<compile_context>
chip_gen: v6e
topology: v6e:2x2x1
jax: 0.10.0
libtpu: 0.0.40
codegen_flags: <defaults>
</compile_context>

<pallas_src>
import functools

import jax
import jax.numpy as jnp
from jax.experimental import pallas as pl
from jax.experimental.pallas import tpu as pltpu

EPS = 1e-5


# ----------------------------------------------------------------------------
# Fused Pallas kernel: 4 chained MXU matmuls + folded-BN affine + activations.
# ----------------------------------------------------------------------------
def _generator_kernel(z_ref, w0_ref, sh0_ref, w1_ref, sh1_ref,
                      w2_ref, sh2_ref, w3_ref, sh3_ref, o_ref):
    # Stage 0: Linear (+ folded BatchNorm) + ReLU.  z is pre-cast to bf16.
    x = jnp.dot(z_ref[...], w0_ref[...],
                preferred_element_type=jnp.float32) + sh0_ref[...]
    x = jnp.maximum(x, 0.0)
    # Stage 1: ConvTranspose2d (block-diag per-pixel matmul) + BN + ReLU.
    x = jnp.dot(x.astype(jnp.bfloat16), w1_ref[...],
                preferred_element_type=jnp.float32) + sh1_ref[...]
    x = jnp.maximum(x, 0.0)
    # Stage 2: ConvTranspose2d + BN + ReLU.
    x = jnp.dot(x.astype(jnp.bfloat16), w2_ref[...],
                preferred_element_type=jnp.float32) + sh2_ref[...]
    x = jnp.maximum(x, 0.0)
    # Stage 3: ConvTranspose2d + tanh (f32 epilogue).
    x = jnp.dot(x.astype(jnp.bfloat16), w3_ref[...],
                preferred_element_type=jnp.float32) + sh3_ref[...]
    o_ref[...] = jnp.tanh(x)


# ----------------------------------------------------------------------------
# Parameters (deterministic synthetic init; shapes match the nn.Module)
# ----------------------------------------------------------------------------
def init_params(key, noise_dim, dim, data_shape):
    c_img, h_img, w_img = data_shape
    init_dim = dim * h_img * w_img // 16
    ks = jax.random.split(key, 11)
    s = 0.05

    def bn_params(k, c):
        k1, k2, k3, k4 = jax.random.split(k, 4)
        return dict(
            gamma=1.0 + 0.1 * jax.random.normal(k1, (c,), jnp.float32),
            beta=0.1 * jax.random.normal(k2, (c,), jnp.float32),
            mean=0.1 * jax.random.normal(k3, (c,), jnp.float32),
            var=0.9 + 0.1 * jnp.abs(jax.random.normal(k4, (c,), jnp.float32)),
        )

    return {
        "lin_w": s * jax.random.normal(ks[0], (init_dim, noise_dim), jnp.float32),
        "lin_b": s * jax.random.normal(ks[1], (init_dim,), jnp.float32),
        "bn0": bn_params(ks[2], init_dim),
        "w1": s * jax.random.normal(ks[3], (4 * dim, 2 * dim, 2, 2), jnp.float32),
        "b1": s * jax.random.normal(ks[4], (2 * dim,), jnp.float32),
        "bn1": bn_params(ks[5], 2 * dim),
        "w2": s * jax.random.normal(ks[6], (2 * dim, dim, 2, 2), jnp.float32),
        "b2": s * jax.random.normal(ks[7], (dim,), jnp.float32),
        "bn2": bn_params(ks[8], dim),
        "w3": s * jax.random.normal(ks[9], (dim, c_img, 2, 2), jnp.float32),
        "b3": s * jax.random.normal(ks[10], (c_img,), jnp.float32),
    }


def _bn_fold(bn):
    scale = bn["gamma"] / jnp.sqrt(bn["var"] + EPS)
    shift = bn["beta"] - bn["mean"] * scale
    return scale, shift


def _round_up(x, m):
    return (x + m - 1) // m * m


# ----------------------------------------------------------------------------
# Generation-aware hardware queries (all best-effort, safe fallbacks).
# ----------------------------------------------------------------------------
def _device_kind():
    try:
        return jax.devices()[0].device_kind.lower()
    except Exception:
        return ""


def _vmem_capacity_bytes():
    try:
        return int(pltpu.get_tpu_info().vmem_capacity_bytes)
    except Exception:
        pass
    kind = _device_kind()
    if "v7" in kind:
        return 64 * 1024 * 1024
    return 128 * 1024 * 1024


def _num_tensorcores():
    kind = _device_kind()
    if ("v7" in kind) or ("v4" in kind) or ("v5p" in kind):
        return 2
    return 1


def _is_v5e():
    kind = _device_kind()
    return ("v5 lite" in kind) or ("v5e" in kind) or ("v5lite" in kind)


def _choose_group_size(P, C0, dim, c_img, K_pad, tb, want_split, vmem_budget):
    """Pick the spatial group size G (divisor of P) under a VMEM budget.

    Prefer a >=2-way split only when a second TensorCore needs its own program;
    otherwise the largest G (fewest grid steps, widest lane-dense output).
    """
    def widths(G):
        return (G * C0, G * 4 * (2 * dim), G * 16 * dim, G * 64 * c_img)

    def lane_ok(G):
        # Output block last-dim must be a multiple of 128 unless it is the full width.
        return (P // G == 1) or (widths(G)[3] % 128 == 0)

    def vmem_est(G):
        n0, n1, n2, n3 = widths(G)
        w_bytes = 2 * (K_pad * n0 + n0 * n1 + n1 * n2 + n2 * n3)   # bf16 weights
        s_bytes = 4 * (n0 + n1 + n2 + n3)                          # f32 shifts
        act_bytes = 4 * tb * (n0 + n1 + n2 + n3)                   # f32 intermediates
        io_bytes = 2 * (2 * tb * K_pad + 4 * tb * n3)              # dbl-buffered z/out tiles
        return 2 * (w_bytes + s_bytes) + act_bytes + io_bytes      # conservative (dbl-buf)

    divisors = [d for d in range(P, 0, -1) if P % d == 0]
    ordered = ([g for g in divisors if P // g >= 2] + divisors) if want_split else divisors
    for require_budget in (True, False):
        for G in ordered:
            if not lane_ok(G):
                continue
            if require_budget and vmem_est(G) > vmem_budget:
                continue
            return G, P // G
    return P, 1


def _deconv_block(w, b, scale, shift, n_blocks):
    # ConvTranspose2d(Cin, Cout, 2, stride=2) -> per-pixel matmul, columns ordered
    # (kh, kw, cout); BN scale folded into the columns; expanded block-diagonally
    # over the n_blocks pixels currently alive in a group.
    # TODO(synk): for large dim/data_shape, fold the pixel-tree into the M (batch)
    #             axis of stages 2-3 instead of this block-diagonal kron
    #             (useful/total MXU FLOPs = 1/n_blocks here).
    cin, cout = w.shape[0], w.shape[1]
    wm = (w * scale[None, :, None, None]).transpose(0, 2, 3, 1).reshape(cin, 4 * cout)
    shv = jnp.tile(scale * b + shift, 4)
    wb = jnp.kron(jnp.eye(n_blocks, dtype=w.dtype), wm).astype(jnp.bfloat16)
    shb = jnp.tile(shv, n_blocks).reshape(1, -1).astype(jnp.float32)
    return wb, shb


def _spec(shape, index_map, single_buffer):
    if single_buffer:
        # Grid-invariant block: the second pipeline buffer is pure VMEM waste.
        return pl.BlockSpec(shape, index_map, pipeline_mode=pl.Buffered(1))
    return pl.BlockSpec(shape, index_map)


# ----------------------------------------------------------------------------
# Generator forward: one fused pallas_call + constant weight prep.
# ----------------------------------------------------------------------------
def generator_forward(z, p, dim, data_shape, single_buffer_weights=True):
    B, noise_dim = z.shape
    c_img, H, W = data_shape
    H0, W0 = H // 8, W // 8
    P = H0 * W0                 # number of initial spatial positions
    C0 = 4 * dim                # channels per initial spatial position

    # ---- generation-aware sizing -------------------------------------------
    vmem_phys = _vmem_capacity_bytes()
    vmem_limit = max(32 * 1024 * 1024, min(int(0.75 * vmem_phys), 96 * 1024 * 1024))
    num_tc = _num_tensorcores()
    tb_cap = 128 if _is_v5e() else 256

    # Batch tile: multiple of 16 (full bf16 sublane packing), up to tb_cap.
    tb = min(tb_cap, _round_up(B, 16))
    B_pad = _round_up(B, tb)
    batch_steps = B_pad // tb

    # Stage-0 contraction dim padded to a full lane width.
    K_pad = _round_up(noise_dim, 128)

    # Spatial group size: split only when a second TensorCore needs its own
    # program (v7x / megacore); otherwise a single group = single grid step.
    want_split = (num_tc >= 2) and (batch_steps < num_tc) and (P >= 2)
    G, n_groups = _choose_group_size(P, C0, dim, c_img, K_pad, tb,
                                     want_split, int(0.45 * vmem_limit))

    # ---- parameter prep (outside the kernel, plain XLA) ---------------------
    s0, t0 = _bn_fold(p["bn0"])
    s1, t1 = _bn_fold(p["bn1"])
    s2, t2 = _bn_fold(p["bn2"])

    # Stage 0: fold BN scale into the linear weight columns, permute the output
    # columns from (c, h0, w0) -> (h0, w0, c), zero-pad K to K_pad, split groups.
    w0_full = p["lin_w"].T * s0[None, :]                             # (noise_dim, init_dim)
    sh0_full = s0 * p["lin_b"] + t0                                  # (init_dim,)
    w0_perm = w0_full.reshape(noise_dim, C0, P).transpose(0, 2, 1)   # (noise_dim, P, C0)
    sh0_perm = sh0_full.reshape(C0, P).T                             # (P, C0)
    N0 = G * C0
    w0_pad = jnp.zeros((K_pad, P, C0), jnp.float32).at[:noise_dim].set(w0_perm)
    w0g = w0_pad.reshape(K_pad, n_groups, N0).transpose(1, 0, 2).astype(jnp.bfloat16)
    sh0g = sh0_perm.reshape(n_groups, 1, N0).astype(jnp.float32)

    w1g, sh1g = _deconv_block(p["w1"], p["b1"], s1, t1, G)           # (N0, N1)
    w2g, sh2g = _deconv_block(p["w2"], p["b2"], s2, t2, G * 4)       # (N1, N2)
    w3g, sh3g = _deconv_block(p["w3"], p["b3"],
                              jnp.ones((c_img,), jnp.float32),
                              jnp.zeros((c_img,), jnp.float32), G * 16)  # (N2, N3)
    N1, N2, N3 = w1g.shape[1], w2g.shape[1], w3g.shape[1]

    # Fold the intra-patch pixel shuffle into the stage-3 column order so the
    # deferred wrapper transpose moves 8-element contiguous runs:
    #   old columns: (p, kh1, kw1, kh2, kw2, kh3, kw3, c)
    #   new columns: (p, c, kh1, kh2, kh3, kw1, kw2, kw3)
    perm = jnp.arange(N3).reshape(G, 2, 2, 2, 2, 2, 2, c_img)
    perm = perm.transpose(0, 7, 1, 3, 5, 2, 4, 6).reshape(-1)
    w3g = w3g[:, perm]
    sh3g = sh3g[:, perm]

    # ---- batch padding; z pre-cast to bf16 (halves its DMA bytes) -----------
    z_pad = jnp.zeros((B_pad, K_pad), jnp.bfloat16)
    z_pad = z_pad.at[:B, :noise_dim].set(z.astype(jnp.bfloat16))

    grid = (batch_steps, n_groups)
    inv = bool(single_buffer_weights)
    inv0 = inv and (n_groups == 1)

    out_flat = pl.pallas_call(
        _generator_kernel,
        out_shape=jax.ShapeDtypeStruct((B_pad, n_groups * N3), jnp.float32),
        grid=grid,
        in_specs=[
            pl.BlockSpec((tb, K_pad), lambda bi, g: (bi, 0)),
            _spec((None, K_pad, N0), lambda bi, g: (g, 0, 0), inv0),
            _spec((None, 1, N0), lambda bi, g: (g, 0, 0), inv0),
            _spec((N0, N1), lambda bi, g: (0, 0), inv),
            _spec((1, N1), lambda bi, g: (0, 0), inv),
            _spec((N1, N2), lambda bi, g: (0, 0), inv),
            _spec((1, N2), lambda bi, g: (0, 0), inv),
            _spec((N2, N3), lambda bi, g: (0, 0), inv),
            _spec((1, N3), lambda bi, g: (0, 0), inv),
        ],
        out_specs=pl.BlockSpec((tb, N3), lambda bi, g: (bi, g)),
        compiler_params=pltpu.CompilerParams(
            dimension_semantics=("parallel", "parallel"),
            vmem_limit_bytes=vmem_limit,
        ),
    )(z_pad, w0g, sh0g, w1g, sh1g, w2g, sh2g, w3g, sh3g)

    # ---- deferred pixel shuffle: columns are (h0, w0, c, kh1, kh2, kh3, kw1, kw2, kw3)
    # output pixel is (8*h0+4*kh1+2*kh2+kh3, 8*w0+4*kw1+2*kw2+kw3); the 8-long
    # (kw1, kw2, kw3) runs stay contiguous, so this is a strided copy, not a gather.
    out = out_flat[:B].reshape(B, H0, W0, c_img, 2, 2, 2, 2, 2, 2)
    out = out.transpose(0, 3, 1, 4, 5, 6, 2, 7, 8, 9)
    return out.reshape(B, c_img, H, W)


# ----------------------------------------------------------------------------
# Pure-JAX reference (independent einsum-based deconv) for correctness check
# ----------------------------------------------------------------------------
def reference_forward(z, p, dim, data_shape):
    B = z.shape[0]
    c_img, h_img, w_img = data_shape
    H0, W0 = h_img // 8, w_img // 8

    def bn_nchw(x, bn):
        g, be, m, v = bn["gamma"], bn["beta"], bn["mean"], bn["var"]
        inv = 1.0 / jnp.sqrt(v + EPS)
        return (x - m[None, :, None, None]) * (g * inv)[None, :, None, None] \
            + be[None, :, None, None]

    def deconv(x, w, b):  # x: (B,Cin,H,W), w: (Cin,Cout,2,2)
        y = jnp.einsum("bchw,cokl->bohwkl", x, w)
        Bq, Co, Hh, Ww, _, _ = y.shape
        y = y.transpose(0, 1, 2, 4, 3, 5).reshape(Bq, Co, 2 * Hh, 2 * Ww)
        return y + b[None, :, None, None]

    x = z @ p["lin_w"].T + p["lin_b"]
    x = x[:, :, None, None]
    x = jnp.maximum(bn_nchw(x, p["bn0"]), 0.0)
    x = x.reshape(B, 4 * dim, H0, W0)
    x = jnp.maximum(bn_nchw(deconv(x, p["w1"], p["b1"]), p["bn1"]), 0.0)
    x = jnp.maximum(bn_nchw(deconv(x, p["w2"], p["b2"]), p["bn2"]), 0.0)
    x = jnp.tanh(deconv(x, p["w3"], p["b3"]))
    return x


if __name__ == "__main__":
    B = 2
    noise_dim = 32
    dim = 16
    data_shape = (3, 16, 16)   # init_dim = 16*16*16//16 = 256 = 4*dim*(16//8)^2

    key = jax.random.PRNGKey(0)
    kp, kz = jax.random.split(key)
    params = init_params(kp, noise_dim, dim, data_shape)
    z = jax.random.normal(kz, (B, noise_dim), jnp.float32)

    def _run(single_buffer_weights):
        fwd = jax.jit(functools.partial(
            generator_forward, dim=dim, data_shape=data_shape,
            single_buffer_weights=single_buffer_weights))
        return jax.block_until_ready(fwd(z, params))

    try:
        out = _run(True)       # single-buffered grid-invariant weights (pl.Buffered(1))
    except Exception:
        out = _run(False)      # safe fallback: default double buffering

    assert out.shape == (B,) + tuple(data_shape), out.shape

    ref = reference_forward(z, params, dim, data_shape)
    max_err = float(jnp.max(jnp.abs(out - ref)))
    # bf16 MXU operands with f32 accumulation + f32 epilogue: a few e-3 expected.
    assert max_err < 2e-2, f"max error {max_err}"

    print("KERNEL_OK")
</pallas_src>

<mosaic_0001>
module attributes {stable_mosaic.version = 11 : i64} {
  func.func @_generator_kernel(%arg0: i32, %arg1: i32, %arg2: memref<16x128xbf16, #tpu.memory_space<vmem>>, %arg3: memref<1x128x256xbf16, #tpu.memory_space<vmem>>, %arg4: memref<1x1x256xf32, #tpu.memory_space<vmem>>, %arg5: memref<256x512xbf16, #tpu.memory_space<vmem>>, %arg6: memref<1x512xf32, #tpu.memory_space<vmem>>, %arg7: memref<512x1024xbf16, #tpu.memory_space<vmem>>, %arg8: memref<1x1024xf32, #tpu.memory_space<vmem>>, %arg9: memref<1024x768xbf16, #tpu.memory_space<vmem>>, %arg10: memref<1x768xf32, #tpu.memory_space<vmem>>, %arg11: memref<16x768xf32, #tpu.memory_space<vmem>>) attributes {dimension_semantics = [#tpu.dimension_semantics<parallel>, #tpu.dimension_semantics<parallel>], iteration_bounds = array<i64: 1, 1>, scalar_prefetch = 0 : i64, scratch_operands = 0 : i64, tpu.core_type = #tpu.core_type<tc>, window_params = [{transform_indices = @transform_0, window_bounds = array<i64: 16, 128>}, {pipeline_mode = #tpu.pipeline_mode<synchronous>, transform_indices = @transform_1, window_bounds = array<i64: 1, 128, 256>}, {pipeline_mode = #tpu.pipeline_mode<synchronous>, transform_indices = @transform_2, window_bounds = array<i64: 1, 1, 256>}, {pipeline_mode = #tpu.pipeline_mode<synchronous>, transform_indices = @transform_3, window_bounds = array<i64: 256, 512>}, {pipeline_mode = #tpu.pipeline_mode<synchronous>, transform_indices = @transform_4, window_bounds = array<i64: 1, 512>}, {pipeline_mode = #tpu.pipeline_mode<synchronous>, transform_indices = @transform_5, window_bounds = array<i64: 512, 1024>}, {pipeline_mode = #tpu.pipeline_mode<synchronous>, transform_indices = @transform_6, window_bounds = array<i64: 1, 1024>}, {pipeline_mode = #tpu.pipeline_mode<synchronous>, transform_indices = @transform_7, window_bounds = array<i64: 1024, 768>}, {pipeline_mode = #tpu.pipeline_mode<synchronous>, transform_indices = @transform_8, window_bounds = array<i64: 1, 768>}, {transform_indices = @transform_9, window_bounds = array<i64: 16, 768>}]} {
    %c0 = arith.constant 0 : index
    %c0_0 = arith.constant 0 : index
    %0 = vector.load %arg2[%c0, %c0_0] : memref<16x128xbf16, #tpu.memory_space<vmem>>, vector<16x128xbf16>
    %c0_1 = arith.constant 0 : index
    %c0_2 = arith.constant 0 : index
    %c0_3 = arith.constant 0 : index
    %1 = vector.load %arg3[%c0_1, %c0_2, %c0_3] : memref<1x128x256xbf16, #tpu.memory_space<vmem>>, vector<1x128x256xbf16>
    %2 = vector.shape_cast %1 : vector<1x128x256xbf16> to vector<128x256xbf16>
    %cst = arith.constant dense<0.000000e+00> : vector<16x256xf32>
    %3 = tpu.matmul %0, %2, %cst {dimension_numbers = #tpu.dot_dimension_numbers<[1], [0], [0], [1], [0, 0, 1, 1], [], []>} : vector<16x128xbf16>, vector<128x256xbf16>, vector<16x256xf32> -> vector<16x256xf32>
    %c0_4 = arith.constant 0 : index
    %c0_5 = arith.constant 0 : index
    %c0_6 = arith.constant 0 : index
    %4 = vector.load %arg4[%c0_4, %c0_5, %c0_6] : memref<1x1x256xf32, #tpu.memory_space<vmem>>, vector<1x1x256xf32>
    %5 = vector.shape_cast %4 : vector<1x1x256xf32> to vector<1x256xf32>
    %6 = vector.broadcast %5 : vector<1x256xf32> to vector<16x256xf32>
    %7 = arith.addf %3, %6 : vector<16x256xf32>
    %cst_7 = arith.constant 0.000000e+00 : f32
    %8 = vector.broadcast %cst_7 : f32 to vector<16x256xf32>
    %9 = arith.maximumf %7, %8 : vector<16x256xf32>
    %10 = arith.truncf %9 : vector<16x256xf32> to vector<16x256xbf16>
    %c0_8 = arith.constant 0 : index
    %c0_9 = arith.constant 0 : index
    %11 = vector.load %arg5[%c0_8, %c0_9] : memref<256x512xbf16, #tpu.memory_space<vmem>>, vector<256x512xbf16>
    %cst_10 = arith.constant dense<0.000000e+00> : vector<16x512xf32>
    %12 = tpu.matmul %10, %11, %cst_10 {dimension_numbers = #tpu.dot_dimension_numbers<[1], [0], [0], [1], [0, 0, 1, 1], [], []>} : vector<16x256xbf16>, vector<256x512xbf16>, vector<16x512xf32> -> vector<16x512xf32>
    %c0_11 = arith.constant 0 : index
    %c0_12 = arith.constant 0 : index
    %13 = vector.load %arg6[%c0_11, %c0_12] : memref<1x512xf32, #tpu.memory_space<vmem>>, vector<1x512xf32>
    %14 = vector.broadcast %13 : vector<1x512xf32> to vector<16x512xf32>
    %15 = arith.addf %12, %14 : vector<16x512xf32>
    %cst_13 = arith.constant 0.000000e+00 : f32
    %16 = vector.broadcast %cst_13 : f32 to vector<16x512xf32>
    %17 = arith.maximumf %15, %16 : vector<16x512xf32>
    %18 = arith.truncf %17 : vector<16x512xf32> to vector<16x512xbf16>
    %c0_14 = arith.constant 0 : index
    %c0_15 = arith.constant 0 : index
    %19 = vector.load %arg7[%c0_14, %c0_15] : memref<512x1024xbf16, #tpu.memory_space<vmem>>, vector<512x1024xbf16>
    %cst_16 = arith.constant dense<0.000000e+00> : vector<16x1024xf32>
    %20 = tpu.matmul %18, %19, %cst_16 {dimension_numbers = #tpu.dot_dimension_numbers<[1], [0], [0], [1], [0, 0, 1, 1], [], []>} : vector<16x512xbf16>, vector<512x1024xbf16>, vector<16x1024xf32> -> vector<16x1024xf32>
    %c0_17 = arith.constant 0 : index
    %c0_18 = arith.constant 0 : index
    %21 = vector.load %arg8[%c0_17, %c0_18] : memref<1x1024xf32, #tpu.memory_space<vmem>>, vector<1x1024xf32>
    %22 = vector.broadcast %21 : vector<1x1024xf32> to vector<16x1024xf32>
    %23 = arith.addf %20, %22 : vector<16x1024xf32>
    %cst_19 = arith.constant 0.000000e+00 : f32
    %24 = vector.broadcast %cst_19 : f32 to vector<16x1024xf32>
    %25 = arith.maximumf %23, %24 : vector<16x1024xf32>
    %26 = arith.truncf %25 : vector<16x1024xf32> to vector<16x1024xbf16>
    %c0_20 = arith.constant 0 : index
    %c0_21 = arith.constant 0 : index
    %27 = vector.load %arg9[%c0_20, %c0_21] : memref<1024x768xbf16, #tpu.memory_space<vmem>>, vector<1024x768xbf16>
    %cst_22 = arith.constant dense<0.000000e+00> : vector<16x768xf32>
    %28 = tpu.matmul %26, %27, %cst_22 {dimension_numbers = #tpu.dot_dimension_numbers<[1], [0], [0], [1], [0, 0, 1, 1], [], []>} : vector<16x1024xbf16>, vector<1024x768xbf16>, vector<16x768xf32> -> vector<16x768xf32>
    %c0_23 = arith.constant 0 : index
    %c0_24 = arith.constant 0 : index
    %29 = vector.load %arg10[%c0_23, %c0_24] : memref<1x768xf32, #tpu.memory_space<vmem>>, vector<1x768xf32>
    %30 = vector.broadcast %29 : vector<1x768xf32> to vector<16x768xf32>
    %31 = arith.addf %28, %30 : vector<16x768xf32>
    %32 = math.tanh %31 : vector<16x768xf32>
    %c0_25 = arith.constant 0 : index
    %c0_26 = arith.constant 0 : index
    %33 = vector.load %arg11[%c0_25, %c0_26] : memref<16x768xf32, #tpu.memory_space<vmem>>, vector<16x768xf32>
    tpu.vector_store %arg11[%c0_25, %c0_26], %32 {strides = array<i32>} : memref<16x768xf32, #tpu.memory_space<vmem>>, vector<16x768xf32>,
    return
  }
  func.func @transform_0(%arg0: i32, %arg1: i32) -> (i32, i32) {
    %c0_i32 = arith.constant 0 : i32
    %c0_i32_0 = arith.constant 0 : i32
    return %arg0, %c0_i32 : i32, i32
  }
  func.func @transform_1(%arg0: i32, %arg1: i32) -> (i32, i32, i32) {
    %c0_i32 = arith.constant 0 : i32
    %c0_i32_0 = arith.constant 0 : i32
    %c0_i32_1 = arith.constant 0 : i32
    return %arg1, %c0_i32, %c0_i32_0 : i32, i32, i32
  }
  func.func @transform_2(%arg0: i32, %arg1: i32) -> (i32, i32, i32) {
    %c0_i32 = arith.constant 0 : i32
    %c0_i32_0 = arith.constant 0 : i32
    %c0_i32_1 = arith.constant 0 : i32
    return %arg1, %c0_i32, %c0_i32_0 : i32, i32, i32
  }
  func.func @transform_3(%arg0: i32, %arg1: i32) -> (i32, i32) {
    %c0_i32 = arith.constant 0 : i32
    %c0_i32_0 = arith.constant 0 : i32
    %c0_i32_1 = arith.constant 0 : i32
    return %c0_i32, %c0_i32_0 : i32, i32
  }
  func.func @transform_4(%arg0: i32, %arg1: i32) -> (i32, i32) {
    %c0_i32 = arith.constant 0 : i32
    %c0_i32_0 = arith.constant 0 : i32
    %c0_i32_1 = arith.constant 0 : i32
    return %c0_i32, %c0_i32_0 : i32, i32
  }
  func.func @transform_5(%arg0: i32, %arg1: i32) -> (i32, i32) {
    %c0_i32 = arith.constant 0 : i32
    %c0_i32_0 = arith.constant 0 : i32
    %c0_i32_1 = arith.constant 0 : i32
    return %c0_i32, %c0_i32_0 : i32, i32
  }
  func.func @transform_6(%arg0: i32, %arg1: i32) -> (i32, i32) {
    %c0_i32 = arith.constant 0 : i32
    %c0_i32_0 = arith.constant 0 : i32
    %c0_i32_1 = arith.constant 0 : i32
    return %c0_i32, %c0_i32_0 : i32, i32
  }
  func.func @transform_7(%arg0: i32, %arg1: i32) -> (i32, i32) {
    %c0_i32 = arith.constant 0 : i32
    %c0_i32_0 = arith.constant 0 : i32
    %c0_i32_1 = arith.constant 0 : i32
    return %c0_i32, %c0_i32_0 : i32, i32
  }
  func.func @transform_8(%arg0: i32, %arg1: i32) -> (i32, i32) {
    %c0_i32 = arith.constant 0 : i32
    %c0_i32_0 = arith.constant 0 : i32
    %c0_i32_1 = arith.constant 0 : i32
    return %c0_i32, %c0_i32_0 : i32, i32
  }
  func.func @transform_9(%arg0: i32, %arg1: i32) -> (i32, i32) {
    %c0_i32 = arith.constant 0 : i32
    return %arg0, %arg1 : i32, i32
  }
}

module attributes {stable_mosaic.version = 11 : i64} {
  func.func @_generator_kernel(%arg0: i32, %arg1: i32, %arg2: memref<16x128xbf16, #tpu.memory_space<vmem>>, %arg3: memref<1x128x256xbf16, #tpu.memory_space<vmem>>, %arg4: memref<1x1x256xf32, #tpu.memory_space<vmem>>, %arg5: memref<256x512xbf16, #tpu.memory_space<vmem>>, %arg6: memref<1x512xf32, #tpu.memory_space<vmem>>, %arg7: memref<512x1024xbf16, #tpu.memory_space<vmem>>, %arg8: memref<1x1024xf32, #tpu.memory_space<vmem>>, %arg9: memref<1024x768xbf16, #tpu.memory_space<vmem>>, %arg10: memref<1x768xf32, #tpu.memory_space<vmem>>, %arg11: memref<16x768xf32, #tpu.memory_space<vmem>>) attributes {dimension_semantics = [#tpu.dimension_semantics<parallel>, #tpu.dimension_semantics<parallel>], iteration_bounds = array<i64: 1, 1>, scalar_prefetch = 0 : i64, scratch_operands = 0 : i64, tpu.core_type = #tpu.core_type<tc>, window_params = [{transform_indices = @transform_0, window_bounds = array<i64: 16, 128>}, {transform_indices = @transform_1, window_bounds = array<i64: 1, 128, 256>}, {transform_indices = @transform_2, window_bounds = array<i64: 1, 1, 256>}, {pipeline_mode = #tpu.pipeline_mode<synchronous>, transform_indices = @transform_3, window_bounds = array<i64: 256, 512>}, {pipeline_mode = #tpu.pipeline_mode<synchronous>, transform_indices = @transform_4, window_bounds = array<i64: 1, 512>}, {pipeline_mode = #tpu.pipeline_mode<synchronous>, transform_indices = @transform_5, window_bounds = array<i64: 512, 1024>}, {pipeline_mode = #tpu.pipeline_mode<synchronous>, transform_indices = @transform_6, window_bounds = array<i64: 1, 1024>}, {pipeline_mode = #tpu.pipeline_mode<synchronous>, transform_indices = @transform_7, window_bounds = array<i64: 1024, 768>}, {pipeline_mode = #tpu.pipeline_mode<synchronous>, transform_indices = @transform_8, window_bounds = array<i64: 1, 768>}, {transform_indices = @transform_9, window_bounds = array<i64: 16, 768>}]} {
    %c0 = arith.constant 0 : index
    %c0_0 = arith.constant 0 : index
    %0 = vector.load %arg2[%c0, %c0_0] : memref<16x128xbf16, #tpu.memory_space<vmem>>, vector<16x128xbf16>
    %c0_1 = arith.constant 0 : index
    %c0_2 = arith.constant 0 : index
    %c0_3 = arith.constant 0 : index
    %1 = vector.load %arg3[%c0_1, %c0_2, %c0_3] : memref<1x128x256xbf16, #tpu.memory_space<vmem>>, vector<1x128x256xbf16>
    %2 = vector.shape_cast %1 : vector<1x128x256xbf16> to vector<128x256xbf16>
    %cst = arith.constant dense<0.000000e+00> : vector<16x256xf32>
    %3 = tpu.matmul %0, %2, %cst {dimension_numbers = #tpu.dot_dimension_numbers<[1], [0], [0], [1], [0, 0, 1, 1], [], []>} : vector<16x128xbf16>, vector<128x256xbf16>, vector<16x256xf32> -> vector<16x256xf32>
    %c0_4 = arith.constant 0 : index
    %c0_5 = arith.constant 0 : index
    %c0_6 = arith.constant 0 : index
    %4 = vector.load %arg4[%c0_4, %c0_5, %c0_6] : memref<1x1x256xf32, #tpu.memory_space<vmem>>, vector<1x1x256xf32>
    %5 = vector.shape_cast %4 : vector<1x1x256xf32> to vector<1x256xf32>
    %6 = vector.broadcast %5 : vector<1x256xf32> to vector<16x256xf32>
    %7 = arith.addf %3, %6 : vector<16x256xf32>
    %cst_7 = arith.constant 0.000000e+00 : f32
    %8 = vector.broadcast %cst_7 : f32 to vector<16x256xf32>
    %9 = arith.maximumf %7, %8 : vector<16x256xf32>
    %10 = arith.truncf %9 : vector<16x256xf32> to vector<16x256xbf16>
    %c0_8 = arith.constant 0 : index
    %c0_9 = arith.constant 0 : index
    %11 = vector.load %arg5[%c0_8, %c0_9] : memref<256x512xbf16, #tpu.memory_space<vmem>>, vector<256x512xbf16>
    %cst_10 = arith.constant dense<0.000000e+00> : vector<16x512xf32>
    %12 = tpu.matmul %10, %11, %cst_10 {dimension_numbers = #tpu.dot_dimension_numbers<[1], [0], [0], [1], [0, 0, 1, 1], [], []>} : vector<16x256xbf16>, vector<256x512xbf16>, vector<16x512xf32> -> vector<16x512xf32>
    %c0_11 = arith.constant 0 : index
    %c0_12 = arith.constant 0 : index
    %13 = vector.load %arg6[%c0_11, %c0_12] : memref<1x512xf32, #tpu.memory_space<vmem>>, vector<1x512xf32>
    %14 = vector.broadcast %13 : vector<1x512xf32> to vector<16x512xf32>
    %15 = arith.addf %12, %14 : vector<16x512xf32>
    %cst_13 = arith.constant 0.000000e+00 : f32
    %16 = vector.broadcast %cst_13 : f32 to vector<16x512xf32>
    %17 = arith.maximumf %15, %16 : vector<16x512xf32>
    %18 = arith.truncf %17 : vector<16x512xf32> to vector<16x512xbf16>
    %c0_14 = arith.constant 0 : index
    %c0_15 = arith.constant 0 : index
    %19 = vector.load %arg7[%c0_14, %c0_15] : memref<512x1024xbf16, #tpu.memory_space<vmem>>, vector<512x1024xbf16>
    %cst_16 = arith.constant dense<0.000000e+00> : vector<16x1024xf32>
    %20 = tpu.matmul %18, %19, %cst_16 {dimension_numbers = #tpu.dot_dimension_numbers<[1], [0], [0], [1], [0, 0, 1, 1], [], []>} : vector<16x512xbf16>, vector<512x1024xbf16>, vector<16x1024xf32> -> vector<16x1024xf32>
    %c0_17 = arith.constant 0 : index
    %c0_18 = arith.constant 0 : index
    %21 = vector.load %arg8[%c0_17, %c0_18] : memref<1x1024xf32, #tpu.memory_space<vmem>>, vector<1x1024xf32>
    %22 = vector.broadcast %21 : vector<1x1024xf32> to vector<16x1024xf32>
    %23 = arith.addf %20, %22 : vector<16x1024xf32>
    %cst_19 = arith.constant 0.000000e+00 : f32
    %24 = vector.broadcast %cst_19 : f32 to vector<16x1024xf32>
    %25 = arith.maximumf %23, %24 : vector<16x1024xf32>
    %26 = arith.truncf %25 : vector<16x1024xf32> to vector<16x1024xbf16>
    %c0_20 = arith.constant 0 : index
    %c0_21 = arith.constant 0 : index
    %27 = vector.load %arg9[%c0_20, %c0_21] : memref<1024x768xbf16, #tpu.memory_space<vmem>>, vector<1024x768xbf16>
    %cst_22 = arith.constant dense<0.000000e+00> : vector<16x768xf32>
    %28 = tpu.matmul %26, %27, %cst_22 {dimension_numbers = #tpu.dot_dimension_numbers<[1], [0], [0], [1], [0, 0, 1, 1], [], []>} : vector<16x1024xbf16>, vector<1024x768xbf16>, vector<16x768xf32> -> vector<16x768xf32>
    %c0_23 = arith.constant 0 : index
    %c0_24 = arith.constant 0 : index
    %29 = vector.load %arg10[%c0_23, %c0_24] : memref<1x768xf32, #tpu.memory_space<vmem>>, vector<1x768xf32>
    %30 = vector.broadcast %29 : vector<1x768xf32> to vector<16x768xf32>
    %31 = arith.addf %28, %30 : vector<16x768xf32>
    %32 = math.tanh %31 : vector<16x768xf32>
    %c0_25 = arith.constant 0 : index
    %c0_26 = arith.constant 0 : index
    %33 = vector.load %arg11[%c0_25, %c0_26] : memref<16x768xf32, #tpu.memory_space<vmem>>, vector<16x768xf32>
    tpu.vector_store %arg11[%c0_25, %c0_26], %32 {strides = array<i32>} : memref<16x768xf32, #tpu.memory_space<vmem>>, vector<16x768xf32>,
    return
  }
  func.func @transform_0(%arg0: i32, %arg1: i32) -> (i32, i32) {
    %c0_i32 = arith.constant 0 : i32
    %c0_i32_0 = arith.constant 0 : i32
    return %arg0, %c0_i32 : i32, i32
  }
  func.func @transform_1(%arg0: i32, %arg1: i32) -> (i32, i32, i32) {
    %c0_i32 = arith.constant 0 : i32
    %c0_i32_0 = arith.constant 0 : i32
    %c0_i32_1 = arith.constant 0 : i32
    return %arg1, %c0_i32, %c0_i32_0 : i32, i32, i32
  }
  func.func @transform_2(%arg0: i32, %arg1: i32) -> (i32, i32, i32) {
    %c0_i32 = arith.constant 0 : i32
    %c0_i32_0 = arith.constant 0 : i32
    %c0_i32_1 = arith.constant 0 : i32
    return %arg1, %c0_i32, %c0_i32_0 : i32, i32, i32
  }
  func.func @transform_3(%arg0: i32, %arg1: i32) -> (i32, i32) {
    %c0_i32 = arith.constant 0 : i32
    %c0_i32_0 = arith.constant 0 : i32
    %c0_i32_1 = arith.constant 0 : i32
    return %c0_i32, %c0_i32_0 : i32, i32
  }
  func.func @transform_4(%arg0: i32, %arg1: i32) -> (i32, i32) {
    %c0_i32 = arith.constant 0 : i32
    %c0_i32_0 = arith.constant 0 : i32
    %c0_i32_1 = arith.constant 0 : i32
    return %c0_i32, %c0_i32_0 : i32, i32
  }
  func.func @transform_5(%arg0: i32, %arg1: i32) -> (i32, i32) {
    %c0_i32 = arith.constant 0 : i32
    %c0_i32_0 = arith.constant 0 : i32
    %c0_i32_1 = arith.constant 0 : i32
    return %c0_i32, %c0_i32_0 : i32, i32
  }
  func.func @transform_6(%arg0: i32, %arg1: i32) -> (i32, i32) {
    %c0_i32 = arith.constant 0 : i32
    %c0_i32_0 = arith.constant 0 : i32
    %c0_i32_1 = arith.constant 0 : i32
    return %c0_i32, %c0_i32_0 : i32, i32
  }
  func.func @transform_7(%arg0: i32, %arg1: i32) -> (i32, i32) {
    %c0_i32 = arith.constant 0 : i32
    %c0_i32_0 = arith.constant 0 : i32
    %c0_i32_1 = arith.constant 0 : i32
    return %c0_i32, %c0_i32_0 : i32, i32
  }
  func.func @transform_8(%arg0: i32, %arg1: i32) -> (i32, i32) {
    %c0_i32 = arith.constant 0 : i32
    %c0_i32_0 = arith.constant 0 : i32
    %c0_i32_1 = arith.constant 0 : i32
    return %c0_i32, %c0_i32_0 : i32, i32
  }
  func.func @transform_9(%arg0: i32, %arg1: i32) -> (i32, i32) {
    %c0_i32 = arith.constant 0 : i32
    return %arg0, %arg1 : i32, i32
  }
}

</mosaic_0001>

<bundles_post_ra>
// kernel: mul.18
= control target key start
LH: loop header
LB: loop body
LE: loop exit
PB: predicated region body
PF: predicated region fallthrough
CT: control target
= control target key end

     0   :  { %vm22_vm0 = vcmask 130048   ;;  %s81_s0 = inlined_call_operand.vmem [shape: f32[16,2,2,3], index: 0, kind: input, shape index: {}]   ;;  %s82_s1 = inlined_call_operand.vmem [shape: f32[16,12], index: 1, kind: output, shape index: {}]  }
   0x1   :  { %v41_v0 = vld [vmem:[%s81_s0 + $0xc] sm:$0xf]  ;;  %v42_v1 = vld [vmem:[%s81_s0 + $0x8] sm:$0xf]  ;;  %v43_v2 = vld [vmem:[%s81_s0 + $0x4] sm:$0xf] }
   0x2   :  { %9 = vst [vmem:[#allocation0 + $0x8] sm:$0xf] %v41_v0  ;;  %14 = vst [vmem:[#allocation0 + $0x18] sm:$0xf] %v42_v1  ;;  %v19_v3 = vld [vmem:[%s81_s0] sm:$0xf] }
   0x3   :  { %18 = vst [vmem:[#allocation0] sm:$0xf] %v43_v2  ;;  %20 = vst [vmem:[#allocation0 + $0x10] sm:$0xf] %v19_v3 }
   0x9   :  { %v30_v5 = vld [vmem:[#allocation0 + $0x18] sm:$0x7]   ;;  %v35_v6 = vld [vmem:[#allocation0 + $0x8] sm:$0x7]  }
   0xa   :  { %v25_v4 = vld [vmem:[#allocation0] sm:$0x7]   ;;  %v21_v7 = vld [vmem:[#allocation0 + $0x10] sm:$0x7]   ;;  %45 = vst.msk [vmem:[%s82_s1 + $0x6] sm:$0x7] %vm22_vm0, %v30_v5  }
   0xb   :  { %44 = vst.msk [vmem:[%s82_s1 + $0x3] sm:$0x7] %vm22_vm0, %v25_v4   ;;  %46 = vst.msk [vmem:[%s82_s1 + $0x9] sm:$0x7] %vm22_vm0, %v35_v6  }
   0xc   :  { %23 = vst.msk [vmem:[%s82_s1] sm:$0x7] %vm22_vm0, %v21_v7  }

// kernel: tile.48
= control target key start
LH: loop header
LB: loop body
LE: loop exit
PB: predicated region body
PF: predicated region fallthrough
CT: control target
= control target key end

     0   :  { %s22_s0 = inlined_call_operand.vmem [shape: f32[3], index: 0, kind: input, shape index: {}]   ;;  %s23_s1 = inlined_call_operand.vmem [shape: f32[4,3], index: 1, kind: output, shape index: {}]  }
   0x1   :  { %v4_v0 = vld [vmem:[%s22_s0] ss:$0 sm:$0xff] }
   0x2   :  { %5 = vst [vmem:[%s23_s1] sm:$0xf] %v4_v0 }

// kernel: tile.51
= control target key start
LH: loop header
LB: loop body
LE: loop exit
PB: predicated region body
PF: predicated region fallthrough
CT: control target
= control target key end

     0   :  { %vm8_vm0 = vcmask 23552   ;;  %s40_s8 = smov 3   ;;  %s41_s9 = smov 6   ;;  %vm14_vm1 = vcmask 97352   ;;  %vm20_vm2 = vcmask 72752   ;;  %vm26_vm3 = vcmask 48152   ;;  %s58_s0 = inlined_call_operand.vmem [shape: f32[4,3], index: 0, kind: input, shape index: {}]   ;;  %s59_s1 = inlined_call_operand.vmem [shape: f32[12], index: 1, kind: output, shape index: {}]  }
   0x1   :  { %v5_v0 = vld [vmem:[%s58_s0] sm:$0xf]  ;;  %s39_s0 = smov 9  }
   0x2   :  { %6 = vst [vmem:[#allocation1] sm:$0xf] %v5_v0 }
   0x9   :  { %v11_v1 = vld [vmem:[#allocation1 + $0x3] sm:$0x1]   ;;  %v23_v2 = vld [vmem:[#allocation1 + $0x1] sm:$0x1]   ;;  %v7_v3 = vld [vmem:[#allocation1] sm:$0x1]  }
   0xa   :  { %12 = vrot.lane.b32.xlu0 %v11_v1, %s39_s0  ;;  %24 = vrot.lane.b32.xlu1 %v23_v2, %s40_s8  ;;  %v17_v4 = vld [vmem:[#allocation1 + $0x2] sm:$0x1]   ;;  %9 = vst.msk [vmem:[#allocation0] sm:$0x1] %vm8_vm0, %v7_v3  }
   0xe   :  { %18 = vrot.lane.b32.xlu0 %v17_v4, %s41_s9 }
  0x7c   :  { %v13_v5 = vpop.permute.xlu0 %12   ;;  %v25_v6 = vpop.permute.xlu1 %24  }
  0x7d   :  { %15 = vst.msk [vmem:[#allocation0] sm:$0x1] %vm14_vm1, %v13_v5  }
  0x80   :  { %v19_v7 = vpop.permute.xlu0 %18  }
  0x81   :  { %21 = vst.msk [vmem:[#allocation0] sm:$0x1] %vm20_vm2, %v19_v7  }
  0x82   :  { %27 = vst.msk [vmem:[#allocation0] sm:$0x1] %vm26_vm3, %v25_v6  }
  0x89   :  { %v32_v8 = vld [vmem:[#allocation0] sm:$0x1] }
  0x8a   :  { %35 = vst [vmem:[%s59_s1] sm:$0x1] %v32_v8 }

// kernel: tile.52
= control target key start
LH: loop header
LB: loop body
LE: loop exit
PB: predicated region body
PF: predicated region fallthrough
CT: control target
= control target key end

     0   :  { %s64_s0 = inlined_call_operand.vmem [shape: f32[12], index: 0, kind: input, shape index: {}]   ;;  %s65_s1 = inlined_call_operand.vmem [shape: f32[64,12], index: 1, kind: output, shape index: {}]  }
   0x1   :  { %v4_v0 = vld [vmem:[%s64_s0] ss:$0 sm:$0xff] }
   0x2   :  { %5 = vst [vmem:[%s65_s1] sm:$0xff] %v4_v0  ;;  %20 = vst [vmem:[%s65_s1 + $0x8] sm:$0xff] %v4_v0 }
   0x3   :  { %21 = vst [vmem:[%s65_s1 + $0x10] sm:$0xff] %v4_v0  ;;  %22 = vst [vmem:[%s65_s1 + $0x18] sm:$0xff] %v4_v0 }
   0x4   :  { %23 = vst [vmem:[%s65_s1 + $0x20] sm:$0xff] %v4_v0  ;;  %24 = vst [vmem:[%s65_s1 + $0x28] sm:$0xff] %v4_v0 }
   0x5   :  { %25 = vst [vmem:[%s65_s1 + $0x30] sm:$0xff] %v4_v0  ;;  %26 = vst [vmem:[%s65_s1 + $0x38] sm:$0xff] %v4_v0 }

// kernel: tile.39
= control target key start
LH: loop header
LB: loop body
LE: loop exit
PB: predicated region body
PF: predicated region fallthrough
CT: control target
= control target key end

     0   :  { %s22_s0 = inlined_call_operand.vmem [shape: f32[16], index: 0, kind: input, shape index: {}]   ;;  %s23_s1 = inlined_call_operand.vmem [shape: f32[4,16], index: 1, kind: output, shape index: {}]  }
   0x1   :  { %v4_v0 = vld [vmem:[%s22_s0] ss:$0 sm:$0xff] }
   0x2   :  { %5 = vst [vmem:[%s23_s1] sm:$0xf] %v4_v0 }

// kernel: tile.42
= control target key start
LH: loop header
LB: loop body
LE: loop exit
PB: predicated region body
PF: predicated region fallthrough
CT: control target
= control target key end

     0   :  { %vm8_vm0 = vcmask 130048   ;;  %s40_s8 = smov 16   ;;  %s41_s9 = smov 32   ;;  %vm14_vm1 = vcmask 523648   ;;  %vm20_vm2 = vcmask 392448   ;;  %vm26_vm3 = vcmask 261248   ;;  %s58_s0 = inlined_call_operand.vmem [shape: f32[4,16], index: 0, kind: input, shape index: {}]   ;;  %s59_s1 = inlined_call_operand.vmem [shape: f32[64], index: 1, kind: output, shape index: {}]  }
   0x1   :  { %v5_v0 = vld [vmem:[%s58_s0] sm:$0xf]  ;;  %s39_s0 = smov 48  }
   0x2   :  { %6 = vst [vmem:[#allocation1] sm:$0xf] %v5_v0 }
   0x9   :  { %v11_v1 = vld [vmem:[#allocation1 + $0x3] sm:$0x1]   ;;  %v23_v2 = vld [vmem:[#allocation1 + $0x1] sm:$0x1]   ;;  %v7_v3 = vld [vmem:[#allocation1] sm:$0x1]  }
   0xa   :  { %12 = vrot.lane.b32.xlu0 %v11_v1, %s39_s0  ;;  %24 = vrot.lane.b32.xlu1 %v23_v2, %s40_s8  ;;  %v17_v4 = vld [vmem:[#allocation1 + $0x2] sm:$0x1]   ;;  %9 = vst.msk [vmem:[#allocation0] sm:$0x1] %vm8_vm0, %v7_v3  }
   0xe   :  { %18 = vrot.lane.b32.xlu0 %v17_v4, %s41_s9 }
  0x7c   :  { %v13_v5 = vpop.permute.xlu0 %12   ;;  %v25_v6 = vpop.permute.xlu1 %24  }
  0x7d   :  { %15 = vst.msk [vmem:[#allocation0] sm:$0x1] %vm14_vm1, %v13_v5  }
  0x80   :  { %v19_v7 = vpop.permute.xlu0 %18  }
  0x81   :  { %21 = vst.msk [vmem:[#allocation0] sm:$0x1] %vm20_vm2, %v19_v7  }
  0x82   :  { %27 = vst.msk [vmem:[#allocation0] sm:$0x1] %vm26_vm3, %v25_v6  }
  0x89   :  { %v32_v8 = vld [vmem:[#allocation0] sm:$0x1] }
  0x8a   :  { %35 = vst [vmem:[%s59_s1] sm:$0x1] %v32_v8 }

// kernel: tile.43
= control target key start
LH: loop header
LB: loop body
LE: loop exit
PB: predicated region body
PF: predicated region fallthrough
CT: control target
= control target key end

     0   :  { %s28_s0 = inlined_call_operand.vmem [shape: f32[64], index: 0, kind: input, shape index: {}]   ;;  %s29_s1 = inlined_call_operand.vmem [shape: f32[16,64], index: 1, kind: output, shape index: {}]  }
   0x1   :  { %v4_v0 = vld [vmem:[%s28_s0] ss:$0 sm:$0xff] }
   0x2   :  { %5 = vst [vmem:[%s29_s1] sm:$0xff] %v4_v0  ;;  %8 = vst [vmem:[%s29_s1 + $0x8] sm:$0xff] %v4_v0 }

// kernel: tile.44
= control target key start
LH: loop header
LB: loop body
LE: loop exit
PB: predicated region body
PF: predicated region fallthrough
CT: control target
= control target key end

     0   :  { %vm3_vm0 = vcmask 523264   ;;  %vm10_vm1 = vcmask 1048064   ;;  %s125_s0 = inlined_call_operand.vmem [shape: f32[16,64], index: 0, kind: input, shape index: {}]   ;;  %s126_s1 = inlined_call_operand.vmem [shape: f32[1,1024], index: 1, kind: output, shape index: {}]  }
   0x1   :  { %v75_v0 = vld [vmem:[%s125_s0 + $0x1] ss:$2 sm:$0xff]   ;;  %v2_v1 = vld [vmem:[%s125_s0] ss:$2 sm:$0xff]   ;;  %s84_s0 = smov 64  }
   0x2   :  { %8 = vrot.lane.b32.xlu0 %v75_v0, %s84_s0  ;;  %4 = vst.msk [vmem:[#allocation0] ss:$8 sm:$0xf] %vm3_vm0, %v2_v1   ;;  %5 = vst.msk [vmem:[#allocation0] ss:$8 sm:$0xf0] %vm3_vm0, %v2_v1  }
  0x74   :  { %v9_v2 = vpop.permute.xlu0 %8  }
  0x75   :  { %11 = vst.msk [vmem:[#allocation0] ss:$8 sm:$0xf] %vm10_vm1, %v9_v2   ;;  %12 = vst.msk [vmem:[#allocation0] ss:$8 sm:$0xf0] %vm10_vm1, %v9_v2  }
  0x7c   :  { %v17_v3 = vld [vmem:[#allocation0] sm:$0x1]  ;;  %v22_v4 = vld [vmem:[#allocation0 + $0x8] sm:$0x1]  ;;  %v28_v5 = vld [vmem:[#allocation0 + $0x10] sm:$0x1] }
  0x7d   :  { %20 = vst [vmem:[%s126_s1] sm:$0x1] %v17_v3  ;;  %76 = vst [vmem:[%s126_s1 + $0x1] sm:$0x1] %v22_v4  ;;  %v35_v6 = vld [vmem:[#allocation0 + $0x18] sm:$0x1] }
  0x7e   :  { %77 = vst [vmem:[%s126_s1 + $0x2] sm:$0x1] %v28_v5  ;;  %v42_v7 = vld [vmem:[#allocation0 + $0x20] sm:$0x1]  ;;  %v49_v8 = vld [vmem:[#allocation0 + $0x28] sm:$0x1] }
  0x7f   :  { %78 = vst [vmem:[%s126_s1 + $0x3] sm:$0x1] %v35_v6  ;;  %79 = vst [vmem:[%s126_s1 + $0x4] sm:$0x1] %v42_v7  ;;  %v56_v9 = vld [vmem:[#allocation0 + $0x30] sm:$0x1] }
  0x80   :  { %80 = vst [vmem:[%s126_s1 + $0x5] sm:$0x1] %v49_v8  ;;  %v63_v10 = vld [vmem:[#allocation0 + $0x38] sm:$0x1]  ;;  %81 = vst [vmem:[%s126_s1 + $0x6] sm:$0x1] %v56_v9 }
  0x81   :  { %82 = vst [vmem:[%s126_s1 + $0x7] sm:$0x1] %v63_v10 }

// kernel: tile.30
= control target key start
LH: loop header
LB: loop body
LE: loop exit
PB: predicated region body
PF: predicated region fallthrough
CT: control target
= control target key end

     0   :  { %s22_s0 = inlined_call_operand.vmem [shape: f32[32], index: 0, kind: input, shape index: {}]   ;;  %s23_s1 = inlined_call_operand.vmem [shape: f32[4,32], index: 1, kind: output, shape index: {}]  }
   0x1   :  { %v4_v0 = vld [vmem:[%s22_s0] ss:$0 sm:$0xff] }
   0x2   :  { %5 = vst [vmem:[%s23_s1] sm:$0xf] %v4_v0 }

// kernel: tile.33
= control target key start
LH: loop header
LB: loop body
LE: loop exit
PB: predicated region body
PF: predicated region fallthrough
CT: control target
= control target key end

     0   :  { %vm8_vm0 = vcmask 261120   ;;  %s40_s8 = smov 32   ;;  %s41_s9 = smov 64   ;;  %vm14_vm1 = vcmask 1048320   ;;  %vm20_vm2 = vcmask 785920   ;;  %vm26_vm3 = vcmask 523520   ;;  %s58_s0 = inlined_call_operand.vmem [shape: f32[4,32], index: 0, kind: input, shape index: {}]   ;;  %s59_s1 = inlined_call_operand.vmem [shape: f32[128], index: 1, kind: output, shape index: {}]  }
   0x1   :  { %v5_v0 = vld [vmem:[%s58_s0] sm:$0xf]  ;;  %s39_s0 = smov 96  }
   0x2   :  { %6 = vst [vmem:[#allocation1] sm:$0xf] %v5_v0 }
   0x9   :  { %v11_v1 = vld [vmem:[#allocation1 + $0x3] sm:$0x1]   ;;  %v23_v2 = vld [vmem:[#allocation1 + $0x1] sm:$0x1]   ;;  %v7_v3 = vld [vmem:[#allocation1] sm:$0x1]  }
   0xa   :  { %12 = vrot.lane.b32.xlu0 %v11_v1, %s39_s0  ;;  %24 = vrot.lane.b32.xlu1 %v23_v2, %s40_s8  ;;  %v17_v4 = vld [vmem:[#allocation1 + $0x2] sm:$0x1]   ;;  %9 = vst.msk [vmem:[#allocation0] sm:$0x1] %vm8_vm0, %v7_v3  }
   0xe   :  { %18 = vrot.lane.b32.xlu0 %v17_v4, %s41_s9 }
  0x7c   :  { %v13_v5 = vpop.permute.xlu0 %12   ;;  %v25_v6 = vpop.permute.xlu1 %24  }
  0x7d   :  { %15 = vst.msk [vmem:[#allocation0] sm:$0x1] %vm14_vm1, %v13_v5  }
  0x80   :  { %v19_v7 = vpop.permute.xlu0 %18  }
  0x81   :  { %21 = vst.msk [vmem:[#allocation0] sm:$0x1] %vm20_vm2, %v19_v7  }
  0x82   :  { %27 = vst.msk [vmem:[#allocation0] sm:$0x1] %vm26_vm3, %v25_v6  }
  0x89   :  { %v32_v8 = vld [vmem:[#allocation0] sm:$0x1] }
  0x8a   :  { %35 = vst [vmem:[%s59_s1] sm:$0x1] %v32_v8 }

// kernel: tile.34
= control target key start
LH: loop header
LB: loop body
LE: loop exit
PB: predicated region body
PF: predicated region fallthrough
CT: control target
= control target key end

     0   :  { %s22_s0 = inlined_call_operand.vmem [shape: f32[128], index: 0, kind: input, shape index: {}]   ;;  %s23_s1 = inlined_call_operand.vmem [shape: f32[4,128], index: 1, kind: output, shape index: {}]  }
   0x1   :  { %v4_v0 = vld [vmem:[%s22_s0] ss:$0 sm:$0xff] }
   0x2   :  { %5 = vst [vmem:[%s23_s1] sm:$0xf] %v4_v0 }

// kernel: generator_forward.1
= control target key start
LH: loop header
LB: loop body
LE: loop exit
PB: predicated region body
PF: predicated region fallthrough
CT: control target
= control target key end

     0   :  { %v6971_v1 = vmov 0   ;;  %s9367_s1 = inlined_call_operand.vmem [shape: bf16[1,128,256], index: 1, kind: input, shape index: {}]   ;;  %s9368_s0 = inlined_call_operand.vmem [shape: bf16[16,128], index: 0, kind: input, shape index: {}]   ;;  %s9369_s3 = inlined_call_operand.vmem [shape: bf16[256,512], index: 3, kind: input, shape index: {}]   ;;  %s9370_s5 = inlined_call_operand.vmem [shape: bf16[512,1024], index: 5, kind: input, shape index: {}]   ;;  %s9371_s2 = inlined_call_operand.vmem [shape: f32[1,1,256], index: 2, kind: input, shape index: {}]   ;;  %s9372_s4 = inlined_call_operand.vmem [shape: f32[1,512], index: 4, kind: input, shape index: {}]   ;;  %s9373_s7 = inlined_call_operand.vmem [shape: bf16[1024,768], index: 7, kind: input, shape index: {}]   ;;  %s9374_s6 = inlined_call_operand.vmem [shape: f32[1,1024], index: 6, kind: input, shape index: {}]   ;;  %s9375_s8 = inlined_call_operand.vmem [shape: f32[1,768], index: 8, kind: input, shape index: {}]   ;;  %s9376_s9 = inlined_call_operand.vmem [shape: f32[16,768], index: 9, kind: output, shape index: {}]  }
   0x1   :  { %v6250_v0 = vld [vmem:[%s9367_s1 + $0x74] ss:$8 sps:$4 sm:$0xff]   ;;  %181 = vmatprep.mubr.bf16.mxu0 %v6971_v1  ;;  %v6252_v2 = vld [vmem:[%s9367_s1 + $0x70] ss:$8 sps:$4 sm:$0xff]   ;;  %v6253_v3 = vld [vmem:[%s9367_s1 + $0x64] ss:$8 sps:$4 sm:$0xff]  }
   0x2   :  { %149 = vmatprep.subr.bf16.mxu0 %v6250_v0  ;;  %v6255_v4 = vld [vmem:[%s9367_s1 + $0x60] ss:$8 sps:$4 sm:$0xff]   ;;  %v6256_v5 = vld [vmem:[%s9367_s1 + $0x54] ss:$8 sps:$4 sm:$0xff]   ;;  %v6258_v6 = vld [vmem:[%s9367_s1 + $0x50] ss:$8 sps:$4 sm:$0xff]  }
   0x3   :  { %150 = vmatpush1.bf16.msra.mxu0 %v6252_v2  ;;  %v6259_v7 = vld [vmem:[%s9367_s1 + $0x44] ss:$8 sps:$4 sm:$0xff]   ;;  %v6261_v8 = vld [vmem:[%s9367_s1 + $0x40] ss:$8 sps:$4 sm:$0xff]   ;;  %v6262_v9 = vld [vmem:[%s9367_s1 + $0x34] ss:$8 sps:$4 sm:$0xff]  }
   0x4   :  { %151 = vmatprep.subr.bf16.mxu0 %v6253_v3  ;;  %v6275_v10 = vld [vmem:[%s9369_s3 + $0xe4] ss:$16 sps:$4 sm:$0xff]   ;;  %v6264_v11 = vld [vmem:[%s9367_s1 + $0x30] ss:$8 sps:$4 sm:$0xff]   ;;  %v6267_v17 = vld [vmem:[%s9367_s1 + $0x20] ss:$8 sps:$4 sm:$0xff]  }
   0x5   :  { %604 = vmatprep.subr.bf16.mxu1 %v6275_v10  ;;  %v6280_v12 = vld [vmem:[%s9369_s3 + $0xe0] ss:$16 sps:$4 sm:$0xff]   ;;  %v6281_v13 = vld [vmem:[%s9369_s3 + $0xc4] ss:$16 sps:$4 sm:$0xff]   ;;  %v6279_v26 = vld [vmem:[%s9369_s3 + $0xec] ss:$16 sps:$4 sm:$0xff]  }
   0x6   :  { %v6265_v14 = vld [vmem:[%s9367_s1 + $0x24] ss:$8 sps:$4 sm:$0xff]   ;;  %605 = vmatpush1.bf16.msra.mxu1 %v6280_v12  ;;  %v6286_v15 = vld [vmem:[%s9369_s3 + $0xc0] ss:$16 sps:$4 sm:$0xff]   ;;  %v6268_v18 = vld [vmem:[%s9367_s1 + $0x14] ss:$8 sps:$4 sm:$0xff]  }
   0x7   :  { %152 = vmatpush1.bf16.msra.mxu0 %v6255_v4  ;;  %606 = vmatprep.subr.bf16.mxu1 %v6281_v13  ;;  %v6287_v16 = vld [vmem:[%s9369_s3 + $0xa4] ss:$16 sps:$4 sm:$0xff]   ;;  %v6292_v19 = vld [vmem:[%s9369_s3 + $0xa0] ss:$16 sps:$4 sm:$0xff]   ;;  %v6277_v30 = vld [vmem:[%s9369_s3 + $0xe8] ss:$16 sps:$4 sm:$0xff]  }
   0x8   :  { %153 = vmatprep.subr.bf16.mxu0 %v6256_v5  ;;  %v6293_v20 = vld [vmem:[%s9369_s3 + $0x84] ss:$16 sps:$4 sm:$0xff]   ;;  %v6270_v21 = vld [vmem:[%s9367_s1 + $0x10] ss:$8 sps:$4 sm:$0xff]   ;;  %v6273_v25 = vld [vmem:[%s9367_s1] ss:$8 sps:$4 sm:$0xff]  }
   0x9   :  { %v6271_v22 = vld [vmem:[%s9367_s1 + $0x4] ss:$8 sps:$4 sm:$0xff]   ;;  %v6298_v23 = vld [vmem:[%s9369_s3 + $0x80] ss:$16 sps:$4 sm:$0xff]   ;;  %v6283_v34 = vld [vmem:[%s9369_s3 + $0xc8] ss:$16 sps:$4 sm:$0xff]  }
   0xa   :  { %607 = vmatpush1.bf16.msra.mxu1 %v6286_v15  ;;  %v6299_v24 = vld [vmem:[%s9369_s3 + $0x64] ss:$16 sps:$4 sm:$0xff]   ;;  %v6304_v27 = vld [vmem:[%s9369_s3 + $0x60] ss:$16 sps:$4 sm:$0xff]   ;;  %v6285_v31 = vld [vmem:[%s9369_s3 + $0xcc] ss:$16 sps:$4 sm:$0xff]  }
   0xb   :  { %154 = vmatpush1.bf16.msra.mxu0 %v6258_v6  ;;  %608 = vmatprep.subr.bf16.mxu1 %v6287_v16  ;;  %v6305_v28 = vld [vmem:[%s9369_s3 + $0x44] ss:$16 sps:$4 sm:$0xff]   ;;  %v6310_v32 = vld [vmem:[%s9369_s3 + $0x40] ss:$16 sps:$4 sm:$0xff]   ;;  %v6291_v35 = vld [vmem:[%s9369_s3 + $0xac] ss:$16 sps:$4 sm:$0xff]  }
   0xc   :  { %155 = vmatprep.subr.bf16.mxu0 %v6259_v7  ;;  %v6274_v29 = vld [vmem:[%s9368_s0] sm:$0xff]   ;;  %v6289_v38 = vld [vmem:[%s9369_s3 + $0xa8] ss:$16 sps:$4 sm:$0xff]   ;;  %v6297_v39 = vld [vmem:[%s9369_s3 + $0x8c] ss:$16 sps:$4 sm:$0xff]  }
   0xd   :  { %v6311_v33 = vld [vmem:[%s9369_s3 + $0x24] ss:$16 sps:$4 sm:$0xff]   ;;  %v6316_v36 = vld [vmem:[%s9369_s3 + $0x20] ss:$16 sps:$4 sm:$0xff]   ;;  %v6295_v42 = vld [vmem:[%s9369_s3 + $0x88] ss:$16 sps:$4 sm:$0xff]  }
   0xe   :  { %609 = vmatpush1.bf16.msra.mxu1 %v6292_v19  ;;  %v6317_v37 = vld [vmem:[%s9369_s3 + $0x4] ss:$16 sps:$4 sm:$0xff]   ;;  %v6322_v40 = vld [vmem:[%s9369_s3] ss:$16 sps:$4 sm:$0xff]   ;;  %v6303_v43 = vld [vmem:[%s9369_s3 + $0x6c] ss:$16 sps:$4 sm:$0xff]  }
   0xf   :  { %156 = vmatpush1.bf16.msra.mxu0 %v6261_v8  ;;  %610 = vmatprep.subr.bf16.mxu1 %v6293_v20  ;;  %v6323_v41 = vld [vmem:[%s9369_s3 + $0x1e4] ss:$16 sps:$4 sm:$0xff]   ;;  %v6328_v44 = vld [vmem:[%s9369_s3 + $0x1e0] ss:$16 sps:$4 sm:$0xff]   ;;  %v6301_v45 = vld [vmem:[%s9369_s3 + $0x68] ss:$16 sps:$4 sm:$0xff]  }
  0x10   :  { %157 = vmatprep.subr.bf16.mxu0 %v6262_v9  ;;  %v6329_v46 = vld [vmem:[%s9369_s3 + $0x1c4] ss:$16 sps:$4 sm:$0xff]   ;;  %v6309_v47 = vld [vmem:[%s9369_s3 + $0x4c] ss:$16 sps:$4 sm:$0xff]   ;;  %v6334_v48 = vld [vmem:[%s9369_s3 + $0x1c0] ss:$16 sps:$4 sm:$0xff]  }
  0x11   :  { %v6335_v49 = vld [vmem:[%s9369_s3 + $0x1a4] ss:$16 sps:$4 sm:$0xff]   ;;  %v6307_v50 = vld [vmem:[%s9369_s3 + $0x48] ss:$16 sps:$4 sm:$0xff]   ;;  %v6315_v51 = vld [vmem:[%s9369_s3 + $0x2c] ss:$16 sps:$4 sm:$0xff]  }
  0x12   :  { %611 = vmatpush1.bf16.msra.mxu1 %v6298_v23  ;;  %v6340_v52 = vld [vmem:[%s9369_s3 + $0x1a0] ss:$16 sps:$4 sm:$0xff]   ;;  %v6341_v53 = vld [vmem:[%s9369_s3 + $0x184] ss:$16 sps:$4 sm:$0xff]   ;;  %v6313_v54 = vld [vmem:[%s9369_s3 + $0x28] ss:$16 sps:$4 sm:$0xff]  }
  0x13   :  { %158 = vmatpush1.bf16.msra.mxu0 %v6264_v11  ;;  %612 = vmatprep.subr.bf16.mxu1 %v6299_v24  ;;  %v6321_v55 = vld [vmem:[%s9369_s3 + $0xc] ss:$16 sps:$4 sm:$0xff]   ;;  %v6346_v56 = vld [vmem:[%s9369_s3 + $0x180] ss:$16 sps:$4 sm:$0xff]   ;;  %v6347_v57 = vld [vmem:[%s9369_s3 + $0x164] ss:$16 sps:$4 sm:$0xff]  }
  0x14   :  { %159 = vmatprep.subr.bf16.mxu0 %v6265_v14  ;;  %v6319_v58 = vld [vmem:[%s9369_s3 + $0x8] ss:$16 sps:$4 sm:$0xff]   ;;  %v6327_v59 = vld [vmem:[%s9369_s3 + $0x1ec] ss:$16 sps:$4 sm:$0xff]   ;;  %v6352_v60 = vld [vmem:[%s9369_s3 + $0x160] ss:$16 sps:$4 sm:$0xff]  }
  0x15   :  { %v6325_v61 = vld [vmem:[%s9369_s3 + $0x1e8] ss:$16 sps:$4 sm:$0xff]   ;;  %v6333_v62 = vld [vmem:[%s9369_s3 + $0x1cc] ss:$16 sps:$4 sm:$0xff]   ;;  %v6353_v6 = vld [vmem:[%s9369_s3 + $0x144] ss:$16 sps:$4 sm:$0xff]  }
  0x16   :  { %613 = vmatpush1.bf16.msra.mxu1 %v6304_v27  ;;  %v6331_v63 = vld [vmem:[%s9369_s3 + $0x1c8] ss:$16 sps:$4 sm:$0xff]   ;;  %v6339_v0 = vld [vmem:[%s9369_s3 + $0x1ac] ss:$16 sps:$4 sm:$0xff]   ;;  %v6358_v9 = vld [vmem:[%s9369_s3 + $0x140] ss:$16 sps:$4 sm:$0xff]  }
  0x17   :  { %160 = vmatpush1.bf16.msra.mxu0 %v6267_v17  ;;  %614 = vmatprep.subr.bf16.mxu1 %v6305_v28  ;;  %v6337_v1 = vld [vmem:[%s9369_s3 + $0x1a8] ss:$16 sps:$4 sm:$0xff]   ;;  %v6345_v2 = vld [vmem:[%s9369_s3 + $0x18c] ss:$16 sps:$4 sm:$0xff]   ;;  %v6359_v10 = vld [vmem:[%s9369_s3 + $0x124] ss:$16 sps:$4 sm:$0xff]  }
  0x18   :  { %161 = vmatprep.subr.bf16.mxu0 %v6268_v18  ;;  %v6343_v3 = vld [vmem:[%s9369_s3 + $0x188] ss:$16 sps:$4 sm:$0xff]   ;;  %v6351_v4 = vld [vmem:[%s9369_s3 + $0x16c] ss:$16 sps:$4 sm:$0xff]   ;;  %v6364_v13 = vld [vmem:[%s9369_s3 + $0x120] ss:$16 sps:$4 sm:$0xff]  }
  0x19   :  { %v6349_v5 = vld [vmem:[%s9369_s3 + $0x168] ss:$16 sps:$4 sm:$0xff]   ;;  %v6357_v7 = vld [vmem:[%s9369_s3 + $0x14c] ss:$16 sps:$4 sm:$0xff]   ;;  %v6365_v14 = vld [vmem:[%s9369_s3 + $0x104] ss:$16 sps:$4 sm:$0xff]  }
  0x1a   :  { %615 = vmatpush1.bf16.msra.mxu1 %v6310_v32  ;;  %v6355_v8 = vld [vmem:[%s9369_s3 + $0x148] ss:$16 sps:$4 sm:$0xff]   ;;  %v6363_v11 = vld [vmem:[%s9369_s3 + $0x12c] ss:$16 sps:$4 sm:$0xff]   ;;  %v6370_v17 = vld [vmem:[%s9369_s3 + $0x100] ss:$16 sps:$4 sm:$0xff]  }
  0x1b   :  { %162 = vmatpush1.bf16.msra.mxu0 %v6270_v21  ;;  %616 = vmatprep.subr.bf16.mxu1 %v6311_v33  ;;  %v6361_v12 = vld [vmem:[%s9369_s3 + $0x128] ss:$16 sps:$4 sm:$0xff]   ;;  %v6369_v15 = vld [vmem:[%s9369_s3 + $0x10c] ss:$16 sps:$4 sm:$0xff]   ;;  %v758_v18 = vld [vmem:[%s9370_s5 + $0x1c0] sm:$0xff] }
  0x1c   :  { %163 = vmatprep.subr.bf16.mxu0 %v6271_v22  ;;  %v6367_v16 = vld [vmem:[%s9369_s3 + $0x108] ss:$16 sps:$4 sm:$0xff]   ;;  %v762_v19 = vld [vmem:[%s9370_s5 + $0x1e0] sm:$0xff] }
  0x1d   :  { %v886_v20 = vld [vmem:[%s9370_s5 + $0x5c0] sm:$0xff]  ;;  %v5665_v21 = vcombine.low %v758_v18, %v762_v19  ;;  %v5666_v22 = vcombine.high %v758_v18, %v762_v19 }
  0x1e   :  { %617 = vmatpush1.bf16.msra.mxu1 %v6316_v36  ;;  %v890_v23 = vld [vmem:[%s9370_s5 + $0x5e0] sm:$0xff] }
  0x1f   :  { %164 = vmatpush1.bf16.msra.mxu0 %v6273_v25  ;;  %618 = vmatprep.subr.bf16.mxu1 %v6317_v37  ;;  %v5793_v24 = vcombine.low %v886_v20, %v890_v23  ;;  %v5794_v25 = vcombine.high %v886_v20, %v890_v23  ;;  %v838_v23 = vld [vmem:[%s9370_s5 + $0x440] sm:$0xff] }
  0x20   :  { %647 = vmatprep.subr.bf16.mxu0 %v6279_v26  ;;  %v53_v26 = vlaneseq }
  0x22   :  { %182 = vmatmul.mubr.bf16.vlgmr.msra.gmra.mxu0 %v6274_v29  ;;  %619 = vmatpush1.bf16.msra.mxu1 %v6322_v40  ;;  %v7277_v27 = vshrl.u32 %v53_v26, 7 }
  0x23   :  { %648 = vmatpush1.bf16.msra.mxu0 %v6277_v30  ;;  %620 = vmatprep.subr.bf16.mxu1 %v6323_v41  ;;  %v51_v30 = vld [vmem:[%s9371_s2] sm:$0x3] }
  0x24   :  { %649 = vmatprep.subr.bf16.mxu0 %v6285_v31  ;;  %v7280_v28 = vsub.s32 1, %v7277_v27  ;;  %v7283_v29 = vsub.s32 0, %v7277_v27 }
  0x26   :  { %621 = vmatpush2.bf16.msra.mxu1 %v6328_v44  ;;  %v60_v32 = vrot.slane %v51_v30, %v7280_v28  ;;  %v56_v33 = vrot.slane %v51_v30, %v7283_v29 }
  0x27   :  { %650 = vmatpush1.bf16.msra.mxu0 %v6283_v34  ;;  %622 = vmatprep.subr.bf16.mxu1 %v6329_v46  ;;  %v878_v46 = vld [vmem:[%s9370_s5 + $0x580] sm:$0xff] }
  0x28   :  { %651 = vmatprep.subr.bf16.mxu0 %v6291_v35 }
  0x2a   :  { %623 = vmatpush2.bf16.msra.mxu1 %v6334_v48 }
  0x2b   :  { %652 = vmatpush1.bf16.msra.mxu0 %v6289_v38  ;;  %624 = vmatprep.subr.bf16.mxu1 %v6335_v49 }
  0x2c   :  { %653 = vmatprep.subr.bf16.mxu0 %v6297_v39 }
  0x2e   :  { %625 = vmatpush2.bf16.msra.mxu1 %v6340_v52 }
  0x2f   :  { %654 = vmatpush1.bf16.msra.mxu0 %v6295_v42  ;;  %626 = vmatprep.subr.bf16.mxu1 %v6341_v53  ;;  %v750_v42 = vld [vmem:[%s9370_s5 + $0x180] sm:$0xff] }
  0x30   :  { %655 = vmatprep.subr.bf16.mxu0 %v6303_v43  ;;  %v742_v53 = vld [vmem:[%s9370_s5 + $0x140] sm:$0xff] }
  0x32   :  { %627 = vmatpush2.bf16.msra.mxu1 %v6346_v56  ;;  %v874_v56 = vld [vmem:[%s9370_s5 + $0x560] sm:$0xff] }
  0x33   :  { %656 = vmatpush1.bf16.msra.mxu0 %v6301_v45  ;;  %628 = vmatprep.subr.bf16.mxu1 %v6347_v57  ;;  %v754_v45 = vld [vmem:[%s9370_s5 + $0x1a0] sm:$0xff] }
  0x34   :  { %657 = vmatprep.subr.bf16.mxu0 %v6309_v47  ;;  %v882_v47 = vld [vmem:[%s9370_s5 + $0x5a0] sm:$0xff]  ;;  %v5657_v57 = vcombine.low %v750_v42, %v754_v45 }
  0x35   :  { %v5786_v52 = vcombine.high %v878_v46, %v882_v47 }
  0x36   :  { %629 = vmatpush2.bf16.msra.mxu1 %v6352_v60 }
  0x37   :  { %658 = vmatpush1.bf16.msra.mxu0 %v6307_v50  ;;  %630 = vmatprep.subr.bf16.mxu1 %v6353_v6  ;;  %v730_v6 = vld [vmem:[%s9370_s5 + $0xe0] sm:$0xff] }
  0x38   :  { %659 = vmatprep.subr.bf16.mxu0 %v6315_v51  ;;  %v5658_v51 = vcombine.high %v750_v42, %v754_v45  ;;  %v950_v42 = vld [vmem:[%s9370_s5 + $0x7c0] sm:$0xff] }
  0x3a   :  { %631 = vmatpush2.bf16.msra.mxu1 %v6358_v9 }
  0x3b   :  { %660 = vmatpush1.bf16.msra.mxu0 %v6313_v54  ;;  %632 = vmatprep.subr.bf16.mxu1 %v6359_v10  ;;  %v746_v54 = vld [vmem:[%s9370_s5 + $0x160] sm:$0xff] }
  0x3c   :  { %661 = vmatprep.subr.bf16.mxu0 %v6321_v55  ;;  %v870_v55 = vld [vmem:[%s9370_s5 + $0x540] sm:$0xff] }
  0x3d   :  { %v5778_v60 = vcombine.high %v870_v55, %v874_v56 }
  0x3e   :  { %633 = vmatpush2.bf16.msra.mxu1 %v6364_v13  ;;  %v718_v13 = vld [vmem:[%s9370_s5 + $0x80] sm:$0xff] }
  0x3f   :  { %662 = vmatpush1.bf16.msra.mxu0 %v6319_v58  ;;  %634 = vmatprep.subr.bf16.mxu1 %v6365_v14  ;;  %v5785_v58 = vcombine.low %v878_v46, %v882_v47  ;;  %v722_v14 = vld [vmem:[%s9370_s5 + $0xa0] sm:$0xff] }
  0x40   :  { %663 = vmatprep.subr.bf16.mxu0 %v6327_v59  ;;  %v5650_v59 = vcombine.high %v742_v53, %v746_v54  ;;  %v5626_v19 = vcombine.high %v718_v13, %v722_v14 }
  0x42   :  { %635 = vmatpush2.bf16.msra.mxu1 %v6370_v17 }
  0x43   :  { %664 = vmatpush2.bf16.msra.mxu0 %v6325_v61  ;;  %2280 = vmatprep.subr.bf16.mxu1 %v5666_v22  ;;  %v734_v61 = vld [vmem:[%s9370_s5 + $0x100] sm:$0xff] }
  0x44   :  { %665 = vmatprep.subr.bf16.mxu0 %v6333_v62  ;;  %v738_v62 = vld [vmem:[%s9370_s5 + $0x120] sm:$0xff] }
  0x45   :  { %v5641_v9 = vcombine.low %v734_v61, %v738_v62  ;;  %v714_v22 = vld [vmem:[%s9370_s5 + $0x60] sm:$0xff] }
  0x47   :  { %666 = vmatpush2.bf16.msra.mxu0 %v6331_v63  ;;  %v862_v63 = vld [vmem:[%s9370_s5 + $0x500] sm:$0xff] }
  0x48   :  { %667 = vmatprep.subr.bf16.mxu0 %v6339_v0  ;;  %v866_v0 = vld [vmem:[%s9370_s5 + $0x520] sm:$0xff] }
  0x49   :  { %v5769_v10 = vcombine.low %v862_v63, %v866_v0 }
  0x4b   :  { %668 = vmatpush2.bf16.msra.mxu0 %v6337_v1  ;;  %v5649_v1 = vcombine.low %v742_v53, %v746_v54 }
  0x4c   :  { %669 = vmatprep.subr.bf16.mxu0 %v6345_v2  ;;  %v5777_v2 = vcombine.low %v870_v55, %v874_v56  ;;  %v806_v56 = vld [vmem:[%s9370_s5 + $0x340] sm:$0xff] }
  0x4f   :  { %670 = vmatpush2.bf16.msra.mxu0 %v6343_v3  ;;  %v5642_v3 = vcombine.high %v734_v61, %v738_v62 }
  0x50   :  { %671 = vmatprep.subr.bf16.mxu0 %v6351_v4  ;;  %v5770_v4 = vcombine.high %v862_v63, %v866_v0  ;;  %v798_v0 = vld [vmem:[%s9370_s5 + $0x300] sm:$0xff] }
  0x53   :  { %672 = vmatpush2.bf16.msra.mxu0 %v6349_v5  ;;  %v726_v5 = vld [vmem:[%s9370_s5 + $0xc0] sm:$0xff] }
  0x54   :  { %673 = vmatprep.subr.bf16.mxu0 %v6357_v7  ;;  %v854_v7 = vld [vmem:[%s9370_s5 + $0x4c0] sm:$0xff]  ;;  %v5633_v17 = vcombine.low %v726_v5, %v730_v6 }
  0x57   :  { %674 = vmatpush2.bf16.msra.mxu0 %v6355_v8  ;;  %v858_v8 = vld [vmem:[%s9370_s5 + $0x4e0] sm:$0xff] }
  0x58   :  { %675 = vmatprep.subr.bf16.mxu0 %v6363_v11  ;;  %v5634_v11 = vcombine.high %v726_v5, %v730_v6  ;;  %v5761_v18 = vcombine.low %v854_v7, %v858_v8 }
  0x5b   :  { %676 = vmatpush2.bf16.msra.mxu0 %v6361_v12  ;;  %v5762_v12 = vcombine.high %v854_v7, %v858_v8  ;;  %v790_v8 = vld [vmem:[%s9370_s5 + $0x2c0] sm:$0xff] }
  0x5c   :  { %677 = vmatprep.subr.bf16.mxu0 %v6369_v15  ;;  %v846_v15 = vld [vmem:[%s9370_s5 + $0x480] sm:$0xff] }
  0x5f   :  { %678 = vmatpush2.bf16.msra.mxu0 %v6367_v16  ;;  %v850_v16 = vld [vmem:[%s9370_s5 + $0x4a0] sm:$0xff] }
  0x60   :  { %2323 = vmatprep.subr.bf16.mxu0 %v5794_v25  ;;  %v5754_v20 = vcombine.high %v846_v15, %v850_v16  ;;  %v5625_v25 = vcombine.low %v718_v13, %v722_v14  ;;  %v5753_v26 = vcombine.low %v846_v15, %v850_v16 }
  0xe2   :  { %v183_v31 = vpop.f32.mrf.mxu0 }
  0xe3   :  { %v184_v38 = vadd.f32 %v183_v31, %v56_v33 }
  0xe4   :  { %v185_v34 = vpop.f32.mrf.mxu0 }
  0xe5   :  { %v186_v36 = vadd.f32 %v185_v34, %v60_v32  ;;  %v192_v48 = vmax.f32 %v184_v38, 0.0  ;;  %v830_v34 = vld [vmem:[%s9370_s5 + $0x400] sm:$0xff] }
  0xe6   :  { %v187_v35 = vpop.f32.mrf.mxu0 }
  0xe7   :  { %v188_v37 = vadd.f32 %v187_v35, %v56_v33  ;;  %v193_v43 = vmax.f32 %v186_v36, 0.0  ;;  %v706_v33 = vld [vmem:[%s9370_s5 + $0x20] sm:$0xff] }
  0xe8   :  { %v189_v39 = vpop.f32.mrf.mxu0  ;;  %v834_v35 = vld [vmem:[%s9370_s5 + $0x420] sm:$0xff] }
  0xe9   :  { %v190_v40 = vadd.f32 %v189_v39, %v60_v32  ;;  %v194_v41 = vmax.f32 %v188_v37, 0.0  ;;  %v702_v32 = vld [vmem:[%s9370_s5] sm:$0xff]  ;;  %v5738_v39 = vcombine.high %v830_v34, %v834_v35  ;;  %v5737_v45 = vcombine.low %v830_v34, %v834_v35 }
  0xea   :  { %v5610_v38 = vcombine.high %v702_v32, %v706_v33 }
  0xeb   :  { %v195_v44 = vmax.f32 %v190_v40, 0.0  ;;  %v196_v50 = vpack.c.bf16 %v194_v41, %v192_v48  ;;  %v822_v40 = vld [vmem:[%s9370_s5 + $0x3c0] sm:$0xff] }
  0xec   :  { %v826_v41 = vld [vmem:[%s9370_s5 + $0x3e0] sm:$0xff] }
  0xed   :  { %v197_v49 = vpack.c.bf16 %v195_v44, %v193_v43  ;;  %v954_v43 = vld [vmem:[%s9370_s5 + $0x7e0] sm:$0xff]  ;;  %v5609_v44 = vcombine.low %v702_v32, %v706_v33  ;;  %v5730_v46 = vcombine.high %v822_v40, %v826_v41 }
  0xee   :  { %v5858_v47 = vcombine.high %v950_v42, %v954_v43  ;;  %v814_v48 = vld [vmem:[%s9370_s5 + $0x380] sm:$0xff]  ;;  %v5857_v53 = vcombine.low %v950_v42, %v954_v43 }
  0xef   :  { %636 = vmatprep.mubr.bf16.mxu1 %v197_v49  ;;  %679 = vmatprep.mubr.bf16.mxu0 %v197_v49  ;;  %v818_v49 = vld [vmem:[%s9370_s5 + $0x3a0] sm:$0xff] }
  0xf0   :  { %637 = vmatmul.mubr.bf16.vlgmr.msra.gmra.mxu1 %v196_v50  ;;  %680 = vmatmul.mubr.bf16.vlgmr.msra.gmra.mxu0 %v196_v50  ;;  %v942_v50 = vld [vmem:[%s9370_s5 + $0x780] sm:$0xff]  ;;  %v5722_v54 = vcombine.high %v814_v48, %v818_v49 }
  0xf1   :  { %2281 = vmatpush1.bf16.msra.mxu1 %v5665_v21  ;;  %2324 = vmatpush1.bf16.msra.mxu0 %v5793_v24  ;;  %v710_v21 = vld [vmem:[%s9370_s5 + $0x40] sm:$0xff] }
  0xf2   :  { %2282 = vmatprep.subr.bf16.mxu1 %v5658_v51  ;;  %2325 = vmatprep.subr.bf16.mxu0 %v5786_v52  ;;  %v842_v24 = vld [vmem:[%s9370_s5 + $0x460] sm:$0xff]  ;;  %v5618_v30 = vcombine.high %v710_v21, %v714_v22  ;;  %v5617_v36 = vcombine.low %v710_v21, %v714_v22  ;;  %v5729_v52 = vcombine.low %v822_v40, %v826_v41 }
  0xf3   :  { %v5746_v31 = vcombine.high %v838_v23, %v842_v24  ;;  %v5745_v37 = vcombine.low %v838_v23, %v842_v24  ;;  %v946_v51 = vld [vmem:[%s9370_s5 + $0x7a0] sm:$0xff] }
  0xf4   :  { %v5850_v55 = vcombine.high %v942_v50, %v946_v51  ;;  %v5849_v61 = vcombine.low %v942_v50, %v946_v51  ;;  %v914_v22 = vld [vmem:[%s9370_s5 + $0x6a0] sm:$0xff] }
  0xf5   :  { %2283 = vmatpush1.bf16.msra.mxu1 %v5657_v57  ;;  %2326 = vmatpush1.bf16.msra.mxu0 %v5785_v58  ;;  %v810_v57 = vld [vmem:[%s9370_s5 + $0x360] sm:$0xff] }
  0xf6   :  { %2284 = vmatprep.subr.bf16.mxu1 %v5650_v59  ;;  %2327 = vmatprep.subr.bf16.mxu0 %v5778_v60  ;;  %v934_v58 = vld [vmem:[%s9370_s5 + $0x740] sm:$0xff]  ;;  %v5721_v60 = vcombine.low %v814_v48, %v818_v49  ;;  %v5714_v62 = vcombine.high %v806_v56, %v810_v57  ;;  %v891_v49 = vld [vmem:[%s9370_s5 + $0x5e8] sm:$0xff] }
  0xf7   :  { %v938_v59 = vld [vmem:[%s9370_s5 + $0x760] sm:$0xff] }
  0xf8   :  { %v5842_v63 = vcombine.high %v934_v58, %v938_v59  ;;  %v5841_v5 = vcombine.low %v934_v58, %v938_v59  ;;  %v906_v33 = vld [vmem:[%s9370_s5 + $0x660] sm:$0xff] }
  0xf9   :  { %2285 = vmatpush1.bf16.msra.mxu1 %v5649_v1  ;;  %2328 = vmatpush1.bf16.msra.mxu0 %v5777_v2  ;;  %v802_v1 = vld [vmem:[%s9370_s5 + $0x320] sm:$0xff] }
  0xfa   :  { %2286 = vmatprep.subr.bf16.mxu1 %v5642_v3  ;;  %2329 = vmatprep.subr.bf16.mxu0 %v5770_v4  ;;  %v926_v2 = vld [vmem:[%s9370_s5 + $0x700] sm:$0xff]  ;;  %v5713_v4 = vcombine.low %v806_v56, %v810_v57  ;;  %v5706_v6 = vcombine.high %v798_v0, %v802_v1 }
  0xfb   :  { %v930_v3 = vld [vmem:[%s9370_s5 + $0x720] sm:$0xff] }
  0xfc   :  { %v5834_v7 = vcombine.high %v926_v2, %v930_v3  ;;  %v5833_v13 = vcombine.low %v926_v2, %v930_v3  ;;  %v898_v41 = vld [vmem:[%s9370_s5 + $0x620] sm:$0xff] }
  0xfd   :  { %2287 = vmatpush1.bf16.msra.mxu1 %v5641_v9  ;;  %2330 = vmatpush1.bf16.msra.mxu0 %v5769_v10  ;;  %v794_v9 = vld [vmem:[%s9370_s5 + $0x2e0] sm:$0xff] }
  0xfe   :  { %2288 = vmatprep.subr.bf16.mxu1 %v5634_v11  ;;  %2331 = vmatprep.subr.bf16.mxu0 %v5762_v12  ;;  %v918_v10 = vld [vmem:[%s9370_s5 + $0x6c0] sm:$0xff]  ;;  %v5705_v12 = vcombine.low %v798_v0, %v802_v1  ;;  %v5698_v14 = vcombine.high %v790_v8, %v794_v9  ;;  %v5697_v16 = vcombine.low %v790_v8, %v794_v9 }
  0xff   :  { %v922_v11 = vld [vmem:[%s9370_s5 + $0x6e0] sm:$0xff] }
 0x100   :  { %v5826_v15 = vcombine.high %v918_v10, %v922_v11 }
 0x101   :  { %2289 = vmatpush1.bf16.msra.mxu1 %v5633_v17  ;;  %2332 = vmatpush1.bf16.msra.mxu0 %v5761_v18  ;;  %v5825_v17 = vcombine.low %v918_v10, %v922_v11  ;;  %v782_v18 = vld [vmem:[%s9370_s5 + $0x280] sm:$0xff] }
 0x102   :  { %2290 = vmatprep.subr.bf16.mxu1 %v5626_v19  ;;  %2333 = vmatprep.subr.bf16.mxu0 %v5754_v20  ;;  %v786_v19 = vld [vmem:[%s9370_s5 + $0x2a0] sm:$0xff] }
 0x103   :  { %v910_v20 = vld [vmem:[%s9370_s5 + $0x680] sm:$0xff]  ;;  %v5690_v21 = vcombine.high %v782_v18, %v786_v19  ;;  %v5689_v23 = vcombine.low %v782_v18, %v786_v19  ;;  %v751_v18 = vld [vmem:[%s9370_s5 + $0x188] sm:$0xff] }
 0x104   :  { %v5817_v24 = vcombine.low %v910_v20, %v914_v22 }
 0x105   :  { %2291 = vmatpush1.bf16.msra.mxu1 %v5625_v25  ;;  %2334 = vmatpush1.bf16.msra.mxu0 %v5753_v26  ;;  %v5818_v25 = vcombine.high %v910_v20, %v914_v22  ;;  %v774_v26 = vld [vmem:[%s9370_s5 + $0x240] sm:$0xff]  ;;  %v879_v22 = vld [vmem:[%s9370_s5 + $0x588] sm:$0xff] }
 0x106   :  { %2292 = vmatprep.subr.bf16.mxu1 %v5618_v30  ;;  %2335 = vmatprep.subr.bf16.mxu0 %v5746_v31  ;;  %v778_v30 = vld [vmem:[%s9370_s5 + $0x260] sm:$0xff] }
 0x107   :  { %v902_v31 = vld [vmem:[%s9370_s5 + $0x640] sm:$0xff]  ;;  %v5682_v32 = vcombine.high %v774_v26, %v778_v30  ;;  %v5681_v34 = vcombine.low %v774_v26, %v778_v30 }
 0x108   :  { %v5809_v35 = vcombine.low %v902_v31, %v906_v33 }
 0x109   :  { %2293 = vmatpush1.bf16.msra.mxu1 %v5617_v36  ;;  %2336 = vmatpush1.bf16.msra.mxu0 %v5745_v37  ;;  %v5810_v36 = vcombine.high %v902_v31, %v906_v33  ;;  %v766_v37 = vld [vmem:[%s9370_s5 + $0x200] sm:$0xff]  ;;  %v743_v31 = vld [vmem:[%s9370_s5 + $0x148] sm:$0xff] }
 0x10a   :  { %2294 = vmatprep.subr.bf16.mxu1 %v5610_v38  ;;  %2337 = vmatprep.subr.bf16.mxu0 %v5738_v39  ;;  %v770_v38 = vld [vmem:[%s9370_s5 + $0x220] sm:$0xff] }
 0x10b   :  { %v894_v39 = vld [vmem:[%s9370_s5 + $0x600] sm:$0xff]  ;;  %v5674_v40 = vcombine.high %v766_v37, %v770_v38  ;;  %v5673_v42 = vcombine.low %v766_v37, %v770_v38 }
 0x10c   :  { %v5801_v43 = vcombine.low %v894_v39, %v898_v41 }
 0x10d   :  { %2295 = vmatpush1.bf16.msra.mxu1 %v5609_v44  ;;  %2338 = vmatpush1.bf16.msra.mxu0 %v5737_v45  ;;  %v5802_v44 = vcombine.high %v894_v39, %v898_v41  ;;  %v759_v45 = vld [vmem:[%s9370_s5 + $0x1c8] sm:$0xff] }
 0x10e   :  { %2296 = vmatprep.subr.bf16.mxu1 %v5730_v46  ;;  %2339 = vmatprep.subr.bf16.mxu0 %v5858_v47  ;;  %v763_v46 = vld [vmem:[%s9370_s5 + $0x1e8] sm:$0xff] }
 0x10f   :  { %v887_v47 = vld [vmem:[%s9370_s5 + $0x5c8] sm:$0xff]  ;;  %v5668_v48 = vcombine.high %v759_v45, %v763_v46  ;;  %v5667_v50 = vcombine.low %v759_v45, %v763_v46 }
 0x110   :  { %v5795_v51 = vcombine.low %v887_v47, %v891_v49  ;;  %v735_v41 = vld [vmem:[%s9370_s5 + $0x108] sm:$0xff] }
 0x111   :  { %2297 = vmatpush2.bf16.msra.mxu1 %v5729_v52  ;;  %2340 = vmatpush2.bf16.msra.mxu0 %v5857_v53  ;;  %v5796_v52 = vcombine.high %v887_v47, %v891_v49  ;;  %v7483_v53 = vsub.s32 3, %v7277_v27  ;;  %v727_v49 = vld [vmem:[%s9370_s5 + $0xc8] sm:$0xff] }
 0x112   :  { %2298 = vmatprep.subr.bf16.mxu1 %v5722_v54  ;;  %2341 = vmatprep.subr.bf16.mxu0 %v5850_v55  ;;  %v7486_v54 = vsub.s32 2, %v7277_v27  ;;  %v262_v55 = vld [vmem:[%s9372_s4] sm:$0xf] }
 0x113   :  { %v271_v58 = vrot.slane %v262_v55, %v7280_v28  ;;  %v279_v59 = vrot.slane %v262_v55, %v7483_v53 }
 0x115   :  { %2299 = vmatpush2.bf16.msra.mxu1 %v5721_v60  ;;  %2342 = vmatpush2.bf16.msra.mxu0 %v5849_v61  ;;  %v267_v60 = vrot.slane %v262_v55, %v7283_v29  ;;  %v275_v61 = vrot.slane %v262_v55, %v7486_v54 }
 0x116   :  { %2300 = vmatprep.subr.bf16.mxu1 %v5714_v62  ;;  %2343 = vmatprep.subr.bf16.mxu0 %v5842_v63 }
 0x119   :  { %2301 = vmatpush2.bf16.msra.mxu1 %v5713_v4  ;;  %2344 = vmatpush2.bf16.msra.mxu0 %v5841_v5 }
 0x11a   :  { %2302 = vmatprep.subr.bf16.mxu1 %v5706_v6  ;;  %2345 = vmatprep.subr.bf16.mxu0 %v5834_v7 }
 0x11d   :  { %2303 = vmatpush2.bf16.msra.mxu1 %v5705_v12  ;;  %2346 = vmatpush2.bf16.msra.mxu0 %v5833_v13 }
 0x11e   :  { %2304 = vmatprep.subr.bf16.mxu1 %v5698_v14  ;;  %2347 = vmatprep.subr.bf16.mxu0 %v5826_v15 }
 0x121   :  { %2305 = vmatpush2.bf16.msra.mxu1 %v5697_v16  ;;  %2348 = vmatpush2.bf16.msra.mxu0 %v5825_v17 }
 0x122   :  { %2306 = vmatprep.subr.bf16.mxu1 %v5690_v21  ;;  %2349 = vmatprep.subr.bf16.mxu0 %v5818_v25  ;;  %v755_v21 = vld [vmem:[%s9370_s5 + $0x1a8] sm:$0xff] }
 0x123   :  { %v5659_v37 = vcombine.low %v751_v18, %v755_v21 }
 0x125   :  { %2307 = vmatpush2.bf16.msra.mxu1 %v5689_v23  ;;  %2350 = vmatpush2.bf16.msra.mxu0 %v5817_v24  ;;  %v883_v23 = vld [vmem:[%s9370_s5 + $0x5a8] sm:$0xff] }
 0x126   :  { %2308 = vmatprep.subr.bf16.mxu1 %v5682_v32  ;;  %2351 = vmatprep.subr.bf16.mxu0 %v5810_v36  ;;  %v5660_v32 = vcombine.high %v751_v18, %v755_v21  ;;  %v5788_v33 = vcombine.high %v879_v22, %v883_v23  ;;  %v875_v36 = vld [vmem:[%s9370_s5 + $0x568] sm:$0xff]  ;;  %v5787_v38 = vcombine.low %v879_v22, %v883_v23 }
 0x127   :  { %v951_v21 = vld [vmem:[%s9370_s5 + $0x7c8] sm:$0xff] }
 0x128   :  { %v955_v22 = vld [vmem:[%s9370_s5 + $0x7e8] sm:$0xff] }
 0x129   :  { %2309 = vmatpush2.bf16.msra.mxu1 %v5681_v34  ;;  %2352 = vmatpush2.bf16.msra.mxu0 %v5809_v35  ;;  %v747_v34 = vld [vmem:[%s9370_s5 + $0x168] sm:$0xff] }
 0x12a   :  { %2310 = vmatprep.subr.bf16.mxu1 %v5674_v40  ;;  %2353 = vmatprep.subr.bf16.mxu0 %v5802_v44  ;;  %v871_v35 = vld [vmem:[%s9370_s5 + $0x548] sm:$0xff]  ;;  %v5652_v39 = vcombine.high %v743_v31, %v747_v34  ;;  %v5651_v45 = vcombine.low %v743_v31, %v747_v34 }
 0x12b   :  { %v5780_v40 = vcombine.high %v871_v35, %v875_v36  ;;  %v867_v44 = vld [vmem:[%s9370_s5 + $0x528] sm:$0xff]  ;;  %v5779_v46 = vcombine.low %v871_v35, %v875_v36 }
 0x12c   :  { %v815_v34 = vld [vmem:[%s9370_s5 + $0x388] sm:$0xff] }
 0x12d   :  { %2311 = vmatpush2.bf16.msra.mxu1 %v5673_v42  ;;  %2354 = vmatpush2.bf16.msra.mxu0 %v5801_v43  ;;  %v739_v42 = vld [vmem:[%s9370_s5 + $0x128] sm:$0xff] }
 0x12e   :  { %2366 = vmatprep.subr.bf16.mxu1 %v5668_v48  ;;  %2409 = vmatprep.subr.bf16.mxu0 %v5796_v52  ;;  %v863_v43 = vld [vmem:[%s9370_s5 + $0x508] sm:$0xff]  ;;  %v5644_v47 = vcombine.high %v735_v41, %v739_v42  ;;  %v5643_v55 = vcombine.low %v735_v41, %v739_v42 }
 0x12f   :  { %v5772_v48 = vcombine.high %v863_v43, %v867_v44  ;;  %v859_v52 = vld [vmem:[%s9370_s5 + $0x4e8] sm:$0xff] }
 0x130   :  { %v819_v35 = vld [vmem:[%s9370_s5 + $0x3a8] sm:$0xff] }
 0x131   :  { %v943_v36 = vld [vmem:[%s9370_s5 + $0x788] sm:$0xff] }
 0x132   :  { %v807_v42 = vld [vmem:[%s9370_s5 + $0x348] sm:$0xff] }
 0x1b0   :  { %v638_v56 = vpop.f32.mrf.mxu1  ;;  %v681_v57 = vpop.f32.mrf.mxu0 }
 0x1b1   :  { %v639_v6 = vadd.f32 %v638_v56, %v267_v60  ;;  %v682_v7 = vadd.f32 %v681_v57, %v275_v61  ;;  %v5771_v56 = vcombine.low %v863_v43, %v867_v44  ;;  %v811_v43 = vld [vmem:[%s9370_s5 + $0x368] sm:$0xff] }
 0x1b2   :  { %v640_v62 = vpop.f32.mrf.mxu1  ;;  %v683_v63 = vpop.f32.mrf.mxu0  ;;  %v935_v44 = vld [vmem:[%s9370_s5 + $0x748] sm:$0xff] }
 0x1b3   :  { %v641_v2 = vadd.f32 %v640_v62, %v271_v58  ;;  %v684_v3 = vadd.f32 %v683_v63, %v279_v59  ;;  %v690_v19 = vmax.f32 %v639_v6, 0.0  ;;  %v692_v20 = vmax.f32 %v682_v7, 0.0  ;;  %v851_v62 = vld [vmem:[%s9370_s5 + $0x4a8] sm:$0xff] }
 0x1b4   :  { %v642_v0 = vpop.f32.mrf.mxu1  ;;  %v685_v1 = vpop.f32.mrf.mxu0  ;;  %v843_v6 = vld [vmem:[%s9370_s5 + $0x468] sm:$0xff] }
 0x1b5   :  { %v643_v4 = vadd.f32 %v642_v0, %v267_v60  ;;  %v686_v5 = vadd.f32 %v685_v1, %v275_v61  ;;  %v691_v14 = vmax.f32 %v641_v2, 0.0  ;;  %v693_v15 = vmax.f32 %v684_v3, 0.0  ;;  %v723_v60 = vld [vmem:[%s9370_s5 + $0xa8] sm:$0xff] }
 0x1b6   :  { %v644_v8 = vpop.f32.mrf.mxu1  ;;  %v687_v9 = vpop.f32.mrf.mxu0  ;;  %v847_v61 = vld [vmem:[%s9370_s5 + $0x488] sm:$0xff] }
 0x1b7   :  { %v645_v10 = vadd.f32 %v644_v8, %v271_v58  ;;  %v688_v11 = vadd.f32 %v687_v9, %v279_v59  ;;  %v694_v12 = vmax.f32 %v643_v4, 0.0  ;;  %v696_v13 = vmax.f32 %v686_v5, 0.0  ;;  %v719_v59 = vld [vmem:[%s9370_s5 + $0x88] sm:$0xff] }
 0x1b8   :  { %v5628_v1 = vcombine.high %v719_v59, %v723_v60  ;;  %v5756_v2 = vcombine.high %v847_v61, %v851_v62  ;;  %v711_v3 = vld [vmem:[%s9370_s5 + $0x48] sm:$0xff]  ;;  %v5627_v7 = vcombine.low %v719_v59, %v723_v60  ;;  %v5755_v8 = vcombine.low %v847_v61, %v851_v62 }
 0x1b9   :  { %v695_v16 = vmax.f32 %v645_v10, 0.0  ;;  %v697_v17 = vmax.f32 %v688_v11, 0.0  ;;  %v7511_v26 = vpack.c.bf16 %v694_v12, %v690_v19  ;;  %v7513_v30 = vpack.c.bf16 %v696_v13, %v692_v20  ;;  %v715_v4 = vld [vmem:[%s9370_s5 + $0x68] sm:$0xff] }
 0x1ba   :  { %v839_v5 = vld [vmem:[%s9370_s5 + $0x448] sm:$0xff]  ;;  %v5620_v9 = vcombine.high %v711_v3, %v715_v4 }
 0x1bb   :  { %v7507_v24 = vpack.c.bf16 %v695_v16, %v691_v14  ;;  %v7509_v25 = vpack.c.bf16 %v697_v17, %v693_v15  ;;  %v5748_v10 = vcombine.high %v839_v5, %v843_v6  ;;  %v703_v11 = vld [vmem:[%s9370_s5 + $0x8] sm:$0xff]  ;;  %v5619_v15 = vcombine.low %v711_v3, %v715_v4 }
 0x1bc   :  { %v707_v12 = vld [vmem:[%s9370_s5 + $0x28] sm:$0xff]  ;;  %v5747_v16 = vcombine.low %v839_v5, %v843_v6 }
 0x1bd   :  { %2312 = vmatprep.mubr.bf16.mxu1 %v7507_v24  ;;  %2355 = vmatprep.mubr.bf16.mxu0 %v7509_v25  ;;  %v831_v13 = vld [vmem:[%s9370_s5 + $0x408] sm:$0xff]  ;;  %v5612_v17 = vcombine.high %v703_v11, %v707_v12  ;;  %v5611_v23 = vcombine.low %v703_v11, %v707_v12 }
 0x1be   :  { %2313 = vmatmul.mubr.bf16.vlgmr.msra.gmra.mxu1 %v7511_v26  ;;  %2356 = vmatmul.mubr.bf16.vlgmr.msra.gmra.mxu0 %v7513_v30  ;;  %v835_v14 = vld [vmem:[%s9370_s5 + $0x428] sm:$0xff] }
 0x1bf   :  { %2367 = vmatpush1.bf16.msra.mxu1 %v5667_v50  ;;  %2410 = vmatpush1.bf16.msra.mxu0 %v5795_v51  ;;  %v731_v50 = vld [vmem:[%s9370_s5 + $0xe8] sm:$0xff]  ;;  %v5740_v18 = vcombine.high %v831_v13, %v835_v14  ;;  %v5739_v31 = vcombine.low %v831_v13, %v835_v14 }
 0x1c0   :  { %2398 = vmatprep.mubr.bf16.mxu1 %v7507_v24  ;;  %2441 = vmatprep.mubr.bf16.mxu0 %v7509_v25  ;;  %v855_v51 = vld [vmem:[%s9370_s5 + $0x4c8] sm:$0xff]  ;;  %v5636_v57 = vcombine.high %v727_v49, %v731_v50  ;;  %v5635_v63 = vcombine.low %v727_v49, %v731_v50 }
 0x1c1   :  { %2368 = vmatprep.subr.bf16.mxu1 %v5660_v32  ;;  %2411 = vmatprep.subr.bf16.mxu0 %v5788_v33  ;;  %v5764_v58 = vcombine.high %v855_v51, %v859_v52  ;;  %v5763_v0 = vcombine.low %v855_v51, %v859_v52  ;;  %v823_v19 = vld [vmem:[%s9370_s5 + $0x3c8] sm:$0xff]  ;;  %v5860_v33 = vcombine.high %v951_v21, %v955_v22 }
 0x1c2   :  { %v827_v20 = vld [vmem:[%s9370_s5 + $0x3e8] sm:$0xff] }
 0x1c3   :  { %2369 = vmatpush1.bf16.msra.mxu1 %v5659_v37  ;;  %2412 = vmatpush1.bf16.msra.mxu0 %v5787_v38  ;;  %v5732_v32 = vcombine.high %v823_v19, %v827_v20  ;;  %v947_v37 = vld [vmem:[%s9370_s5 + $0x7a8] sm:$0xff]  ;;  %v5731_v38 = vcombine.low %v823_v19, %v827_v20 }
 0x1c4   :  { %2370 = vmatprep.subr.bf16.mxu1 %v5652_v39  ;;  %2413 = vmatprep.subr.bf16.mxu0 %v5780_v40  ;;  %v5859_v39 = vcombine.low %v951_v21, %v955_v22  ;;  %v5724_v40 = vcombine.high %v815_v34, %v819_v35  ;;  %v5852_v41 = vcombine.high %v943_v36, %v947_v37  ;;  %v799_v50 = vld [vmem:[%s9370_s5 + $0x308] sm:$0xff] }
 0x1c5   :  { %v803_v51 = vld [vmem:[%s9370_s5 + $0x328] sm:$0xff] }
 0x1c6   :  { %v927_v52 = vld [vmem:[%s9370_s5 + $0x708] sm:$0xff] }
 0x1c7   :  { %2371 = vmatpush1.bf16.msra.mxu1 %v5651_v45  ;;  %2414 = vmatpush1.bf16.msra.mxu0 %v5779_v46  ;;  %v939_v45 = vld [vmem:[%s9370_s5 + $0x768] sm:$0xff]  ;;  %v5723_v46 = vcombine.low %v815_v34, %v819_v35  ;;  %v760_v35 = vld [vmem:[%s9370_s5 + $0x1d0] sm:$0xff] }
 0x1c8   :  { %2372 = vmatprep.subr.bf16.mxu1 %v5644_v47  ;;  %2415 = vmatprep.subr.bf16.mxu0 %v5772_v48  ;;  %v5851_v47 = vcombine.low %v943_v36, %v947_v37  ;;  %v5716_v48 = vcombine.high %v807_v42, %v811_v43  ;;  %v5844_v49 = vcombine.high %v935_v44, %v939_v45  ;;  %v791_v60 = vld [vmem:[%s9370_s5 + $0x2c8] sm:$0xff]  ;;  %v764_v36 = vld [vmem:[%s9370_s5 + $0x1f0] sm:$0xff] }
 0x1c9   :  { %v795_v61 = vld [vmem:[%s9370_s5 + $0x2e8] sm:$0xff]  ;;  %v888_v37 = vld [vmem:[%s9370_s5 + $0x5d0] sm:$0xff] }
 0x1ca   :  { %v919_v62 = vld [vmem:[%s9370_s5 + $0x6c8] sm:$0xff] }
 0x1cb   :  { %2373 = vmatpush1.bf16.msra.mxu1 %v5643_v55  ;;  %2416 = vmatpush1.bf16.msra.mxu0 %v5771_v56  ;;  %v931_v55 = vld [vmem:[%s9370_s5 + $0x728] sm:$0xff]  ;;  %v5715_v56 = vcombine.low %v807_v42, %v811_v43  ;;  %v752_v43 = vld [vmem:[%s9370_s5 + $0x190] sm:$0xff] }
 0x1cc   :  { %2374 = vmatprep.subr.bf16.mxu1 %v5636_v57  ;;  %2417 = vmatprep.subr.bf16.mxu0 %v5764_v58  ;;  %v5843_v57 = vcombine.low %v935_v44, %v939_v45  ;;  %v5708_v58 = vcombine.high %v799_v50, %v803_v51  ;;  %v5836_v59 = vcombine.high %v927_v52, %v931_v55  ;;  %v783_v4 = vld [vmem:[%s9370_s5 + $0x288] sm:$0xff]  ;;  %v756_v44 = vld [vmem:[%s9370_s5 + $0x1b0] sm:$0xff] }
 0x1cd   :  { %v787_v5 = vld [vmem:[%s9370_s5 + $0x2a8] sm:$0xff]  ;;  %v880_v45 = vld [vmem:[%s9370_s5 + $0x590] sm:$0xff] }
 0x1ce   :  { %v911_v6 = vld [vmem:[%s9370_s5 + $0x688] sm:$0xff] }
 0x1cf   :  { %2375 = vmatpush1.bf16.msra.mxu1 %v5635_v63  ;;  %2418 = vmatpush1.bf16.msra.mxu0 %v5763_v0  ;;  %v923_v63 = vld [vmem:[%s9370_s5 + $0x6e8] sm:$0xff]  ;;  %v5707_v0 = vcombine.low %v799_v50, %v803_v51  ;;  %v744_v51 = vld [vmem:[%s9370_s5 + $0x150] sm:$0xff] }
 0x1d0   :  { %2376 = vmatprep.subr.bf16.mxu1 %v5628_v1  ;;  %2419 = vmatprep.subr.bf16.mxu0 %v5756_v2  ;;  %v5835_v1 = vcombine.low %v927_v52, %v931_v55  ;;  %v5700_v2 = vcombine.high %v791_v60, %v795_v61  ;;  %v5828_v3 = vcombine.high %v919_v62, %v923_v63  ;;  %v775_v12 = vld [vmem:[%s9370_s5 + $0x248] sm:$0xff]  ;;  %v748_v52 = vld [vmem:[%s9370_s5 + $0x170] sm:$0xff] }
 0x1d1   :  { %v779_v13 = vld [vmem:[%s9370_s5 + $0x268] sm:$0xff]  ;;  %v872_v55 = vld [vmem:[%s9370_s5 + $0x550] sm:$0xff] }
 0x1d2   :  { %v903_v14 = vld [vmem:[%s9370_s5 + $0x648] sm:$0xff] }
 0x1d3   :  { %2377 = vmatpush1.bf16.msra.mxu1 %v5627_v7  ;;  %2420 = vmatpush1.bf16.msra.mxu0 %v5755_v8  ;;  %v915_v7 = vld [vmem:[%s9370_s5 + $0x6a8] sm:$0xff]  ;;  %v5699_v8 = vcombine.low %v791_v60, %v795_v61  ;;  %v5654_v61 = vcombine.high %v744_v51, %v748_v52 }
 0x1d4   :  { %2378 = vmatprep.subr.bf16.mxu1 %v5620_v9  ;;  %2421 = vmatprep.subr.bf16.mxu0 %v5748_v10  ;;  %v5827_v9 = vcombine.low %v919_v62, %v923_v63  ;;  %v5692_v10 = vcombine.high %v783_v4, %v787_v5  ;;  %v5820_v11 = vcombine.high %v911_v6, %v915_v7  ;;  %v767_v20 = vld [vmem:[%s9370_s5 + $0x208] sm:$0xff]  ;;  %v864_v62 = vld [vmem:[%s9370_s5 + $0x510] sm:$0xff] }
 0x1d5   :  { %v771_v21 = vld [vmem:[%s9370_s5 + $0x228] sm:$0xff] }
 0x1d6   :  { %v895_v22 = vld [vmem:[%s9370_s5 + $0x608] sm:$0xff] }
 0x1d7   :  { %2379 = vmatpush1.bf16.msra.mxu1 %v5619_v15  ;;  %2422 = vmatpush1.bf16.msra.mxu0 %v5747_v16  ;;  %v907_v15 = vld [vmem:[%s9370_s5 + $0x668] sm:$0xff]  ;;  %v5691_v16 = vcombine.low %v783_v4, %v787_v5 }
 0x1d8   :  { %2380 = vmatprep.subr.bf16.mxu1 %v5612_v17  ;;  %2423 = vmatprep.subr.bf16.mxu0 %v5740_v18  ;;  %v5819_v17 = vcombine.low %v911_v6, %v915_v7  ;;  %v5684_v18 = vcombine.high %v775_v12, %v779_v13  ;;  %v5812_v19 = vcombine.high %v903_v14, %v907_v15  ;;  %v856_v6 = vld [vmem:[%s9370_s5 + $0x4d0] sm:$0xff] }
 0x1db   :  { %2381 = vmatpush1.bf16.msra.mxu1 %v5611_v23  ;;  %2424 = vmatpush1.bf16.msra.mxu0 %v5739_v31  ;;  %v899_v23 = vld [vmem:[%s9370_s5 + $0x628] sm:$0xff]  ;;  %v5683_v31 = vcombine.low %v775_v12, %v779_v13 }
 0x1dc   :  { %2382 = vmatprep.subr.bf16.mxu1 %v5732_v32  ;;  %2425 = vmatprep.subr.bf16.mxu0 %v5860_v33  ;;  %v5811_v32 = vcombine.low %v903_v14, %v907_v15  ;;  %v5676_v33 = vcombine.high %v767_v20, %v771_v21  ;;  %v5804_v34 = vcombine.high %v895_v22, %v899_v23  ;;  %v848_v14 = vld [vmem:[%s9370_s5 + $0x490] sm:$0xff] }
 0x1df   :  { %2383 = vmatpush2.bf16.msra.mxu1 %v5731_v38  ;;  %2426 = vmatpush2.bf16.msra.mxu0 %v5859_v39  ;;  %v892_v38 = vld [vmem:[%s9370_s5 + $0x5f0] sm:$0xff]  ;;  %v5675_v39 = vcombine.low %v767_v20, %v771_v21 }
 0x1e0   :  { %2384 = vmatprep.subr.bf16.mxu1 %v5724_v40  ;;  %2427 = vmatprep.subr.bf16.mxu0 %v5852_v41  ;;  %v5803_v40 = vcombine.low %v895_v22, %v899_v23  ;;  %v5670_v41 = vcombine.high %v760_v35, %v764_v36  ;;  %v5798_v42 = vcombine.high %v888_v37, %v892_v38  ;;  %v840_v23 = vld [vmem:[%s9370_s5 + $0x450] sm:$0xff] }
 0x1e3   :  { %2385 = vmatpush2.bf16.msra.mxu1 %v5723_v46  ;;  %2428 = vmatpush2.bf16.msra.mxu0 %v5851_v47  ;;  %v884_v46 = vld [vmem:[%s9370_s5 + $0x5b0] sm:$0xff]  ;;  %v5669_v47 = vcombine.low %v760_v35, %v764_v36 }
 0x1e4   :  { %2386 = vmatprep.subr.bf16.mxu1 %v5716_v48  ;;  %2429 = vmatprep.subr.bf16.mxu0 %v5844_v49  ;;  %v5797_v48 = vcombine.low %v888_v37, %v892_v38  ;;  %v5662_v49 = vcombine.high %v752_v43, %v756_v44  ;;  %v5790_v50 = vcombine.high %v880_v45, %v884_v46  ;;  %v832_v37 = vld [vmem:[%s9370_s5 + $0x410] sm:$0xff] }
 0x1e5   :  { %v5789_v60 = vcombine.low %v880_v45, %v884_v46  ;;  %v836_v38 = vld [vmem:[%s9370_s5 + $0x430] sm:$0xff] }
 0x1e6   :  { %v952_v45 = vld [vmem:[%s9370_s5 + $0x7d0] sm:$0xff] }
 0x1e7   :  { %2387 = vmatpush2.bf16.msra.mxu1 %v5715_v56  ;;  %2430 = vmatpush2.bf16.msra.mxu0 %v5843_v57  ;;  %v876_v56 = vld [vmem:[%s9370_s5 + $0x570] sm:$0xff]  ;;  %v5661_v57 = vcombine.low %v752_v43, %v756_v44 }
 0x1e8   :  { %2388 = vmatprep.subr.bf16.mxu1 %v5708_v58  ;;  %2431 = vmatprep.subr.bf16.mxu0 %v5836_v59  ;;  %v736_v58 = vld [vmem:[%s9370_s5 + $0x110] sm:$0xff]  ;;  %v5782_v63 = vcombine.high %v872_v55, %v876_v56  ;;  %v5781_v4 = vcombine.low %v872_v55, %v876_v56 }
 0x1e9   :  { %v740_v59 = vld [vmem:[%s9370_s5 + $0x130] sm:$0xff] }
 0x1ea   :  { %v5646_v5 = vcombine.high %v736_v58, %v740_v59  ;;  %v956_v46 = vld [vmem:[%s9370_s5 + $0x7f0] sm:$0xff] }
 0x1eb   :  { %2389 = vmatpush2.bf16.msra.mxu1 %v5707_v0  ;;  %2432 = vmatpush2.bf16.msra.mxu0 %v5835_v1  ;;  %v868_v0 = vld [vmem:[%s9370_s5 + $0x530] sm:$0xff]  ;;  %v5653_v1 = vcombine.low %v744_v51, %v748_v52  ;;  %v5741_v51 = vcombine.low %v832_v37, %v836_v38 }
 0x1ec   :  { %2390 = vmatprep.subr.bf16.mxu1 %v5700_v2  ;;  %2433 = vmatprep.subr.bf16.mxu0 %v5828_v3  ;;  %v728_v2 = vld [vmem:[%s9370_s5 + $0xd0] sm:$0xff]  ;;  %v5774_v7 = vcombine.high %v864_v62, %v868_v0  ;;  %v5773_v12 = vcombine.low %v864_v62, %v868_v0 }
 0x1ed   :  { %v732_v3 = vld [vmem:[%s9370_s5 + $0xf0] sm:$0xff] }
 0x1ee   :  { %v5638_v13 = vcombine.high %v728_v2, %v732_v3  ;;  %v944_v55 = vld [vmem:[%s9370_s5 + $0x790] sm:$0xff] }
 0x1ef   :  { %2391 = vmatpush2.bf16.msra.mxu1 %v5699_v8  ;;  %2434 = vmatpush2.bf16.msra.mxu0 %v5827_v9  ;;  %v860_v8 = vld [vmem:[%s9370_s5 + $0x4f0] sm:$0xff]  ;;  %v5645_v9 = vcombine.low %v736_v58, %v740_v59 }
 0x1f0   :  { %2392 = vmatprep.subr.bf16.mxu1 %v5692_v10  ;;  %2435 = vmatprep.subr.bf16.mxu0 %v5820_v11  ;;  %v720_v10 = vld [vmem:[%s9370_s5 + $0x90] sm:$0xff]  ;;  %v5766_v15 = vcombine.high %v856_v6, %v860_v8  ;;  %v5765_v20 = vcombine.low %v856_v6, %v860_v8 }
 0x1f1   :  { %v724_v11 = vld [vmem:[%s9370_s5 + $0xb0] sm:$0xff] }
 0x1f2   :  { %v5630_v21 = vcombine.high %v720_v10, %v724_v11  ;;  %v948_v56 = vld [vmem:[%s9370_s5 + $0x7b0] sm:$0xff] }
 0x1f3   :  { %2393 = vmatpush2.bf16.msra.mxu1 %v5691_v16  ;;  %2436 = vmatpush2.bf16.msra.mxu0 %v5819_v17  ;;  %v852_v16 = vld [vmem:[%s9370_s5 + $0x4b0] sm:$0xff]  ;;  %v5637_v17 = vcombine.low %v728_v2, %v732_v3 }
 0x1f4   :  { %2394 = vmatprep.subr.bf16.mxu1 %v5684_v18  ;;  %2437 = vmatprep.subr.bf16.mxu0 %v5812_v19  ;;  %v712_v18 = vld [vmem:[%s9370_s5 + $0x50] sm:$0xff]  ;;  %v5758_v22 = vcombine.high %v848_v14, %v852_v16  ;;  %v5757_v35 = vcombine.low %v848_v14, %v852_v16 }
 0x1f5   :  { %v716_v19 = vld [vmem:[%s9370_s5 + $0x70] sm:$0xff] }
 0x1f6   :  { %v5622_v36 = vcombine.high %v712_v18, %v716_v19  ;;  %v808_v59 = vld [vmem:[%s9370_s5 + $0x350] sm:$0xff] }
 0x1f7   :  { %2395 = vmatpush2.bf16.msra.mxu1 %v5683_v31  ;;  %2438 = vmatpush2.bf16.msra.mxu0 %v5811_v32  ;;  %v844_v31 = vld [vmem:[%s9370_s5 + $0x470] sm:$0xff]  ;;  %v5629_v32 = vcombine.low %v720_v10, %v724_v11 }
 0x1f8   :  { %2396 = vmatprep.subr.bf16.mxu1 %v5676_v33  ;;  %2439 = vmatprep.subr.bf16.mxu0 %v5804_v34  ;;  %v704_v33 = vld [vmem:[%s9370_s5 + $0x10] sm:$0xff]  ;;  %v5749_v43 = vcombine.low %v840_v23, %v844_v31 }
 0x1f9   :  { %v708_v34 = vld [vmem:[%s9370_s5 + $0x30] sm:$0xff] }
 0x1fa   :  { %v5614_v44 = vcombine.high %v704_v33, %v708_v34  ;;  %v940_v0 = vld [vmem:[%s9370_s5 + $0x770] sm:$0xff] }
 0x1fb   :  { %2397 = vmatpush2.bf16.msra.mxu1 %v5675_v39  ;;  %2440 = vmatpush2.bf16.msra.mxu0 %v5803_v40  ;;  %v5750_v39 = vcombine.high %v840_v23, %v844_v31  ;;  %v5621_v40 = vcombine.low %v712_v18, %v716_v19  ;;  %v800_v3 = vld [vmem:[%s9370_s5 + $0x310] sm:$0xff] }
 0x1fc   :  { %2452 = vmatprep.subr.bf16.mxu1 %v5670_v41  ;;  %2495 = vmatprep.subr.bf16.mxu0 %v5798_v42  ;;  %v824_v41 = vld [vmem:[%s9370_s5 + $0x3d0] sm:$0xff] }
 0x1fd   :  { %v828_v42 = vld [vmem:[%s9370_s5 + $0x3f0] sm:$0xff] }
 0x1fe   :  { %2399 = vmatmul.mubr.bf16.vlgmr.msra.gmra.mxu1 %v7511_v26  ;;  %2442 = vmatmul.mubr.bf16.vlgmr.msra.gmra.mxu0 %v7513_v30  ;;  %v5734_v52 = vcombine.high %v824_v41, %v828_v42  ;;  %v5733_v58 = vcombine.low %v824_v41, %v828_v42  ;;  %v932_v8 = vld [vmem:[%s9370_s5 + $0x730] sm:$0xff] }
 0x1ff   :  { %2453 = vmatpush1.bf16.msra.mxu1 %v5669_v47  ;;  %2484 = vmatprep.mubr.bf16.mxu1 %v7507_v24  ;;  %v5742_v47 = vcombine.high %v832_v37, %v836_v38  ;;  %v792_v11 = vld [vmem:[%s9370_s5 + $0x2d0] sm:$0xff] }
 0x200   :  { %2496 = vmatpush1.bf16.msra.mxu0 %v5797_v48  ;;  %2527 = vmatprep.mubr.bf16.mxu0 %v7509_v25  ;;  %v5613_v48 = vcombine.low %v704_v33, %v708_v34  ;;  %v924_v16 = vld [vmem:[%s9370_s5 + $0x6f0] sm:$0xff] }
 0x201   :  { %2454 = vmatprep.subr.bf16.mxu1 %v5662_v49  ;;  %2497 = vmatprep.subr.bf16.mxu0 %v5790_v50  ;;  %v816_v49 = vld [vmem:[%s9370_s5 + $0x390] sm:$0xff] }
 0x202   :  { %v820_v50 = vld [vmem:[%s9370_s5 + $0x3b0] sm:$0xff] }
 0x203   :  { %2455 = vmatpush1.bf16.msra.mxu1 %v5661_v57  ;;  %v5862_v57 = vcombine.high %v952_v45, %v956_v46  ;;  %v5726_v62 = vcombine.high %v816_v49, %v820_v50  ;;  %v5725_v2 = vcombine.low %v816_v49, %v820_v50  ;;  %v784_v19 = vld [vmem:[%s9370_s5 + $0x290] sm:$0xff]  ;;  %v761_v50 = vld [vmem:[%s9370_s5 + $0x1d8] sm:$0xff] }
 0x204   :  { %2498 = vmatpush1.bf16.msra.mxu0 %v5789_v60  ;;  %2456 = vmatprep.subr.bf16.mxu1 %v5654_v61  ;;  %v812_v60 = vld [vmem:[%s9370_s5 + $0x370] sm:$0xff]  ;;  %v5861_v61 = vcombine.low %v952_v45, %v956_v46 }
 0x205   :  { %2499 = vmatprep.subr.bf16.mxu0 %v5782_v63  ;;  %v936_v63 = vld [vmem:[%s9370_s5 + $0x750] sm:$0xff]  ;;  %v5718_v6 = vcombine.high %v808_v59, %v812_v60  ;;  %v5717_v10 = vcombine.low %v808_v59, %v812_v60 }
 0x206   :  { %v912_v23 = vld [vmem:[%s9370_s5 + $0x690] sm:$0xff] }
 0x207   :  { %2457 = vmatpush1.bf16.msra.mxu1 %v5653_v1  ;;  %v5854_v1 = vcombine.high %v944_v55, %v948_v56  ;;  %v916_v31 = vld [vmem:[%s9370_s5 + $0x6b0] sm:$0xff] }
 0x208   :  { %2500 = vmatpush1.bf16.msra.mxu0 %v5781_v4  ;;  %2458 = vmatprep.subr.bf16.mxu1 %v5646_v5  ;;  %v804_v4 = vld [vmem:[%s9370_s5 + $0x330] sm:$0xff]  ;;  %v5853_v5 = vcombine.low %v944_v55, %v948_v56  ;;  %v889_v56 = vld [vmem:[%s9370_s5 + $0x5d8] sm:$0xff] }
 0x209   :  { %2501 = vmatprep.subr.bf16.mxu0 %v5774_v7  ;;  %v928_v7 = vld [vmem:[%s9370_s5 + $0x710] sm:$0xff]  ;;  %v5710_v14 = vcombine.high %v800_v3, %v804_v4  ;;  %v5709_v18 = vcombine.low %v800_v3, %v804_v4  ;;  %v745_v4 = vld [vmem:[%s9370_s5 + $0x158] sm:$0xff] }
 0x20a   :  { %v776_v34 = vld [vmem:[%s9370_s5 + $0x250] sm:$0xff] }
 0x20b   :  { %2459 = vmatpush1.bf16.msra.mxu1 %v5645_v9  ;;  %v5846_v9 = vcombine.high %v936_v63, %v940_v0  ;;  %v904_v38 = vld [vmem:[%s9370_s5 + $0x650] sm:$0xff] }
 0x20c   :  { %2502 = vmatpush1.bf16.msra.mxu0 %v5773_v12  ;;  %2460 = vmatprep.subr.bf16.mxu1 %v5638_v13  ;;  %v796_v12 = vld [vmem:[%s9370_s5 + $0x2f0] sm:$0xff]  ;;  %v5845_v13 = vcombine.low %v936_v63, %v940_v0  ;;  %v757_v63 = vld [vmem:[%s9370_s5 + $0x1b8] sm:$0xff] }
 0x20d   :  { %2503 = vmatprep.subr.bf16.mxu0 %v5766_v15  ;;  %v920_v15 = vld [vmem:[%s9370_s5 + $0x6d0] sm:$0xff]  ;;  %v5701_v33 = vcombine.low %v792_v11, %v796_v12 }
 0x20e   :  { %v768_v42 = vld [vmem:[%s9370_s5 + $0x210] sm:$0xff] }
 0x20f   :  { %2461 = vmatpush1.bf16.msra.mxu1 %v5637_v17  ;;  %v5838_v17 = vcombine.high %v928_v7, %v932_v8  ;;  %v896_v46 = vld [vmem:[%s9370_s5 + $0x610] sm:$0xff] }
 0x210   :  { %2504 = vmatpush1.bf16.msra.mxu0 %v5765_v20  ;;  %2462 = vmatprep.subr.bf16.mxu1 %v5630_v21  ;;  %v788_v20 = vld [vmem:[%s9370_s5 + $0x2b0] sm:$0xff]  ;;  %v5837_v21 = vcombine.low %v928_v7, %v932_v8  ;;  %v873_v7 = vld [vmem:[%s9370_s5 + $0x558] sm:$0xff] }
 0x211   :  { %2505 = vmatprep.subr.bf16.mxu0 %v5758_v22  ;;  %v5702_v22 = vcombine.high %v792_v11, %v796_v12  ;;  %v5694_v37 = vcombine.high %v784_v19, %v788_v20  ;;  %v5693_v41 = vcombine.low %v784_v19, %v788_v20  ;;  %v737_v12 = vld [vmem:[%s9370_s5 + $0x118] sm:$0xff] }
 0x212   :  { %v733_v20 = vld [vmem:[%s9370_s5 + $0xf8] sm:$0xff] }
 0x213   :  { %2463 = vmatpush1.bf16.msra.mxu1 %v5629_v32  ;;  %v5830_v32 = vcombine.high %v920_v15, %v924_v16 }
 0x214   :  { %2506 = vmatpush1.bf16.msra.mxu0 %v5757_v35  ;;  %2464 = vmatprep.subr.bf16.mxu1 %v5622_v36  ;;  %v780_v35 = vld [vmem:[%s9370_s5 + $0x270] sm:$0xff]  ;;  %v5829_v36 = vcombine.low %v920_v15, %v924_v16  ;;  %v865_v16 = vld [vmem:[%s9370_s5 + $0x518] sm:$0xff] }
 0x215   :  { %2507 = vmatprep.subr.bf16.mxu0 %v5750_v39  ;;  %v908_v39 = vld [vmem:[%s9370_s5 + $0x670] sm:$0xff]  ;;  %v5686_v45 = vcombine.high %v776_v34, %v780_v35  ;;  %v5685_v49 = vcombine.low %v776_v34, %v780_v35  ;;  %v725_v34 = vld [vmem:[%s9370_s5 + $0xb8] sm:$0xff] }
 0x217   :  { %2465 = vmatpush1.bf16.msra.mxu1 %v5621_v40  ;;  %v5822_v40 = vcombine.high %v912_v23, %v916_v31 }
 0x218   :  { %2508 = vmatpush1.bf16.msra.mxu0 %v5749_v43  ;;  %2466 = vmatprep.subr.bf16.mxu1 %v5614_v44  ;;  %v772_v43 = vld [vmem:[%s9370_s5 + $0x230] sm:$0xff]  ;;  %v5821_v44 = vcombine.low %v912_v23, %v916_v31  ;;  %v861_v31 = vld [vmem:[%s9370_s5 + $0x4f8] sm:$0xff] }
 0x219   :  { %2509 = vmatprep.subr.bf16.mxu0 %v5742_v47  ;;  %v900_v47 = vld [vmem:[%s9370_s5 + $0x630] sm:$0xff]  ;;  %v5678_v55 = vcombine.high %v768_v42, %v772_v43  ;;  %v5677_v59 = vcombine.low %v768_v42, %v772_v43 }
 0x21a   :  { %v5805_v60 = vcombine.low %v896_v46, %v900_v47 }
 0x21b   :  { %2467 = vmatpush1.bf16.msra.mxu1 %v5613_v48  ;;  %v5814_v48 = vcombine.high %v904_v38, %v908_v39 }
 0x21c   :  { %2510 = vmatpush1.bf16.msra.mxu0 %v5741_v51  ;;  %2468 = vmatprep.subr.bf16.mxu1 %v5734_v52  ;;  %v765_v51 = vld [vmem:[%s9370_s5 + $0x1f8] sm:$0xff]  ;;  %v5813_v52 = vcombine.low %v904_v38, %v908_v39 }
 0x21d   :  { %2511 = vmatprep.subr.bf16.mxu0 %v5862_v57  ;;  %v893_v57 = vld [vmem:[%s9370_s5 + $0x5f8] sm:$0xff]  ;;  %v5671_v3 = vcombine.low %v761_v50, %v765_v51 }
 0x21e   :  { %v5800_v0 = vcombine.high %v889_v56, %v893_v57  ;;  %v853_v39 = vld [vmem:[%s9370_s5 + $0x4b8] sm:$0xff] }
 0x21f   :  { %2469 = vmatpush2.bf16.msra.mxu1 %v5733_v58  ;;  %v5806_v58 = vcombine.high %v896_v46, %v900_v47  ;;  %v841_v46 = vld [vmem:[%s9370_s5 + $0x458] sm:$0xff] }
 0x220   :  { %2512 = vmatpush2.bf16.msra.mxu0 %v5861_v61  ;;  %2470 = vmatprep.subr.bf16.mxu1 %v5726_v62  ;;  %v5672_v61 = vcombine.high %v761_v50, %v765_v51  ;;  %v753_v62 = vld [vmem:[%s9370_s5 + $0x198] sm:$0xff] }
 0x221   :  { %2513 = vmatprep.subr.bf16.mxu0 %v5854_v1  ;;  %v881_v1 = vld [vmem:[%s9370_s5 + $0x598] sm:$0xff]  ;;  %v5664_v8 = vcombine.high %v753_v62, %v757_v63  ;;  %v5663_v11 = vcombine.low %v753_v62, %v757_v63 }
 0x222   :  { %v845_v47 = vld [vmem:[%s9370_s5 + $0x478] sm:$0xff] }
 0x223   :  { %2471 = vmatpush2.bf16.msra.mxu1 %v5725_v2  ;;  %v885_v2 = vld [vmem:[%s9370_s5 + $0x5b8] sm:$0xff] }
 0x224   :  { %2514 = vmatpush2.bf16.msra.mxu0 %v5853_v5  ;;  %2472 = vmatprep.subr.bf16.mxu1 %v5718_v6  ;;  %v749_v5 = vld [vmem:[%s9370_s5 + $0x178] sm:$0xff]  ;;  %v5799_v6 = vcombine.low %v889_v56, %v893_v57  ;;  %v5752_v56 = vcombine.high %v841_v46, %v845_v47 }
 0x225   :  { %2515 = vmatprep.subr.bf16.mxu0 %v5846_v9  ;;  %v5792_v9 = vcombine.high %v881_v1, %v885_v2  ;;  %v5656_v15 = vcombine.high %v745_v4, %v749_v5  ;;  %v5655_v19 = vcombine.low %v745_v4, %v749_v5  ;;  %v705_v51 = vld [vmem:[%s9370_s5 + $0x18] sm:$0xff] }
 0x226   :  { %v837_v57 = vld [vmem:[%s9370_s5 + $0x438] sm:$0xff] }
 0x227   :  { %2473 = vmatpush2.bf16.msra.mxu1 %v5717_v10  ;;  %v877_v10 = vld [vmem:[%s9370_s5 + $0x578] sm:$0xff] }
 0x228   :  { %2516 = vmatpush2.bf16.msra.mxu0 %v5845_v13  ;;  %2474 = vmatprep.subr.bf16.mxu1 %v5710_v14  ;;  %v741_v13 = vld [vmem:[%s9370_s5 + $0x138] sm:$0xff]  ;;  %v5791_v14 = vcombine.low %v881_v1, %v885_v2 }
 0x229   :  { %2517 = vmatprep.subr.bf16.mxu0 %v5838_v17  ;;  %v5784_v17 = vcombine.high %v873_v7, %v877_v10  ;;  %v953_v63 = vld [vmem:[%s9370_s5 + $0x7d8] sm:$0xff] }
 0x22a   :  { %v821_v4 = vld [vmem:[%s9370_s5 + $0x3b8] sm:$0xff] }
 0x22b   :  { %2475 = vmatpush2.bf16.msra.mxu1 %v5709_v18  ;;  %v869_v18 = vld [vmem:[%s9370_s5 + $0x538] sm:$0xff] }
 0x22c   :  { %2518 = vmatpush2.bf16.msra.mxu0 %v5837_v21  ;;  %2476 = vmatprep.subr.bf16.mxu1 %v5702_v22  ;;  %v5648_v21 = vcombine.high %v737_v12, %v741_v13  ;;  %v857_v22 = vld [vmem:[%s9370_s5 + $0x4d8] sm:$0xff]  ;;  %v5776_v23 = vcombine.high %v865_v16, %v869_v18  ;;  %v5775_v35 = vcombine.low %v865_v16, %v869_v18 }
 0x22d   :  { %2519 = vmatprep.subr.bf16.mxu0 %v5830_v32  ;;  %v5647_v32 = vcombine.low %v737_v12, %v741_v13  ;;  %v5768_v38 = vcombine.high %v857_v22, %v861_v31  ;;  %v813_v12 = vld [vmem:[%s9370_s5 + $0x378] sm:$0xff] }
 0x22e   :  { %v941_v16 = vld [vmem:[%s9370_s5 + $0x778] sm:$0xff] }
 0x22f   :  { %2477 = vmatpush2.bf16.msra.mxu1 %v5701_v33  ;;  %v721_v33 = vld [vmem:[%s9370_s5 + $0x98] sm:$0xff] }
 0x230   :  { %2520 = vmatpush2.bf16.msra.mxu0 %v5829_v36  ;;  %2478 = vmatprep.subr.bf16.mxu1 %v5694_v37  ;;  %v849_v37 = vld [vmem:[%s9370_s5 + $0x498] sm:$0xff]  ;;  %v5632_v42 = vcombine.high %v721_v33, %v725_v34 }
 0x231   :  { %2521 = vmatprep.subr.bf16.mxu0 %v5822_v40  ;;  %v5760_v43 = vcombine.high %v849_v37, %v853_v39 }
 0x233   :  { %2479 = vmatpush2.bf16.msra.mxu1 %v5693_v41  ;;  %v5767_v41 = vcombine.low %v857_v22, %v861_v31  ;;  %v933_v22 = vld [vmem:[%s9370_s5 + $0x738] sm:$0xff] }
 0x234   :  { %2522 = vmatpush2.bf16.msra.mxu0 %v5821_v44  ;;  %2480 = vmatprep.subr.bf16.mxu1 %v5686_v45  ;;  %v713_v44 = vld [vmem:[%s9370_s5 + $0x58] sm:$0xff] }
 0x235   :  { %2523 = vmatprep.subr.bf16.mxu0 %v5814_v48  ;;  %v717_v45 = vld [vmem:[%s9370_s5 + $0x78] sm:$0xff]  ;;  %v5631_v48 = vcombine.low %v721_v33, %v725_v34 }
 0x236   :  { %v5624_v50 = vcombine.high %v713_v44, %v717_v45  ;;  %v797_v33 = vld [vmem:[%s9370_s5 + $0x2f8] sm:$0xff] }
 0x237   :  { %2481 = vmatpush2.bf16.msra.mxu1 %v5685_v49  ;;  %v5759_v49 = vcombine.low %v849_v37, %v853_v39  ;;  %v925_v37 = vld [vmem:[%s9370_s5 + $0x6f8] sm:$0xff] }
 0x238   :  { %2524 = vmatpush2.bf16.msra.mxu0 %v5813_v52  ;;  %2482 = vmatprep.subr.bf16.mxu1 %v5678_v55  ;;  %v709_v52 = vld [vmem:[%s9370_s5 + $0x38] sm:$0xff] }
 0x239   :  { %2525 = vmatprep.subr.bf16.mxu0 %v5806_v58  ;;  %v833_v55 = vld [vmem:[%s9370_s5 + $0x418] sm:$0xff]  ;;  %v5623_v58 = vcombine.low %v713_v44, %v717_v45  ;;  %v5616_v62 = vcombine.high %v705_v51, %v709_v52  ;;  %v5615_v2 = vcombine.low %v705_v51, %v709_v52 }
 0x23a   :  { %v5744_v1 = vcombine.high %v833_v55, %v837_v57  ;;  %v5743_v5 = vcombine.low %v833_v55, %v837_v57  ;;  %v913_v44 = vld [vmem:[%s9370_s5 + $0x698] sm:$0xff] }
 0x23b   :  { %2483 = vmatpush2.bf16.msra.mxu1 %v5677_v59  ;;  %v825_v59 = vld [vmem:[%s9370_s5 + $0x3d8] sm:$0xff] }
 0x23c   :  { %2526 = vmatpush2.bf16.msra.mxu0 %v5805_v60  ;;  %2538 = vmatprep.subr.bf16.mxu1 %v5672_v61  ;;  %v829_v60 = vld [vmem:[%s9370_s5 + $0x3f8] sm:$0xff]  ;;  %v5751_v61 = vcombine.low %v841_v46, %v845_v47 }
 0x23d   :  { %2581 = vmatprep.subr.bf16.mxu0 %v5800_v0  ;;  %v957_v0 = vld [vmem:[%s9370_s5 + $0x7f8] sm:$0xff] }
 0x23e   :  { %2485 = vmatmul.mubr.bf16.vlgmr.msra.gmra.mxu1 %v7511_v26  ;;  %v5863_v13 = vcombine.low %v953_v63, %v957_v0  ;;  %v917_v45 = vld [vmem:[%s9370_s5 + $0x6b8] sm:$0xff] }
 0x23f   :  { %2528 = vmatmul.mubr.bf16.vlgmr.msra.gmra.mxu0 %v7513_v30  ;;  %2539 = vmatpush1.bf16.msra.mxu1 %v5671_v3  ;;  %v817_v3 = vld [vmem:[%s9370_s5 + $0x398] sm:$0xff] }
 0x240   :  { %2570 = vmatprep.mubr.bf16.mxu1 %v7507_v24  ;;  %2582 = vmatpush1.bf16.msra.mxu0 %v5799_v6  ;;  %v729_v24 = vld [vmem:[%s9370_s5 + $0xd8] sm:$0xff]  ;;  %v5736_v6 = vcombine.high %v825_v59, %v829_v60  ;;  %v5727_v18 = vcombine.low %v817_v3, %v821_v4 }
 0x241   :  { %2613 = vmatprep.mubr.bf16.mxu0 %v7509_v25  ;;  %2540 = vmatprep.subr.bf16.mxu1 %v5664_v8  ;;  %v5783_v25 = vcombine.low %v873_v7, %v877_v10  ;;  %v5640_v36 = vcombine.high %v729_v24, %v733_v20  ;;  %v5639_v40 = vcombine.low %v729_v24, %v733_v20  ;;  %v945_v7 = vld [vmem:[%s9370_s5 + $0x798] sm:$0xff] }
 0x242   :  { %2583 = vmatprep.subr.bf16.mxu0 %v5792_v9  ;;  %v949_v8 = vld [vmem:[%s9370_s5 + $0x7b8] sm:$0xff]  ;;  %v5864_v9 = vcombine.high %v953_v63, %v957_v0  ;;  %v5735_v10 = vcombine.low %v825_v59, %v829_v60  ;;  %v5823_v60 = vcombine.low %v913_v44, %v917_v45 }
 0x243   :  { %2541 = vmatpush1.bf16.msra.mxu1 %v5663_v11  ;;  %v809_v11 = vld [vmem:[%s9370_s5 + $0x358] sm:$0xff]  ;;  %v5855_v20 = vcombine.low %v945_v7, %v949_v8 }
 0x244   :  { %2584 = vmatpush1.bf16.msra.mxu0 %v5791_v14  ;;  %2542 = vmatprep.subr.bf16.mxu1 %v5656_v15  ;;  %v5728_v14 = vcombine.high %v817_v3, %v821_v4  ;;  %v937_v15 = vld [vmem:[%s9370_s5 + $0x758] sm:$0xff]  ;;  %v5719_v31 = vcombine.low %v809_v11, %v813_v12 }
 0x245   :  { %2585 = vmatprep.subr.bf16.mxu0 %v5784_v17  ;;  %v5856_v17 = vcombine.high %v945_v7, %v949_v8  ;;  %v805_v24 = vld [vmem:[%s9370_s5 + $0x338] sm:$0xff]  ;;  %v5847_v34 = vcombine.low %v937_v15, %v941_v16  ;;  %v6388_v7 = vld [vmem:[%s9373_s7 + $0x454] ss:$24 sps:$4 sm:$0xff]  }
 0x246   :  { %v905_v52 = vld [vmem:[%s9370_s5 + $0x658] sm:$0xff] }
 0x247   :  { %2543 = vmatpush1.bf16.msra.mxu1 %v5655_v19  ;;  %v801_v19 = vld [vmem:[%s9370_s5 + $0x318] sm:$0xff] }
 0x248   :  { %2586 = vmatpush1.bf16.msra.mxu0 %v5783_v25  ;;  %2544 = vmatprep.subr.bf16.mxu1 %v5648_v21  ;;  %v5720_v25 = vcombine.high %v809_v11, %v813_v12  ;;  %v929_v21 = vld [vmem:[%s9370_s5 + $0x718] sm:$0xff]  ;;  %v5711_v39 = vcombine.low %v801_v19, %v805_v24  ;;  %v6386_v12 = vld [vmem:[%s9373_s7 + $0x450] ss:$24 sps:$4 sm:$0xff]  }
 0x249   :  { %2587 = vmatprep.subr.bf16.mxu0 %v5776_v23  ;;  %v5848_v23 = vcombine.high %v937_v15, %v941_v16  ;;  %v909_v55 = vld [vmem:[%s9370_s5 + $0x678] sm:$0xff] }
 0x24a   :  { %v773_v59 = vld [vmem:[%s9370_s5 + $0x238] sm:$0xff]  ;;  %v5816_v0 = vcombine.high %v905_v52, %v909_v55 }
 0x24b   :  { %2545 = vmatpush1.bf16.msra.mxu1 %v5647_v32  ;;  %v793_v32 = vld [vmem:[%s9370_s5 + $0x2d8] sm:$0xff] }
 0x24c   :  { %2588 = vmatpush1.bf16.msra.mxu0 %v5775_v35  ;;  %2546 = vmatprep.subr.bf16.mxu1 %v5640_v36  ;;  %v5712_v35 = vcombine.high %v801_v19, %v805_v24  ;;  %v921_v36 = vld [vmem:[%s9370_s5 + $0x6d8] sm:$0xff]  ;;  %v5703_v47 = vcombine.low %v793_v32, %v797_v33 }
 0x24d   :  { %2589 = vmatprep.subr.bf16.mxu0 %v5768_v38  ;;  %v5840_v38 = vcombine.high %v929_v21, %v933_v22  ;;  %v5832_v46 = vcombine.high %v921_v36, %v925_v37  ;;  %v901_v63 = vld [vmem:[%s9370_s5 + $0x638] sm:$0xff] }
 0x24e   :  { %v6376_v11 = vld [vmem:[%s9373_s7 + $0x124] ss:$24 sps:$4 sm:$0xff]   ;;  %v6374_v15 = vld [vmem:[%s9373_s7 + $0x120] ss:$24 sps:$4 sm:$0xff]  }
 0x24f   :  { %2547 = vmatpush1.bf16.msra.mxu1 %v5639_v40  ;;  %v785_v40 = vld [vmem:[%s9370_s5 + $0x298] sm:$0xff] }
 0x250   :  { %2590 = vmatpush1.bf16.msra.mxu0 %v5767_v41  ;;  %2548 = vmatprep.subr.bf16.mxu1 %v5632_v42  ;;  %v789_v41 = vld [vmem:[%s9370_s5 + $0x2b8] sm:$0xff]  ;;  %v5839_v42 = vcombine.low %v929_v21, %v933_v22  ;;  %v6400_v21 = vld [vmem:[%s9373_s7 + $0x3f4] ss:$24 sps:$4 sm:$0xff]  }
 0x251   :  { %2591 = vmatprep.subr.bf16.mxu0 %v5760_v43  ;;  %v5704_v43 = vcombine.high %v793_v32, %v797_v33  ;;  %v5696_v51 = vcombine.high %v785_v40, %v789_v41  ;;  %v5695_v57 = vcombine.low %v785_v40, %v789_v41  ;;  %v6392_v19 = vld [vmem:[%s9373_s7 + $0x420] ss:$24 sps:$4 sm:$0xff]  }
 0x253   :  { %2549 = vmatpush1.bf16.msra.mxu1 %v5631_v48  ;;  %v777_v48 = vld [vmem:[%s9370_s5 + $0x258] sm:$0xff] }
 0x254   :  { %2592 = vmatpush1.bf16.msra.mxu0 %v5759_v49  ;;  %2550 = vmatprep.subr.bf16.mxu1 %v5624_v50  ;;  %v781_v49 = vld [vmem:[%s9370_s5 + $0x278] sm:$0xff]  ;;  %v5831_v50 = vcombine.low %v921_v36, %v925_v37 }
 0x255   :  { %2593 = vmatprep.subr.bf16.mxu0 %v5752_v56  ;;  %v5824_v56 = vcombine.high %v913_v44, %v917_v45  ;;  %v6406_v36 = vld [vmem:[%s9373_s7 + $0x3c4] ss:$24 sps:$4 sm:$0xff]   ;;  %v6412_v44 = vld [vmem:[%s9373_s7 + $0x394] ss:$24 sps:$4 sm:$0xff]  }
 0x256   :  { %v6391_v45 = vld [vmem:[%s9373_s7 + $0x64] ss:$24 sps:$4 sm:$0xff]  }
 0x257   :  { %2551 = vmatpush1.bf16.msra.mxu1 %v5623_v58  ;;  %v769_v58 = vld [vmem:[%s9370_s5 + $0x218] sm:$0xff] }
 0x258   :  { %2594 = vmatpush1.bf16.msra.mxu0 %v5751_v61  ;;  %2552 = vmatprep.subr.bf16.mxu1 %v5616_v62  ;;  %v5688_v61 = vcombine.high %v777_v48, %v781_v49  ;;  %v897_v62 = vld [vmem:[%s9370_s5 + $0x618] sm:$0xff]  ;;  %v5680_v3 = vcombine.high %v769_v58, %v773_v59 }
 0x259   :  { %2595 = vmatprep.subr.bf16.mxu0 %v5744_v1  ;;  %v5687_v1 = vcombine.low %v777_v48, %v781_v49  ;;  %v5808_v4 = vcombine.high %v897_v62, %v901_v63  ;;  %v5807_v8 = vcombine.low %v897_v62, %v901_v63  ;;  %v6418_v48 = vld [vmem:[%s9373_s7 + $0x364] ss:$24 sps:$4 sm:$0xff]   ;;  %v6389_v49 = vld [vmem:[%s9373_s7 + $0x60] ss:$24 sps:$4 sm:$0xff]   ;;  %v6436_v62 = vld [vmem:[%s9373_s7 + $0x5d4] ss:$24 sps:$4 sm:$0xff]  }
 0x25a   :  { %v6407_v63 = vld [vmem:[%s9373_s7 + $0x2d0] ss:$24 sps:$4 sm:$0xff]  }
 0x25b   :  { %2553 = vmatpush1.bf16.msra.mxu1 %v5615_v2  ;;  %v5815_v2 = vcombine.low %v905_v52, %v909_v55  ;;  %v6424_v52 = vld [vmem:[%s9373_s7 + $0x334] ss:$24 sps:$4 sm:$0xff]   ;;  %v6395_v55 = vld [vmem:[%s9373_s7 + $0x30] ss:$24 sps:$4 sm:$0xff]  }
 0x25c   :  { %2596 = vmatpush1.bf16.msra.mxu0 %v5743_v5  ;;  %2554 = vmatprep.subr.bf16.mxu1 %v5736_v6  ;;  %v6373_v5 = vld [vmem:[%s9373_s7 + $0x154] ss:$24 sps:$4 sm:$0xff]   ;;  %v5679_v6 = vcombine.low %v769_v58, %v773_v59  ;;  %v6430_v58 = vld [vmem:[%s9373_s7 + $0x304] ss:$24 sps:$4 sm:$0xff]   ;;  %v6401_v59 = vld [vmem:[%s9373_s7] ss:$24 sps:$4 sm:$0xff]  }
 0x25d   :  { %2597 = vmatprep.subr.bf16.mxu0 %v5864_v9  ;;  %v6371_v9 = vld [vmem:[%s9373_s7 + $0x150] ss:$24 sps:$4 sm:$0xff]  }
 0x25f   :  { %2555 = vmatpush2.bf16.msra.mxu1 %v5735_v10  ;;  %v8093_v10 = vld [vmem:[%s9374_s6] sm:$0xff] }
 0x260   :  { %2598 = vmatpush2.bf16.msra.mxu0 %v5863_v13  ;;  %2556 = vmatprep.subr.bf16.mxu1 %v5728_v14  ;;  %v6394_v13 = vld [vmem:[%s9373_s7 + $0x424] ss:$24 sps:$4 sm:$0xff]   ;;  %v967_v14 = vrot.slane %v8093_v10, %v7280_v28 }
 0x261   :  { %2599 = vmatprep.subr.bf16.mxu0 %v5856_v17 }
 0x263   :  { %2557 = vmatpush2.bf16.msra.mxu1 %v5727_v18  ;;  %v6379_v18 = vld [vmem:[%s9373_s7 + $0xf4] ss:$24 sps:$4 sm:$0xff]  }
 0x264   :  { %2600 = vmatpush2.bf16.msra.mxu0 %v5855_v20  ;;  %2558 = vmatprep.subr.bf16.mxu1 %v5720_v25  ;;  %v6377_v25 = vld [vmem:[%s9373_s7 + $0xf0] ss:$24 sps:$4 sm:$0xff]  }
 0x265   :  { %2601 = vmatprep.subr.bf16.mxu0 %v5848_v23 }
 0x267   :  { %2559 = vmatpush2.bf16.msra.mxu1 %v5719_v31  ;;  %v6398_v31 = vld [vmem:[%s9373_s7 + $0x3f0] ss:$24 sps:$4 sm:$0xff]  }
 0x268   :  { %2602 = vmatpush2.bf16.msra.mxu0 %v5847_v34  ;;  %2560 = vmatprep.subr.bf16.mxu1 %v5712_v35  ;;  %v6380_v35 = vld [vmem:[%s9373_s7 + $0xc0] ss:$24 sps:$4 sm:$0xff]  }
 0x269   :  { %2603 = vmatprep.subr.bf16.mxu0 %v5840_v38  ;;  %v6385_v38 = vld [vmem:[%s9373_s7 + $0x94] ss:$24 sps:$4 sm:$0xff]  }
 0x26b   :  { %2561 = vmatpush2.bf16.msra.mxu1 %v5711_v39  ;;  %v6404_v39 = vld [vmem:[%s9373_s7 + $0x3c0] ss:$24 sps:$4 sm:$0xff]  }
 0x26c   :  { %2604 = vmatpush2.bf16.msra.mxu0 %v5839_v42  ;;  %2562 = vmatprep.subr.bf16.mxu1 %v5704_v43  ;;  %v6383_v43 = vld [vmem:[%s9373_s7 + $0x90] ss:$24 sps:$4 sm:$0xff]  }
 0x26d   :  { %2605 = vmatprep.subr.bf16.mxu0 %v5832_v46  ;;  %v6410_v46 = vld [vmem:[%s9373_s7 + $0x390] ss:$24 sps:$4 sm:$0xff]  }
 0x26f   :  { %2563 = vmatpush2.bf16.msra.mxu1 %v5703_v47 }
 0x270   :  { %2606 = vmatpush2.bf16.msra.mxu0 %v5831_v50  ;;  %2564 = vmatprep.subr.bf16.mxu1 %v5696_v51  ;;  %v6397_v50 = vld [vmem:[%s9373_s7 + $0x34] ss:$24 sps:$4 sm:$0xff]   ;;  %v6416_v51 = vld [vmem:[%s9373_s7 + $0x360] ss:$24 sps:$4 sm:$0xff]  }
 0x271   :  { %2607 = vmatprep.subr.bf16.mxu0 %v5824_v56  ;;  %v6403_v56 = vld [vmem:[%s9373_s7 + $0x4] ss:$24 sps:$4 sm:$0xff]  }
 0x273   :  { %2565 = vmatpush2.bf16.msra.mxu1 %v5695_v57  ;;  %v6422_v57 = vld [vmem:[%s9373_s7 + $0x330] ss:$24 sps:$4 sm:$0xff]  }
 0x274   :  { %2608 = vmatpush2.bf16.msra.mxu0 %v5823_v60  ;;  %2566 = vmatprep.subr.bf16.mxu1 %v5688_v61  ;;  %v6409_v60 = vld [vmem:[%s9373_s7 + $0x2d4] ss:$24 sps:$4 sm:$0xff]   ;;  %v6428_v61 = vld [vmem:[%s9373_s7 + $0x300] ss:$24 sps:$4 sm:$0xff]  }
 0x275   :  { %2609 = vmatprep.subr.bf16.mxu0 %v5816_v0  ;;  %v6415_v0 = vld [vmem:[%s9373_s7 + $0x2a4] ss:$24 sps:$4 sm:$0xff]  }
 0x277   :  { %2567 = vmatpush2.bf16.msra.mxu1 %v5687_v1  ;;  %v6434_v1 = vld [vmem:[%s9373_s7 + $0x5d0] ss:$24 sps:$4 sm:$0xff]  }
 0x278   :  { %2610 = vmatpush2.bf16.msra.mxu0 %v5815_v2  ;;  %2568 = vmatprep.subr.bf16.mxu1 %v5680_v3  ;;  %v6442_v2 = vld [vmem:[%s9373_s7 + $0x5a4] ss:$24 sps:$4 sm:$0xff]   ;;  %v6413_v3 = vld [vmem:[%s9373_s7 + $0x2a0] ss:$24 sps:$4 sm:$0xff]  }
 0x279   :  { %2611 = vmatprep.subr.bf16.mxu0 %v5808_v4  ;;  %v6421_v4 = vld [vmem:[%s9373_s7 + $0x274] ss:$24 sps:$4 sm:$0xff]  }
 0x27b   :  { %2569 = vmatpush2.bf16.msra.mxu1 %v5679_v6  ;;  %v6448_v6 = vld [vmem:[%s9373_s7 + $0x574] ss:$24 sps:$4 sm:$0xff]  }
 0x27c   :  { %2612 = vmatpush2.bf16.msra.mxu0 %v5807_v8  ;;  %4984 = vmatprep.subr.bf16.mxu1 %v6373_v5  ;;  %v6440_v5 = vld [vmem:[%s9373_s7 + $0x5a0] ss:$24 sps:$4 sm:$0xff]   ;;  %v6427_v8 = vld [vmem:[%s9373_s7 + $0x244] ss:$24 sps:$4 sm:$0xff]  }
 0x27d   :  { %5027 = vmatprep.subr.bf16.mxu0 %v6388_v7  ;;  %v6419_v7 = vld [vmem:[%s9373_s7 + $0x270] ss:$24 sps:$4 sm:$0xff]  }
 0x27e   :  { %2571 = vmatmul.mubr.bf16.vlgmr.msra.gmra.mxu1 %v7511_v26  ;;  %v8110_v16 = vpop.f32.mrf.mxu1  ;;  %v8112_v17 = vpop.f32.mrf.mxu0 }
 0x27f   :  { %2614 = vmatmul.mubr.bf16.vlgmr.msra.gmra.mxu0 %v7513_v30  ;;  %4985 = vmatpush1.bf16.msra.mxu1 %v6371_v9  ;;  %v6382_v30 = vld [vmem:[%s9373_s7 + $0xc4] ss:$24 sps:$4 sm:$0xff]   ;;  %v6446_v9 = vld [vmem:[%s9373_s7 + $0x570] ss:$24 sps:$4 sm:$0xff]  }
 0x280   :  { %v2316_v24 = vpop.f32.mrf.mxu1  ;;  %v2359_v20 = vpop.f32.mrf.mxu0  ;;  %4986 = vmatprep.subr.bf16.mxu1 %v6376_v11  ;;  %5028 = vmatpush1.bf16.msra.mxu0 %v6386_v12  ;;  %v6454_v11 = vld [vmem:[%s9373_s7 + $0x544] ss:$24 sps:$4 sm:$0xff]   ;;  %v6425_v12 = vld [vmem:[%s9373_s7 + $0x240] ss:$24 sps:$4 sm:$0xff]  }
 0x281   :  { %v2317_v26 = vadd.f32 %v2316_v24, %v967_v14  ;;  %5029 = vmatprep.subr.bf16.mxu0 %v6394_v13  ;;  %v6433_v13 = vld [vmem:[%s9373_s7 + $0x214] ss:$24 sps:$4 sm:$0xff]   ;;  %v6455_v24 = vld [vmem:[%s9373_s7 + $0x510] ss:$24 sps:$4 sm:$0xff]  }
 0x282   :  { %v8127_v22 = vpop.f32.mrf.mxu1  ;;  %v8129_v23 = vpop.f32.mrf.mxu0 }
 0x283   :  { %4987 = vmatpush1.bf16.msra.mxu1 %v6374_v15  ;;  %v2360_v33 = vadd.f32 %v2359_v20, %v2317_v26  ;;  %v6457_v15 = vld [vmem:[%s9373_s7 + $0x514] ss:$24 sps:$4 sm:$0xff]   ;;  %v6460_v20 = vld [vmem:[%s9373_s7 + $0x4e4] ss:$24 sps:$4 sm:$0xff]   ;;  %v963_v26 = vrot.slane %v8093_v10, %v7283_v29 }
 0x284   :  { %v2320_v32 = vpop.f32.mrf.mxu1  ;;  %4988 = vmatprep.subr.bf16.mxu1 %v6379_v18  ;;  %5030 = vmatpush1.bf16.msra.mxu0 %v6392_v19  ;;  %v2363_v37 = vpop.f32.mrf.mxu0  ;;  %v6431_v18 = vld [vmem:[%s9373_s7 + $0x210] ss:$24 sps:$4 sm:$0xff]   ;;  %v6439_v19 = vld [vmem:[%s9373_s7 + $0x1e4] ss:$24 sps:$4 sm:$0xff]  }
 0x285   :  { %v2321_v34 = vadd.f32 %v2320_v32, %v967_v14  ;;  %5031 = vmatprep.subr.bf16.mxu0 %v6400_v21  ;;  %v2625_v41 = vmax.f32 %v2360_v33, 0.0  ;;  %v6452_v14 = vld [vmem:[%s9373_s7 + $0x540] ss:$24 sps:$4 sm:$0xff]   ;;  %v2319_v21 = vadd.f32 %v8127_v22, %v963_v26  ;;  %v6463_v32 = vld [vmem:[%s9373_s7 + $0x4b4] ss:$24 sps:$4 sm:$0xff]   ;;  %v2315_v33 = vadd.f32 %v8110_v16, %v963_v26 }
 0x286   :  { %v6443_v22 = vld [vmem:[%s9373_s7 + $0x1b0] ss:$24 sps:$4 sm:$0xff]   ;;  %v6466_v16 = vld [vmem:[%s9373_s7 + $0x484] ss:$24 sps:$4 sm:$0xff]   ;;  %v6521_v26 = vld [vmem:[%s9373_s7 + $0xa20] ss:$24 sps:$4 sm:$0xff]  }
 0x287   :  { %v2364_v40 = vadd.f32 %v2363_v37, %v2321_v34  ;;  %4989 = vmatpush1.bf16.msra.mxu1 %v6377_v25  ;;  %v6437_v25 = vld [vmem:[%s9373_s7 + $0x1e0] ss:$24 sps:$4 sm:$0xff]   ;;  %v2362_v34 = vadd.f32 %v8129_v23, %v2319_v21  ;;  %v2358_v37 = vadd.f32 %v8112_v17, %v2315_v33  ;;  %v6517_v17 = vld [vmem:[%s9373_s7 + $0xa54] ss:$24 sps:$4 sm:$0xff]   ;;  %v6535_v33 = vld [vmem:[%s9373_s7 + $0x9c4] ss:$24 sps:$4 sm:$0xff]  }
 0x288   :  { %4990 = vmatprep.subr.bf16.mxu1 %v6382_v30  ;;  %5032 = vmatpush1.bf16.msra.mxu0 %v6398_v31  ;;  %v6445_v30 = vld [vmem:[%s9373_s7 + $0x1b4] ss:$24 sps:$4 sm:$0xff]   ;;  %v6458_v31 = vld [vmem:[%s9373_s7 + $0x4e0] ss:$24 sps:$4 sm:$0xff]  }
 0x289   :  { %v2633_v42 = vmax.f32 %v2364_v40, 0.0  ;;  %5033 = vmatprep.subr.bf16.mxu0 %v6406_v36  ;;  %v6461_v36 = vld [vmem:[%s9373_s7 + $0x4b0] ss:$24 sps:$4 sm:$0xff]   ;;  %v6449_v23 = vld [vmem:[%s9373_s7 + $0x180] ss:$24 sps:$4 sm:$0xff]  }
 0x28a   :  { %v6469_v40 = vld [vmem:[%s9373_s7 + $0x754] ss:$24 sps:$4 sm:$0xff]  }
 0x28b   :  { %v8161_v47 = vpack.c.bf16 %v2633_v42, %v2625_v41  ;;  %4991 = vmatpush1.bf16.msra.mxu1 %v6380_v35  ;;  %v6451_v35 = vld [vmem:[%s9373_s7 + $0x184] ss:$24 sps:$4 sm:$0xff]   ;;  %v2624_v41 = vmax.f32 %v2358_v37, 0.0  ;;  %v6467_v42 = vld [vmem:[%s9373_s7 + $0x750] ss:$24 sps:$4 sm:$0xff]  }
 0x28c   :  { %4992 = vmatprep.subr.bf16.mxu1 %v6385_v38  ;;  %5034 = vmatpush1.bf16.msra.mxu0 %v6404_v39  ;;  %v2632_v38 = vmax.f32 %v2362_v34, 0.0  ;;  %v6464_v39 = vld [vmem:[%s9373_s7 + $0x480] ss:$24 sps:$4 sm:$0xff]   ;;  %v6529_v21 = vld [vmem:[%s9373_s7 + $0x9f4] ss:$24 sps:$4 sm:$0xff]  }
 0x28d   :  { %5016 = vmatprep.mubr.bf16.mxu1 %v8161_v47  ;;  %5035 = vmatprep.subr.bf16.mxu0 %v6412_v44  ;;  %v6472_v44 = vld [vmem:[%s9373_s7 + $0x724] ss:$24 sps:$4 sm:$0xff]   ;;  %v6533_v34 = vld [vmem:[%s9373_s7 + $0x9c0] ss:$24 sps:$4 sm:$0xff]   ;;  %v6539_v37 = vld [vmem:[%s9373_s7 + $0x990] ss:$24 sps:$4 sm:$0xff]  }
 0x28f   :  { %4993 = vmatpush1.bf16.msra.mxu1 %v6383_v43  ;;  %v8308_v43 = vpack.c.bf16 %v2632_v38, %v2624_v41  ;;  %v6547_v38 = vld [vmem:[%s9373_s7 + $0x964] ss:$24 sps:$4 sm:$0xff]   ;;  %v6553_v41 = vld [vmem:[%s9373_s7 + $0x934] ss:$24 sps:$4 sm:$0xff]  }
 0x290   :  { %4994 = vmatprep.subr.bf16.mxu1 %v6391_v45  ;;  %5036 = vmatpush1.bf16.msra.mxu0 %v6410_v46  ;;  %v975_v45 = vrot.slane %v8093_v10, %v7483_v53  ;;  %v971_v46 = vrot.slane %v8093_v10, %v7486_v54 }
 0x291   :  { %5037 = vmatprep.subr.bf16.mxu0 %v6418_v48 }
 0x293   :  { %4995 = vmatpush1.bf16.msra.mxu1 %v6389_v49 }
 0x294   :  { %4996 = vmatprep.subr.bf16.mxu1 %v6397_v50  ;;  %5038 = vmatpush1.bf16.msra.mxu0 %v6416_v51  ;;  %v6470_v50 = vld [vmem:[%s9373_s7 + $0x720] ss:$24 sps:$4 sm:$0xff]  }
 0x295   :  { %5039 = vmatprep.subr.bf16.mxu0 %v6424_v52 }
 0x297   :  { %4997 = vmatpush1.bf16.msra.mxu1 %v6395_v55  ;;  %v6475_v55 = vld [vmem:[%s9373_s7 + $0x6f4] ss:$24 sps:$4 sm:$0xff]  }
 0x298   :  { %4998 = vmatprep.subr.bf16.mxu1 %v6403_v56  ;;  %5040 = vmatpush1.bf16.msra.mxu0 %v6422_v57 }
 0x299   :  { %5041 = vmatprep.subr.bf16.mxu0 %v6430_v58 }
 0x29b   :  { %4999 = vmatpush1.bf16.msra.mxu1 %v6401_v59 }
 0x29c   :  { %5000 = vmatprep.subr.bf16.mxu1 %v6409_v60  ;;  %5042 = vmatpush1.bf16.msra.mxu0 %v6428_v61  ;;  %v6473_v61 = vld [vmem:[%s9373_s7 + $0x6f0] ss:$24 sps:$4 sm:$0xff]  }
 0x29d   :  { %5043 = vmatprep.subr.bf16.mxu0 %v6436_v62 }
 0x29f   :  { %5001 = vmatpush2.bf16.msra.mxu1 %v6407_v63  ;;  %v6478_v63 = vld [vmem:[%s9373_s7 + $0x6c4] ss:$24 sps:$4 sm:$0xff]  }
 0x2a0   :  { %5002 = vmatprep.subr.bf16.mxu1 %v6415_v0  ;;  %5044 = vmatpush2.bf16.msra.mxu0 %v6434_v1 }
 0x2a1   :  { %5045 = vmatprep.subr.bf16.mxu0 %v6442_v2 }
 0x2a3   :  { %5003 = vmatpush2.bf16.msra.mxu1 %v6413_v3 }
 0x2a4   :  { %5004 = vmatprep.subr.bf16.mxu1 %v6421_v4  ;;  %5046 = vmatpush2.bf16.msra.mxu0 %v6440_v5 }
 0x2a5   :  { %5047 = vmatprep.subr.bf16.mxu0 %v6448_v6  ;;  %v6476_v6 = vld [vmem:[%s9373_s7 + $0x6c0] ss:$24 sps:$4 sm:$0xff]  }
 0x2a7   :  { %5005 = vmatpush2.bf16.msra.mxu1 %v6419_v7 }
 0x2a8   :  { %5006 = vmatprep.subr.bf16.mxu1 %v6427_v8  ;;  %5048 = vmatpush2.bf16.msra.mxu0 %v6446_v9  ;;  %v6481_v8 = vld [vmem:[%s9373_s7 + $0x694] ss:$24 sps:$4 sm:$0xff]  }
 0x2a9   :  { %5049 = vmatprep.subr.bf16.mxu0 %v6454_v11 }
 0x2ab   :  { %5007 = vmatpush2.bf16.msra.mxu1 %v6425_v12 }
 0x2ac   :  { %5008 = vmatprep.subr.bf16.mxu1 %v6433_v13  ;;  %5050 = vmatpush2.bf16.msra.mxu0 %v6452_v14  ;;  %v6479_v14 = vld [vmem:[%s9373_s7 + $0x690] ss:$24 sps:$4 sm:$0xff]  }
 0x2ad   :  { %5051 = vmatprep.subr.bf16.mxu0 %v6457_v15  ;;  %v6515_v15 = vld [vmem:[%s9373_s7 + $0xa50] ss:$24 sps:$4 sm:$0xff]  }
 0x2af   :  { %5009 = vmatpush2.bf16.msra.mxu1 %v6431_v18 }
 0x2b0   :  { %5010 = vmatprep.subr.bf16.mxu1 %v6439_v19  ;;  %5052 = vmatpush2.bf16.msra.mxu0 %v6455_v24  ;;  %v6484_v19 = vld [vmem:[%s9373_s7 + $0x664] ss:$24 sps:$4 sm:$0xff]  }
 0x2b1   :  { %5053 = vmatprep.subr.bf16.mxu0 %v6460_v20  ;;  %v6523_v24 = vld [vmem:[%s9373_s7 + $0xa24] ss:$24 sps:$4 sm:$0xff]   ;;  %v6482_v20 = vld [vmem:[%s9373_s7 + $0x660] ss:$24 sps:$4 sm:$0xff]  }
 0x2b3   :  { %5011 = vmatpush2.bf16.msra.mxu1 %v6437_v25  ;;  %v6487_v25 = vld [vmem:[%s9373_s7 + $0x634] ss:$24 sps:$4 sm:$0xff]  }
 0x2b4   :  { %5012 = vmatprep.subr.bf16.mxu1 %v6445_v30  ;;  %5054 = vmatpush2.bf16.msra.mxu0 %v6458_v31  ;;  %v6485_v30 = vld [vmem:[%s9373_s7 + $0x630] ss:$24 sps:$4 sm:$0xff]  }
 0x2b5   :  { %5055 = vmatprep.subr.bf16.mxu0 %v6463_v32  ;;  %v6527_v31 = vld [vmem:[%s9373_s7 + $0x9f0] ss:$24 sps:$4 sm:$0xff]   ;;  %v6490_v32 = vld [vmem:[%s9373_s7 + $0x604] ss:$24 sps:$4 sm:$0xff]  }
 0x2b7   :  { %5013 = vmatpush2.bf16.msra.mxu1 %v6443_v22  ;;  %v6488_v22 = vld [vmem:[%s9373_s7 + $0x600] ss:$24 sps:$4 sm:$0xff]  }
 0x2b8   :  { %5014 = vmatprep.subr.bf16.mxu1 %v6451_v35  ;;  %5056 = vmatpush2.bf16.msra.mxu0 %v6461_v36  ;;  %v6493_v35 = vld [vmem:[%s9373_s7 + $0x8d4] ss:$24 sps:$4 sm:$0xff]  }
 0x2b9   :  { %5057 = vmatprep.subr.bf16.mxu0 %v6466_v16  ;;  %v6541_v36 = vld [vmem:[%s9373_s7 + $0x994] ss:$24 sps:$4 sm:$0xff]   ;;  %v6491_v16 = vld [vmem:[%s9373_s7 + $0x8d0] ss:$24 sps:$4 sm:$0xff]  }
 0x2bb   :  { %5015 = vmatpush2.bf16.msra.mxu1 %v6449_v23  ;;  %v6496_v23 = vld [vmem:[%s9373_s7 + $0x8a4] ss:$24 sps:$4 sm:$0xff]  }
 0x2bc   :  { %5058 = vmatpush2.bf16.msra.mxu0 %v6464_v39  ;;  %5070 = vmatprep.subr.bf16.mxu1 %v6469_v40  ;;  %v6494_v39 = vld [vmem:[%s9373_s7 + $0x8a0] ss:$24 sps:$4 sm:$0xff]  }
 0x2bd   :  { %5113 = vmatprep.subr.bf16.mxu0 %v6517_v17  ;;  %v6545_v40 = vld [vmem:[%s9373_s7 + $0x960] ss:$24 sps:$4 sm:$0xff]   ;;  %v6499_v17 = vld [vmem:[%s9373_s7 + $0x874] ss:$24 sps:$4 sm:$0xff]  }
 0x2be   :  { %v2400_v48 = vpop.f32.mrf.mxu1  ;;  %v2443_v49 = vpop.f32.mrf.mxu0  ;;  %5017 = vmatmul.mubr.bf16.vlgmr.msra.gmra.mxu1 %v8308_v43 }
 0x2bf   :  { %5071 = vmatpush1.bf16.msra.mxu1 %v6467_v42  ;;  %v2401_v57 = vadd.f32 %v2400_v48, %v971_v46  ;;  %v6497_v42 = vld [vmem:[%s9373_s7 + $0x870] ss:$24 sps:$4 sm:$0xff]   ;;  %v6500_v48 = vld [vmem:[%s9373_s7 + $0x840] ss:$24 sps:$4 sm:$0xff]  }
 0x2c0   :  { %v2402_v51 = vpop.f32.mrf.mxu1  ;;  %v2445_v52 = vpop.f32.mrf.mxu0  ;;  %5072 = vmatprep.subr.bf16.mxu1 %v6472_v44  ;;  %v6551_v44 = vld [vmem:[%s9373_s7 + $0x930] ss:$24 sps:$4 sm:$0xff]  }
 0x2c1   :  { %v2403_v56 = vadd.f32 %v2402_v51, %v975_v45  ;;  %v2444_v3 = vadd.f32 %v2443_v49, %v2401_v57  ;;  %v6557_v49 = vld [vmem:[%s9373_s7 + $0x900] ss:$24 sps:$4 sm:$0xff]   ;;  %v6565_v51 = vld [vmem:[%s9373_s7 + $0xbd4] ss:$24 sps:$4 sm:$0xff]   ;;  %v6571_v57 = vld [vmem:[%s9373_s7 + $0xba4] ss:$24 sps:$4 sm:$0xff]  }
 0x2c2   :  { %v2404_v58 = vpop.f32.mrf.mxu1  ;;  %v2447_v59 = vpop.f32.mrf.mxu0 }
 0x2c3   :  { %v2405_v60 = vadd.f32 %v2404_v58, %v971_v46  ;;  %5073 = vmatpush1.bf16.msra.mxu1 %v6470_v50  ;;  %v2446_v0 = vadd.f32 %v2445_v52, %v2403_v56  ;;  %v2626_v12 = vmax.f32 %v2444_v3, 0.0  ;;  %v6559_v46 = vld [vmem:[%s9373_s7 + $0x904] ss:$24 sps:$4 sm:$0xff]   ;;  %v6505_v50 = vld [vmem:[%s9373_s7 + $0x814] ss:$24 sps:$4 sm:$0xff]  }
 0x2c4   :  { %v2406_v62 = vpop.f32.mrf.mxu1  ;;  %5074 = vmatprep.subr.bf16.mxu1 %v6475_v55  ;;  %v2449_v4 = vpop.f32.mrf.mxu0  ;;  %v6503_v52 = vld [vmem:[%s9373_s7 + $0x810] ss:$24 sps:$4 sm:$0xff]   ;;  %v6508_v56 = vld [vmem:[%s9373_s7 + $0x7e4] ss:$24 sps:$4 sm:$0xff]   ;;  %v6506_v58 = vld [vmem:[%s9373_s7 + $0x7e0] ss:$24 sps:$4 sm:$0xff]  }
 0x2c5   :  { %v2448_v1 = vadd.f32 %v2447_v59, %v2405_v60  ;;  %v2407_v2 = vadd.f32 %v2406_v62, %v975_v45  ;;  %v2627_v9 = vmax.f32 %v2446_v0, 0.0  ;;  %v6502_v45 = vld [vmem:[%s9373_s7 + $0x844] ss:$24 sps:$4 sm:$0xff]   ;;  %v6563_v55 = vld [vmem:[%s9373_s7 + $0xbd0] ss:$24 sps:$4 sm:$0xff]  }
 0x2c6   :  { %v6569_v59 = vld [vmem:[%s9373_s7 + $0xba0] ss:$24 sps:$4 sm:$0xff]   ;;  %v6511_v60 = vld [vmem:[%s9373_s7 + $0x7b4] ss:$24 sps:$4 sm:$0xff]   ;;  %v6509_v62 = vld [vmem:[%s9373_s7 + $0x7b0] ss:$24 sps:$4 sm:$0xff]  }
 0x2c7   :  { %v2450_v5 = vadd.f32 %v2449_v4, %v2407_v2  ;;  %5075 = vmatpush1.bf16.msra.mxu1 %v6473_v61  ;;  %v2634_v7 = vmax.f32 %v2448_v1, 0.0  ;;  %v6577_v61 = vld [vmem:[%s9373_s7 + $0xb74] ss:$24 sps:$4 sm:$0xff]   ;;  %v6514_v0 = vld [vmem:[%s9373_s7 + $0x784] ss:$24 sps:$4 sm:$0xff]  }
 0x2c8   :  { %5076 = vmatprep.subr.bf16.mxu1 %v6478_v63  ;;  %v6575_v63 = vld [vmem:[%s9373_s7 + $0xb70] ss:$24 sps:$4 sm:$0xff]   ;;  %v6583_v1 = vld [vmem:[%s9373_s7 + $0xb44] ss:$24 sps:$4 sm:$0xff]   ;;  %v6512_v2 = vld [vmem:[%s9373_s7 + $0x780] ss:$24 sps:$4 sm:$0xff]  }
 0x2c9   :  { %v2635_v11 = vmax.f32 %v2450_v5, 0.0  ;;  %v8344_v18 = vpack.c.bf16 %v2634_v7, %v2626_v12  ;;  %v6581_v3 = vld [vmem:[%s9373_s7 + $0xb40] ss:$24 sps:$4 sm:$0xff]   ;;  %v6520_v4 = vld [vmem:[%s9373_s7 + $0x15c] ss:$24 sps:$4 sm:$0xff]   ;;  %v978_v7 = vsub.s32 4, %v7277_v27 }
 0x2ca   :  { %v6589_v5 = vld [vmem:[%s9373_s7 + $0xb14] ss:$24 sps:$4 sm:$0xff]  }
 0x2cb   :  { %v8336_v13 = vpack.c.bf16 %v2635_v11, %v2627_v9  ;;  %5077 = vmatpush1.bf16.msra.mxu1 %v6476_v6  ;;  %v982_v6 = vsub.s32 5, %v7277_v27  ;;  %v6595_v9 = vld [vmem:[%s9373_s7 + $0xae4] ss:$24 sps:$4 sm:$0xff]   ;;  %v979_v12 = vrot.slane %v8093_v10, %v978_v7 }
 0x2cc   :  { %5078 = vmatprep.subr.bf16.mxu1 %v6481_v8  ;;  %v6587_v8 = vld [vmem:[%s9373_s7 + $0xb10] ss:$24 sps:$4 sm:$0xff]  }
 0x2cd   :  { %5059 = vmatprep.mubr.bf16.mxu0 %v8336_v13  ;;  %v983_v11 = vrot.slane %v8093_v10, %v982_v6 }
 0x2ce   :  { %5060 = vmatmul.mubr.bf16.vlgmr.msra.gmra.mxu0 %v8344_v18 }
 0x2cf   :  { %5079 = vmatpush1.bf16.msra.mxu1 %v6479_v14  ;;  %5114 = vmatpush1.bf16.msra.mxu0 %v6515_v15 }
 0x2d0   :  { %5080 = vmatprep.subr.bf16.mxu1 %v6484_v19  ;;  %5115 = vmatprep.subr.bf16.mxu0 %v6523_v24  ;;  %v6593_v19 = vld [vmem:[%s9373_s7 + $0xae0] ss:$24 sps:$4 sm:$0xff]  }
 0x2d3   :  { %5081 = vmatpush1.bf16.msra.mxu1 %v6482_v20  ;;  %5116 = vmatpush1.bf16.msra.mxu0 %v6521_v26  ;;  %v6601_v20 = vld [vmem:[%s9373_s7 + $0xab4] ss:$24 sps:$4 sm:$0xff]  }
 0x2d4   :  { %5082 = vmatprep.subr.bf16.mxu1 %v6487_v25  ;;  %5117 = vmatprep.subr.bf16.mxu0 %v6529_v21 }
 0x2d7   :  { %5083 = vmatpush1.bf16.msra.mxu1 %v6485_v30  ;;  %5118 = vmatpush1.bf16.msra.mxu0 %v6527_v31 }
 0x2d8   :  { %5084 = vmatprep.subr.bf16.mxu1 %v6490_v32  ;;  %5119 = vmatprep.subr.bf16.mxu0 %v6535_v33  ;;  %v6599_v33 = vld [vmem:[%s9373_s7 + $0xab0] ss:$24 sps:$4 sm:$0xff]  }
 0x2db   :  { %5085 = vmatpush1.bf16.msra.mxu1 %v6488_v22  ;;  %5120 = vmatpush1.bf16.msra.mxu0 %v6533_v34  ;;  %v6607_v34 = vld [vmem:[%s9373_s7 + $0xa84] ss:$24 sps:$4 sm:$0xff]  }
 0x2dc   :  { %5086 = vmatprep.subr.bf16.mxu1 %v6493_v35  ;;  %5121 = vmatprep.subr.bf16.mxu0 %v6541_v36 }
 0x2df   :  { %5087 = vmatpush2.bf16.msra.mxu1 %v6491_v16  ;;  %5122 = vmatpush1.bf16.msra.mxu0 %v6539_v37 }
 0x2e0   :  { %5088 = vmatprep.subr.bf16.mxu1 %v6496_v23  ;;  %5123 = vmatprep.subr.bf16.mxu0 %v6547_v38 }
 0x2e3   :  { %5089 = vmatpush2.bf16.msra.mxu1 %v6494_v39  ;;  %5124 = vmatpush1.bf16.msra.mxu0 %v6545_v40  ;;  %v6605_v39 = vld [vmem:[%s9373_s7 + $0xa80] ss:$24 sps:$4 sm:$0xff]  }
 0x2e4   :  { %5090 = vmatprep.subr.bf16.mxu1 %v6499_v17  ;;  %5125 = vmatprep.subr.bf16.mxu0 %v6553_v41  ;;  %v6613_v17 = vld [vmem:[%s9373_s7 + $0x45c] ss:$24 sps:$4 sm:$0xff]  }
 0x2e7   :  { %5091 = vmatpush2.bf16.msra.mxu1 %v6497_v42  ;;  %5126 = vmatpush1.bf16.msra.mxu0 %v6551_v44 }
 0x2e8   :  { %5092 = vmatprep.subr.bf16.mxu1 %v6502_v45  ;;  %5127 = vmatprep.subr.bf16.mxu0 %v6559_v46  ;;  %v6518_v46 = vld [vmem:[%s9373_s7 + $0x158] ss:$24 sps:$4 sm:$0xff]  }
 0x2eb   :  { %5093 = vmatpush2.bf16.msra.mxu1 %v6500_v48  ;;  %5128 = vmatpush1.bf16.msra.mxu0 %v6557_v49  ;;  %v6526_v49 = vld [vmem:[%s9373_s7 + $0x12c] ss:$24 sps:$4 sm:$0xff]  }
 0x2ec   :  { %5094 = vmatprep.subr.bf16.mxu1 %v6505_v50  ;;  %5129 = vmatprep.subr.bf16.mxu0 %v6565_v51  ;;  %v6524_v50 = vld [vmem:[%s9373_s7 + $0x128] ss:$24 sps:$4 sm:$0xff]   ;;  %v6532_v51 = vld [vmem:[%s9373_s7 + $0xfc] ss:$24 sps:$4 sm:$0xff]  }
 0x2ef   :  { %5095 = vmatpush2.bf16.msra.mxu1 %v6503_v52  ;;  %5130 = vmatpush2.bf16.msra.mxu0 %v6563_v55  ;;  %v6530_v52 = vld [vmem:[%s9373_s7 + $0xf8] ss:$24 sps:$4 sm:$0xff]   ;;  %v6538_v55 = vld [vmem:[%s9373_s7 + $0xcc] ss:$24 sps:$4 sm:$0xff]  }
 0x2f0   :  { %5096 = vmatprep.subr.bf16.mxu1 %v6508_v56  ;;  %5131 = vmatprep.subr.bf16.mxu0 %v6571_v57  ;;  %v6536_v56 = vld [vmem:[%s9373_s7 + $0xc8] ss:$24 sps:$4 sm:$0xff]   ;;  %v6544_v57 = vld [vmem:[%s9373_s7 + $0x9c] ss:$24 sps:$4 sm:$0xff]  }
 0x2f3   :  { %5097 = vmatpush2.bf16.msra.mxu1 %v6506_v58  ;;  %5132 = vmatpush2.bf16.msra.mxu0 %v6569_v59  ;;  %v6542_v58 = vld [vmem:[%s9373_s7 + $0x98] ss:$24 sps:$4 sm:$0xff]   ;;  %v6550_v59 = vld [vmem:[%s9373_s7 + $0x6c] ss:$24 sps:$4 sm:$0xff]  }
 0x2f4   :  { %5098 = vmatprep.subr.bf16.mxu1 %v6511_v60  ;;  %5133 = vmatprep.subr.bf16.mxu0 %v6577_v61  ;;  %v6548_v60 = vld [vmem:[%s9373_s7 + $0x68] ss:$24 sps:$4 sm:$0xff]   ;;  %v6556_v61 = vld [vmem:[%s9373_s7 + $0x3c] ss:$24 sps:$4 sm:$0xff]  }
 0x2f7   :  { %5099 = vmatpush2.bf16.msra.mxu1 %v6509_v62  ;;  %5134 = vmatpush2.bf16.msra.mxu0 %v6575_v63  ;;  %v6554_v62 = vld [vmem:[%s9373_s7 + $0x38] ss:$24 sps:$4 sm:$0xff]   ;;  %v6562_v63 = vld [vmem:[%s9373_s7 + $0xc] ss:$24 sps:$4 sm:$0xff]  }
 0x2f8   :  { %5100 = vmatprep.subr.bf16.mxu1 %v6514_v0  ;;  %5135 = vmatprep.subr.bf16.mxu0 %v6583_v1  ;;  %v6560_v0 = vld [vmem:[%s9373_s7 + $0x8] ss:$24 sps:$4 sm:$0xff]   ;;  %v6568_v1 = vld [vmem:[%s9373_s7 + $0x2dc] ss:$24 sps:$4 sm:$0xff]  }
 0x2fb   :  { %5101 = vmatpush2.bf16.msra.mxu1 %v6512_v2  ;;  %5136 = vmatpush2.bf16.msra.mxu0 %v6581_v3  ;;  %v6566_v2 = vld [vmem:[%s9373_s7 + $0x2d8] ss:$24 sps:$4 sm:$0xff]   ;;  %v6574_v3 = vld [vmem:[%s9373_s7 + $0x2ac] ss:$24 sps:$4 sm:$0xff]  }
 0x2fc   :  { %5156 = vmatprep.subr.bf16.mxu1 %v6520_v4  ;;  %5137 = vmatprep.subr.bf16.mxu0 %v6589_v5  ;;  %v6572_v4 = vld [vmem:[%s9373_s7 + $0x2a8] ss:$24 sps:$4 sm:$0xff]   ;;  %v6580_v5 = vld [vmem:[%s9373_s7 + $0x27c] ss:$24 sps:$4 sm:$0xff]  }
 0x2fe   :  { %v2486_v14 = vpop.f32.mrf.mxu1 }
 0x2ff   :  { %v2529_v15 = vpop.f32.mrf.mxu0  ;;  %5138 = vmatpush2.bf16.msra.mxu0 %v6587_v8  ;;  %v2487_v21 = vadd.f32 %v2486_v14, %v979_v12  ;;  %v6578_v8 = vld [vmem:[%s9373_s7 + $0x278] ss:$24 sps:$4 sm:$0xff]   ;;  %v990_v14 = vsub.s32 7, %v7277_v27 }
 0x300   :  { %v2488_v24 = vpop.f32.mrf.mxu1  ;;  %5139 = vmatprep.subr.bf16.mxu0 %v6595_v9  ;;  %v6586_v9 = vld [vmem:[%s9373_s7 + $0x24c] ss:$24 sps:$4 sm:$0xff]  }
 0x301   :  { %v2489_v26 = vadd.f32 %v2488_v24, %v983_v11  ;;  %v2531_v25 = vpop.f32.mrf.mxu0  ;;  %v2530_v37 = vadd.f32 %v2529_v15, %v2487_v21  ;;  %v986_v15 = vsub.s32 6, %v7277_v27  ;;  %v6598_v24 = vld [vmem:[%s9373_s7 + $0x1ec] ss:$24 sps:$4 sm:$0xff]  }
 0x302   :  { %v2490_v30 = vpop.f32.mrf.mxu1 }
 0x303   :  { %v2491_v31 = vadd.f32 %v2490_v30, %v979_v12  ;;  %v2533_v32 = vpop.f32.mrf.mxu0  ;;  %5140 = vmatpush2.bf16.msra.mxu0 %v6593_v19  ;;  %v2532_v35 = vadd.f32 %v2531_v25, %v2489_v26  ;;  %v2628_v44 = vmax.f32 %v2530_v37, 0.0  ;;  %v6592_v12 = vld [vmem:[%s9373_s7 + $0x21c] ss:$24 sps:$4 sm:$0xff]   ;;  %v6590_v19 = vld [vmem:[%s9373_s7 + $0x218] ss:$24 sps:$4 sm:$0xff]   ;;  %v987_v26 = vrot.slane %v8093_v10, %v986_v15 }
 0x304   :  { %v2492_v22 = vpop.f32.mrf.mxu1  ;;  %5141 = vmatprep.subr.bf16.mxu0 %v6601_v20  ;;  %v991_v20 = vrot.slane %v8093_v10, %v990_v14  ;;  %v6596_v30 = vld [vmem:[%s9373_s7 + $0x1e8] ss:$24 sps:$4 sm:$0xff]   ;;  %v6602_v10 = vld [vmem:[%s9373_s7 + $0x1b8] ss:$24 sps:$4 sm:$0xff]   ;;  %v6643_v15 = vld [vmem:[%s9373_s7 + $0x36c] ss:$24 sps:$4 sm:$0xff]  }
 0x305   :  { %v2534_v36 = vadd.f32 %v2533_v32, %v2491_v31  ;;  %v2493_v16 = vadd.f32 %v2492_v22, %v983_v11  ;;  %v2535_v23 = vpop.f32.mrf.mxu0  ;;  %v2629_v41 = vmax.f32 %v2532_v35, 0.0  ;;  %v6584_v11 = vld [vmem:[%s9373_s7 + $0x248] ss:$24 sps:$4 sm:$0xff]   ;;  %v6604_v32 = vld [vmem:[%s9373_s7 + $0x1bc] ss:$24 sps:$4 sm:$0xff]  }
 0x306   :  { %v6638_v14 = vld [vmem:[%s9373_s7 + $0x698] ss:$24 sps:$4 sm:$0xff]  }
 0x307   :  { %v2536_v38 = vadd.f32 %v2535_v23, %v2493_v16  ;;  %5142 = vmatpush2.bf16.msra.mxu0 %v6599_v33  ;;  %v2636_v40 = vmax.f32 %v2534_v36, 0.0  ;;  %v6610_v23 = vld [vmem:[%s9373_s7 + $0x18c] ss:$24 sps:$4 sm:$0xff]  }
 0x308   :  { %5143 = vmatprep.subr.bf16.mxu0 %v6607_v34 }
 0x309   :  { %v2637_v42 = vmax.f32 %v2536_v38, 0.0  ;;  %v8523_v48 = vpack.c.bf16 %v2636_v40, %v2628_v44  ;;  %v6608_v44 = vld [vmem:[%s9373_s7 + $0x188] ss:$24 sps:$4 sm:$0xff]  }
 0x30b   :  { %v8518_v45 = vpack.c.bf16 %v2637_v42, %v2629_v41  ;;  %5144 = vmatpush2.bf16.msra.mxu0 %v6605_v39 }
 0x30c   :  { %5199 = vmatprep.subr.bf16.mxu0 %v6613_v17 }
 0x30d   :  { %5102 = vmatprep.mubr.bf16.mxu1 %v8518_v45 }
 0x30e   :  { %5103 = vmatmul.mubr.bf16.vlgmr.msra.gmra.mxu1 %v8523_v48 }
 0x30f   :  { %5157 = vmatpush1.bf16.msra.mxu1 %v6518_v46  ;;  %5188 = vmatprep.mubr.bf16.mxu1 %v8161_v47 }
 0x310   :  { %5158 = vmatprep.subr.bf16.mxu1 %v6526_v49  ;;  %v6616_v49 = vld [vmem:[%s9373_s7 + $0x75c] ss:$24 sps:$4 sm:$0xff]  }
 0x313   :  { %5159 = vmatpush1.bf16.msra.mxu1 %v6524_v50 }
 0x314   :  { %5160 = vmatprep.subr.bf16.mxu1 %v6532_v51 }
 0x317   :  { %5161 = vmatpush1.bf16.msra.mxu1 %v6530_v52 }
 0x318   :  { %5162 = vmatprep.subr.bf16.mxu1 %v6538_v55 }
 0x31b   :  { %5163 = vmatpush1.bf16.msra.mxu1 %v6536_v56  ;;  %v6611_v56 = vld [vmem:[%s9373_s7 + $0x458] ss:$24 sps:$4 sm:$0xff]  }
 0x31c   :  { %5164 = vmatprep.subr.bf16.mxu1 %v6544_v57  ;;  %v6614_v57 = vld [vmem:[%s9373_s7 + $0x758] ss:$24 sps:$4 sm:$0xff]  }
 0x31f   :  { %5165 = vmatpush1.bf16.msra.mxu1 %v6542_v58 }
 0x320   :  { %5166 = vmatprep.subr.bf16.mxu1 %v6550_v59  ;;  %v6619_v59 = vld [vmem:[%s9373_s7 + $0x42c] ss:$24 sps:$4 sm:$0xff]  }
 0x323   :  { %5167 = vmatpush1.bf16.msra.mxu1 %v6548_v60  ;;  %v6622_v60 = vld [vmem:[%s9373_s7 + $0x72c] ss:$24 sps:$4 sm:$0xff]  }
 0x324   :  { %5168 = vmatprep.subr.bf16.mxu1 %v6556_v61  ;;  %v6617_v61 = vld [vmem:[%s9373_s7 + $0x428] ss:$24 sps:$4 sm:$0xff]  }
 0x327   :  { %5169 = vmatpush1.bf16.msra.mxu1 %v6554_v62  ;;  %v6620_v62 = vld [vmem:[%s9373_s7 + $0x728] ss:$24 sps:$4 sm:$0xff]  }
 0x328   :  { %5170 = vmatprep.subr.bf16.mxu1 %v6562_v63  ;;  %v6625_v63 = vld [vmem:[%s9373_s7 + $0x3fc] ss:$24 sps:$4 sm:$0xff]  }
 0x32b   :  { %5171 = vmatpush1.bf16.msra.mxu1 %v6560_v0  ;;  %v6628_v0 = vld [vmem:[%s9373_s7 + $0x6fc] ss:$24 sps:$4 sm:$0xff]  }
 0x32c   :  { %5172 = vmatprep.subr.bf16.mxu1 %v6568_v1  ;;  %v6623_v1 = vld [vmem:[%s9373_s7 + $0x3f8] ss:$24 sps:$4 sm:$0xff]  }
 0x32f   :  { %5173 = vmatpush2.bf16.msra.mxu1 %v6566_v2  ;;  %v6626_v2 = vld [vmem:[%s9373_s7 + $0x6f8] ss:$24 sps:$4 sm:$0xff]  }
 0x330   :  { %5174 = vmatprep.subr.bf16.mxu1 %v6574_v3  ;;  %v6631_v3 = vld [vmem:[%s9373_s7 + $0x3cc] ss:$24 sps:$4 sm:$0xff]  }
 0x333   :  { %5175 = vmatpush2.bf16.msra.mxu1 %v6572_v4  ;;  %v6634_v4 = vld [vmem:[%s9373_s7 + $0x6cc] ss:$24 sps:$4 sm:$0xff]  }
 0x334   :  { %5176 = vmatprep.subr.bf16.mxu1 %v6580_v5  ;;  %v6629_v5 = vld [vmem:[%s9373_s7 + $0x3c8] ss:$24 sps:$4 sm:$0xff]  }
 0x337   :  { %5177 = vmatpush2.bf16.msra.mxu1 %v6578_v8  ;;  %v6632_v8 = vld [vmem:[%s9373_s7 + $0x6c8] ss:$24 sps:$4 sm:$0xff]  }
 0x338   :  { %5178 = vmatprep.subr.bf16.mxu1 %v6586_v9  ;;  %v6637_v9 = vld [vmem:[%s9373_s7 + $0x39c] ss:$24 sps:$4 sm:$0xff]  }
 0x33b   :  { %5179 = vmatpush2.bf16.msra.mxu1 %v6584_v11  ;;  %v6640_v11 = vld [vmem:[%s9373_s7 + $0x69c] ss:$24 sps:$4 sm:$0xff]  }
 0x33c   :  { %5180 = vmatprep.subr.bf16.mxu1 %v6592_v12  ;;  %v6635_v12 = vld [vmem:[%s9373_s7 + $0x398] ss:$24 sps:$4 sm:$0xff]  }
 0x33e   :  { %v2572_v25 = vpop.f32.mrf.mxu1 }
 0x33f   :  { %v2615_v21 = vpop.f32.mrf.mxu0  ;;  %5181 = vmatpush2.bf16.msra.mxu1 %v6590_v19  ;;  %v2573_v34 = vadd.f32 %v2572_v25, %v987_v26  ;;  %v6646_v19 = vld [vmem:[%s9373_s7 + $0x66c] ss:$24 sps:$4 sm:$0xff]   ;;  %v6652_v25 = vld [vmem:[%s9373_s7 + $0x63c] ss:$24 sps:$4 sm:$0xff]  }
 0x340   :  { %v2574_v31 = vpop.f32.mrf.mxu1  ;;  %5182 = vmatprep.subr.bf16.mxu1 %v6598_v24  ;;  %v6641_v24 = vld [vmem:[%s9373_s7 + $0x368] ss:$24 sps:$4 sm:$0xff]  }
 0x341   :  { %v2575_v33 = vadd.f32 %v2574_v31, %v991_v20  ;;  %v2617_v22 = vpop.f32.mrf.mxu0  ;;  %v2616_v17 = vadd.f32 %v2615_v21, %v2573_v34  ;;  %v6647_v21 = vld [vmem:[%s9373_s7 + $0x338] ss:$24 sps:$4 sm:$0xff]   ;;  %v6655_v31 = vld [vmem:[%s9373_s7 + $0x30c] ss:$24 sps:$4 sm:$0xff]   ;;  %v6661_v34 = vld [vmem:[%s9373_s7 + $0x5dc] ss:$24 sps:$4 sm:$0xff]  }
 0x342   :  { %v2576_v35 = vpop.f32.mrf.mxu1 }
 0x343   :  { %v2577_v36 = vadd.f32 %v2576_v35, %v987_v26  ;;  %v2619_v16 = vpop.f32.mrf.mxu0  ;;  %5183 = vmatpush2.bf16.msra.mxu1 %v6596_v30  ;;  %v2618_v38 = vadd.f32 %v2617_v22, %v2575_v33  ;;  %v2630_v52 = vmax.f32 %v2616_v17, 0.0  ;;  %v6649_v26 = vld [vmem:[%s9373_s7 + $0x33c] ss:$24 sps:$4 sm:$0xff]   ;;  %v6650_v30 = vld [vmem:[%s9373_s7 + $0x638] ss:$24 sps:$4 sm:$0xff]  }
 0x344   :  { %v2578_v37 = vpop.f32.mrf.mxu1  ;;  %5184 = vmatprep.subr.bf16.mxu1 %v6604_v32  ;;  %v6658_v32 = vld [vmem:[%s9373_s7 + $0x60c] ss:$24 sps:$4 sm:$0xff]   ;;  %v6653_v33 = vld [vmem:[%s9373_s7 + $0x308] ss:$24 sps:$4 sm:$0xff]   ;;  %v6664_v35 = vld [vmem:[%s9373_s7 + $0x8dc] ss:$24 sps:$4 sm:$0xff]  }
 0x345   :  { %v2620_v39 = vadd.f32 %v2619_v16, %v2577_v36  ;;  %v2579_v40 = vadd.f32 %v2578_v37, %v991_v20  ;;  %v2621_v41 = vpop.f32.mrf.mxu0  ;;  %v2631_v50 = vmax.f32 %v2618_v38, 0.0  ;;  %v6644_v20 = vld [vmem:[%s9373_s7 + $0x668] ss:$24 sps:$4 sm:$0xff]   ;;  %v6659_v36 = vld [vmem:[%s9373_s7 + $0x5d8] ss:$24 sps:$4 sm:$0xff]  }
 0x346   :  { %v6656_v22 = vld [vmem:[%s9373_s7 + $0x608] ss:$24 sps:$4 sm:$0xff]   ;;  %v6662_v16 = vld [vmem:[%s9373_s7 + $0x8d8] ss:$24 sps:$4 sm:$0xff]   ;;  %v6670_v37 = vld [vmem:[%s9373_s7 + $0x8ac] ss:$24 sps:$4 sm:$0xff]  }
 0x347   :  { %v2622_v42 = vadd.f32 %v2621_v41, %v2579_v40  ;;  %5185 = vmatpush2.bf16.msra.mxu1 %v6602_v10  ;;  %v2638_v46 = vmax.f32 %v2620_v39, 0.0  ;;  %v6667_v10 = vld [vmem:[%s9373_s7 + $0x5ac] ss:$24 sps:$4 sm:$0xff]   ;;  %v6668_v38 = vld [vmem:[%s9373_s7 + $0x8a8] ss:$24 sps:$4 sm:$0xff]  }
 0x348   :  { %5186 = vmatprep.subr.bf16.mxu1 %v6610_v23  ;;  %v6665_v23 = vld [vmem:[%s9373_s7 + $0x5a8] ss:$24 sps:$4 sm:$0xff]   ;;  %v6673_v39 = vld [vmem:[%s9373_s7 + $0x57c] ss:$24 sps:$4 sm:$0xff]   ;;  %v6671_v17 = vld [vmem:[%s9373_s7 + $0x578] ss:$24 sps:$4 sm:$0xff]  }
 0x349   :  { %v2639_v51 = vmax.f32 %v2622_v42, 0.0  ;;  %v8633_v58 = vpack.c.bf16 %v2638_v46, %v2630_v52  ;;  %v6676_v40 = vld [vmem:[%s9373_s7 + $0x87c] ss:$24 sps:$4 sm:$0xff]   ;;  %v6674_v41 = vld [vmem:[%s9373_s7 + $0x878] ss:$24 sps:$4 sm:$0xff]  }
 0x34a   :  { %v6679_v42 = vld [vmem:[%s9373_s7 + $0x54c] ss:$24 sps:$4 sm:$0xff]   ;;  %v6677_v46 = vld [vmem:[%s9373_s7 + $0x548] ss:$24 sps:$4 sm:$0xff]   ;;  %v6683_v52 = vld [vmem:[%s9373_s7 + $0x518] ss:$24 sps:$4 sm:$0xff]  }
 0x34b   :  { %v8625_v55 = vpack.c.bf16 %v2639_v51, %v2631_v50  ;;  %5187 = vmatpush2.bf16.msra.mxu1 %v6608_v44  ;;  %v6682_v44 = vld [vmem:[%s9373_s7 + $0x84c] ss:$24 sps:$4 sm:$0xff]   ;;  %v6685_v50 = vld [vmem:[%s9373_s7 + $0x51c] ss:$24 sps:$4 sm:$0xff]  }
 0x34c   :  { %5242 = vmatprep.subr.bf16.mxu1 %v6616_v49  ;;  %v6680_v49 = vld [vmem:[%s9373_s7 + $0x848] ss:$24 sps:$4 sm:$0xff]   ;;  %v6688_v51 = vld [vmem:[%s9373_s7 + $0x81c] ss:$24 sps:$4 sm:$0xff]  }
 0x34d   :  { %5145 = vmatprep.mubr.bf16.mxu0 %v8625_v55 }
 0x34e   :  { %5189 = vmatmul.mubr.bf16.vlgmr.msra.gmra.mxu1 %v8308_v43  ;;  %5146 = vmatmul.mubr.bf16.vlgmr.msra.gmra.mxu0 %v8633_v58 }
 0x34f   :  { %5200 = vmatpush1.bf16.msra.mxu0 %v6611_v56  ;;  %5243 = vmatpush1.bf16.msra.mxu1 %v6614_v57  ;;  %v6686_v56 = vld [vmem:[%s9373_s7 + $0x818] ss:$24 sps:$4 sm:$0xff]   ;;  %v6691_v57 = vld [vmem:[%s9373_s7 + $0x4ec] ss:$24 sps:$4 sm:$0xff]  }
 0x350   :  { %5274 = vmatprep.mubr.bf16.mxu1 %v8518_v45  ;;  %5231 = vmatprep.mubr.bf16.mxu0 %v8336_v13 }
 0x351   :  { %5201 = vmatprep.subr.bf16.mxu0 %v6619_v59  ;;  %5244 = vmatprep.subr.bf16.mxu1 %v6622_v60  ;;  %v6694_v59 = vld [vmem:[%s9373_s7 + $0x7ec] ss:$24 sps:$4 sm:$0xff]   ;;  %v6689_v60 = vld [vmem:[%s9373_s7 + $0x4e8] ss:$24 sps:$4 sm:$0xff]  }
 0x353   :  { %5202 = vmatpush1.bf16.msra.mxu0 %v6617_v61  ;;  %5245 = vmatpush1.bf16.msra.mxu1 %v6620_v62  ;;  %v6692_v61 = vld [vmem:[%s9373_s7 + $0x7e8] ss:$24 sps:$4 sm:$0xff]   ;;  %v6697_v62 = vld [vmem:[%s9373_s7 + $0x4bc] ss:$24 sps:$4 sm:$0xff]  }
 0x354   :  { %5203 = vmatprep.subr.bf16.mxu0 %v6625_v63  ;;  %5246 = vmatprep.subr.bf16.mxu1 %v6628_v0  ;;  %v6700_v63 = vld [vmem:[%s9373_s7 + $0x7bc] ss:$24 sps:$4 sm:$0xff]   ;;  %v6695_v0 = vld [vmem:[%s9373_s7 + $0x4b8] ss:$24 sps:$4 sm:$0xff]  }
 0x357   :  { %5204 = vmatpush1.bf16.msra.mxu0 %v6623_v1  ;;  %5247 = vmatpush1.bf16.msra.mxu1 %v6626_v2  ;;  %v6698_v1 = vld [vmem:[%s9373_s7 + $0x7b8] ss:$24 sps:$4 sm:$0xff]   ;;  %v6703_v2 = vld [vmem:[%s9373_s7 + $0x48c] ss:$24 sps:$4 sm:$0xff]  }
 0x358   :  { %5205 = vmatprep.subr.bf16.mxu0 %v6631_v3  ;;  %5248 = vmatprep.subr.bf16.mxu1 %v6634_v4  ;;  %v6706_v3 = vld [vmem:[%s9373_s7 + $0x78c] ss:$24 sps:$4 sm:$0xff]   ;;  %v6701_v4 = vld [vmem:[%s9373_s7 + $0x488] ss:$24 sps:$4 sm:$0xff]  }
 0x35b   :  { %5206 = vmatpush1.bf16.msra.mxu0 %v6629_v5  ;;  %5249 = vmatpush1.bf16.msra.mxu1 %v6632_v8  ;;  %v6704_v5 = vld [vmem:[%s9373_s7 + $0x788] ss:$24 sps:$4 sm:$0xff]   ;;  %v6709_v8 = vld [vmem:[%s9373_s7 + $0xa5c] ss:$24 sps:$4 sm:$0xff]  }
 0x35c   :  { %5207 = vmatprep.subr.bf16.mxu0 %v6637_v9  ;;  %5250 = vmatprep.subr.bf16.mxu1 %v6640_v11  ;;  %v6712_v9 = vld [vmem:[%s9373_s7 + $0x164] ss:$24 sps:$4 sm:$0xff]   ;;  %v6707_v11 = vld [vmem:[%s9373_s7 + $0xa58] ss:$24 sps:$4 sm:$0xff]  }
 0x35f   :  { %5208 = vmatpush1.bf16.msra.mxu0 %v6635_v12  ;;  %5251 = vmatpush1.bf16.msra.mxu1 %v6638_v14  ;;  %v6710_v12 = vld [vmem:[%s9373_s7 + $0x160] ss:$24 sps:$4 sm:$0xff]   ;;  %v6715_v14 = vld [vmem:[%s9373_s7 + $0xa2c] ss:$24 sps:$4 sm:$0xff]  }
 0x360   :  { %5209 = vmatprep.subr.bf16.mxu0 %v6643_v15  ;;  %5252 = vmatprep.subr.bf16.mxu1 %v6646_v19  ;;  %v6718_v15 = vld [vmem:[%s9373_s7 + $0x134] ss:$24 sps:$4 sm:$0xff]   ;;  %v6713_v19 = vld [vmem:[%s9373_s7 + $0xa28] ss:$24 sps:$4 sm:$0xff]  }
 0x363   :  { %5210 = vmatpush1.bf16.msra.mxu0 %v6641_v24  ;;  %5253 = vmatpush1.bf16.msra.mxu1 %v6644_v20  ;;  %v6716_v24 = vld [vmem:[%s9373_s7 + $0x130] ss:$24 sps:$4 sm:$0xff]   ;;  %v6721_v20 = vld [vmem:[%s9373_s7 + $0x9fc] ss:$24 sps:$4 sm:$0xff]  }
 0x364   :  { %5211 = vmatprep.subr.bf16.mxu0 %v6649_v26  ;;  %5254 = vmatprep.subr.bf16.mxu1 %v6652_v25  ;;  %v6724_v26 = vld [vmem:[%s9373_s7 + $0x104] ss:$24 sps:$4 sm:$0xff]   ;;  %v6719_v25 = vld [vmem:[%s9373_s7 + $0x9f8] ss:$24 sps:$4 sm:$0xff]  }
 0x367   :  { %5212 = vmatpush1.bf16.msra.mxu0 %v6647_v21  ;;  %5255 = vmatpush1.bf16.msra.mxu1 %v6650_v30  ;;  %v6727_v21 = vld [vmem:[%s9373_s7 + $0x9cc] ss:$24 sps:$4 sm:$0xff]  }
 0x368   :  { %5213 = vmatprep.subr.bf16.mxu0 %v6655_v31  ;;  %5256 = vmatprep.subr.bf16.mxu1 %v6658_v32  ;;  %v6730_v30 = vld [vmem:[%s9373_s7 + $0xd4] ss:$24 sps:$4 sm:$0xff]   ;;  %v6725_v31 = vld [vmem:[%s9373_s7 + $0x9c8] ss:$24 sps:$4 sm:$0xff]  }
 0x369   :  { %v6728_v32 = vld [vmem:[%s9373_s7 + $0xd0] ss:$24 sps:$4 sm:$0xff]  }
 0x36b   :  { %5214 = vmatpush1.bf16.msra.mxu0 %v6653_v33  ;;  %5257 = vmatpush1.bf16.msra.mxu1 %v6656_v22  ;;  %v6733_v33 = vld [vmem:[%s9373_s7 + $0x99c] ss:$24 sps:$4 sm:$0xff]  }
 0x36c   :  { %5215 = vmatprep.subr.bf16.mxu0 %v6661_v34  ;;  %5258 = vmatprep.subr.bf16.mxu1 %v6664_v35  ;;  %v6736_v22 = vld [vmem:[%s9373_s7 + $0xa4] ss:$24 sps:$4 sm:$0xff]   ;;  %v6731_v34 = vld [vmem:[%s9373_s7 + $0x998] ss:$24 sps:$4 sm:$0xff]  }
 0x36d   :  { %v6734_v35 = vld [vmem:[%s9373_s7 + $0xa0] ss:$24 sps:$4 sm:$0xff]  }
 0x36f   :  { %5216 = vmatpush2.bf16.msra.mxu0 %v6659_v36  ;;  %5259 = vmatpush2.bf16.msra.mxu1 %v6662_v16  ;;  %v6739_v36 = vld [vmem:[%s9373_s7 + $0x96c] ss:$24 sps:$4 sm:$0xff]  }
 0x370   :  { %5217 = vmatprep.subr.bf16.mxu0 %v6667_v10  ;;  %5260 = vmatprep.subr.bf16.mxu1 %v6670_v37  ;;  %v6742_v16 = vld [vmem:[%s9373_s7 + $0x74] ss:$24 sps:$4 sm:$0xff]   ;;  %v6737_v10 = vld [vmem:[%s9373_s7 + $0x968] ss:$24 sps:$4 sm:$0xff]  }
 0x371   :  { %v6740_v37 = vld [vmem:[%s9373_s7 + $0x70] ss:$24 sps:$4 sm:$0xff]  }
 0x373   :  { %5218 = vmatpush2.bf16.msra.mxu0 %v6665_v23  ;;  %5261 = vmatpush2.bf16.msra.mxu1 %v6668_v38  ;;  %v6745_v23 = vld [vmem:[%s9373_s7 + $0x93c] ss:$24 sps:$4 sm:$0xff]  }
 0x374   :  { %5219 = vmatprep.subr.bf16.mxu0 %v6673_v39  ;;  %5262 = vmatprep.subr.bf16.mxu1 %v6676_v40  ;;  %v6748_v38 = vld [vmem:[%s9373_s7 + $0x44] ss:$24 sps:$4 sm:$0xff]   ;;  %v6743_v39 = vld [vmem:[%s9373_s7 + $0x938] ss:$24 sps:$4 sm:$0xff]  }
 0x375   :  { %v6746_v40 = vld [vmem:[%s9373_s7 + $0x40] ss:$24 sps:$4 sm:$0xff]  }
 0x377   :  { %5220 = vmatpush2.bf16.msra.mxu0 %v6671_v17  ;;  %5263 = vmatpush2.bf16.msra.mxu1 %v6674_v41  ;;  %v6751_v17 = vld [vmem:[%s9373_s7 + $0x90c] ss:$24 sps:$4 sm:$0xff]  }
 0x378   :  { %5221 = vmatprep.subr.bf16.mxu0 %v6679_v42  ;;  %5264 = vmatprep.subr.bf16.mxu1 %v6682_v44  ;;  %v6754_v41 = vld [vmem:[%s9373_s7 + $0x14] ss:$24 sps:$4 sm:$0xff]   ;;  %v6749_v42 = vld [vmem:[%s9373_s7 + $0x908] ss:$24 sps:$4 sm:$0xff]  }
 0x379   :  { %v6752_v44 = vld [vmem:[%s9373_s7 + $0x10] ss:$24 sps:$4 sm:$0xff]  }
 0x37b   :  { %5222 = vmatpush2.bf16.msra.mxu0 %v6677_v46  ;;  %5265 = vmatpush2.bf16.msra.mxu1 %v6680_v49  ;;  %v6757_v46 = vld [vmem:[%s9373_s7 + $0xbdc] ss:$24 sps:$4 sm:$0xff]  }
 0x37c   :  { %5223 = vmatprep.subr.bf16.mxu0 %v6685_v50  ;;  %5266 = vmatprep.subr.bf16.mxu1 %v6688_v51  ;;  %v6760_v49 = vld [vmem:[%s9373_s7 + $0x2e4] ss:$24 sps:$4 sm:$0xff]   ;;  %v6755_v50 = vld [vmem:[%s9373_s7 + $0xbd8] ss:$24 sps:$4 sm:$0xff]  }
 0x37d   :  { %v6758_v51 = vld [vmem:[%s9373_s7 + $0x2e0] ss:$24 sps:$4 sm:$0xff]  }
 0x37f   :  { %5224 = vmatpush2.bf16.msra.mxu0 %v6683_v52  ;;  %5267 = vmatpush2.bf16.msra.mxu1 %v6686_v56  ;;  %v6763_v52 = vld [vmem:[%s9373_s7 + $0xbac] ss:$24 sps:$4 sm:$0xff]  }
 0x380   :  { %5225 = vmatprep.subr.bf16.mxu0 %v6691_v57  ;;  %5268 = vmatprep.subr.bf16.mxu1 %v6694_v59  ;;  %v6766_v56 = vld [vmem:[%s9373_s7 + $0x2b4] ss:$24 sps:$4 sm:$0xff]   ;;  %v6761_v57 = vld [vmem:[%s9373_s7 + $0xba8] ss:$24 sps:$4 sm:$0xff]  }
 0x381   :  { %v6764_v59 = vld [vmem:[%s9373_s7 + $0x2b0] ss:$24 sps:$4 sm:$0xff]  }
 0x383   :  { %5226 = vmatpush2.bf16.msra.mxu0 %v6689_v60  ;;  %5269 = vmatpush2.bf16.msra.mxu1 %v6692_v61  ;;  %v6769_v60 = vld [vmem:[%s9373_s7 + $0xb7c] ss:$24 sps:$4 sm:$0xff]  }
 0x384   :  { %5227 = vmatprep.subr.bf16.mxu0 %v6697_v62  ;;  %5270 = vmatprep.subr.bf16.mxu1 %v6700_v63  ;;  %v6772_v61 = vld [vmem:[%s9373_s7 + $0x284] ss:$24 sps:$4 sm:$0xff]   ;;  %v6767_v62 = vld [vmem:[%s9373_s7 + $0xb78] ss:$24 sps:$4 sm:$0xff]  }
 0x385   :  { %v6770_v63 = vld [vmem:[%s9373_s7 + $0x280] ss:$24 sps:$4 sm:$0xff]  }
 0x387   :  { %5228 = vmatpush2.bf16.msra.mxu0 %v6695_v0  ;;  %5271 = vmatpush2.bf16.msra.mxu1 %v6698_v1  ;;  %v6775_v0 = vld [vmem:[%s9373_s7 + $0xb4c] ss:$24 sps:$4 sm:$0xff]  }
 0x388   :  { %5229 = vmatprep.subr.bf16.mxu0 %v6703_v2  ;;  %5272 = vmatprep.subr.bf16.mxu1 %v6706_v3  ;;  %v6778_v1 = vld [vmem:[%s9373_s7 + $0x254] ss:$24 sps:$4 sm:$0xff]   ;;  %v6773_v2 = vld [vmem:[%s9373_s7 + $0xb48] ss:$24 sps:$4 sm:$0xff]  }
 0x389   :  { %v6776_v3 = vld [vmem:[%s9373_s7 + $0x250] ss:$24 sps:$4 sm:$0xff]  }
 0x38b   :  { %5230 = vmatpush2.bf16.msra.mxu0 %v6701_v4  ;;  %5273 = vmatpush2.bf16.msra.mxu1 %v6704_v5  ;;  %v6781_v4 = vld [vmem:[%s9373_s7 + $0xb1c] ss:$24 sps:$4 sm:$0xff]  }
 0x38c   :  { %5285 = vmatprep.subr.bf16.mxu0 %v6709_v8  ;;  %5328 = vmatprep.subr.bf16.mxu1 %v6712_v9  ;;  %v6784_v5 = vld [vmem:[%s9373_s7 + $0x224] ss:$24 sps:$4 sm:$0xff]   ;;  %v6779_v8 = vld [vmem:[%s9373_s7 + $0xb18] ss:$24 sps:$4 sm:$0xff]  }
 0x38d   :  { %v6782_v9 = vld [vmem:[%s9373_s7 + $0x220] ss:$24 sps:$4 sm:$0xff]  }
 0x38e   :  { %5232 = vmatmul.mubr.bf16.vlgmr.msra.gmra.mxu0 %v8344_v18  ;;  %5275 = vmatmul.mubr.bf16.vlgmr.msra.gmra.mxu1 %v8523_v48 }
 0x38f   :  { %5286 = vmatpush1.bf16.msra.mxu0 %v6707_v11  ;;  %5317 = vmatprep.mubr.bf16.mxu0 %v8625_v55  ;;  %v6787_v11 = vld [vmem:[%s9373_s7 + $0xaec] ss:$24 sps:$4 sm:$0xff]  }
 0x390   :  { %5329 = vmatpush1.bf16.msra.mxu1 %v6710_v12  ;;  %5360 = vmatprep.mubr.bf16.mxu1 %v8161_v47  ;;  %v6722_v47 = vld [vmem:[%s9373_s7 + $0x100] ss:$24 sps:$4 sm:$0xff]   ;;  %v6790_v12 = vld [vmem:[%s9373_s7 + $0x1f4] ss:$24 sps:$4 sm:$0xff]  }
 0x391   :  { %5287 = vmatprep.subr.bf16.mxu0 %v6715_v14  ;;  %5330 = vmatprep.subr.bf16.mxu1 %v6718_v15  ;;  %v6785_v14 = vld [vmem:[%s9373_s7 + $0xae8] ss:$24 sps:$4 sm:$0xff]  }
 0x392   :  { %v6788_v15 = vld [vmem:[%s9373_s7 + $0x1f0] ss:$24 sps:$4 sm:$0xff]  }
 0x393   :  { %5288 = vmatpush1.bf16.msra.mxu0 %v6713_v19  ;;  %v6793_v19 = vld [vmem:[%s9373_s7 + $0xabc] ss:$24 sps:$4 sm:$0xff]  }
 0x394   :  { %5331 = vmatpush1.bf16.msra.mxu1 %v6716_v24  ;;  %5289 = vmatprep.subr.bf16.mxu0 %v6721_v20  ;;  %v6796_v24 = vld [vmem:[%s9373_s7 + $0x1c4] ss:$24 sps:$4 sm:$0xff]   ;;  %v6791_v20 = vld [vmem:[%s9373_s7 + $0xab8] ss:$24 sps:$4 sm:$0xff]  }
 0x395   :  { %5332 = vmatprep.subr.bf16.mxu1 %v6724_v26  ;;  %v6794_v26 = vld [vmem:[%s9373_s7 + $0x1c0] ss:$24 sps:$4 sm:$0xff]  }
 0x397   :  { %5290 = vmatpush1.bf16.msra.mxu0 %v6719_v25  ;;  %v6799_v25 = vld [vmem:[%s9373_s7 + $0xa8c] ss:$24 sps:$4 sm:$0xff]  }
 0x398   :  { %5333 = vmatpush1.bf16.msra.mxu1 %v6722_v47  ;;  %5291 = vmatprep.subr.bf16.mxu0 %v6727_v21  ;;  %v6802_v47 = vld [vmem:[%s9373_s7 + $0x194] ss:$24 sps:$4 sm:$0xff]   ;;  %v6797_v21 = vld [vmem:[%s9373_s7 + $0xa88] ss:$24 sps:$4 sm:$0xff]  }
 0x399   :  { %5334 = vmatprep.subr.bf16.mxu1 %v6730_v30  ;;  %v6800_v30 = vld [vmem:[%s9373_s7 + $0x190] ss:$24 sps:$4 sm:$0xff]  }
 0x39b   :  { %5292 = vmatpush1.bf16.msra.mxu0 %v6725_v31  ;;  %v6805_v31 = vld [vmem:[%s9373_s7 + $0x464] ss:$24 sps:$4 sm:$0xff]  }
 0x39c   :  { %5335 = vmatpush1.bf16.msra.mxu1 %v6728_v32  ;;  %5293 = vmatprep.subr.bf16.mxu0 %v6733_v33  ;;  %v6808_v32 = vld [vmem:[%s9373_s7 + $0x764] ss:$24 sps:$4 sm:$0xff]   ;;  %v6803_v33 = vld [vmem:[%s9373_s7 + $0x460] ss:$24 sps:$4 sm:$0xff]  }
 0x39d   :  { %5336 = vmatprep.subr.bf16.mxu1 %v6736_v22  ;;  %v6806_v22 = vld [vmem:[%s9373_s7 + $0x760] ss:$24 sps:$4 sm:$0xff]  }
 0x39f   :  { %5294 = vmatpush1.bf16.msra.mxu0 %v6731_v34  ;;  %v6811_v34 = vld [vmem:[%s9373_s7 + $0x434] ss:$24 sps:$4 sm:$0xff]  }
 0x3a0   :  { %5337 = vmatpush1.bf16.msra.mxu1 %v6734_v35  ;;  %5295 = vmatprep.subr.bf16.mxu0 %v6739_v36  ;;  %v6814_v35 = vld [vmem:[%s9373_s7 + $0x734] ss:$24 sps:$4 sm:$0xff]   ;;  %v6809_v36 = vld [vmem:[%s9373_s7 + $0x430] ss:$24 sps:$4 sm:$0xff]  }
 0x3a1   :  { %5338 = vmatprep.subr.bf16.mxu1 %v6742_v16  ;;  %v6812_v16 = vld [vmem:[%s9373_s7 + $0x730] ss:$24 sps:$4 sm:$0xff]  }
 0x3a3   :  { %5296 = vmatpush1.bf16.msra.mxu0 %v6737_v10  ;;  %v6817_v10 = vld [vmem:[%s9373_s7 + $0x404] ss:$24 sps:$4 sm:$0xff]  }
 0x3a4   :  { %5339 = vmatpush1.bf16.msra.mxu1 %v6740_v37  ;;  %5297 = vmatprep.subr.bf16.mxu0 %v6745_v23  ;;  %v6818_v37 = vld [vmem:[%s9373_s7 + $0x700] ss:$24 sps:$4 sm:$0xff]   ;;  %v6826_v23 = vld [vmem:[%s9373_s7 + $0x6d4] ss:$24 sps:$4 sm:$0xff]  }
 0x3a5   :  { %5340 = vmatprep.subr.bf16.mxu1 %v6748_v38  ;;  %v6821_v38 = vld [vmem:[%s9373_s7 + $0x3d0] ss:$24 sps:$4 sm:$0xff]  }
 0x3a7   :  { %5298 = vmatpush1.bf16.msra.mxu0 %v6743_v39  ;;  %v6824_v39 = vld [vmem:[%s9373_s7 + $0x6d0] ss:$24 sps:$4 sm:$0xff]  }
 0x3a8   :  { %5341 = vmatpush1.bf16.msra.mxu1 %v6746_v40  ;;  %5299 = vmatprep.subr.bf16.mxu0 %v6751_v17  ;;  %v6829_v40 = vld [vmem:[%s9373_s7 + $0x3a4] ss:$24 sps:$4 sm:$0xff]  }
 0x3a9   :  { %5342 = vmatprep.subr.bf16.mxu1 %v6754_v41  ;;  %v6832_v17 = vld [vmem:[%s9373_s7 + $0x6a4] ss:$24 sps:$4 sm:$0xff]   ;;  %v6827_v41 = vld [vmem:[%s9373_s7 + $0x3a0] ss:$24 sps:$4 sm:$0xff]  }
 0x3ab   :  { %5300 = vmatpush1.bf16.msra.mxu0 %v6749_v42  ;;  %v6830_v42 = vld [vmem:[%s9373_s7 + $0x6a0] ss:$24 sps:$4 sm:$0xff]  }
 0x3ac   :  { %5343 = vmatpush1.bf16.msra.mxu1 %v6752_v44  ;;  %5301 = vmatprep.subr.bf16.mxu0 %v6757_v46  ;;  %v6835_v44 = vld [vmem:[%s9373_s7 + $0x374] ss:$24 sps:$4 sm:$0xff]  }
 0x3ad   :  { %5344 = vmatprep.subr.bf16.mxu1 %v6760_v49  ;;  %v6838_v46 = vld [vmem:[%s9373_s7 + $0x674] ss:$24 sps:$4 sm:$0xff]   ;;  %v6833_v49 = vld [vmem:[%s9373_s7 + $0x370] ss:$24 sps:$4 sm:$0xff]  }
 0x3af   :  { %5302 = vmatpush2.bf16.msra.mxu0 %v6755_v50  ;;  %v6836_v50 = vld [vmem:[%s9373_s7 + $0x670] ss:$24 sps:$4 sm:$0xff]  }
 0x3b0   :  { %5345 = vmatpush2.bf16.msra.mxu1 %v6758_v51  ;;  %5303 = vmatprep.subr.bf16.mxu0 %v6763_v52  ;;  %v6841_v51 = vld [vmem:[%s9373_s7 + $0x344] ss:$24 sps:$4 sm:$0xff]  }
 0x3b1   :  { %5346 = vmatprep.subr.bf16.mxu1 %v6766_v56  ;;  %v6844_v52 = vld [vmem:[%s9373_s7 + $0x644] ss:$24 sps:$4 sm:$0xff]   ;;  %v6839_v56 = vld [vmem:[%s9373_s7 + $0x340] ss:$24 sps:$4 sm:$0xff]  }
 0x3b3   :  { %5304 = vmatpush2.bf16.msra.mxu0 %v6761_v57  ;;  %v6842_v57 = vld [vmem:[%s9373_s7 + $0x640] ss:$24 sps:$4 sm:$0xff]  }
 0x3b4   :  { %5347 = vmatpush2.bf16.msra.mxu1 %v6764_v59  ;;  %5305 = vmatprep.subr.bf16.mxu0 %v6769_v60  ;;  %v6847_v59 = vld [vmem:[%s9373_s7 + $0x314] ss:$24 sps:$4 sm:$0xff]  }
 0x3b5   :  { %5348 = vmatprep.subr.bf16.mxu1 %v6772_v61  ;;  %v6850_v60 = vld [vmem:[%s9373_s7 + $0x614] ss:$24 sps:$4 sm:$0xff]   ;;  %v6845_v61 = vld [vmem:[%s9373_s7 + $0x310] ss:$24 sps:$4 sm:$0xff]  }
 0x3b7   :  { %5306 = vmatpush2.bf16.msra.mxu0 %v6767_v62  ;;  %v6848_v62 = vld [vmem:[%s9373_s7 + $0x610] ss:$24 sps:$4 sm:$0xff]  }
 0x3b8   :  { %5349 = vmatpush2.bf16.msra.mxu1 %v6770_v63  ;;  %5307 = vmatprep.subr.bf16.mxu0 %v6775_v0  ;;  %v6853_v63 = vld [vmem:[%s9373_s7 + $0x5e4] ss:$24 sps:$4 sm:$0xff]  }
 0x3b9   :  { %5350 = vmatprep.subr.bf16.mxu1 %v6778_v1  ;;  %v6856_v0 = vld [vmem:[%s9373_s7 + $0x8e4] ss:$24 sps:$4 sm:$0xff]   ;;  %v6851_v1 = vld [vmem:[%s9373_s7 + $0x5e0] ss:$24 sps:$4 sm:$0xff]  }
 0x3bb   :  { %5308 = vmatpush2.bf16.msra.mxu0 %v6773_v2  ;;  %v6854_v2 = vld [vmem:[%s9373_s7 + $0x8e0] ss:$24 sps:$4 sm:$0xff]  }
 0x3bc   :  { %5351 = vmatpush2.bf16.msra.mxu1 %v6776_v3  ;;  %5309 = vmatprep.subr.bf16.mxu0 %v6781_v4  ;;  %v6859_v3 = vld [vmem:[%s9373_s7 + $0x5b4] ss:$24 sps:$4 sm:$0xff]  }
 0x3bd   :  { %5352 = vmatprep.subr.bf16.mxu1 %v6784_v5  ;;  %v6862_v4 = vld [vmem:[%s9373_s7 + $0x8b4] ss:$24 sps:$4 sm:$0xff]   ;;  %v6857_v5 = vld [vmem:[%s9373_s7 + $0x5b0] ss:$24 sps:$4 sm:$0xff]  }
 0x3bf   :  { %5310 = vmatpush2.bf16.msra.mxu0 %v6779_v8  ;;  %v6860_v8 = vld [vmem:[%s9373_s7 + $0x8b0] ss:$24 sps:$4 sm:$0xff]  }
 0x3c0   :  { %5353 = vmatpush2.bf16.msra.mxu1 %v6782_v9  ;;  %5311 = vmatprep.subr.bf16.mxu0 %v6787_v11  ;;  %v6865_v9 = vld [vmem:[%s9373_s7 + $0x584] ss:$24 sps:$4 sm:$0xff]  }
 0x3c1   :  { %5354 = vmatprep.subr.bf16.mxu1 %v6790_v12  ;;  %v6868_v11 = vld [vmem:[%s9373_s7 + $0x884] ss:$24 sps:$4 sm:$0xff]   ;;  %v6863_v12 = vld [vmem:[%s9373_s7 + $0x580] ss:$24 sps:$4 sm:$0xff]  }
 0x3c3   :  { %5312 = vmatpush2.bf16.msra.mxu0 %v6785_v14  ;;  %v6866_v14 = vld [vmem:[%s9373_s7 + $0x880] ss:$24 sps:$4 sm:$0xff]  }
 0x3c4   :  { %5355 = vmatpush2.bf16.msra.mxu1 %v6788_v15  ;;  %5313 = vmatprep.subr.bf16.mxu0 %v6793_v19  ;;  %v6871_v15 = vld [vmem:[%s9373_s7 + $0x554] ss:$24 sps:$4 sm:$0xff]  }
 0x3c5   :  { %5356 = vmatprep.subr.bf16.mxu1 %v6796_v24  ;;  %v6874_v19 = vld [vmem:[%s9373_s7 + $0x854] ss:$24 sps:$4 sm:$0xff]   ;;  %v5018_v24 = vpop.f32.mrf.mxu1 }
 0x3c7   :  { %5314 = vmatpush2.bf16.msra.mxu0 %v6791_v20  ;;  %v6869_v20 = vld [vmem:[%s9373_s7 + $0x550] ss:$24 sps:$4 sm:$0xff]  }
 0x3c8   :  { %5357 = vmatpush2.bf16.msra.mxu1 %v6794_v26  ;;  %5315 = vmatprep.subr.bf16.mxu0 %v6799_v25  ;;  %v6872_v26 = vld [vmem:[%s9373_s7 + $0x850] ss:$24 sps:$4 sm:$0xff]   ;;  %v6877_v25 = vld [vmem:[%s9373_s7 + $0x524] ss:$24 sps:$4 sm:$0xff]  }
 0x3c9   :  { %5358 = vmatprep.subr.bf16.mxu1 %v6802_v47  ;;  %v6880_v47 = vld [vmem:[%s9373_s7 + $0x824] ss:$24 sps:$4 sm:$0xff]  }
 0x3cb   :  { %5316 = vmatpush2.bf16.msra.mxu0 %v6797_v21  ;;  %v5020_v21 = vpop.f32.mrf.mxu1 }
 0x3cc   :  { %5359 = vmatpush2.bf16.msra.mxu1 %v6800_v30  ;;  %5371 = vmatprep.subr.bf16.mxu0 %v6805_v31  ;;  %v6875_v30 = vld [vmem:[%s9373_s7 + $0x520] ss:$24 sps:$4 sm:$0xff]  }
 0x3cd   :  { %5414 = vmatprep.subr.bf16.mxu1 %v6808_v32  ;;  %v6878_v31 = vld [vmem:[%s9373_s7 + $0x820] ss:$24 sps:$4 sm:$0xff]   ;;  %v6883_v32 = vld [vmem:[%s9373_s7 + $0x4f4] ss:$24 sps:$4 sm:$0xff]  }
 0x3ce   :  { %5318 = vmatmul.mubr.bf16.vlgmr.msra.gmra.mxu0 %v8633_v58 }
 0x3cf   :  { %5361 = vmatmul.mubr.bf16.vlgmr.msra.gmra.mxu1 %v8308_v43  ;;  %5372 = vmatpush1.bf16.msra.mxu0 %v6803_v33  ;;  %v6820_v43 = vld [vmem:[%s9373_s7 + $0x704] ss:$24 sps:$4 sm:$0xff]   ;;  %v6886_v33 = vld [vmem:[%s9373_s7 + $0x7f4] ss:$24 sps:$4 sm:$0xff]  }
 0x3d0   :  { %5403 = vmatprep.mubr.bf16.mxu0 %v8336_v13  ;;  %5415 = vmatpush1.bf16.msra.mxu1 %v6806_v22  ;;  %v6815_v13 = vld [vmem:[%s9373_s7 + $0x400] ss:$24 sps:$4 sm:$0xff]   ;;  %v5022_v22 = vpop.f32.mrf.mxu1 }
 0x3d1   :  { %5446 = vmatprep.mubr.bf16.mxu1 %v8518_v45  ;;  %5373 = vmatprep.subr.bf16.mxu0 %v6811_v34  ;;  %v6823_v45 = vld [vmem:[%s9373_s7 + $0x3d4] ss:$24 sps:$4 sm:$0xff]   ;;  %v6881_v34 = vld [vmem:[%s9373_s7 + $0x4f0] ss:$24 sps:$4 sm:$0xff]  }
 0x3d2   :  { %5416 = vmatprep.subr.bf16.mxu1 %v6814_v35  ;;  %v5061_v35 = vpop.f32.mrf.mxu0 }
 0x3d3   :  { %5374 = vmatpush1.bf16.msra.mxu0 %v6809_v36  ;;  %v6884_v36 = vld [vmem:[%s9373_s7 + $0x7f0] ss:$24 sps:$4 sm:$0xff]  }
 0x3d4   :  { %5417 = vmatpush1.bf16.msra.mxu1 %v6812_v16  ;;  %5375 = vmatprep.subr.bf16.mxu0 %v6817_v10  ;;  %v6889_v16 = vld [vmem:[%s9373_s7 + $0x4c4] ss:$24 sps:$4 sm:$0xff]  }
 0x3d5   :  { %5418 = vmatprep.subr.bf16.mxu1 %v6820_v43  ;;  %v6892_v10 = vld [vmem:[%s9373_s7 + $0x7c4] ss:$24 sps:$4 sm:$0xff]  }
 0x3d6   :  { %v9197_v43 = vld [vmem:[%s9375_s8] sm:$0x3f] }
 0x3d7   :  { %5376 = vmatpush1.bf16.msra.mxu0 %v6815_v13  ;;  %v5024_v13 = vpop.f32.mrf.mxu1 }
 0x3d8   :  { %5419 = vmatpush1.bf16.msra.mxu1 %v6818_v37  ;;  %5377 = vmatprep.subr.bf16.mxu0 %v6823_v45  ;;  %v6887_v37 = vld [vmem:[%s9373_s7 + $0x4c0] ss:$24 sps:$4 sm:$0xff]   ;;  %v5063_v45 = vpop.f32.mrf.mxu0 }
 0x3d9   :  { %5420 = vmatprep.subr.bf16.mxu1 %v6826_v23  ;;  %v5104_v23 = vpop.f32.mrf.mxu1 }
 0x3db   :  { %5378 = vmatpush1.bf16.msra.mxu0 %v6821_v38  ;;  %v6890_v38 = vld [vmem:[%s9373_s7 + $0x7c0] ss:$24 sps:$4 sm:$0xff]  }
 0x3dc   :  { %5421 = vmatpush1.bf16.msra.mxu1 %v6824_v39  ;;  %5379 = vmatprep.subr.bf16.mxu0 %v6829_v40  ;;  %v6895_v39 = vld [vmem:[%s9373_s7 + $0x494] ss:$24 sps:$4 sm:$0xff]   ;;  %v3037_v40 = vrot.slane %v9197_v43, %v7283_v29  ;;  %v6896_v29 = vld [vmem:[%s9373_s7 + $0x790] ss:$24 sps:$4 sm:$0xff]  }
 0x3dd   :  { %5422 = vmatprep.subr.bf16.mxu1 %v6832_v17  ;;  %v6898_v17 = vld [vmem:[%s9373_s7 + $0x794] ss:$24 sps:$4 sm:$0xff]  }
 0x3df   :  { %5380 = vmatpush1.bf16.msra.mxu0 %v6827_v41  ;;  %v3041_v41 = vrot.slane %v9197_v43, %v7280_v28 }
 0x3e0   :  { %5423 = vmatpush1.bf16.msra.mxu1 %v6830_v42  ;;  %5381 = vmatprep.subr.bf16.mxu0 %v6835_v44  ;;  %v6893_v42 = vld [vmem:[%s9373_s7 + $0x490] ss:$24 sps:$4 sm:$0xff]   ;;  %v5065_v44 = vpop.f32.mrf.mxu0 }
 0x3e1   :  { %5424 = vmatprep.subr.bf16.mxu1 %v6838_v46  ;;  %v5106_v46 = vpop.f32.mrf.mxu1  ;;  %v5021_v28 = vadd.f32 %v5020_v21, %v3041_v41  ;;  %v6916_v21 = vld [vmem:[%s9373_s7 + $0x974] ss:$24 sps:$4 sm:$0xff]  }
 0x3e3   :  { %5382 = vmatpush1.bf16.msra.mxu0 %v6833_v49  ;;  %v6901_v49 = vld [vmem:[%s9373_s7 + $0xa64] ss:$24 sps:$4 sm:$0xff]  }
 0x3e4   :  { %5425 = vmatpush1.bf16.msra.mxu1 %v6836_v50  ;;  %5383 = vmatprep.subr.bf16.mxu0 %v6841_v51  ;;  %v5019_v50 = vadd.f32 %v5018_v24, %v3037_v40  ;;  %v6910_v24 = vld [vmem:[%s9373_s7 + $0x9d4] ss:$24 sps:$4 sm:$0xff]  }
 0x3e5   :  { %5426 = vmatprep.subr.bf16.mxu1 %v6844_v52  ;;  %v6899_v52 = vld [vmem:[%s9373_s7 + $0xa60] ss:$24 sps:$4 sm:$0xff]  }
 0x3e6   :  { %v5062_v51 = vadd.f32 %v5061_v35, %v5019_v50  ;;  %v6944_v50 = vld [vmem:[%s9373_s7 + $0xa90] ss:$24 sps:$4 sm:$0xff]  }
 0x3e7   :  { %5384 = vmatpush1.bf16.msra.mxu0 %v6839_v56  ;;  %v5067_v56 = vpop.f32.mrf.mxu0 }
 0x3e8   :  { %5427 = vmatpush1.bf16.msra.mxu1 %v6842_v57  ;;  %5385 = vmatprep.subr.bf16.mxu0 %v6847_v59  ;;  %v5108_v57 = vpop.f32.mrf.mxu1  ;;  %v6904_v59 = vld [vmem:[%s9373_s7 + $0xa34] ss:$24 sps:$4 sm:$0xff]  }
 0x3e9   :  { %5428 = vmatprep.subr.bf16.mxu1 %v6850_v60  ;;  %v5023_v60 = vadd.f32 %v5022_v22, %v3037_v40  ;;  %v6932_v40 = vld [vmem:[%s9373_s7 + $0xb50] ss:$24 sps:$4 sm:$0xff]  }
 0x3eb   :  { %5386 = vmatpush1.bf16.msra.mxu0 %v6845_v61  ;;  %v5064_v61 = vadd.f32 %v5063_v45, %v5021_v28  ;;  %v6926_v45 = vld [vmem:[%s9373_s7 + $0xbb0] ss:$24 sps:$4 sm:$0xff]  }
 0x3ec   :  { %5429 = vmatpush1.bf16.msra.mxu1 %v6848_v62  ;;  %5387 = vmatprep.subr.bf16.mxu0 %v6853_v63  ;;  %v5105_v62 = vadd.f32 %v5104_v23, %v5062_v51  ;;  %v5025_v63 = vadd.f32 %v5024_v13, %v3041_v41  ;;  %v6923_v13 = vld [vmem:[%s9373_s7 + $0xbe0] ss:$24 sps:$4 sm:$0xff]   ;;  %v6931_v23 = vld [vmem:[%s9373_s7 + $0xb84] ss:$24 sps:$4 sm:$0xff]  }
 0x3ed   :  { %5430 = vmatprep.subr.bf16.mxu1 %v6856_v0  ;;  %v6935_v41 = vld [vmem:[%s9373_s7 + $0xb20] ss:$24 sps:$4 sm:$0xff]  }
 0x3ef   :  { %5388 = vmatpush2.bf16.msra.mxu0 %v6851_v1  ;;  %v5066_v1 = vadd.f32 %v5065_v44, %v5023_v60  ;;  %v6938_v44 = vld [vmem:[%s9373_s7 + $0xaf0] ss:$24 sps:$4 sm:$0xff]  }
 0x3f0   :  { %5431 = vmatpush2.bf16.msra.mxu1 %v6854_v2  ;;  %5389 = vmatprep.subr.bf16.mxu0 %v6859_v3  ;;  %v5107_v2 = vadd.f32 %v5106_v46, %v5064_v61  ;;  %v6943_v46 = vld [vmem:[%s9373_s7 + $0xac4] ss:$24 sps:$4 sm:$0xff]   ;;  %v3049_v61 = vrot.slane %v9197_v43, %v7483_v53 }
 0x3f1   :  { %5432 = vmatprep.subr.bf16.mxu1 %v6862_v4  ;;  %v6902_v4 = vld [vmem:[%s9373_s7 + $0xa30] ss:$24 sps:$4 sm:$0xff]  }
 0x3f3   :  { %5390 = vmatpush2.bf16.msra.mxu0 %v6857_v5  ;;  %v5110_v5 = vpop.f32.mrf.mxu1 }
 0x3f4   :  { %5433 = vmatpush2.bf16.msra.mxu1 %v6860_v8  ;;  %5391 = vmatprep.subr.bf16.mxu0 %v6865_v9  ;;  %v5068_v9 = vadd.f32 %v5067_v56, %v5025_v63 }
 0x3f5   :  { %5434 = vmatprep.subr.bf16.mxu1 %v6868_v11  ;;  %v5109_v11 = vadd.f32 %v5108_v57, %v5066_v1  ;;  %v3045_v57 = vrot.slane %v9197_v43, %v7486_v54 }
 0x3f7   :  { %5392 = vmatpush2.bf16.msra.mxu0 %v6863_v12 }
 0x3f8   :  { %5435 = vmatpush2.bf16.msra.mxu1 %v6866_v14  ;;  %5393 = vmatprep.subr.bf16.mxu0 %v6871_v15  ;;  %v5111_v14 = vadd.f32 %v5110_v5, %v5068_v9 }
 0x3f9   :  { %5436 = vmatprep.subr.bf16.mxu1 %v6874_v19  ;;  %v6905_v19 = vld [vmem:[%s9373_s7 + $0xa00] ss:$24 sps:$4 sm:$0xff]  }
 0x3fb   :  { %5394 = vmatpush2.bf16.msra.mxu0 %v6869_v20 }
 0x3fc   :  { %5437 = vmatpush2.bf16.msra.mxu1 %v6872_v26  ;;  %5395 = vmatprep.subr.bf16.mxu0 %v6877_v25  ;;  %v6908_v26 = vld [vmem:[%s9373_s7 + $0x9d0] ss:$24 sps:$4 sm:$0xff]   ;;  %v6913_v25 = vld [vmem:[%s9373_s7 + $0x9a4] ss:$24 sps:$4 sm:$0xff]  }
 0x3fd   :  { %5438 = vmatprep.subr.bf16.mxu1 %v6880_v47  ;;  %v6911_v47 = vld [vmem:[%s9373_s7 + $0x9a0] ss:$24 sps:$4 sm:$0xff]  }
 0x3ff   :  { %5396 = vmatpush2.bf16.msra.mxu0 %v6875_v30 }
 0x400   :  { %5439 = vmatpush2.bf16.msra.mxu1 %v6878_v31  ;;  %5397 = vmatprep.subr.bf16.mxu0 %v6883_v32  ;;  %v6914_v31 = vld [vmem:[%s9373_s7 + $0x970] ss:$24 sps:$4 sm:$0xff]  }
 0x401   :  { %5440 = vmatprep.subr.bf16.mxu1 %v6886_v33  ;;  %v6919_v33 = vld [vmem:[%s9373_s7 + $0x944] ss:$24 sps:$4 sm:$0xff]  }
 0x403   :  { %5398 = vmatpush2.bf16.msra.mxu0 %v6881_v34  ;;  %v6917_v34 = vld [vmem:[%s9373_s7 + $0x940] ss:$24 sps:$4 sm:$0xff]  }
 0x404   :  { %5441 = vmatpush2.bf16.msra.mxu1 %v6884_v36  ;;  %5399 = vmatprep.subr.bf16.mxu0 %v6889_v16  ;;  %v6922_v36 = vld [vmem:[%s9373_s7 + $0x914] ss:$24 sps:$4 sm:$0xff]   ;;  %v6920_v16 = vld [vmem:[%s9373_s7 + $0x910] ss:$24 sps:$4 sm:$0xff]  }
 0x405   :  { %5442 = vmatprep.subr.bf16.mxu1 %v6892_v10  ;;  %v6925_v10 = vld [vmem:[%s9373_s7 + $0xbe4] ss:$24 sps:$4 sm:$0xff]  }
 0x407   :  { %5400 = vmatpush2.bf16.msra.mxu0 %v6887_v37  ;;  %v6928_v37 = vld [vmem:[%s9373_s7 + $0xbb4] ss:$24 sps:$4 sm:$0xff]  }
 0x408   :  { %5443 = vmatpush2.bf16.msra.mxu1 %v6890_v38  ;;  %5401 = vmatprep.subr.bf16.mxu0 %v6895_v39  ;;  %v6929_v38 = vld [vmem:[%s9373_s7 + $0xb80] ss:$24 sps:$4 sm:$0xff]   ;;  %v6934_v39 = vld [vmem:[%s9373_s7 + $0xb54] ss:$24 sps:$4 sm:$0xff]  }
 0x409   :  { %5444 = vmatprep.subr.bf16.mxu1 %v6898_v17  ;;  %v6937_v17 = vld [vmem:[%s9373_s7 + $0xb24] ss:$24 sps:$4 sm:$0xff]  }
 0x40b   :  { %5402 = vmatpush2.bf16.msra.mxu0 %v6893_v42  ;;  %v6940_v42 = vld [vmem:[%s9373_s7 + $0xaf4] ss:$24 sps:$4 sm:$0xff]  }
 0x40c   :  { %5445 = vmatpush2.bf16.msra.mxu1 %v6896_v29  ;;  %5457 = vmatprep.subr.bf16.mxu0 %v6901_v49  ;;  %v6941_v29 = vld [vmem:[%s9373_s7 + $0xac0] ss:$24 sps:$4 sm:$0xff]   ;;  %v6946_v49 = vld [vmem:[%s9373_s7 + $0xa94] ss:$24 sps:$4 sm:$0xff]  }
 0x40e   :  { %5404 = vmatmul.mubr.bf16.vlgmr.msra.gmra.mxu0 %v8344_v18  ;;  %v5147_v0 = vpop.f32.mrf.mxu0  ;;  %v6907_v18 = vld [vmem:[%s9373_s7 + $0xa04] ss:$24 sps:$4 sm:$0xff]   ;;  %v5190_v28 = vpop.f32.mrf.mxu1 }
 0x40f   :  { %5447 = vmatmul.mubr.bf16.vlgmr.msra.gmra.mxu1 %v8523_v48  ;;  %v5148_v3 = vadd.f32 %v5147_v0, %v5105_v62  ;;  %5458 = vmatpush1.bf16.msra.mxu0 %v6899_v52  ;;  %v5191_v63 = vadd.f32 %v5190_v28, %v3045_v57 }
 0x410   :  { %5489 = vmatprep.mubr.bf16.mxu0 %v8625_v55  ;;  %v5149_v8 = vpop.f32.mrf.mxu0  ;;  %5459 = vmatprep.subr.bf16.mxu0 %v6904_v59  ;;  %v5192_v51 = vpop.f32.mrf.mxu1 }
 0x411   :  { %6947 = vtanh.f32 %v5148_v3  ;;  %v5150_v12 = vadd.f32 %v5149_v8, %v5107_v2  ;;  %v5193_v1 = vadd.f32 %v5192_v51, %v3049_v61 }
 0x412   :  { %v5151_v48 = vpop.f32.mrf.mxu0  ;;  %v5194_v52 = vpop.f32.mrf.mxu1 }
 0x413   :  { %6949 = vtanh.f32 %v5150_v12  ;;  %v5152_v15 = vadd.f32 %v5151_v48, %v5109_v11  ;;  %5460 = vmatpush1.bf16.msra.mxu0 %v6902_v4  ;;  %v5195_v4 = vadd.f32 %v5194_v52, %v3045_v57 }
 0x414   :  { %v5153_v55 = vpop.f32.mrf.mxu0  ;;  %5461 = vmatprep.subr.bf16.mxu0 %v6907_v18  ;;  %v5196_v59 = vpop.f32.mrf.mxu1 }
 0x415   :  { %6951 = vtanh.f32 %v5152_v15  ;;  %v5154_v20 = vadd.f32 %v5153_v55, %v5111_v14  ;;  %v5197_v8 = vadd.f32 %v5196_v59, %v3049_v61 }
 0x417   :  { %6953 = vtanh.f32 %v5154_v20  ;;  %5462 = vmatpush1.bf16.msra.mxu0 %v6905_v19 }
 0x418   :  { %5463 = vmatprep.subr.bf16.mxu0 %v6910_v24 }
 0x41b   :  { %5464 = vmatpush1.bf16.msra.mxu0 %v6908_v26 }
 0x41c   :  { %5465 = vmatprep.subr.bf16.mxu0 %v6913_v25 }
 0x41e   :  { %v6948_v30 = vpop.eup %6947 }
 0x41f   :  { %5512 = vst [vmem:[%s9376_s9] sm:$0xff] %v6948_v30  ;;  %5466 = vmatpush1.bf16.msra.mxu0 %v6911_v47 }
 0x420   :  { %v6950_v32 = vpop.eup %6949  ;;  %5467 = vmatprep.subr.bf16.mxu0 %v6916_v21 }
 0x421   :  { %5513 = vst [vmem:[%s9376_s9 + $0x8] sm:$0xff] %v6950_v32 }
 0x422   :  { %v6952_v22 = vpop.eup %6951 }
 0x423   :  { %5518 = vst [vmem:[%s9376_s9 + $0x30] sm:$0xff] %v6952_v22  ;;  %5468 = vmatpush1.bf16.msra.mxu0 %v6914_v31 }
 0x424   :  { %v6954_v35 = vpop.eup %6953  ;;  %5469 = vmatprep.subr.bf16.mxu0 %v6919_v33 }
 0x425   :  { %5519 = vst [vmem:[%s9376_s9 + $0x38] sm:$0xff] %v6954_v35 }
 0x427   :  { %5470 = vmatpush1.bf16.msra.mxu0 %v6917_v34 }
 0x428   :  { %5471 = vmatprep.subr.bf16.mxu0 %v6922_v36  ;;  %v3053_v36 = vrot.slane %v9197_v43, %v978_v7 }
 0x42b   :  { %5472 = vmatpush1.bf16.msra.mxu0 %v6920_v16 }
 0x42c   :  { %5473 = vmatprep.subr.bf16.mxu0 %v6925_v10 }
 0x42f   :  { %5474 = vmatpush2.bf16.msra.mxu0 %v6923_v13  ;;  %v3057_v13 = vrot.slane %v9197_v43, %v982_v6 }
 0x430   :  { %5475 = vmatprep.subr.bf16.mxu0 %v6928_v37 }
 0x433   :  { %5476 = vmatpush2.bf16.msra.mxu0 %v6926_v45 }
 0x434   :  { %5477 = vmatprep.subr.bf16.mxu0 %v6931_v23 }
 0x437   :  { %5478 = vmatpush2.bf16.msra.mxu0 %v6929_v38 }
 0x438   :  { %5479 = vmatprep.subr.bf16.mxu0 %v6934_v39 }
 0x43b   :  { %5480 = vmatpush2.bf16.msra.mxu0 %v6932_v40 }
 0x43c   :  { %5481 = vmatprep.subr.bf16.mxu0 %v6937_v17 }
 0x43f   :  { %5482 = vmatpush2.bf16.msra.mxu0 %v6935_v41 }
 0x440   :  { %5483 = vmatprep.subr.bf16.mxu0 %v6940_v42 }
 0x443   :  { %5484 = vmatpush2.bf16.msra.mxu0 %v6938_v44 }
 0x444   :  { %5485 = vmatprep.subr.bf16.mxu0 %v6943_v46 }
 0x447   :  { %5486 = vmatpush2.bf16.msra.mxu0 %v6941_v29 }
 0x448   :  { %5487 = vmatprep.subr.bf16.mxu0 %v6946_v49 }
 0x44b   :  { %5488 = vmatpush2.bf16.msra.mxu0 %v6944_v50 }
 0x44e   :  { %5490 = vmatmul.mubr.bf16.vlgmr.msra.gmra.mxu0 %v8633_v58  ;;  %v5233_v56 = vpop.f32.mrf.mxu0  ;;  %v5276_v62 = vpop.f32.mrf.mxu1 }
 0x44f   :  { %v5234_v2 = vadd.f32 %v5233_v56, %v5191_v63 }
 0x450   :  { %v5235_v60 = vpop.f32.mrf.mxu0  ;;  %v5278_v3 = vpop.f32.mrf.mxu1 }
 0x451   :  { %v5236_v58 = vadd.f32 %v5235_v60, %v5193_v1  ;;  %v5277_v18 = vadd.f32 %v5276_v62, %v5234_v2 }
 0x452   :  { %v5237_v0 = vpop.f32.mrf.mxu0  ;;  %v5280_v11 = vpop.f32.mrf.mxu1 }
 0x453   :  { %v5238_v9 = vadd.f32 %v5237_v0, %v5195_v4  ;;  %v5279_v54 = vadd.f32 %v5278_v3, %v5236_v58 }
 0x454   :  { %v5239_v5 = vpop.f32.mrf.mxu0  ;;  %v5282_v55 = vpop.f32.mrf.mxu1 }
 0x455   :  { %v5240_v48 = vadd.f32 %v5239_v5, %v5197_v8  ;;  %v5281_v19 = vadd.f32 %v5280_v11, %v5238_v9 }
 0x457   :  { %v5283_v20 = vadd.f32 %v5282_v55, %v5240_v48 }
 0x48e   :  { %v5319_v12 = vpop.f32.mrf.mxu0 }
 0x48f   :  { %v5320_v14 = vadd.f32 %v5319_v12, %v5277_v18  ;;  %v5362_v33 = vpop.f32.mrf.mxu1 }
 0x490   :  { %v5321_v15 = vpop.f32.mrf.mxu0  ;;  %v5363_v45 = vadd.f32 %v5362_v33, %v3053_v36 }
 0x491   :  { %6955 = vtanh.f32 %v5320_v14  ;;  %v5322_v53 = vadd.f32 %v5321_v15, %v5279_v54  ;;  %v5364_v22 = vpop.f32.mrf.mxu1 }
 0x492   :  { %v5323_v24 = vpop.f32.mrf.mxu0  ;;  %v5365_v38 = vadd.f32 %v5364_v22, %v3057_v13 }
 0x493   :  { %6957 = vtanh.f32 %v5322_v53  ;;  %v5324_v26 = vadd.f32 %v5323_v24, %v5281_v19  ;;  %v5366_v34 = vpop.f32.mrf.mxu1 }
 0x494   :  { %v5325_v25 = vpop.f32.mrf.mxu0  ;;  %v5367_v17 = vadd.f32 %v5366_v34, %v3053_v36 }
 0x495   :  { %6959 = vtanh.f32 %v5324_v26  ;;  %v5326_v47 = vadd.f32 %v5325_v25, %v5283_v20  ;;  %v5368_v16 = vpop.f32.mrf.mxu1 }
 0x496   :  { %v5369_v44 = vadd.f32 %v5368_v16, %v3057_v13 }
 0x497   :  { %6961 = vtanh.f32 %v5326_v47 }
 0x49e   :  { %v6956_v21 = vpop.eup %6955 }
 0x49f   :  { %5514 = vst [vmem:[%s9376_s9 + $0x10] sm:$0xff] %v6956_v21 }
 0x4a0   :  { %v6958_v30 = vpop.eup %6957 }
 0x4a1   :  { %5515 = vst [vmem:[%s9376_s9 + $0x18] sm:$0xff] %v6958_v30 }
 0x4a2   :  { %v6960_v31 = vpop.eup %6959 }
 0x4a3   :  { %5520 = vst [vmem:[%s9376_s9 + $0x40] sm:$0xff] %v6960_v31 }
 0x4a4   :  { %v6962_v32 = vpop.eup %6961 }
 0x4a5   :  { %5521 = vst [vmem:[%s9376_s9 + $0x48] sm:$0xff] %v6962_v32 }
 0x4ce   :  { %v5405_v35 = vpop.f32.mrf.mxu0 }
 0x4cf   :  { %v5448_v37 = vpop.f32.mrf.mxu1  ;;  %v5406_v39 = vadd.f32 %v5405_v35, %v5363_v45 }
 0x4d0   :  { %v5407_v10 = vpop.f32.mrf.mxu0 }
 0x4d1   :  { %v5450_v40 = vpop.f32.mrf.mxu1  ;;  %v5408_v41 = vadd.f32 %v5407_v10, %v5365_v38  ;;  %v5449_v46 = vadd.f32 %v5448_v37, %v5406_v39 }
 0x4d2   :  { %v5409_v23 = vpop.f32.mrf.mxu0 }
 0x4d3   :  { %v5410_v29 = vadd.f32 %v5409_v23, %v5367_v17  ;;  %v5452_v49 = vpop.f32.mrf.mxu1  ;;  %v5451_v50 = vadd.f32 %v5450_v40, %v5408_v41 }
 0x4d4   :  { %v5411_v42 = vpop.f32.mrf.mxu0 }
 0x4d5   :  { %v5412_v28 = vadd.f32 %v5411_v42, %v5369_v44  ;;  %v5453_v52 = vadd.f32 %v5452_v49, %v5410_v29  ;;  %v5454_v43 = vpop.f32.mrf.mxu1 }
 0x4d7   :  { %v5455_v57 = vadd.f32 %v5454_v43, %v5412_v28 }
 0x50e   :  { %v5491_v7 = vpop.f32.mrf.mxu0 }
 0x50f   :  { %v5492_v51 = vadd.f32 %v5491_v7, %v5449_v46 }
 0x510   :  { %v5493_v27 = vpop.f32.mrf.mxu0 }
 0x511   :  { %6963 = vtanh.f32 %v5492_v51  ;;  %v5494_v6 = vadd.f32 %v5493_v27, %v5451_v50 }
 0x512   :  { %v5495_v56 = vpop.f32.mrf.mxu0 }
 0x513   :  { %6965 = vtanh.f32 %v5494_v6  ;;  %v5496_v59 = vadd.f32 %v5495_v56, %v5453_v52 }
 0x514   :  { %v5497_v60 = vpop.f32.mrf.mxu0 }
 0x515   :  { %6967 = vtanh.f32 %v5496_v59  ;;  %v5498_v61 = vadd.f32 %v5497_v60, %v5455_v57 }
 0x517   :  { %6969 = vtanh.f32 %v5498_v61 }
 0x51e   :  { %v6964_v62 = vpop.eup %6963 }
 0x51f   :  { %5516 = vst [vmem:[%s9376_s9 + $0x20] sm:$0xff] %v6964_v62 }
 0x520   :  { %v6966_v63 = vpop.eup %6965 }
 0x521   :  { %5517 = vst [vmem:[%s9376_s9 + $0x28] sm:$0xff] %v6966_v63 }
 0x522   :  { %v6968_v0 = vpop.eup %6967 }
 0x523   :  { %5522 = vst [vmem:[%s9376_s9 + $0x50] sm:$0xff] %v6968_v0 }
 0x524   :  { %v6970_v1 = vpop.eup %6969 }
 0x525   :  { %5523 = vst [vmem:[%s9376_s9 + $0x58] sm:$0xff] %v6970_v1 }

// kernel: mul.18
= control target key start
LH: loop header
LB: loop body
LE: loop exit
PB: predicated region body
PF: predicated region fallthrough
CT: control target
= control target key end

     0   :  { %vm22_vm0 = vcmask 130048   ;;  %s81_s0 = inlined_call_operand.vmem [shape: f32[16,2,2,3], index: 0, kind: input, shape index: {}]   ;;  %s82_s1 = inlined_call_operand.vmem [shape: f32[16,12], index: 1, kind: output, shape index: {}]  }
   0x1   :  { %v41_v0 = vld [vmem:[%s81_s0 + $0xc] sm:$0xf]  ;;  %v42_v1 = vld [vmem:[%s81_s0 + $0x8] sm:$0xf]  ;;  %v43_v2 = vld [vmem:[%s81_s0 + $0x4] sm:$0xf] }
   0x2   :  { %9 = vst [vmem:[#allocation0 + $0x8] sm:$0xf] %v41_v0  ;;  %14 = vst [vmem:[#allocation0 + $0x18] sm:$0xf] %v42_v1  ;;  %v19_v3 = vld [vmem:[%s81_s0] sm:$0xf] }
   0x3   :  { %18 = vst [vmem:[#allocation0] sm:$0xf] %v43_v2  ;;  %20 = vst [vmem:[#allocation0 + $0x10] sm:$0xf] %v19_v3 }
   0x9   :  { %v30_v5 = vld [vmem:[#allocation0 + $0x18] sm:$0x7]   ;;  %v35_v6 = vld [vmem:[#allocation0 + $0x8] sm:$0x7]  }
   0xa   :  { %v25_v4 = vld [vmem:[#allocation0] sm:$0x7]   ;;  %v21_v7 = vld [vmem:[#allocation0 + $0x10] sm:$0x7]   ;;  %45 = vst.msk [vmem:[%s82_s1 + $0x6] sm:$0x7] %vm22_vm0, %v30_v5  }
   0xb   :  { %44 = vst.msk [vmem:[%s82_s1 + $0x3] sm:$0x7] %vm22_vm0, %v25_v4   ;;  %46 = vst.msk [vmem:[%s82_s1 + $0x9] sm:$0x7] %vm22_vm0, %v35_v6  }
   0xc   :  { %23 = vst.msk [vmem:[%s82_s1] sm:$0x7] %vm22_vm0, %v21_v7  }

// kernel: tile.48
= control target key start
LH: loop header
LB: loop body
LE: loop exit
PB: predicated region body
PF: predicated region fallthrough
CT: control target
= control target key end

     0   :  { %s22_s0 = inlined_call_operand.vmem [shape: f32[3], index: 0, kind: input, shape index: {}]   ;;  %s23_s1 = inlined_call_operand.vmem [shape: f32[4,3], index: 1, kind: output, shape index: {}]  }
   0x1   :  { %v4_v0 = vld [vmem:[%s22_s0] ss:$0 sm:$0xff] }
   0x2   :  { %5 = vst [vmem:[%s23_s1] sm:$0xf] %v4_v0 }

// kernel: tile.51
= control target key start
LH: loop header
LB: loop body
LE: loop exit
PB: predicated region body
PF: predicated region fallthrough
CT: control target
= control target key end

     0   :  { %vm8_vm0 = vcmask 23552   ;;  %s40_s8 = smov 3   ;;  %s41_s9 = smov 6   ;;  %vm14_vm1 = vcmask 97352   ;;  %vm20_vm2 = vcmask 72752   ;;  %vm26_vm3 = vcmask 48152   ;;  %s58_s0 = inlined_call_operand.vmem [shape: f32[4,3], index: 0, kind: input, shape index: {}]   ;;  %s59_s1 = inlined_call_operand.vmem [shape: f32[12], index: 1, kind: output, shape index: {}]  }
   0x1   :  { %v5_v0 = vld [vmem:[%s58_s0] sm:$0xf]  ;;  %s39_s0 = smov 9  }
   0x2   :  { %6 = vst [vmem:[#allocation1] sm:$0xf] %v5_v0 }
   0x9   :  { %v11_v1 = vld [vmem:[#allocation1 + $0x3] sm:$0x1]   ;;  %v23_v2 = vld [vmem:[#allocation1 + $0x1] sm:$0x1]   ;;  %v7_v3 = vld [vmem:[#allocation1] sm:$0x1]  }
   0xa   :  { %12 = vrot.lane.b32.xlu0 %v11_v1, %s39_s0  ;;  %24 = vrot.lane.b32.xlu1 %v23_v2, %s40_s8  ;;  %v17_v4 = vld [vmem:[#allocation1 + $0x2] sm:$0x1]   ;;  %9 = vst.msk [vmem:[#allocation0] sm:$0x1] %vm8_vm0, %v7_v3  }
   0xe   :  { %18 = vrot.lane.b32.xlu0 %v17_v4, %s41_s9 }
  0x7c   :  { %v13_v5 = vpop.permute.xlu0 %12   ;;  %v25_v6 = vpop.permute.xlu1 %24  }
  0x7d   :  { %15 = vst.msk [vmem:[#allocation0] sm:$0x1] %vm14_vm1, %v13_v5  }
  0x80   :  { %v19_v7 = vpop.permute.xlu0 %18  }
  0x81   :  { %21 = vst.msk [vmem:[#allocation0] sm:$0x1] %vm20_vm2, %v19_v7  }
  0x82   :  { %27 = vst.msk [vmem:[#allocation0] sm:$0x1] %vm26_vm3, %v25_v6  }
  0x89   :  { %v32_v8 = vld [vmem:[#allocation0] sm:$0x1] }
  0x8a   :  { %35 = vst [vmem:[%s59_s1] sm:$0x1] %v32_v8 }

// kernel: tile.52
= control target key start
LH: loop header
LB: loop body
LE: loop exit
PB: predicated region body
PF: predicated region fallthrough
CT: control target
= control target key end

     0   :  { %s64_s0 = inlined_call_operand.vmem [shape: f32[12], index: 0, kind: input, shape index: {}]   ;;  %s65_s1 = inlined_call_operand.vmem [shape: f32[64,12], index: 1, kind: output, shape index: {}]  }
   0x1   :  { %v4_v0 = vld [vmem:[%s64_s0] ss:$0 sm:$0xff] }
   0x2   :  { %5 = vst [vmem:[%s65_s1] sm:$0xff] %v4_v0  ;;  %20 = vst [vmem:[%s65_s1 + $0x8] sm:$0xff] %v4_v0 }
   0x3   :  { %21 = vst [vmem:[%s65_s1 + $0x10] sm:$0xff] %v4_v0  ;;  %22 = vst [vmem:[%s65_s1 + $0x18] sm:$0xff] %v4_v0 }
   0x4   :  { %23 = vst [vmem:[%s65_s1 + $0x20] sm:$0xff] %v4_v0  ;;  %24 = vst [vmem:[%s65_s1 + $0x28] sm:$0xff] %v4_v0 }
   0x5   :  { %25 = vst [vmem:[%s65_s1 + $0x30] sm:$0xff] %v4_v0  ;;  %26 = vst [vmem:[%s65_s1 + $0x38] sm:$0xff] %v4_v0 }

// kernel: tile.39
= control target key start
LH: loop header
LB: loop body
LE: loop exit
PB: predicated region body
PF: predicated region fallthrough
CT: control target
= control target key end

     0   :  { %s22_s0 = inlined_call_operand.vmem [shape: f32[16], index: 0, kind: input, shape index: {}]   ;;  %s23_s1 = inlined_call_operand.vmem [shape: f32[4,16], index: 1, kind: output, shape index: {}]  }
   0x1   :  { %v4_v0 = vld [vmem:[%s22_s0] ss:$0 sm:$0xff] }
   0x2   :  { %5 = vst [vmem:[%s23_s1] sm:$0xf] %v4_v0 }

// kernel: tile.42
= control target key start
LH: loop header
LB: loop body
LE: loop exit
PB: predicated region body
PF: predicated region fallthrough
CT: control target
= control target key end

     0   :  { %vm8_vm0 = vcmask 130048   ;;  %s40_s8 = smov 16   ;;  %s41_s9 = smov 32   ;;  %vm14_vm1 = vcmask 523648   ;;  %vm20_vm2 = vcmask 392448   ;;  %vm26_vm3 = vcmask 261248   ;;  %s58_s0 = inlined_call_operand.vmem [shape: f32[4,16], index: 0, kind: input, shape index: {}]   ;;  %s59_s1 = inlined_call_operand.vmem [shape: f32[64], index: 1, kind: output, shape index: {}]  }
   0x1   :  { %v5_v0 = vld [vmem:[%s58_s0] sm:$0xf]  ;;  %s39_s0 = smov 48  }
   0x2   :  { %6 = vst [vmem:[#allocation1] sm:$0xf] %v5_v0 }
   0x9   :  { %v11_v1 = vld [vmem:[#allocation1 + $0x3] sm:$0x1]   ;;  %v23_v2 = vld [vmem:[#allocation1 + $0x1] sm:$0x1]   ;;  %v7_v3 = vld [vmem:[#allocation1] sm:$0x1]  }
   0xa   :  { %12 = vrot.lane.b32.xlu0 %v11_v1, %s39_s0  ;;  %24 = vrot.lane.b32.xlu1 %v23_v2, %s40_s8  ;;  %v17_v4 = vld [vmem:[#allocation1 + $0x2] sm:$0x1]   ;;  %9 = vst.msk [vmem:[#allocation0] sm:$0x1] %vm8_vm0, %v7_v3  }
   0xe   :  { %18 = vrot.lane.b32.xlu0 %v17_v4, %s41_s9 }
  0x7c   :  { %v13_v5 = vpop.permute.xlu0 %12   ;;  %v25_v6 = vpop.permute.xlu1 %24  }
  0x7d   :  { %15 = vst.msk [vmem:[#allocation0] sm:$0x1] %vm14_vm1, %v13_v5  }
  0x80   :  { %v19_v7 = vpop.permute.xlu0 %18  }
  0x81   :  { %21 = vst.msk [vmem:[#allocation0] sm:$0x1] %vm20_vm2, %v19_v7  }
  0x82   :  { %27 = vst.msk [vmem:[#allocation0] sm:$0x1] %vm26_vm3, %v25_v6  }
  0x89   :  { %v32_v8 = vld [vmem:[#allocation0] sm:$0x1] }
  0x8a   :  { %35 = vst [vmem:[%s59_s1] sm:$0x1] %v32_v8 }

// kernel: tile.43
= control target key start
LH: loop header
LB: loop body
LE: loop exit
PB: predicated region body
PF: predicated region fallthrough
CT: control target
= control target key end

     0   :  { %s28_s0 = inlined_call_operand.vmem [shape: f32[64], index: 0, kind: input, shape index: {}]   ;;  %s29_s1 = inlined_call_operand.vmem [shape: f32[16,64], index: 1, kind: output, shape index: {}]  }
   0x1   :  { %v4_v0 = vld [vmem:[%s28_s0] ss:$0 sm:$0xff] }
   0x2   :  { %5 = vst [vmem:[%s29_s1] sm:$0xff] %v4_v0  ;;  %8 = vst [vmem:[%s29_s1 + $0x8] sm:$0xff] %v4_v0 }

// kernel: tile.44
= control target key start
LH: loop header
LB: loop body
LE: loop exit
PB: predicated region body
PF: predicated region fallthrough
CT: control target
= control target key end

     0   :  { %vm3_vm0 = vcmask 523264   ;;  %vm10_vm1 = vcmask 1048064   ;;  %s125_s0 = inlined_call_operand.vmem [shape: f32[16,64], index: 0, kind: input, shape index: {}]   ;;  %s126_s1 = inlined_call_operand.vmem [shape: f32[1,1024], index: 1, kind: output, shape index: {}]  }
   0x1   :  { %v75_v0 = vld [vmem:[%s125_s0 + $0x1] ss:$2 sm:$0xff]   ;;  %v2_v1 = vld [vmem:[%s125_s0] ss:$2 sm:$0xff]   ;;  %s84_s0 = smov 64  }
   0x2   :  { %8 = vrot.lane.b32.xlu0 %v75_v0, %s84_s0  ;;  %4 = vst.msk [vmem:[#allocation0] ss:$8 sm:$0xf] %vm3_vm0, %v2_v1   ;;  %5 = vst.msk [vmem:[#allocation0] ss:$8 sm:$0xf0] %vm3_vm0, %v2_v1  }
  0x74   :  { %v9_v2 = vpop.permute.xlu0 %8  }
  0x75   :  { %11 = vst.msk [vmem:[#allocation0] ss:$8 sm:$0xf] %vm10_vm1, %v9_v2   ;;  %12 = vst.msk [vmem:[#allocation0] ss:$8 sm:$0xf0] %vm10_vm1, %v9_v2  }
  0x7c   :  { %v17_v3 = vld [vmem:[#allocation0] sm:$0x1]  ;;  %v22_v4 = vld [vmem:[#allocation0 + $0x8] sm:$0x1]  ;;  %v28_v5 = vld [vmem:[#allocation0 + $0x10] sm:$0x1] }
  0x7d   :  { %20 = vst [vmem:[%s126_s1] sm:$0x1] %v17_v3  ;;  %76 = vst [vmem:[%s126_s1 + $0x1] sm:$0x1] %v22_v4  ;;  %v35_v6 = vld [vmem:[#allocation0 + $0x18] sm:$0x1] }
  0x7e   :  { %77 = vst [vmem:[%s126_s1 + $0x2] sm:$0x1] %v28_v5  ;;  %v42_v7 = vld [vmem:[#allocation0 + $0x20] sm:$0x1]  ;;  %v49_v8 = vld [vmem:[#allocation0 + $0x28] sm:$0x1] }
  0x7f   :  { %78 = vst [vmem:[%s126_s1 + $0x3] sm:$0x1] %v35_v6  ;;  %79 = vst [vmem:[%s126_s1 + $0x4] sm:$0x1] %v42_v7  ;;  %v56_v9 = vld [vmem:[#allocation0 + $0x30] sm:$0x1] }
  0x80   :  { %80 = vst [vmem:[%s126_s1 + $0x5] sm:$0x1] %v49_v8  ;;  %v63_v10 = vld [vmem:[#allocation0 + $0x38] sm:$0x1]  ;;  %81 = vst [vmem:[%s126_s1 + $0x6] sm:$0x1] %v56_v9 }
  0x81   :  { %82 = vst [vmem:[%s126_s1 + $0x7] sm:$0x1] %v63_v10 }

// kernel: tile.30
= control target key start
LH: loop header
LB: loop body
LE: loop exit
PB: predicated region body
PF: predicated region fallthrough
CT: control target
= control target key end

     0   :  { %s22_s0 = inlined_call_operand.vmem [shape: f32[32], index: 0, kind: input, shape index: {}]   ;;  %s23_s1 = inlined_call_operand.vmem [shape: f32[4,32], index: 1, kind: output, shape index: {}]  }
   0x1   :  { %v4_v0 = vld [vmem:[%s22_s0] ss:$0 sm:$0xff] }
   0x2   :  { %5 = vst [vmem:[%s23_s1] sm:$0xf] %v4_v0 }

// kernel: tile.33
= control target key start
LH: loop header
LB: loop body
LE: loop exit
PB: predicated region body
PF: predicated region fallthrough
CT: control target
= control target key end

     0   :  { %vm8_vm0 = vcmask 261120   ;;  %s40_s8 = smov 32   ;;  %s41_s9 = smov 64   ;;  %vm14_vm1 = vcmask 1048320   ;;  %vm20_vm2 = vcmask 785920   ;;  %vm26_vm3 = vcmask 523520   ;;  %s58_s0 = inlined_call_operand.vmem [shape: f32[4,32], index: 0, kind: input, shape index: {}]   ;;  %s59_s1 = inlined_call_operand.vmem [shape: f32[128], index: 1, kind: output, shape index: {}]  }
   0x1   :  { %v5_v0 = vld [vmem:[%s58_s0] sm:$0xf]  ;;  %s39_s0 = smov 96  }
   0x2   :  { %6 = vst [vmem:[#allocation1] sm:$0xf] %v5_v0 }
   0x9   :  { %v11_v1 = vld [vmem:[#allocation1 + $0x3] sm:$0x1]   ;;  %v23_v2 = vld [vmem:[#allocation1 + $0x1] sm:$0x1]   ;;  %v7_v3 = vld [vmem:[#allocation1] sm:$0x1]  }
   0xa   :  { %12 = vrot.lane.b32.xlu0 %v11_v1, %s39_s0  ;;  %24 = vrot.lane.b32.xlu1 %v23_v2, %s40_s8  ;;  %v17_v4 = vld [vmem:[#allocation1 + $0x2] sm:$0x1]   ;;  %9 = vst.msk [vmem:[#allocation0] sm:$0x1] %vm8_vm0, %v7_v3  }
   0xe   :  { %18 = vrot.lane.b32.xlu0 %v17_v4, %s41_s9 }
  0x7c   :  { %v13_v5 = vpop.permute.xlu0 %12   ;;  %v25_v6 = vpop.permute.xlu1 %24  }
  0x7d   :  { %15 = vst.msk [vmem:[#allocation0] sm:$0x1] %vm14_vm1, %v13_v5  }
  0x80   :  { %v19_v7 = vpop.permute.xlu0 %18  }
  0x81   :  { %21 = vst.msk [vmem:[#allocation0] sm:$0x1] %vm20_vm2, %v19_v7  }
  0x82   :  { %27 = vst.msk [vmem:[#allocation0] sm:$0x1] %vm26_vm3, %v25_v6  }
  0x89   :  { %v32_v8 = vld [vmem:[#allocation0] sm:$0x1] }
  0x8a   :  { %35 = vst [vmem:[%s59_s1] sm:$0x1] %v32_v8 }

// kernel: tile.34
= control target key start
LH: loop header
LB: loop body
LE: loop exit
PB: predicated region body
PF: predicated region fallthrough
CT: control target
= control target key end

     0   :  { %s22_s0 = inlined_call_operand.vmem [shape: f32[128], index: 0, kind: input, shape index: {}]   ;;  %s23_s1 = inlined_call_operand.vmem [shape: f32[4,128], index: 1, kind: output, shape index: {}]  }
   0x1   :  { %v4_v0 = vld [vmem:[%s22_s0] ss:$0 sm:$0xff] }
   0x2   :  { %5 = vst [vmem:[%s23_s1] sm:$0xf] %v4_v0 }

// kernel: generator_forward.1
= control target key start
LH: loop header
LB: loop body
LE: loop exit
PB: predicated region body
PF: predicated region fallthrough
CT: control target
= control target key end

     0   :  { %v6971_v1 = vmov 0   ;;  %s9367_s1 = inlined_call_operand.vmem [shape: bf16[1,128,256], index: 1, kind: input, shape index: {}]   ;;  %s9368_s0 = inlined_call_operand.vmem [shape: bf16[16,128], index: 0, kind: input, shape index: {}]   ;;  %s9369_s3 = inlined_call_operand.vmem [shape: bf16[256,512], index: 3, kind: input, shape index: {}]   ;;  %s9370_s5 = inlined_call_operand.vmem [shape: bf16[512,1024], index: 5, kind: input, shape index: {}]   ;;  %s9371_s2 = inlined_call_operand.vmem [shape: f32[1,1,256], index: 2, kind: input, shape index: {}]   ;;  %s9372_s4 = inlined_call_operand.vmem [shape: f32[1,512], index: 4, kind: input, shape index: {}]   ;;  %s9373_s7 = inlined_call_operand.vmem [shape: bf16[1024,768], index: 7, kind: input, shape index: {}]   ;;  %s9374_s6 = inlined_call_operand.vmem [shape: f32[1,1024], index: 6, kind: input, shape index: {}]   ;;  %s9375_s8 = inlined_call_operand.vmem [shape: f32[1,768], index: 8, kind: input, shape index: {}]   ;;  %s9376_s9 = inlined_call_operand.vmem [shape: f32[16,768], index: 9, kind: output, shape index: {}]  }
   0x1   :  { %v6250_v0 = vld [vmem:[%s9367_s1 + $0x74] ss:$8 sps:$4 sm:$0xff]   ;;  %181 = vmatprep.mubr.bf16.mxu0 %v6971_v1  ;;  %v6252_v2 = vld [vmem:[%s9367_s1 + $0x70] ss:$8 sps:$4 sm:$0xff]   ;;  %v6253_v3 = vld [vmem:[%s9367_s1 + $0x64] ss:$8 sps:$4 sm:$0xff]  }
   0x2   :  { %149 = vmatprep.subr.bf16.mxu0 %v6250_v0  ;;  %v6255_v4 = vld [vmem:[%s9367_s1 + $0x60] ss:$8 sps:$4 sm:$0xff]   ;;  %v6256_v5 = vld [vmem:[%s9367_s1 + $0x54] ss:$8 sps:$4 sm:$0xff]   ;;  %v6258_v6 = vld [vmem:[%s9367_s1 + $0x50] ss:$8 sps:$4 sm:$0xff]  }
   0x3   :  { %150 = vmatpush1.bf16.msra.mxu0 %v6252_v2  ;;  %v6259_v7 = vld [vmem:[%s9367_s1 + $0x44] ss:$8 sps:$4 sm:$0xff]   ;;  %v6261_v8 = vld [vmem:[%s9367_s1 + $0x40] ss:$8 sps:$4 sm:$0xff]   ;;  %v6262_v9 = vld [vmem:[%s9367_s1 + $0x34] ss:$8 sps:$4 sm:$0xff]  }
   0x4   :  { %151 = vmatprep.subr.bf16.mxu0 %v6253_v3  ;;  %v6275_v10 = vld [vmem:[%s9369_s3 + $0xe4] ss:$16 sps:$4 sm:$0xff]   ;;  %v6264_v11 = vld [vmem:[%s9367_s1 + $0x30] ss:$8 sps:$4 sm:$0xff]   ;;  %v6267_v17 = vld [vmem:[%s9367_s1 + $0x20] ss:$8 sps:$4 sm:$0xff]  }
   0x5   :  { %604 = vmatprep.subr.bf16.mxu1 %v6275_v10  ;;  %v6280_v12 = vld [vmem:[%s9369_s3 + $0xe0] ss:$16 sps:$4 sm:$0xff]   ;;  %v6281_v13 = vld [vmem:[%s9369_s3 + $0xc4] ss:$16 sps:$4 sm:$0xff]   ;;  %v6279_v26 = vld [vmem:[%s9369_s3 + $0xec] ss:$16 sps:$4 sm:$0xff]  }
   0x6   :  { %v6265_v14 = vld [vmem:[%s9367_s1 + $0x24] ss:$8 sps:$4 sm:$0xff]   ;;  %605 = vmatpush1.bf16.msra.mxu1 %v6280_v12  ;;  %v6286_v15 = vld [vmem:[%s9369_s3 + $0xc0] ss:$16 sps:$4 sm:$0xff]   ;;  %v6268_v18 = vld [vmem:[%s9367_s1 + $0x14] ss:$8 sps:$4 sm:$0xff]  }
   0x7   :  { %152 = vmatpush1.bf16.msra.mxu0 %v6255_v4  ;;  %606 = vmatprep.subr.bf16.mxu1 %v6281_v13  ;;  %v6287_v16 = vld [vmem:[%s9369_s3 + $0xa4] ss:$16 sps:$4 sm:$0xff]   ;;  %v6292_v19 = vld [vmem:[%s9369_s3 + $0xa0] ss:$16 sps:$4 sm:$0xff]   ;;  %v6277_v30 = vld [vmem:[%s9369_s3 + $0xe8] ss:$16 sps:$4 sm:$0xff]  }
   0x8   :  { %153 = vmatprep.subr.bf16.mxu0 %v6256_v5  ;;  %v6293_v20 = vld [vmem:[%s9369_s3 + $0x84] ss:$16 sps:$4 sm:$0xff]   ;;  %v6270_v21 = vld [vmem:[%s9367_s1 + $0x10] ss:$8 sps:$4 sm:$0xff]   ;;  %v6273_v25 = vld [vmem:[%s9367_s1] ss:$8 sps:$4 sm:$0xff]  }
   0x9   :  { %v6271_v22 = vld [vmem:[%s9367_s1 + $0x4] ss:$8 sps:$4 sm:$0xff]   ;;  %v6298_v23 = vld [vmem:[%s9369_s3 + $0x80] ss:$16 sps:$4 sm:$0xff]   ;;  %v6283_v34 = vld [vmem:[%s9369_s3 + $0xc8] ss:$16 sps:$4 sm:$0xff]  }
   0xa   :  { %607 = vmatpush1.bf16.msra.mxu1 %v6286_v15  ;;  %v6299_v24 = vld [vmem:[%s9369_s3 + $0x64] ss:$16 sps:$4 sm:$0xff]   ;;  %v6304_v27 = vld [vmem:[%s9369_s3 + $0x60] ss:$16 sps:$4 sm:$0xff]   ;;  %v6285_v31 = vld [vmem:[%s9369_s3 + $0xcc] ss:$16 sps:$4 sm:$0xff]  }
   0xb   :  { %154 = vmatpush1.bf16.msra.mxu0 %v6258_v6  ;;  %608 = vmatprep.subr.bf16.mxu1 %v6287_v16  ;;  %v6305_v28 = vld [vmem:[%s9369_s3 + $0x44] ss:$16 sps:$4 sm:$0xff]   ;;  %v6310_v32 = vld [vmem:[%s9369_s3 + $0x40] ss:$16 sps:$4 sm:$0xff]   ;;  %v6291_v35 = vld [vmem:[%s9369_s3 + $0xac] ss:$16 sps:$4 sm:$0xff]  }
   0xc   :  { %155 = vmatprep.subr.bf16.mxu0 %v6259_v7  ;;  %v6274_v29 = vld [vmem:[%s9368_s0] sm:$0xff]   ;;  %v6289_v38 = vld [vmem:[%s9369_s3 + $0xa8] ss:$16 sps:$4 sm:$0xff]   ;;  %v6297_v39 = vld [vmem:[%s9369_s3 + $0x8c] ss:$16 sps:$4 sm:$0xff]  }
   0xd   :  { %v6311_v33 = vld [vmem:[%s9369_s3 + $0x24] ss:$16 sps:$4 sm:$0xff]   ;;  %v6316_v36 = vld [vmem:[%s9369_s3 + $0x20] ss:$16 sps:$4 sm:$0xff]   ;;  %v6295_v42 = vld [vmem:[%s9369_s3 + $0x88] ss:$16 sps:$4 sm:$0xff]  }
   0xe   :  { %609 = vmatpush1.bf16.msra.mxu1 %v6292_v19  ;;  %v6317_v37 = vld [vmem:[%s9369_s3 + $0x4] ss:$16 sps:$4 sm:$0xff]   ;;  %v6322_v40 = vld [vmem:[%s9369_s3] ss:$16 sps:$4 sm:$0xff]   ;;  %v6303_v43 = vld [vmem:[%s9369_s3 + $0x6c] ss:$16 sps:$4 sm:$0xff]  }
   0xf   :  { %156 = vmatpush1.bf16.msra.mxu0 %v6261_v8  ;;  %610 = vmatprep.subr.bf16.mxu1 %v6293_v20  ;;  %v6323_v41 = vld [vmem:[%s9369_s3 + $0x1e4] ss:$16 sps:$4 sm:$0xff]   ;;  %v6328_v44 = vld [vmem:[%s9369_s3 + $0x1e0] ss:$16 sps:$4 sm:$0xff]   ;;  %v6301_v45 = vld [vmem:[%s9369_s3 + $0x68] ss:$16 sps:$4 sm:$0xff]  }
  0x10   :  { %157 = vmatprep.subr.bf16.mxu0 %v6262_v9  ;;  %v6329_v46 = vld [vmem:[%s9369_s3 + $0x1c4] ss:$16 sps:$4 sm:$0xff]   ;;  %v6309_v47 = vld [vmem:[%s9369_s3 + $0x4c] ss:$16 sps:$4 sm:$0xff]   ;;  %v6334_v48 = vld [vmem:[%s9369_s3 + $0x1c0] ss:$16 sps:$4 sm:$0xff]  }
  0x11   :  { %v6335_v49 = vld [vmem:[%s9369_s3 + $0x1a4] ss:$16 sps:$4 sm:$0xff]   ;;  %v6307_v50 = vld [vmem:[%s9369_s3 + $0x48] ss:$16 sps:$4 sm:$0xff]   ;;  %v6315_v51 = vld [vmem:[%s9369_s3 + $0x2c] ss:$16 sps:$4 sm:$0xff]  }
  0x12   :  { %611 = vmatpush1.bf16.msra.mxu1 %v6298_v23  ;;  %v6340_v52 = vld [vmem:[%s9369_s3 + $0x1a0] ss:$16 sps:$4 sm:$0xff]   ;;  %v6341_v53 = vld [vmem:[%s9369_s3 + $0x184] ss:$16 sps:$4 sm:$0xff]   ;;  %v6313_v54 = vld [vmem:[%s9369_s3 + $0x28] ss:$16 sps:$4 sm:$0xff]  }
  0x13   :  { %158 = vmatpush1.bf16.msra.mxu0 %v6264_v11  ;;  %612 = vmatprep.subr.bf16.mxu1 %v6299_v24  ;;  %v6321_v55 = vld [vmem:[%s9369_s3 + $0xc] ss:$16 sps:$4 sm:$0xff]   ;;  %v6346_v56 = vld [vmem:[%s9369_s3 + $0x180] ss:$16 sps:$4 sm:$0xff]   ;;  %v6347_v57 = vld [vmem:[%s9369_s3 + $0x164] ss:$16 sps:$4 sm:$0xff]  }
  0x14   :  { %159 = vmatprep.subr.bf16.mxu0 %v6265_v14  ;;  %v6319_v58 = vld [vmem:[%s9369_s3 + $0x8] ss:$16 sps:$4 sm:$0xff]   ;;  %v6327_v59 = vld [vmem:[%s9369_s3 + $0x1ec] ss:$16 sps:$4 sm:$0xff]   ;;  %v6352_v60 = vld [vmem:[%s9369_s3 + $0x160] ss:$16 sps:$4 sm:$0xff]  }
  0x15   :  { %v6325_v61 = vld [vmem:[%s9369_s3 + $0x1e8] ss:$16 sps:$4 sm:$0xff]   ;;  %v6333_v62 = vld [vmem:[%s9369_s3 + $0x1cc] ss:$16 sps:$4 sm:$0xff]   ;;  %v6353_v6 = vld [vmem:[%s9369_s3 + $0x144] ss:$16 sps:$4 sm:$0xff]  }
  0x16   :  { %613 = vmatpush1.bf16.msra.mxu1 %v6304_v27  ;;  %v6331_v63 = vld [vmem:[%s9369_s3 + $0x1c8] ss:$16 sps:$4 sm:$0xff]   ;;  %v6339_v0 = vld [vmem:[%s9369_s3 + $0x1ac] ss:$16 sps:$4 sm:$0xff]   ;;  %v6358_v9 = vld [vmem:[%s9369_s3 + $0x140] ss:$16 sps:$4 sm:$0xff]  }
  0x17   :  { %160 = vmatpush1.bf16.msra.mxu0 %v6267_v17  ;;  %614 = vmatprep.subr.bf16.mxu1 %v6305_v28  ;;  %v6337_v1 = vld [vmem:[%s9369_s3 + $0x1a8] ss:$16 sps:$4 sm:$0xff]   ;;  %v6345_v2 = vld [vmem:[%s9369_s3 + $0x18c] ss:$16 sps:$4 sm:$0xff]   ;;  %v6359_v10 = vld [vmem:[%s9369_s3 + $0x124] ss:$16 sps:$4 sm:$0xff]  }
  0x18   :  { %161 = vmatprep.subr.bf16.mxu0 %v6268_v18  ;;  %v6343_v3 = vld [vmem:[%s9369_s3 + $0x188] ss:$16 sps:$4 sm:$0xff]   ;;  %v6351_v4 = vld [vmem:[%s9369_s3 + $0x16c] ss:$16 sps:$4 sm:$0xff]   ;;  %v6364_v13 = vld [vmem:[%s9369_s3 + $0x120] ss:$16 sps:$4 sm:$0xff]  }
  0x19   :  { %v6349_v5 = vld [vmem:[%s9369_s3 + $0x168] ss:$16 sps:$4 sm:$0xff]   ;;  %v6357_v7 = vld [vmem:[%s9369_s3 + $0x14c] ss:$16 sps:$4 sm:$0xff]   ;;  %v6365_v14 = vld [vmem:[%s9369_s3 + $0x104] ss:$16 sps:$4 sm:$0xff]  }
  0x1a   :  { %615 = vmatpush1.bf16.msra.mxu1 %v6310_v32  ;;  %v6355_v8 = vld [vmem:[%s9369_s3 + $0x148] ss:$16 sps:$4 sm:$0xff]   ;;  %v6363_v11 = vld [vmem:[%s9369_s3 + $0x12c] ss:$16 sps:$4 sm:$0xff]   ;;  %v6370_v17 = vld [vmem:[%s9369_s3 + $0x100] ss:$16 sps:$4 sm:$0xff]  }
  0x1b   :  { %162 = vmatpush1.bf16.msra.mxu0 %v6270_v21  ;;  %616 = vmatprep.subr.bf16.mxu1 %v6311_v33  ;;  %v6361_v12 = vld [vmem:[%s9369_s3 + $0x128] ss:$16 sps:$4 sm:$0xff]   ;;  %v6369_v15 = vld [vmem:[%s9369_s3 + $0x10c] ss:$16 sps:$4 sm:$0xff]   ;;  %v758_v18 = vld [vmem:[%s9370_s5 + $0x1c0] sm:$0xff] }
  0x1c   :  { %163 = vmatprep.subr.bf16.mxu0 %v6271_v22  ;;  %v6367_v16 = vld [vmem:[%s9369_s3 + $0x108] ss:$16 sps:$4 sm:$0xff]   ;;  %v762_v19 = vld [vmem:[%s9370_s5 + $0x1e0] sm:$0xff] }
  0x1d   :  { %v886_v20 = vld [vmem:[%s9370_s5 + $0x5c0] sm:$0xff]  ;;  %v5665_v21 = vcombine.low %v758_v18, %v762_v19  ;;  %v5666_v22 = vcombine.high %v758_v18, %v762_v19 }
  0x1e   :  { %617 = vmatpush1.bf16.msra.mxu1 %v6316_v36  ;;  %v890_v23 = vld [vmem:[%s9370_s5 + $0x5e0] sm:$0xff] }
  0x1f   :  { %164 = vmatpush1.bf16.msra.mxu0 %v6273_v25  ;;  %618 = vmatprep.subr.bf16.mxu1 %v6317_v37  ;;  %v5793_v24 = vcombine.low %v886_v20, %v890_v23  ;;  %v5794_v25 = vcombine.high %v886_v20, %v890_v23  ;;  %v838_v23 = vld [vmem:[%s9370_s5 + $0x440] sm:$0xff] }
  0x20   :  { %647 = vmatprep.subr.bf16.mxu0 %v6279_v26  ;;  %v53_v26 = vlaneseq }
  0x22   :  { %182 = vmatmul.mubr.bf16.vlgmr.msra.gmra.mxu0 %v6274_v29  ;;  %619 = vmatpush1.bf16.msra.mxu1 %v6322_v40  ;;  %v7277_v27 = vshrl.u32 %v53_v26, 7 }
  0x23   :  { %648 = vmatpush1.bf16.msra.mxu0 %v6277_v30  ;;  %620 = vmatprep.subr.bf16.mxu1 %v6323_v41  ;;  %v51_v30 = vld [vmem:[%s9371_s2] sm:$0x3] }
  0x24   :  { %649 = vmatprep.subr.bf16.mxu0 %v6285_v31  ;;  %v7280_v28 = vsub.s32 1, %v7277_v27  ;;  %v7283_v29 = vsub.s32 0, %v7277_v27 }
  0x26   :  { %621 = vmatpush2.bf16.msra.mxu1 %v6328_v44  ;;  %v60_v32 = vrot.slane %v51_v30, %v7280_v28  ;;  %v56_v33 = vrot.slane %v51_v30, %v7283_v29 }
  0x27   :  { %650 = vmatpush1.bf16.msra.mxu0 %v6283_v34  ;;  %622 = vmatprep.subr.bf16.mxu1 %v6329_v46  ;;  %v878_v46 = vld [vmem:[%s9370_s5 + $0x580] sm:$0xff] }
  0x28   :  { %651 = vmatprep.subr.bf16.mxu0 %v6291_v35 }
  0x2a   :  { %623 = vmatpush2.bf16.msra.mxu1 %v6334_v48 }
  0x2b   :  { %652 = vmatpush1.bf16.msra.mxu0 %v6289_v38  ;;  %624 = vmatprep.subr.bf16.mxu1 %v6335_v49 }
  0x2c   :  { %653 = vmatprep.subr.bf16.mxu0 %v6297_v39 }
  0x2e   :  { %625 = vmatpush2.bf16.msra.mxu1 %v6340_v52 }
  0x2f   :  { %654 = vmatpush1.bf16.msra.mxu0 %v6295_v42  ;;  %626 = vmatprep.subr.bf16.mxu1 %v6341_v53  ;;  %v750_v42 = vld [vmem:[%s9370_s5 + $0x180] sm:$0xff] }
  0x30   :  { %655 = vmatprep.subr.bf16.mxu0 %v6303_v43  ;;  %v742_v53 = vld [vmem:[%s9370_s5 + $0x140] sm:$0xff] }
  0x32   :  { %627 = vmatpush2.bf16.msra.mxu1 %v6346_v56  ;;  %v874_v56 = vld [vmem:[%s9370_s5 + $0x560] sm:$0xff] }
  0x33   :  { %656 = vmatpush1.bf16.msra.mxu0 %v6301_v45  ;;  %628 = vmatprep.subr.bf16.mxu1 %v6347_v57  ;;  %v754_v45 = vld [vmem:[%s9370_s5 + $0x1a0] sm:$0xff] }
  0x34   :  { %657 = vmatprep.subr.bf16.mxu0 %v6309_v47  ;;  %v882_v47 = vld [vmem:[%s9370_s5 + $0x5a0] sm:$0xff]  ;;  %v5657_v57 = vcombine.low %v750_v42, %v754_v45 }
  0x35   :  { %v5786_v52 = vcombine.high %v878_v46, %v882_v47 }
  0x36   :  { %629 = vmatpush2.bf16.msra.mxu1 %v6352_v60 }
  0x37   :  { %658 = vmatpush1.bf16.msra.mxu0 %v6307_v50  ;;  %630 = vmatprep.subr.bf16.mxu1 %v6353_v6  ;;  %v730_v6 = vld [vmem:[%s9370_s5 + $0xe0] sm:$0xff] }
  0x38   :  { %659 = vmatprep.subr.bf16.mxu0 %v6315_v51  ;;  %v5658_v51 = vcombine.high %v750_v42, %v754_v45  ;;  %v950_v42 = vld [vmem:[%s9370_s5 + $0x7c0] sm:$0xff] }
  0x3a   :  { %631 = vmatpush2.bf16.msra.mxu1 %v6358_v9 }
  0x3b   :  { %660 = vmatpush1.bf16.msra.mxu0 %v6313_v54  ;;  %632 = vmatprep.subr.bf16.mxu1 %v6359_v10  ;;  %v746_v54 = vld [vmem:[%s9370_s5 + $0x160] sm:$0xff] }
  0x3c   :  { %661 = vmatprep.subr.bf16.mxu0 %v6321_v55  ;;  %v870_v55 = vld [vmem:[%s9370_s5 + $0x540] sm:$0xff] }
  0x3d   :  { %v5778_v60 = vcombine.high %v870_v55, %v874_v56 }
  0x3e   :  { %633 = vmatpush2.bf16.msra.mxu1 %v6364_v13  ;;  %v718_v13 = vld [vmem:[%s9370_s5 + $0x80] sm:$0xff] }
  0x3f   :  { %662 = vmatpush1.bf16.msra.mxu0 %v6319_v58  ;;  %634 = vmatprep.subr.bf16.mxu1 %v6365_v14  ;;  %v5785_v58 = vcombine.low %v878_v46, %v882_v47  ;;  %v722_v14 = vld [vmem:[%s9370_s5 + $0xa0] sm:$0xff] }
  0x40   :  { %663 = vmatprep.subr.bf16.mxu0 %v6327_v59  ;;  %v5650_v59 = vcombine.high %v742_v53, %v746_v54  ;;  %v5626_v19 = vcombine.high %v718_v13, %v722_v14 }
  0x42   :  { %635 = vmatpush2.bf16.msra.mxu1 %v6370_v17 }
  0x43   :  { %664 = vmatpush2.bf16.msra.mxu0 %v6325_v61  ;;  %2280 = vmatprep.subr.bf16.mxu1 %v5666_v22  ;;  %v734_v61 = vld [vmem:[%s9370_s5 + $0x100] sm:$0xff] }
  0x44   :  { %665 = vmatprep.subr.bf16.mxu0 %v6333_v62  ;;  %v738_v62 = vld [vmem:[%s9370_s5 + $0x120] sm:$0xff] }
  0x45   :  { %v5641_v9 = vcombine.low %v734_v61, %v738_v62  ;;  %v714_v22 = vld [vmem:[%s9370_s5 + $0x60] sm:$0xff] }
  0x47   :  { %666 = vmatpush2.bf16.msra.mxu0 %v6331_v63  ;;  %v862_v63 = vld [vmem:[%s9370_s5 + $0x500] sm:$0xff] }
  0x48   :  { %667 = vmatprep.subr.bf16.mxu0 %v6339_v0  ;;  %v866_v0 = vld [vmem:[%s9370_s5 + $0x520] sm:$0xff] }
  0x49   :  { %v5769_v10 = vcombine.low %v862_v63, %v866_v0 }
  0x4b   :  { %668 = vmatpush2.bf16.msra.mxu0 %v6337_v1  ;;  %v5649_v1 = vcombine.low %v742_v53, %v746_v54 }
  0x4c   :  { %669 = vmatprep.subr.bf16.mxu0 %v6345_v2  ;;  %v5777_v2 = vcombine.low %v870_v55, %v874_v56  ;;  %v806_v56 = vld [vmem:[%s9370_s5 + $0x340] sm:$0xff] }
  0x4f   :  { %670 = vmatpush2.bf16.msra.mxu0 %v6343_v3  ;;  %v5642_v3 = vcombine.high %v734_v61, %v738_v62 }
  0x50   :  { %671 = vmatprep.subr.bf16.mxu0 %v6351_v4  ;;  %v5770_v4 = vcombine.high %v862_v63, %v866_v0  ;;  %v798_v0 = vld [vmem:[%s9370_s5 + $0x300] sm:$0xff] }
  0x53   :  { %672 = vmatpush2.bf16.msra.mxu0 %v6349_v5  ;;  %v726_v5 = vld [vmem:[%s9370_s5 + $0xc0] sm:$0xff] }
  0x54   :  { %673 = vmatprep.subr.bf16.mxu0 %v6357_v7  ;;  %v854_v7 = vld [vmem:[%s9370_s5 + $0x4c0] sm:$0xff]  ;;  %v5633_v17 = vcombine.low %v726_v5, %v730_v6 }
  0x57   :  { %674 = vmatpush2.bf16.msra.mxu0 %v6355_v8  ;;  %v858_v8 = vld [vmem:[%s9370_s5 + $0x4e0] sm:$0xff] }
  0x58   :  { %675 = vmatprep.subr.bf16.mxu0 %v6363_v11  ;;  %v5634_v11 = vcombine.high %v726_v5, %v730_v6  ;;  %v5761_v18 = vcombine.low %v854_v7, %v858_v8 }
  0x5b   :  { %676 = vmatpush2.bf16.msra.mxu0 %v6361_v12  ;;  %v5762_v12 = vcombine.high %v854_v7, %v858_v8  ;;  %v790_v8 = vld [vmem:[%s9370_s5 + $0x2c0] sm:$0xff] }
  0x5c   :  { %677 = vmatprep.subr.bf16.mxu0 %v6369_v15  ;;  %v846_v15 = vld [vmem:[%s9370_s5 + $0x480] sm:$0xff] }
  0x5f   :  { %678 = vmatpush2.bf16.msra.mxu0 %v6367_v16  ;;  %v850_v16 = vld [vmem:[%s9370_s5 + $0x4a0] sm:$0xff] }
  0x60   :  { %2323 = vmatprep.subr.bf16.mxu0 %v5794_v25  ;;  %v5754_v20 = vcombine.high %v846_v15, %v850_v16  ;;  %v5625_v25 = vcombine.low %v718_v13, %v722_v14  ;;  %v5753_v26 = vcombine.low %v846_v15, %v850_v16 }
  0xe2   :  { %v183_v31 = vpop.f32.mrf.mxu0 }
  0xe3   :  { %v184_v38 = vadd.f32 %v183_v31, %v56_v33 }
  0xe4   :  { %v185_v34 = vpop.f32.mrf.mxu0 }
  0xe5   :  { %v186_v36 = vadd.f32 %v185_v34, %v60_v32  ;;  %v192_v48 = vmax.f32 %v184_v38, 0.0  ;;  %v830_v34 = vld [vmem:[%s9370_s5 + $0x400] sm:$0xff] }
  0xe6   :  { %v187_v35 = vpop.f32.mrf.mxu0 }
  0xe7   :  { %v188_v37 = vadd.f32 %v187_v35, %v56_v33  ;;  %v193_v43 = vmax.f32 %v186_v36, 0.0  ;;  %v706_v33 = vld [vmem:[%s9370_s5 + $0x20] sm:$0xff] }
  0xe8   :  { %v189_v39 = vpop.f32.mrf.mxu0  ;;  %v834_v35 = vld [vmem:[%s9370_s5 + $0x420] sm:$0xff] }
  0xe9   :  { %v190_v40 = vadd.f32 %v189_v39, %v60_v32  ;;  %v194_v41 = vmax.f32 %v188_v37, 0.0  ;;  %v702_v32 = vld [vmem:[%s9370_s5] sm:$0xff]  ;;  %v5738_v39 = vcombine.high %v830_v34, %v834_v35  ;;  %v5737_v45 = vcombine.low %v830_v34, %v834_v35 }
  0xea   :  { %v5610_v38 = vcombine.high %v702_v32, %v706_v33 }
  0xeb   :  { %v195_v44 = vmax.f32 %v190_v40, 0.0  ;;  %v196_v50 = vpack.c.bf16 %v194_v41, %v192_v48  ;;  %v822_v40 = vld [vmem:[%s9370_s5 + $0x3c0] sm:$0xff] }
  0xec   :  { %v826_v41 = vld [vmem:[%s9370_s5 + $0x3e0] sm:$0xff] }
  0xed   :  { %v197_v49 = vpack.c.bf16 %v195_v44, %v193_v43  ;;  %v954_v43 = vld [vmem:[%s9370_s5 + $0x7e0] sm:$0xff]  ;;  %v5609_v44 = vcombine.low %v702_v32, %v706_v33  ;;  %v5730_v46 = vcombine.high %v822_v40, %v826_v41 }
  0xee   :  { %v5858_v47 = vcombine.high %v950_v42, %v954_v43  ;;  %v814_v48 = vld [vmem:[%s9370_s5 + $0x380] sm:$0xff]  ;;  %v5857_v53 = vcombine.low %v950_v42, %v954_v43 }
  0xef   :  { %636 = vmatprep.mubr.bf16.mxu1 %v197_v49  ;;  %679 = vmatprep.mubr.bf16.mxu0 %v197_v49  ;;  %v818_v49 = vld [vmem:[%s9370_s5 + $0x3a0] sm:$0xff] }
  0xf0   :  { %637 = vmatmul.mubr.bf16.vlgmr.msra.gmra.mxu1 %v196_v50  ;;  %680 = vmatmul.mubr.bf16.vlgmr.msra.gmra.mxu0 %v196_v50  ;;  %v942_v50 = vld [vmem:[%s9370_s5 + $0x780] sm:$0xff]  ;;  %v5722_v54 = vcombine.high %v814_v48, %v818_v49 }
  0xf1   :  { %2281 = vmatpush1.bf16.msra.mxu1 %v5665_v21  ;;  %2324 = vmatpush1.bf16.msra.mxu0 %v5793_v24  ;;  %v710_v21 = vld [vmem:[%s9370_s5 + $0x40] sm:$0xff] }
  0xf2   :  { %2282 = vmatprep.subr.bf16.mxu1 %v5658_v51  ;;  %2325 = vmatprep.subr.bf16.mxu0 %v5786_v52  ;;  %v842_v24 = vld [vmem:[%s9370_s5 + $0x460] sm:$0xff]  ;;  %v5618_v30 = vcombine.high %v710_v21, %v714_v22  ;;  %v5617_v36 = vcombine.low %v710_v21, %v714_v22  ;;  %v5729_v52 = vcombine.low %v822_v40, %v826_v41 }
  0xf3   :  { %v5746_v31 = vcombine.high %v838_v23, %v842_v24  ;;  %v5745_v37 = vcombine.low %v838_v23, %v842_v24  ;;  %v946_v51 = vld [vmem:[%s9370_s5 + $0x7a0] sm:$0xff] }
  0xf4   :  { %v5850_v55 = vcombine.high %v942_v50, %v946_v51  ;;  %v5849_v61 = vcombine.low %v942_v50, %v946_v51  ;;  %v914_v22 = vld [vmem:[%s9370_s5 + $0x6a0] sm:$0xff] }
  0xf5   :  { %2283 = vmatpush1.bf16.msra.mxu1 %v5657_v57  ;;  %2326 = vmatpush1.bf16.msra.mxu0 %v5785_v58  ;;  %v810_v57 = vld [vmem:[%s9370_s5 + $0x360] sm:$0xff] }
  0xf6   :  { %2284 = vmatprep.subr.bf16.mxu1 %v5650_v59  ;;  %2327 = vmatprep.subr.bf16.mxu0 %v5778_v60  ;;  %v934_v58 = vld [vmem:[%s9370_s5 + $0x740] sm:$0xff]  ;;  %v5721_v60 = vcombine.low %v814_v48, %v818_v49  ;;  %v5714_v62 = vcombine.high %v806_v56, %v810_v57  ;;  %v891_v49 = vld [vmem:[%s9370_s5 + $0x5e8] sm:$0xff] }
  0xf7   :  { %v938_v59 = vld [vmem:[%s9370_s5 + $0x760] sm:$0xff] }
  0xf8   :  { %v5842_v63 = vcombine.high %v934_v58, %v938_v59  ;;  %v5841_v5 = vcombine.low %v934_v58, %v938_v59  ;;  %v906_v33 = vld [vmem:[%s9370_s5 + $0x660] sm:$0xff] }
  0xf9   :  { %2285 = vmatpush1.bf16.msra.mxu1 %v5649_v1  ;;  %2328 = vmatpush1.bf16.msra.mxu0 %v5777_v2  ;;  %v802_v1 = vld [vmem:[%s9370_s5 + $0x320] sm:$0xff] }
  0xfa   :  { %2286 = vmatprep.subr.bf16.mxu1 %v5642_v3  ;;  %2329 = vmatprep.subr.bf16.mxu0 %v5770_v4  ;;  %v926_v2 = vld [vmem:[%s9370_s5 + $0x700] sm:$0xff]  ;;  %v5713_v4 = vcombine.low %v806_v56, %v810_v57  ;;  %v5706_v6 = vcombine.high %v798_v0, %v802_v1 }
  0xfb   :  { %v930_v3 = vld [vmem:[%s9370_s5 + $0x720] sm:$0xff] }
  0xfc   :  { %v5834_v7 = vcombine.high %v926_v2, %v930_v3  ;;  %v5833_v13 = vcombine.low %v926_v2, %v930_v3  ;;  %v898_v41 = vld [vmem:[%s9370_s5 + $0x620] sm:$0xff] }
  0xfd   :  { %2287 = vmatpush1.bf16.msra.mxu1 %v5641_v9  ;;  %2330 = vmatpush1.bf16.msra.mxu0 %v5769_v10  ;;  %v794_v9 = vld [vmem:[%s9370_s5 + $0x2e0] sm:$0xff] }
  0xfe   :  { %2288 = vmatprep.subr.bf16.mxu1 %v5634_v11  ;;  %2331 = vmatprep.subr.bf16.mxu0 %v5762_v12  ;;  %v918_v10 = vld [vmem:[%s9370_s5 + $0x6c0] sm:$0xff]  ;;  %v5705_v12 = vcombine.low %v798_v0, %v802_v1  ;;  %v5698_v14 = vcombine.high %v790_v8, %v794_v9  ;;  %v5697_v16 = vcombine.low %v790_v8, %v794_v9 }
  0xff   :  { %v922_v11 = vld [vmem:[%s9370_s5 + $0x6e0] sm:$0xff] }
 0x100   :  { %v5826_v15 = vcombine.high %v918_v10, %v922_v11 }
 0x101   :  { %2289 = vmatpush1.bf16.msra.mxu1 %v5633_v17  ;;  %2332 = vmatpush1.bf16.msra.mxu0 %v5761_v18  ;;  %v5825_v17 = vcombine.low %v918_v10, %v922_v11  ;;  %v782_v18 = vld [vmem:[%s9370_s5 + $0x280] sm:$0xff] }
 0x102   :  { %2290 = vmatprep.subr.bf16.mxu1 %v5626_v19  ;;  %2333 = vmatprep.subr.bf16.mxu0 %v5754_v20  ;;  %v786_v19 = vld [vmem:[%s9370_s5 + $0x2a0] sm:$0xff] }
 0x103   :  { %v910_v20 = vld [vmem:[%s9370_s5 + $0x680] sm:$0xff]  ;;  %v5690_v21 = vcombine.high %v782_v18, %v786_v19  ;;  %v5689_v23 = vcombine.low %v782_v18, %v786_v19  ;;  %v751_v18 = vld [vmem:[%s9370_s5 + $0x188] sm:$0xff] }
 0x104   :  { %v5817_v24 = vcombine.low %v910_v20, %v914_v22 }
 0x105   :  { %2291 = vmatpush1.bf16.msra.mxu1 %v5625_v25  ;;  %2334 = vmatpush1.bf16.msra.mxu0 %v5753_v26  ;;  %v5818_v25 = vcombine.high %v910_v20, %v914_v22  ;;  %v774_v26 = vld [vmem:[%s9370_s5 + $0x240] sm:$0xff]  ;;  %v879_v22 = vld [vmem:[%s9370_s5 + $0x588] sm:$0xff] }
 0x106   :  { %2292 = vmatprep.subr.bf16.mxu1 %v5618_v30  ;;  %2335 = vmatprep.subr.bf16.mxu0 %v5746_v31  ;;  %v778_v30 = vld [vmem:[%s9370_s5 + $0x260] sm:$0xff] }
 0x107   :  { %v902_v31 = vld [vmem:[%s9370_s5 + $0x640] sm:$0xff]  ;;  %v5682_v32 = vcombine.high %v774_v26, %v778_v30  ;;  %v5681_v34 = vcombine.low %v774_v26, %v778_v30 }
 0x108   :  { %v5809_v35 = vcombine.low %v902_v31, %v906_v33 }
 0x109   :  { %2293 = vmatpush1.bf16.msra.mxu1 %v5617_v36  ;;  %2336 = vmatpush1.bf16.msra.mxu0 %v5745_v37  ;;  %v5810_v36 = vcombine.high %v902_v31, %v906_v33  ;;  %v766_v37 = vld [vmem:[%s9370_s5 + $0x200] sm:$0xff]  ;;  %v743_v31 = vld [vmem:[%s9370_s5 + $0x148] sm:$0xff] }
 0x10a   :  { %2294 = vmatprep.subr.bf16.mxu1 %v5610_v38  ;;  %2337 = vmatprep.subr.bf16.mxu0 %v5738_v39  ;;  %v770_v38 = vld [vmem:[%s9370_s5 + $0x220] sm:$0xff] }
 0x10b   :  { %v894_v39 = vld [vmem:[%s9370_s5 + $0x600] sm:$0xff]  ;;  %v5674_v40 = vcombine.high %v766_v37, %v770_v38  ;;  %v5673_v42 = vcombine.low %v766_v37, %v770_v38 }
 0x10c   :  { %v5801_v43 = vcombine.low %v894_v39, %v898_v41 }
 0x10d   :  { %2295 = vmatpush1.bf16.msra.mxu1 %v5609_v44  ;;  %2338 = vmatpush1.bf16.msra.mxu0 %v5737_v45  ;;  %v5802_v44 = vcombine.high %v894_v39, %v898_v41  ;;  %v759_v45 = vld [vmem:[%s9370_s5 + $0x1c8] sm:$0xff] }
 0x10e   :  { %2296 = vmatprep.subr.bf16.mxu1 %v5730_v46  ;;  %2339 = vmatprep.subr.bf16.mxu0 %v5858_v47  ;;  %v763_v46 = vld [vmem:[%s9370_s5 + $0x1e8] sm:$0xff] }
 0x10f   :  { %v887_v47 = vld [vmem:[%s9370_s5 + $0x5c8] sm:$0xff]  ;;  %v5668_v48 = vcombine.high %v759_v45, %v763_v46  ;;  %v5667_v50 = vcombine.low %v759_v45, %v763_v46 }
 0x110   :  { %v5795_v51 = vcombine.low %v887_v47, %v891_v49  ;;  %v735_v41 = vld [vmem:[%s9370_s5 + $0x108] sm:$0xff] }
 0x111   :  { %2297 = vmatpush2.bf16.msra.mxu1 %v5729_v52  ;;  %2340 = vmatpush2.bf16.msra.mxu0 %v5857_v53  ;;  %v5796_v52 = vcombine.high %v887_v47, %v891_v49  ;;  %v7483_v53 = vsub.s32 3, %v7277_v27  ;;  %v727_v49 = vld [vmem:[%s9370_s5 + $0xc8] sm:$0xff] }
 0x112   :  { %2298 = vmatprep.subr.bf16.mxu1 %v5722_v54  ;;  %2341 = vmatprep.subr.bf16.mxu0 %v5850_v55  ;;  %v7486_v54 = vsub.s32 2, %v7277_v27  ;;  %v262_v55 = vld [vmem:[%s9372_s4] sm:$0xf] }
 0x113   :  { %v271_v58 = vrot.slane %v262_v55, %v7280_v28  ;;  %v279_v59 = vrot.slane %v262_v55, %v7483_v53 }
 0x115   :  { %2299 = vmatpush2.bf16.msra.mxu1 %v5721_v60  ;;  %2342 = vmatpush2.bf16.msra.mxu0 %v5849_v61  ;;  %v267_v60 = vrot.slane %v262_v55, %v7283_v29  ;;  %v275_v61 = vrot.slane %v262_v55, %v7486_v54 }
 0x116   :  { %2300 = vmatprep.subr.bf16.mxu1 %v5714_v62  ;;  %2343 = vmatprep.subr.bf16.mxu0 %v5842_v63 }
 0x119   :  { %2301 = vmatpush2.bf16.msra.mxu1 %v5713_v4  ;;  %2344 = vmatpush2.bf16.msra.mxu0 %v5841_v5 }
 0x11a   :  { %2302 = vmatprep.subr.bf16.mxu1 %v5706_v6  ;;  %2345 = vmatprep.subr.bf16.mxu0 %v5834_v7 }
 0x11d   :  { %2303 = vmatpush2.bf16.msra.mxu1 %v5705_v12  ;;  %2346 = vmatpush2.bf16.msra.mxu0 %v5833_v13 }
 0x11e   :  { %2304 = vmatprep.subr.bf16.mxu1 %v5698_v14  ;;  %2347 = vmatprep.subr.bf16.mxu0 %v5826_v15 }
 0x121   :  { %2305 = vmatpush2.bf16.msra.mxu1 %v5697_v16  ;;  %2348 = vmatpush2.bf16.msra.mxu0 %v5825_v17 }
 0x122   :  { %2306 = vmatprep.subr.bf16.mxu1 %v5690_v21  ;;  %2349 = vmatprep.subr.bf16.mxu0 %v5818_v25  ;;  %v755_v21 = vld [vmem:[%s9370_s5 + $0x1a8] sm:$0xff] }
 0x123   :  { %v5659_v37 = vcombine.low %v751_v18, %v755_v21 }
 0x125   :  { %2307 = vmatpush2.bf16.msra.mxu1 %v5689_v23  ;;  %2350 = vmatpush2.bf16.msra.mxu0 %v5817_v24  ;;  %v883_v23 = vld [vmem:[%s9370_s5 + $0x5a8] sm:$0xff] }
 0x126   :  { %2308 = vmatprep.subr.bf16.mxu1 %v5682_v32  ;;  %2351 = vmatprep.subr.bf16.mxu0 %v5810_v36  ;;  %v5660_v32 = vcombine.high %v751_v18, %v755_v21  ;;  %v5788_v33 = vcombine.high %v879_v22, %v883_v23  ;;  %v875_v36 = vld [vmem:[%s9370_s5 + $0x568] sm:$0xff]  ;;  %v5787_v38 = vcombine.low %v879_v22, %v883_v23 }
 0x127   :  { %v951_v21 = vld [vmem:[%s9370_s5 + $0x7c8] sm:$0xff] }
 0x128   :  { %v955_v22 = vld [vmem:[%s9370_s5 + $0x7e8] sm:$0xff] }
 0x129   :  { %2309 = vmatpush2.bf16.msra.mxu1 %v5681_v34  ;;  %2352 = vmatpush2.bf16.msra.mxu0 %v5809_v35  ;;  %v747_v34 = vld [vmem:[%s9370_s5 + $0x168] sm:$0xff] }
 0x12a   :  { %2310 = vmatprep.subr.bf16.mxu1 %v5674_v40  ;;  %2353 = vmatprep.subr.bf16.mxu0 %v5802_v44  ;;  %v871_v35 = vld [vmem:[%s9370_s5 + $0x548] sm:$0xff]  ;;  %v5652_v39 = vcombine.high %v743_v31, %v747_v34  ;;  %v5651_v45 = vcombine.low %v743_v31, %v747_v34 }
 0x12b   :  { %v5780_v40 = vcombine.high %v871_v35, %v875_v36  ;;  %v867_v44 = vld [vmem:[%s9370_s5 + $0x528] sm:$0xff]  ;;  %v5779_v46 = vcombine.low %v871_v35, %v875_v36 }
 0x12c   :  { %v815_v34 = vld [vmem:[%s9370_s5 + $0x388] sm:$0xff] }
 0x12d   :  { %2311 = vmatpush2.bf16.msra.mxu1 %v5673_v42  ;;  %2354 = vmatpush2.bf16.msra.mxu0 %v5801_v43  ;;  %v739_v42 = vld [vmem:[%s9370_s5 + $0x128] sm:$0xff] }
 0x12e   :  { %2366 = vmatprep.subr.bf16.mxu1 %v5668_v48  ;;  %2409 = vmatprep.subr.bf16.mxu0 %v5796_v52  ;;  %v863_v43 = vld [vmem:[%s9370_s5 + $0x508] sm:$0xff]  ;;  %v5644_v47 = vcombine.high %v735_v41, %v739_v42  ;;  %v5643_v55 = vcombine.low %v735_v41, %v739_v42 }
 0x12f   :  { %v5772_v48 = vcombine.high %v863_v43, %v867_v44  ;;  %v859_v52 = vld [vmem:[%s9370_s5 + $0x4e8] sm:$0xff] }
 0x130   :  { %v819_v35 = vld [vmem:[%s9370_s5 + $0x3a8] sm:$0xff] }
 0x131   :  { %v943_v36 = vld [vmem:[%s9370_s5 + $0x788] sm:$0xff] }
 0x132   :  { %v807_v42 = vld [vmem:[%s9370_s5 + $0x348] sm:$0xff] }
 0x1b0   :  { %v638_v56 = vpop.f32.mrf.mxu1  ;;  %v681_v57 = vpop.f32.mrf.mxu0 }
 0x1b1   :  { %v639_v6 = vadd.f32 %v638_v56, %v267_v60  ;;  %v682_v7 = vadd.f32 %v681_v57, %v275_v61  ;;  %v5771_v56 = vcombine.low %v863_v43, %v867_v44  ;;  %v811_v43 = vld [vmem:[%s9370_s5 + $0x368] sm:$0xff] }
 0x1b2   :  { %v640_v62 = vpop.f32.mrf.mxu1  ;;  %v683_v63 = vpop.f32.mrf.mxu0  ;;  %v935_v44 = vld [vmem:[%s9370_s5 + $0x748] sm:$0xff] }
 0x1b3   :  { %v641_v2 = vadd.f32 %v640_v62, %v271_v58  ;;  %v684_v3 = vadd.f32 %v683_v63, %v279_v59  ;;  %v690_v19 = vmax.f32 %v639_v6, 0.0  ;;  %v692_v20 = vmax.f32 %v682_v7, 0.0  ;;  %v851_v62 = vld [vmem:[%s9370_s5 + $0x4a8] sm:$0xff] }
 0x1b4   :  { %v642_v0 = vpop.f32.mrf.mxu1  ;;  %v685_v1 = vpop.f32.mrf.mxu0  ;;  %v843_v6 = vld [vmem:[%s9370_s5 + $0x468] sm:$0xff] }
 0x1b5   :  { %v643_v4 = vadd.f32 %v642_v0, %v267_v60  ;;  %v686_v5 = vadd.f32 %v685_v1, %v275_v61  ;;  %v691_v14 = vmax.f32 %v641_v2, 0.0  ;;  %v693_v15 = vmax.f32 %v684_v3, 0.0  ;;  %v723_v60 = vld [vmem:[%s9370_s5 + $0xa8] sm:$0xff] }
 0x1b6   :  { %v644_v8 = vpop.f32.mrf.mxu1  ;;  %v687_v9 = vpop.f32.mrf.mxu0  ;;  %v847_v61 = vld [vmem:[%s9370_s5 + $0x488] sm:$0xff] }
 0x1b7   :  { %v645_v10 = vadd.f32 %v644_v8, %v271_v58  ;;  %v688_v11 = vadd.f32 %v687_v9, %v279_v59  ;;  %v694_v12 = vmax.f32 %v643_v4, 0.0  ;;  %v696_v13 = vmax.f32 %v686_v5, 0.0  ;;  %v719_v59 = vld [vmem:[%s9370_s5 + $0x88] sm:$0xff] }
 0x1b8   :  { %v5628_v1 = vcombine.high %v719_v59, %v723_v60  ;;  %v5756_v2 = vcombine.high %v847_v61, %v851_v62  ;;  %v711_v3 = vld [vmem:[%s9370_s5 + $0x48] sm:$0xff]  ;;  %v5627_v7 = vcombine.low %v719_v59, %v723_v60  ;;  %v5755_v8 = vcombine.low %v847_v61, %v851_v62 }
 0x1b9   :  { %v695_v16 = vmax.f32 %v645_v10, 0.0  ;;  %v697_v17 = vmax.f32 %v688_v11, 0.0  ;;  %v7511_v26 = vpack.c.bf16 %v694_v12, %v690_v19  ;;  %v7513_v30 = vpack.c.bf16 %v696_v13, %v692_v20  ;;  %v715_v4 = vld [vmem:[%s9370_s5 + $0x68] sm:$0xff] }
 0x1ba   :  { %v839_v5 = vld [vmem:[%s9370_s5 + $0x448] sm:$0xff]  ;;  %v5620_v9 = vcombine.high %v711_v3, %v715_v4 }
 0x1bb   :  { %v7507_v24 = vpack.c.bf16 %v695_v16, %v691_v14  ;;  %v7509_v25 = vpack.c.bf16 %v697_v17, %v693_v15  ;;  %v5748_v10 = vcombine.high %v839_v5, %v843_v6  ;;  %v703_v11 = vld [vmem:[%s9370_s5 + $0x8] sm:$0xff]  ;;  %v5619_v15 = vcombine.low %v711_v3, %v715_v4 }
 0x1bc   :  { %v707_v12 = vld [vmem:[%s9370_s5 + $0x28] sm:$0xff]  ;;  %v5747_v16 = vcombine.low %v839_v5, %v843_v6 }
 0x1bd   :  { %2312 = vmatprep.mubr.bf16.mxu1 %v7507_v24  ;;  %2355 = vmatprep.mubr.bf16.mxu0 %v7509_v25  ;;  %v831_v13 = vld [vmem:[%s9370_s5 + $0x408] sm:$0xff]  ;;  %v5612_v17 = vcombine.high %v703_v11, %v707_v12  ;;  %v5611_v23 = vcombine.low %v703_v11, %v707_v12 }
 0x1be   :  { %2313 = vmatmul.mubr.bf16.vlgmr.msra.gmra.mxu1 %v7511_v26  ;;  %2356 = vmatmul.mubr.bf16.vlgmr.msra.gmra.mxu0 %v7513_v30  ;;  %v835_v14 = vld [vmem:[%s9370_s5 + $0x428] sm:$0xff] }
 0x1bf   :  { %2367 = vmatpush1.bf16.msra.mxu1 %v5667_v50  ;;  %2410 = vmatpush1.bf16.msra.mxu0 %v5795_v51  ;;  %v731_v50 = vld [vmem:[%s9370_s5 + $0xe8] sm:$0xff]  ;;  %v5740_v18 = vcombine.high %v831_v13, %v835_v14  ;;  %v5739_v31 = vcombine.low %v831_v13, %v835_v14 }
 0x1c0   :  { %2398 = vmatprep.mubr.bf16.mxu1 %v7507_v24  ;;  %2441 = vmatprep.mubr.bf16.mxu0 %v7509_v25  ;;  %v855_v51 = vld [vmem:[%s9370_s5 + $0x4c8] sm:$0xff]  ;;  %v5636_v57 = vcombine.high %v727_v49, %v731_v50  ;;  %v5635_v63 = vcombine.low %v727_v49, %v731_v50 }
 0x1c1   :  { %2368 = vmatprep.subr.bf16.mxu1 %v5660_v32  ;;  %2411 = vmatprep.subr.bf16.mxu0 %v5788_v33  ;;  %v5764_v58 = vcombine.high %v855_v51, %v859_v52  ;;  %v5763_v0 = vcombine.low %v855_v51, %v859_v52  ;;  %v823_v19 = vld [vmem:[%s9370_s5 + $0x3c8] sm:$0xff]  ;;  %v5860_v33 = vcombine.high %v951_v21, %v955_v22 }
 0x1c2   :  { %v827_v20 = vld [vmem:[%s9370_s5 + $0x3e8] sm:$0xff] }
 0x1c3   :  { %2369 = vmatpush1.bf16.msra.mxu1 %v5659_v37  ;;  %2412 = vmatpush1.bf16.msra.mxu0 %v5787_v38  ;;  %v5732_v32 = vcombine.high %v823_v19, %v827_v20  ;;  %v947_v37 = vld [vmem:[%s9370_s5 + $0x7a8] sm:$0xff]  ;;  %v5731_v38 = vcombine.low %v823_v19, %v827_v20 }
 0x1c4   :  { %2370 = vmatprep.subr.bf16.mxu1 %v5652_v39  ;;  %2413 = vmatprep.subr.bf16.mxu0 %v5780_v40  ;;  %v5859_v39 = vcombine.low %v951_v21, %v955_v22  ;;  %v5724_v40 = vcombine.high %v815_v34, %v819_v35  ;;  %v5852_v41 = vcombine.high %v943_v36, %v947_v37  ;;  %v799_v50 = vld [vmem:[%s9370_s5 + $0x308] sm:$0xff] }
 0x1c5   :  { %v803_v51 = vld [vmem:[%s9370_s5 + $0x328] sm:$0xff] }
 0x1c6   :  { %v927_v52 = vld [vmem:[%s9370_s5 + $0x708] sm:$0xff] }
 0x1c7   :  { %2371 = vmatpush1.bf16.msra.mxu1 %v5651_v45  ;;  %2414 = vmatpush1.bf16.msra.mxu0 %v5779_v46  ;;  %v939_v45 = vld [vmem:[%s9370_s5 + $0x768] sm:$0xff]  ;;  %v5723_v46 = vcombine.low %v815_v34, %v819_v35  ;;  %v760_v35 = vld [vmem:[%s9370_s5 + $0x1d0] sm:$0xff] }
 0x1c8   :  { %2372 = vmatprep.subr.bf16.mxu1 %v5644_v47  ;;  %2415 = vmatprep.subr.bf16.mxu0 %v5772_v48  ;;  %v5851_v47 = vcombine.low %v943_v36, %v947_v37  ;;  %v5716_v48 = vcombine.high %v807_v42, %v811_v43  ;;  %v5844_v49 = vcombine.high %v935_v44, %v939_v45  ;;  %v791_v60 = vld [vmem:[%s9370_s5 + $0x2c8] sm:$0xff]  ;;  %v764_v36 = vld [vmem:[%s9370_s5 + $0x1f0] sm:$0xff] }
 0x1c9   :  { %v795_v61 = vld [vmem:[%s9370_s5 + $0x2e8] sm:$0xff]  ;;  %v888_v37 = vld [vmem:[%s9370_s5 + $0x5d0] sm:$0xff] }
 0x1ca   :  { %v919_v62 = vld [vmem:[%s9370_s5 + $0x6c8] sm:$0xff] }
 0x1cb   :  { %2373 = vmatpush1.bf16.msra.mxu1 %v5643_v55  ;;  %2416 = vmatpush1.bf16.msra.mxu0 %v5771_v56  ;;  %v931_v55 = vld [vmem:[%s9370_s5 + $0x728] sm:$0xff]  ;;  %v5715_v56 = vcombine.low %v807_v42, %v811_v43  ;;  %v752_v43 = vld [vmem:[%s9370_s5 + $0x190] sm:$0xff] }
 0x1cc   :  { %2374 = vmatprep.subr.bf16.mxu1 %v5636_v57  ;;  %2417 = vmatprep.subr.bf16.mxu0 %v5764_v58  ;;  %v5843_v57 = vcombine.low %v935_v44, %v939_v45  ;;  %v5708_v58 = vcombine.high %v799_v50, %v803_v51  ;;  %v5836_v59 = vcombine.high %v927_v52, %v931_v55  ;;  %v783_v4 = vld [vmem:[%s9370_s5 + $0x288] sm:$0xff]  ;;  %v756_v44 = vld [vmem:[%s9370_s5 + $0x1b0] sm:$0xff] }
 0x1cd   :  { %v787_v5 = vld [vmem:[%s9370_s5 + $0x2a8] sm:$0xff]  ;;  %v880_v45 = vld [vmem:[%s9370_s5 + $0x590] sm:$0xff] }
 0x1ce   :  { %v911_v6 = vld [vmem:[%s9370_s5 + $0x688] sm:$0xff] }
 0x1cf   :  { %2375 = vmatpush1.bf16.msra.mxu1 %v5635_v63  ;;  %2418 = vmatpush1.bf16.msra.mxu0 %v5763_v0  ;;  %v923_v63 = vld [vmem:[%s9370_s5 + $0x6e8] sm:$0xff]  ;;  %v5707_v0 = vcombine.low %v799_v50, %v803_v51  ;;  %v744_v51 = vld [vmem:[%s9370_s5 + $0x150] sm:$0xff] }
 0x1d0   :  { %2376 = vmatprep.subr.bf16.mxu1 %v5628_v1  ;;  %2419 = vmatprep.subr.bf16.mxu0 %v5756_v2  ;;  %v5835_v1 = vcombine.low %v927_v52, %v931_v55  ;;  %v5700_v2 = vcombine.high %v791_v60, %v795_v61  ;;  %v5828_v3 = vcombine.high %v919_v62, %v923_v63  ;;  %v775_v12 = vld [vmem:[%s9370_s5 + $0x248] sm:$0xff]  ;;  %v748_v52 = vld [vmem:[%s9370_s5 + $0x170] sm:$0xff] }
 0x1d1   :  { %v779_v13 = vld [vmem:[%s9370_s5 + $0x268] sm:$0xff]  ;;  %v872_v55 = vld [vmem:[%s9370_s5 + $0x550] sm:$0xff] }
 0x1d2   :  { %v903_v14 = vld [vmem:[%s9370_s5 + $0x648] sm:$0xff] }
 0x1d3   :  { %2377 = vmatpush1.bf16.msra.mxu1 %v5627_v7  ;;  %2420 = vmatpush1.bf16.msra.mxu0 %v5755_v8  ;;  %v915_v7 = vld [vmem:[%s9370_s5 + $0x6a8] sm:$0xff]  ;;  %v5699_v8 = vcombine.low %v791_v60, %v795_v61  ;;  %v5654_v61 = vcombine.high %v744_v51, %v748_v52 }
 0x1d4   :  { %2378 = vmatprep.subr.bf16.mxu1 %v5620_v9  ;;  %2421 = vmatprep.subr.bf16.mxu0 %v5748_v10  ;;  %v5827_v9 = vcombine.low %v919_v62, %v923_v63  ;;  %v5692_v10 = vcombine.high %v783_v4, %v787_v5  ;;  %v5820_v11 = vcombine.high %v911_v6, %v915_v7  ;;  %v767_v20 = vld [vmem:[%s9370_s5 + $0x208] sm:$0xff]  ;;  %v864_v62 = vld [vmem:[%s9370_s5 + $0x510] sm:$0xff] }
 0x1d5   :  { %v771_v21 = vld [vmem:[%s9370_s5 + $0x228] sm:$0xff] }
 0x1d6   :  { %v895_v22 = vld [vmem:[%s9370_s5 + $0x608] sm:$0xff] }
 0x1d7   :  { %2379 = vmatpush1.bf16.msra.mxu1 %v5619_v15  ;;  %2422 = vmatpush1.bf16.msra.mxu0 %v5747_v16  ;;  %v907_v15 = vld [vmem:[%s9370_s5 + $0x668] sm:$0xff]  ;;  %v5691_v16 = vcombine.low %v783_v4, %v787_v5 }
 0x1d8   :  { %2380 = vmatprep.subr.bf16.mxu1 %v5612_v17  ;;  %2423 = vmatprep.subr.bf16.mxu0 %v5740_v18  ;;  %v5819_v17 = vcombine.low %v911_v6, %v915_v7  ;;  %v5684_v18 = vcombine.high %v775_v12, %v779_v13  ;;  %v5812_v19 = vcombine.high %v903_v14, %v907_v15  ;;  %v856_v6 = vld [vmem:[%s9370_s5 + $0x4d0] sm:$0xff] }
 0x1db   :  { %2381 = vmatpush1.bf16.msra.mxu1 %v5611_v23  ;;  %2424 = vmatpush1.bf16.msra.mxu0 %v5739_v31  ;;  %v899_v23 = vld [vmem:[%s9370_s5 + $0x628] sm:$0xff]  ;;  %v5683_v31 = vcombine.low %v775_v12, %v779_v13 }
 0x1dc   :  { %2382 = vmatprep.subr.bf16.mxu1 %v5732_v32  ;;  %2425 = vmatprep.subr.bf16.mxu0 %v5860_v33  ;;  %v5811_v32 = vcombine.low %v903_v14, %v907_v15  ;;  %v5676_v33 = vcombine.high %v767_v20, %v771_v21  ;;  %v5804_v34 = vcombine.high %v895_v22, %v899_v23  ;;  %v848_v14 = vld [vmem:[%s9370_s5 + $0x490] sm:$0xff] }
 0x1df   :  { %2383 = vmatpush2.bf16.msra.mxu1 %v5731_v38  ;;  %2426 = vmatpush2.bf16.msra.mxu0 %v5859_v39  ;;  %v892_v38 = vld [vmem:[%s9370_s5 + $0x5f0] sm:$0xff]  ;;  %v5675_v39 = vcombine.low %v767_v20, %v771_v21 }
 0x1e0   :  { %2384 = vmatprep.subr.bf16.mxu1 %v5724_v40  ;;  %2427 = vmatprep.subr.bf16.mxu0 %v5852_v41  ;;  %v5803_v40 = vcombine.low %v895_v22, %v899_v23  ;;  %v5670_v41 = vcombine.high %v760_v35, %v764_v36  ;;  %v5798_v42 = vcombine.high %v888_v37, %v892_v38  ;;  %v840_v23 = vld [vmem:[%s9370_s5 + $0x450] sm:$0xff] }
 0x1e3   :  { %2385 = vmatpush2.bf16.msra.mxu1 %v5723_v46  ;;  %2428 = vmatpush2.bf16.msra.mxu0 %v5851_v47  ;;  %v884_v46 = vld [vmem:[%s9370_s5 + $0x5b0] sm:$0xff]  ;;  %v5669_v47 = vcombine.low %v760_v35, %v764_v36 }
 0x1e4   :  { %2386 = vmatprep.subr.bf16.mxu1 %v5716_v48  ;;  %2429 = vmatprep.subr.bf16.mxu0 %v5844_v49  ;;  %v5797_v48 = vcombine.low %v888_v37, %v892_v38  ;;  %v5662_v49 = vcombine.high %v752_v43, %v756_v44  ;;  %v5790_v50 = vcombine.high %v880_v45, %v884_v46  ;;  %v832_v37 = vld [vmem:[%s9370_s5 + $0x410] sm:$0xff] }
 0x1e5   :  { %v5789_v60 = vcombine.low %v880_v45, %v884_v46  ;;  %v836_v38 = vld [vmem:[%s9370_s5 + $0x430] sm:$0xff] }
 0x1e6   :  { %v952_v45 = vld [vmem:[%s9370_s5 + $0x7d0] sm:$0xff] }
 0x1e7   :  { %2387 = vmatpush2.bf16.msra.mxu1 %v5715_v56  ;;  %2430 = vmatpush2.bf16.msra.mxu0 %v5843_v57  ;;  %v876_v56 = vld [vmem:[%s9370_s5 + $0x570] sm:$0xff]  ;;  %v5661_v57 = vcombine.low %v752_v43, %v756_v44 }
 0x1e8   :  { %2388 = vmatprep.subr.bf16.mxu1 %v5708_v58  ;;  %2431 = vmatprep.subr.bf16.mxu0 %v5836_v59  ;;  %v736_v58 = vld [vmem:[%s9370_s5 + $0x110] sm:$0xff]  ;;  %v5782_v63 = vcombine.high %v872_v55, %v876_v56  ;;  %v5781_v4 = vcombine.low %v872_v55, %v876_v56 }
 0x1e9   :  { %v740_v59 = vld [vmem:[%s9370_s5 + $0x130] sm:$0xff] }
 0x1ea   :  { %v5646_v5 = vcombine.high %v736_v58, %v740_v59  ;;  %v956_v46 = vld [vmem:[%s9370_s5 + $0x7f0] sm:$0xff] }
 0x1eb   :  { %2389 = vmatpush2.bf16.msra.mxu1 %v5707_v0  ;;  %2432 = vmatpush2.bf16.msra.mxu0 %v5835_v1  ;;  %v868_v0 = vld [vmem:[%s9370_s5 + $0x530] sm:$0xff]  ;;  %v5653_v1 = vcombine.low %v744_v51, %v748_v52  ;;  %v5741_v51 = vcombine.low %v832_v37, %v836_v38 }
 0x1ec   :  { %2390 = vmatprep.subr.bf16.mxu1 %v5700_v2  ;;  %2433 = vmatprep.subr.bf16.mxu0 %v5828_v3  ;;  %v728_v2 = vld [vmem:[%s9370_s5 + $0xd0] sm:$0xff]  ;;  %v5774_v7 = vcombine.high %v864_v62, %v868_v0  ;;  %v5773_v12 = vcombine.low %v864_v62, %v868_v0 }
 0x1ed   :  { %v732_v3 = vld [vmem:[%s9370_s5 + $0xf0] sm:$0xff] }
 0x1ee   :  { %v5638_v13 = vcombine.high %v728_v2, %v732_v3  ;;  %v944_v55 = vld [vmem:[%s9370_s5 + $0x790] sm:$0xff] }
 0x1ef   :  { %2391 = vmatpush2.bf16.msra.mxu1 %v5699_v8  ;;  %2434 = vmatpush2.bf16.msra.mxu0 %v5827_v9  ;;  %v860_v8 = vld [vmem:[%s9370_s5 + $0x4f0] sm:$0xff]  ;;  %v5645_v9 = vcombine.low %v736_v58, %v740_v59 }
 0x1f0   :  { %2392 = vmatprep.subr.bf16.mxu1 %v5692_v10  ;;  %2435 = vmatprep.subr.bf16.mxu0 %v5820_v11  ;;  %v720_v10 = vld [vmem:[%s9370_s5 + $0x90] sm:$0xff]  ;;  %v5766_v15 = vcombine.high %v856_v6, %v860_v8  ;;  %v5765_v20 = vcombine.low %v856_v6, %v860_v8 }
 0x1f1   :  { %v724_v11 = vld [vmem:[%s9370_s5 + $0xb0] sm:$0xff] }
 0x1f2   :  { %v5630_v21 = vcombine.high %v720_v10, %v724_v11  ;;  %v948_v56 = vld [vmem:[%s9370_s5 + $0x7b0] sm:$0xff] }
 0x1f3   :  { %2393 = vmatpush2.bf16.msra.mxu1 %v5691_v16  ;;  %2436 = vmatpush2.bf16.msra.mxu0 %v5819_v17  ;;  %v852_v16 = vld [vmem:[%s9370_s5 + $0x4b0] sm:$0xff]  ;;  %v5637_v17 = vcombine.low %v728_v2, %v732_v3 }
 0x1f4   :  { %2394 = vmatprep.subr.bf16.mxu1 %v5684_v18  ;;  %2437 = vmatprep.subr.bf16.mxu0 %v5812_v19  ;;  %v712_v18 = vld [vmem:[%s9370_s5 + $0x50] sm:$0xff]  ;;  %v5758_v22 = vcombine.high %v848_v14, %v852_v16  ;;  %v5757_v35 = vcombine.low %v848_v14, %v852_v16 }
 0x1f5   :  { %v716_v19 = vld [vmem:[%s9370_s5 + $0x70] sm:$0xff] }
 0x1f6   :  { %v5622_v36 = vcombine.high %v712_v18, %v716_v19  ;;  %v808_v59 = vld [vmem:[%s9370_s5 + $0x350] sm:$0xff] }
 0x1f7   :  { %2395 = vmatpush2.bf16.msra.mxu1 %v5683_v31  ;;  %2438 = vmatpush2.bf16.msra.mxu0 %v5811_v32  ;;  %v844_v31 = vld [vmem:[%s9370_s5 + $0x470] sm:$0xff]  ;;  %v5629_v32 = vcombine.low %v720_v10, %v724_v11 }
 0x1f8   :  { %2396 = vmatprep.subr.bf16.mxu1 %v5676_v33  ;;  %2439 = vmatprep.subr.bf16.mxu0 %v5804_v34  ;;  %v704_v33 = vld [vmem:[%s9370_s5 + $0x10] sm:$0xff]  ;;  %v5749_v43 = vcombine.low %v840_v23, %v844_v31 }
 0x1f9   :  { %v708_v34 = vld [vmem:[%s9370_s5 + $0x30] sm:$0xff] }
 0x1fa   :  { %v5614_v44 = vcombine.high %v704_v33, %v708_v34  ;;  %v940_v0 = vld [vmem:[%s9370_s5 + $0x770] sm:$0xff] }
 0x1fb   :  { %2397 = vmatpush2.bf16.msra.mxu1 %v5675_v39  ;;  %2440 = vmatpush2.bf16.msra.mxu0 %v5803_v40  ;;  %v5750_v39 = vcombine.high %v840_v23, %v844_v31  ;;  %v5621_v40 = vcombine.low %v712_v18, %v716_v19  ;;  %v800_v3 = vld [vmem:[%s9370_s5 + $0x310] sm:$0xff] }
 0x1fc   :  { %2452 = vmatprep.subr.bf16.mxu1 %v5670_v41  ;;  %2495 = vmatprep.subr.bf16.mxu0 %v5798_v42  ;;  %v824_v41 = vld [vmem:[%s9370_s5 + $0x3d0] sm:$0xff] }
 0x1fd   :  { %v828_v42 = vld [vmem:[%s9370_s5 + $0x3f0] sm:$0xff] }
 0x1fe   :  { %2399 = vmatmul.mubr.bf16.vlgmr.msra.gmra.mxu1 %v7511_v26  ;;  %2442 = vmatmul.mubr.bf16.vlgmr.msra.gmra.mxu0 %v7513_v30  ;;  %v5734_v52 = vcombine.high %v824_v41, %v828_v42  ;;  %v5733_v58 = vcombine.low %v824_v41, %v828_v42  ;;  %v932_v8 = vld [vmem:[%s9370_s5 + $0x730] sm:$0xff] }
 0x1ff   :  { %2453 = vmatpush1.bf16.msra.mxu1 %v5669_v47  ;;  %2484 = vmatprep.mubr.bf16.mxu1 %v7507_v24  ;;  %v5742_v47 = vcombine.high %v832_v37, %v836_v38  ;;  %v792_v11 = vld [vmem:[%s9370_s5 + $0x2d0] sm:$0xff] }
 0x200   :  { %2496 = vmatpush1.bf16.msra.mxu0 %v5797_v48  ;;  %2527 = vmatprep.mubr.bf16.mxu0 %v7509_v25  ;;  %v5613_v48 = vcombine.low %v704_v33, %v708_v34  ;;  %v924_v16 = vld [vmem:[%s9370_s5 + $0x6f0] sm:$0xff] }
 0x201   :  { %2454 = vmatprep.subr.bf16.mxu1 %v5662_v49  ;;  %2497 = vmatprep.subr.bf16.mxu0 %v5790_v50  ;;  %v816_v49 = vld [vmem:[%s9370_s5 + $0x390] sm:$0xff] }
 0x202   :  { %v820_v50 = vld [vmem:[%s9370_s5 + $0x3b0] sm:$0xff] }
 0x203   :  { %2455 = vmatpush1.bf16.msra.mxu1 %v5661_v57  ;;  %v5862_v57 = vcombine.high %v952_v45, %v956_v46  ;;  %v5726_v62 = vcombine.high %v816_v49, %v820_v50  ;;  %v5725_v2 = vcombine.low %v816_v49, %v820_v50  ;;  %v784_v19 = vld [vmem:[%s9370_s5 + $0x290] sm:$0xff]  ;;  %v761_v50 = vld [vmem:[%s9370_s5 + $0x1d8] sm:$0xff] }
 0x204   :  { %2498 = vmatpush1.bf16.msra.mxu0 %v5789_v60  ;;  %2456 = vmatprep.subr.bf16.mxu1 %v5654_v61  ;;  %v812_v60 = vld [vmem:[%s9370_s5 + $0x370] sm:$0xff]  ;;  %v5861_v61 = vcombine.low %v952_v45, %v956_v46 }
 0x205   :  { %2499 = vmatprep.subr.bf16.mxu0 %v5782_v63  ;;  %v936_v63 = vld [vmem:[%s9370_s5 + $0x750] sm:$0xff]  ;;  %v5718_v6 = vcombine.high %v808_v59, %v812_v60  ;;  %v5717_v10 = vcombine.low %v808_v59, %v812_v60 }
 0x206   :  { %v912_v23 = vld [vmem:[%s9370_s5 + $0x690] sm:$0xff] }
 0x207   :  { %2457 = vmatpush1.bf16.msra.mxu1 %v5653_v1  ;;  %v5854_v1 = vcombine.high %v944_v55, %v948_v56  ;;  %v916_v31 = vld [vmem:[%s9370_s5 + $0x6b0] sm:$0xff] }
 0x208   :  { %2500 = vmatpush1.bf16.msra.mxu0 %v5781_v4  ;;  %2458 = vmatprep.subr.bf16.mxu1 %v5646_v5  ;;  %v804_v4 = vld [vmem:[%s9370_s5 + $0x330] sm:$0xff]  ;;  %v5853_v5 = vcombine.low %v944_v55, %v948_v56  ;;  %v889_v56 = vld [vmem:[%s9370_s5 + $0x5d8] sm:$0xff] }
 0x209   :  { %2501 = vmatprep.subr.bf16.mxu0 %v5774_v7  ;;  %v928_v7 = vld [vmem:[%s9370_s5 + $0x710] sm:$0xff]  ;;  %v5710_v14 = vcombine.high %v800_v3, %v804_v4  ;;  %v5709_v18 = vcombine.low %v800_v3, %v804_v4  ;;  %v745_v4 = vld [vmem:[%s9370_s5 + $0x158] sm:$0xff] }
 0x20a   :  { %v776_v34 = vld [vmem:[%s9370_s5 + $0x250] sm:$0xff] }
 0x20b   :  { %2459 = vmatpush1.bf16.msra.mxu1 %v5645_v9  ;;  %v5846_v9 = vcombine.high %v936_v63, %v940_v0  ;;  %v904_v38 = vld [vmem:[%s9370_s5 + $0x650] sm:$0xff] }
 0x20c   :  { %2502 = vmatpush1.bf16.msra.mxu0 %v5773_v12  ;;  %2460 = vmatprep.subr.bf16.mxu1 %v5638_v13  ;;  %v796_v12 = vld [vmem:[%s9370_s5 + $0x2f0] sm:$0xff]  ;;  %v5845_v13 = vcombine.low %v936_v63, %v940_v0  ;;  %v757_v63 = vld [vmem:[%s9370_s5 + $0x1b8] sm:$0xff] }
 0x20d   :  { %2503 = vmatprep.subr.bf16.mxu0 %v5766_v15  ;;  %v920_v15 = vld [vmem:[%s9370_s5 + $0x6d0] sm:$0xff]  ;;  %v5701_v33 = vcombine.low %v792_v11, %v796_v12 }
 0x20e   :  { %v768_v42 = vld [vmem:[%s9370_s5 + $0x210] sm:$0xff] }
 0x20f   :  { %2461 = vmatpush1.bf16.msra.mxu1 %v5637_v17  ;;  %v5838_v17 = vcombine.high %v928_v7, %v932_v8  ;;  %v896_v46 = vld [vmem:[%s9370_s5 + $0x610] sm:$0xff] }
 0x210   :  { %2504 = vmatpush1.bf16.msra.mxu0 %v5765_v20  ;;  %2462 = vmatprep.subr.bf16.mxu1 %v5630_v21  ;;  %v788_v20 = vld [vmem:[%s9370_s5 + $0x2b0] sm:$0xff]  ;;  %v5837_v21 = vcombine.low %v928_v7, %v932_v8  ;;  %v873_v7 = vld [vmem:[%s9370_s5 + $0x558] sm:$0xff] }
 0x211   :  { %2505 = vmatprep.subr.bf16.mxu0 %v5758_v22  ;;  %v5702_v22 = vcombine.high %v792_v11, %v796_v12  ;;  %v5694_v37 = vcombine.high %v784_v19, %v788_v20  ;;  %v5693_v41 = vcombine.low %v784_v19, %v788_v20  ;;  %v737_v12 = vld [vmem:[%s9370_s5 + $0x118] sm:$0xff] }
 0x212   :  { %v733_v20 = vld [vmem:[%s9370_s5 + $0xf8] sm:$0xff] }
 0x213   :  { %2463 = vmatpush1.bf16.msra.mxu1 %v5629_v32  ;;  %v5830_v32 = vcombine.high %v920_v15, %v924_v16 }
 0x214   :  { %2506 = vmatpush1.bf16.msra.mxu0 %v5757_v35  ;;  %2464 = vmatprep.subr.bf16.mxu1 %v5622_v36  ;;  %v780_v35 = vld [vmem:[%s9370_s5 + $0x270] sm:$0xff]  ;;  %v5829_v36 = vcombine.low %v920_v15, %v924_v16  ;;  %v865_v16 = vld [vmem:[%s9370_s5 + $0x518] sm:$0xff] }
 0x215   :  { %2507 = vmatprep.subr.bf16.mxu0 %v5750_v39  ;;  %v908_v39 = vld [vmem:[%s9370_s5 + $0x670] sm:$0xff]  ;;  %v5686_v45 = vcombine.high %v776_v34, %v780_v35  ;;  %v5685_v49 = vcombine.low %v776_v34, %v780_v35  ;;  %v725_v34 = vld [vmem:[%s9370_s5 + $0xb8] sm:$0xff] }
 0x217   :  { %2465 = vmatpush1.bf16.msra.mxu1 %v5621_v40  ;;  %v5822_v40 = vcombine.high %v912_v23, %v916_v31 }
 0x218   :  { %2508 = vmatpush1.bf16.msra.mxu0 %v5749_v43  ;;  %2466 = vmatprep.subr.bf16.mxu1 %v5614_v44  ;;  %v772_v43 = vld [vmem:[%s9370_s5 + $0x230] sm:$0xff]  ;;  %v5821_v44 = vcombine.low %v912_v23, %v916_v31  ;;  %v861_v31 = vld [vmem:[%s9370_s5 + $0x4f8] sm:$0xff] }
 0x219   :  { %2509 = vmatprep.subr.bf16.mxu0 %v5742_v47  ;;  %v900_v47 = vld [vmem:[%s9370_s5 + $0x630] sm:$0xff]  ;;  %v5678_v55 = vcombine.high %v768_v42, %v772_v43  ;;  %v5677_v59 = vcombine.low %v768_v42, %v772_v43 }
 0x21a   :  { %v5805_v60 = vcombine.low %v896_v46, %v900_v47 }
 0x21b   :  { %2467 = vmatpush1.bf16.msra.mxu1 %v5613_v48  ;;  %v5814_v48 = vcombine.high %v904_v38, %v908_v39 }
 0x21c   :  { %2510 = vmatpush1.bf16.msra.mxu0 %v5741_v51  ;;  %2468 = vmatprep.subr.bf16.mxu1 %v5734_v52  ;;  %v765_v51 = vld [vmem:[%s9370_s5 + $0x1f8] sm:$0xff]  ;;  %v5813_v52 = vcombine.low %v904_v38, %v908_v39 }
 0x21d   :  { %2511 = vmatprep.subr.bf16.mxu0 %v5862_v57  ;;  %v893_v57 = vld [vmem:[%s9370_s5 + $0x5f8] sm:$0xff]  ;;  %v5671_v3 = vcombine.low %v761_v50, %v765_v51 }
 0x21e   :  { %v5800_v0 = vcombine.high %v889_v56, %v893_v57  ;;  %v853_v39 = vld [vmem:[%s9370_s5 + $0x4b8] sm:$0xff] }
 0x21f   :  { %2469 = vmatpush2.bf16.msra.mxu1 %v5733_v58  ;;  %v5806_v58 = vcombine.high %v896_v46, %v900_v47  ;;  %v841_v46 = vld [vmem:[%s9370_s5 + $0x458] sm:$0xff] }
 0x220   :  { %2512 = vmatpush2.bf16.msra.mxu0 %v5861_v61  ;;  %2470 = vmatprep.subr.bf16.mxu1 %v5726_v62  ;;  %v5672_v61 = vcombine.high %v761_v50, %v765_v51  ;;  %v753_v62 = vld [vmem:[%s9370_s5 + $0x198] sm:$0xff] }
 0x221   :  { %2513 = vmatprep.subr.bf16.mxu0 %v5854_v1  ;;  %v881_v1 = vld [vmem:[%s9370_s5 + $0x598] sm:$0xff]  ;;  %v5664_v8 = vcombine.high %v753_v62, %v757_v63  ;;  %v5663_v11 = vcombine.low %v753_v62, %v757_v63 }
 0x222   :  { %v845_v47 = vld [vmem:[%s9370_s5 + $0x478] sm:$0xff] }
 0x223   :  { %2471 = vmatpush2.bf16.msra.mxu1 %v5725_v2  ;;  %v885_v2 = vld [vmem:[%s9370_s5 + $0x5b8] sm:$0xff] }
 0x224   :  { %2514 = vmatpush2.bf16.msra.mxu0 %v5853_v5  ;;  %2472 = vmatprep.subr.bf16.mxu1 %v5718_v6  ;;  %v749_v5 = vld [vmem:[%s9370_s5 + $0x178] sm:$0xff]  ;;  %v5799_v6 = vcombine.low %v889_v56, %v893_v57  ;;  %v5752_v56 = vcombine.high %v841_v46, %v845_v47 }
 0x225   :  { %2515 = vmatprep.subr.bf16.mxu0 %v5846_v9  ;;  %v5792_v9 = vcombine.high %v881_v1, %v885_v2  ;;  %v5656_v15 = vcombine.high %v745_v4, %v749_v5  ;;  %v5655_v19 = vcombine.low %v745_v4, %v749_v5  ;;  %v705_v51 = vld [vmem:[%s9370_s5 + $0x18] sm:$0xff] }
 0x226   :  { %v837_v57 = vld [vmem:[%s9370_s5 + $0x438] sm:$0xff] }
 0x227   :  { %2473 = vmatpush2.bf16.msra.mxu1 %v5717_v10  ;;  %v877_v10 = vld [vmem:[%s9370_s5 + $0x578] sm:$0xff] }
 0x228   :  { %2516 = vmatpush2.bf16.msra.mxu0 %v5845_v13  ;;  %2474 = vmatprep.subr.bf16.mxu1 %v5710_v14  ;;  %v741_v13 = vld [vmem:[%s9370_s5 + $0x138] sm:$0xff]  ;;  %v5791_v14 = vcombine.low %v881_v1, %v885_v2 }
 0x229   :  { %2517 = vmatprep.subr.bf16.mxu0 %v5838_v17  ;;  %v5784_v17 = vcombine.high %v873_v7, %v877_v10  ;;  %v953_v63 = vld [vmem:[%s9370_s5 + $0x7d8] sm:$0xff] }
 0x22a   :  { %v821_v4 = vld [vmem:[%s9370_s5 + $0x3b8] sm:$0xff] }
 0x22b   :  { %2475 = vmatpush2.bf16.msra.mxu1 %v5709_v18  ;;  %v869_v18 = vld [vmem:[%s9370_s5 + $0x538] sm:$0xff] }
 0x22c   :  { %2518 = vmatpush2.bf16.msra.mxu0 %v5837_v21  ;;  %2476 = vmatprep.subr.bf16.mxu1 %v5702_v22  ;;  %v5648_v21 = vcombine.high %v737_v12, %v741_v13  ;;  %v857_v22 = vld [vmem:[%s9370_s5 + $0x4d8] sm:$0xff]  ;;  %v5776_v23 = vcombine.high %v865_v16, %v869_v18  ;;  %v5775_v35 = vcombine.low %v865_v16, %v869_v18 }
 0x22d   :  { %2519 = vmatprep.subr.bf16.mxu0 %v5830_v32  ;;  %v5647_v32 = vcombine.low %v737_v12, %v741_v13  ;;  %v5768_v38 = vcombine.high %v857_v22, %v861_v31  ;;  %v813_v12 = vld [vmem:[%s9370_s5 + $0x378] sm:$0xff] }
 0x22e   :  { %v941_v16 = vld [vmem:[%s9370_s5 + $0x778] sm:$0xff] }
 0x22f   :  { %2477 = vmatpush2.bf16.msra.mxu1 %v5701_v33  ;;  %v721_v33 = vld [vmem:[%s9370_s5 + $0x98] sm:$0xff] }
 0x230   :  { %2520 = vmatpush2.bf16.msra.mxu0 %v5829_v36  ;;  %2478 = vmatprep.subr.bf16.mxu1 %v5694_v37  ;;  %v849_v37 = vld [vmem:[%s9370_s5 + $0x498] sm:$0xff]  ;;  %v5632_v42 = vcombine.high %v721_v33, %v725_v34 }
 0x231   :  { %2521 = vmatprep.subr.bf16.mxu0 %v5822_v40  ;;  %v5760_v43 = vcombine.high %v849_v37, %v853_v39 }
 0x233   :  { %2479 = vmatpush2.bf16.msra.mxu1 %v5693_v41  ;;  %v5767_v41 = vcombine.low %v857_v22, %v861_v31  ;;  %v933_v22 = vld [vmem:[%s9370_s5 + $0x738] sm:$0xff] }
 0x234   :  { %2522 = vmatpush2.bf16.msra.mxu0 %v5821_v44  ;;  %2480 = vmatprep.subr.bf16.mxu1 %v5686_v45  ;;  %v713_v44 = vld [vmem:[%s9370_s5 + $0x58] sm:$0xff] }
 0x235   :  { %2523 = vmatprep.subr.bf16.mxu0 %v5814_v48  ;;  %v717_v45 = vld [vmem:[%s9370_s5 + $0x78] sm:$0xff]  ;;  %v5631_v48 = vcombine.low %v721_v33, %v725_v34 }
 0x236   :  { %v5624_v50 = vcombine.high %v713_v44, %v717_v45  ;;  %v797_v33 = vld [vmem:[%s9370_s5 + $0x2f8] sm:$0xff] }
 0x237   :  { %2481 = vmatpush2.bf16.msra.mxu1 %v5685_v49  ;;  %v5759_v49 = vcombine.low %v849_v37, %v853_v39  ;;  %v925_v37 = vld [vmem:[%s9370_s5 + $0x6f8] sm:$0xff] }
 0x238   :  { %2524 = vmatpush2.bf16.msra.mxu0 %v5813_v52  ;;  %2482 = vmatprep.subr.bf16.mxu1 %v5678_v55  ;;  %v709_v52 = vld [vmem:[%s9370_s5 + $0x38] sm:$0xff] }
 0x239   :  { %2525 = vmatprep.subr.bf16.mxu0 %v5806_v58  ;;  %v833_v55 = vld [vmem:[%s9370_s5 + $0x418] sm:$0xff]  ;;  %v5623_v58 = vcombine.low %v713_v44, %v717_v45  ;;  %v5616_v62 = vcombine.high %v705_v51, %v709_v52  ;;  %v5615_v2 = vcombine.low %v705_v51, %v709_v52 }
 0x23a   :  { %v5744_v1 = vcombine.high %v833_v55, %v837_v57  ;;  %v5743_v5 = vcombine.low %v833_v55, %v837_v57  ;;  %v913_v44 = vld [vmem:[%s9370_s5 + $0x698] sm:$0xff] }
 0x23b   :  { %2483 = vmatpush2.bf16.msra.mxu1 %v5677_v59  ;;  %v825_v59 = vld [vmem:[%s9370_s5 + $0x3d8] sm:$0xff] }
 0x23c   :  { %2526 = vmatpush2.bf16.msra.mxu0 %v5805_v60  ;;  %2538 = vmatprep.subr.bf16.mxu1 %v5672_v61  ;;  %v829_v60 = vld [vmem:[%s9370_s5 + $0x3f8] sm:$0xff]  ;;  %v5751_v61 = vcombine.low %v841_v46, %v845_v47 }
 0x23d   :  { %2581 = vmatprep.subr.bf16.mxu0 %v5800_v0  ;;  %v957_v0 = vld [vmem:[%s9370_s5 + $0x7f8] sm:$0xff] }
 0x23e   :  { %2485 = vmatmul.mubr.bf16.vlgmr.msra.gmra.mxu1 %v7511_v26  ;;  %v5863_v13 = vcombine.low %v953_v63, %v957_v0  ;;  %v917_v45 = vld [vmem:[%s9370_s5 + $0x6b8] sm:$0xff] }
 0x23f   :  { %2528 = vmatmul.mubr.bf16.vlgmr.msra.gmra.mxu0 %v7513_v30  ;;  %2539 = vmatpush1.bf16.msra.mxu1 %v5671_v3  ;;  %v817_v3 = vld [vmem:[%s9370_s5 + $0x398] sm:$0xff] }
 0x240   :  { %2570 = vmatprep.mubr.bf16.mxu1 %v7507_v24  ;;  %2582 = vmatpush1.bf16.msra.mxu0 %v5799_v6  ;;  %v729_v24 = vld [vmem:[%s9370_s5 + $0xd8] sm:$0xff]  ;;  %v5736_v6 = vcombine.high %v825_v59, %v829_v60  ;;  %v5727_v18 = vcombine.low %v817_v3, %v821_v4 }
 0x241   :  { %2613 = vmatprep.mubr.bf16.mxu0 %v7509_v25  ;;  %2540 = vmatprep.subr.bf16.mxu1 %v5664_v8  ;;  %v5783_v25 = vcombine.low %v873_v7, %v877_v10  ;;  %v5640_v36 = vcombine.high %v729_v24, %v733_v20  ;;  %v5639_v40 = vcombine.low %v729_v24, %v733_v20  ;;  %v945_v7 = vld [vmem:[%s9370_s5 + $0x798] sm:$0xff] }
 0x242   :  { %2583 = vmatprep.subr.bf16.mxu0 %v5792_v9  ;;  %v949_v8 = vld [vmem:[%s9370_s5 + $0x7b8] sm:$0xff]  ;;  %v5864_v9 = vcombine.high %v953_v63, %v957_v0  ;;  %v5735_v10 = vcombine.low %v825_v59, %v829_v60  ;;  %v5823_v60 = vcombine.low %v913_v44, %v917_v45 }
 0x243   :  { %2541 = vmatpush1.bf16.msra.mxu1 %v5663_v11  ;;  %v809_v11 = vld [vmem:[%s9370_s5 + $0x358] sm:$0xff]  ;;  %v5855_v20 = vcombine.low %v945_v7, %v949_v8 }
 0x244   :  { %2584 = vmatpush1.bf16.msra.mxu0 %v5791_v14  ;;  %2542 = vmatprep.subr.bf16.mxu1 %v5656_v15  ;;  %v5728_v14 = vcombine.high %v817_v3, %v821_v4  ;;  %v937_v15 = vld [vmem:[%s9370_s5 + $0x758] sm:$0xff]  ;;  %v5719_v31 = vcombine.low %v809_v11, %v813_v12 }
 0x245   :  { %2585 = vmatprep.subr.bf16.mxu0 %v5784_v17  ;;  %v5856_v17 = vcombine.high %v945_v7, %v949_v8  ;;  %v805_v24 = vld [vmem:[%s9370_s5 + $0x338] sm:$0xff]  ;;  %v5847_v34 = vcombine.low %v937_v15, %v941_v16  ;;  %v6388_v7 = vld [vmem:[%s9373_s7 + $0x454] ss:$24 sps:$4 sm:$0xff]  }
 0x246   :  { %v905_v52 = vld [vmem:[%s9370_s5 + $0x658] sm:$0xff] }
 0x247   :  { %2543 = vmatpush1.bf16.msra.mxu1 %v5655_v19  ;;  %v801_v19 = vld [vmem:[%s9370_s5 + $0x318] sm:$0xff] }
 0x248   :  { %2586 = vmatpush1.bf16.msra.mxu0 %v5783_v25  ;;  %2544 = vmatprep.subr.bf16.mxu1 %v5648_v21  ;;  %v5720_v25 = vcombine.high %v809_v11, %v813_v12  ;;  %v929_v21 = vld [vmem:[%s9370_s5 + $0x718] sm:$0xff]  ;;  %v5711_v39 = vcombine.low %v801_v19, %v805_v24  ;;  %v6386_v12 = vld [vmem:[%s9373_s7 + $0x450] ss:$24 sps:$4 sm:$0xff]  }
 0x249   :  { %2587 = vmatprep.subr.bf16.mxu0 %v5776_v23  ;;  %v5848_v23 = vcombine.high %v937_v15, %v941_v16  ;;  %v909_v55 = vld [vmem:[%s9370_s5 + $0x678] sm:$0xff] }
 0x24a   :  { %v773_v59 = vld [vmem:[%s9370_s5 + $0x238] sm:$0xff]  ;;  %v5816_v0 = vcombine.high %v905_v52, %v909_v55 }
 0x24b   :  { %2545 = vmatpush1.bf16.msra.mxu1 %v5647_v32  ;;  %v793_v32 = vld [vmem:[%s9370_s5 + $0x2d8] sm:$0xff] }
 0x24c   :  { %2588 = vmatpush1.bf16.msra.mxu0 %v5775_v35  ;;  %2546 = vmatprep.subr.bf16.mxu1 %v5640_v36  ;;  %v5712_v35 = vcombine.high %v801_v19, %v805_v24  ;;  %v921_v36 = vld [vmem:[%s9370_s5 + $0x6d8] sm:$0xff]  ;;  %v5703_v47 = vcombine.low %v793_v32, %v797_v33 }
 0x24d   :  { %2589 = vmatprep.subr.bf16.mxu0 %v5768_v38  ;;  %v5840_v38 = vcombine.high %v929_v21, %v933_v22  ;;  %v5832_v46 = vcombine.high %v921_v36, %v925_v37  ;;  %v901_v63 = vld [vmem:[%s9370_s5 + $0x638] sm:$0xff] }
 0x24e   :  { %v6376_v11 = vld [vmem:[%s9373_s7 + $0x124] ss:$24 sps:$4 sm:$0xff]   ;;  %v6374_v15 = vld [vmem:[%s9373_s7 + $0x120] ss:$24 sps:$4 sm:$0xff]  }
 0x24f   :  { %2547 = vmatpush1.bf16.msra.mxu1 %v5639_v40  ;;  %v785_v40 = vld [vmem:[%s9370_s5 + $0x298] sm:$0xff] }
 0x250   :  { %2590 = vmatpush1.bf16.msra.mxu0 %v5767_v41  ;;  %2548 = vmatprep.subr.bf16.mxu1 %v5632_v42  ;;  %v789_v41 = vld [vmem:[%s9370_s5 + $0x2b8] sm:$0xff]  ;;  %v5839_v42 = vcombine.low %v929_v21, %v933_v22  ;;  %v6400_v21 = vld [vmem:[%s9373_s7 + $0x3f4] ss:$24 sps:$4 sm:$0xff]  }
 0x251   :  { %2591 = vmatprep.subr.bf16.mxu0 %v5760_v43  ;;  %v5704_v43 = vcombine.high %v793_v32, %v797_v33  ;;  %v5696_v51 = vcombine.high %v785_v40, %v789_v41  ;;  %v5695_v57 = vcombine.low %v785_v40, %v789_v41  ;;  %v6392_v19 = vld [vmem:[%s9373_s7 + $0x420] ss:$24 sps:$4 sm:$0xff]  }
 0x253   :  { %2549 = vmatpush1.bf16.msra.mxu1 %v5631_v48  ;;  %v777_v48 = vld [vmem:[%s9370_s5 + $0x258] sm:$0xff] }
 0x254   :  { %2592 = vmatpush1.bf16.msra.mxu0 %v5759_v49  ;;  %2550 = vmatprep.subr.bf16.mxu1 %v5624_v50  ;;  %v781_v49 = vld [vmem:[%s9370_s5 + $0x278] sm:$0xff]  ;;  %v5831_v50 = vcombine.low %v921_v36, %v925_v37 }
 0x255   :  { %2593 = vmatprep.subr.bf16.mxu0 %v5752_v56  ;;  %v5824_v56 = vcombine.high %v913_v44, %v917_v45  ;;  %v6406_v36 = vld [vmem:[%s9373_s7 + $0x3c4] ss:$24 sps:$4 sm:$0xff]   ;;  %v6412_v44 = vld [vmem:[%s9373_s7 + $0x394] ss:$24 sps:$4 sm:$0xff]  }
 0x256   :  { %v6391_v45 = vld [vmem:[%s9373_s7 + $0x64] ss:$24 sps:$4 sm:$0xff]  }
 0x257   :  { %2551 = vmatpush1.bf16.msra.mxu1 %v5623_v58  ;;  %v769_v58 = vld [vmem:[%s9370_s5 + $0x218] sm:$0xff] }
 0x258   :  { %2594 = vmatpush1.bf16.msra.mxu0 %v5751_v61  ;;  %2552 = vmatprep.subr.bf16.mxu1 %v5616_v62  ;;  %v5688_v61 = vcombine.high %v777_v48, %v781_v49  ;;  %v897_v62 = vld [vmem:[%s9370_s5 + $0x618] sm:$0xff]  ;;  %v5680_v3 = vcombine.high %v769_v58, %v773_v59 }
 0x259   :  { %2595 = vmatprep.subr.bf16.mxu0 %v5744_v1  ;;  %v5687_v1 = vcombine.low %v777_v48, %v781_v49  ;;  %v5808_v4 = vcombine.high %v897_v62, %v901_v63  ;;  %v5807_v8 = vcombine.low %v897_v62, %v901_v63  ;;  %v6418_v48 = vld [vmem:[%s9373_s7 + $0x364] ss:$24 sps:$4 sm:$0xff]   ;;  %v6389_v49 = vld [vmem:[%s9373_s7 + $0x60] ss:$24 sps:$4 sm:$0xff]   ;;  %v6436_v62 = vld [vmem:[%s9373_s7 + $0x5d4] ss:$24 sps:$4 sm:$0xff]  }
 0x25a   :  { %v6407_v63 = vld [vmem:[%s9373_s7 + $0x2d0] ss:$24 sps:$4 sm:$0xff]  }
 0x25b   :  { %2553 = vmatpush1.bf16.msra.mxu1 %v5615_v2  ;;  %v5815_v2 = vcombine.low %v905_v52, %v909_v55  ;;  %v6424_v52 = vld [vmem:[%s9373_s7 + $0x334] ss:$24 sps:$4 sm:$0xff]   ;;  %v6395_v55 = vld [vmem:[%s9373_s7 + $0x30] ss:$24 sps:$4 sm:$0xff]  }
 0x25c   :  { %2596 = vmatpush1.bf16.msra.mxu0 %v5743_v5  ;;  %2554 = vmatprep.subr.bf16.mxu1 %v5736_v6  ;;  %v6373_v5 = vld [vmem:[%s9373_s7 + $0x154] ss:$24 sps:$4 sm:$0xff]   ;;  %v5679_v6 = vcombine.low %v769_v58, %v773_v59  ;;  %v6430_v58 = vld [vmem:[%s9373_s7 + $0x304] ss:$24 sps:$4 sm:$0xff]   ;;  %v6401_v59 = vld [vmem:[%s9373_s7] ss:$24 sps:$4 sm:$0xff]  }
 0x25d   :  { %2597 = vmatprep.subr.bf16.mxu0 %v5864_v9  ;;  %v6371_v9 = vld [vmem:[%s9373_s7 + $0x150] ss:$24 sps:$4 sm:$0xff]  }
 0x25f   :  { %2555 = vmatpush2.bf16.msra.mxu1 %v5735_v10  ;;  %v8093_v10 = vld [vmem:[%s9374_s6] sm:$0xff] }
 0x260   :  { %2598 = vmatpush2.bf16.msra.mxu0 %v5863_v13  ;;  %2556 = vmatprep.subr.bf16.mxu1 %v5728_v14  ;;  %v6394_v13 = vld [vmem:[%s9373_s7 + $0x424] ss:$24 sps:$4 sm:$0xff]   ;;  %v967_v14 = vrot.slane %v8093_v10, %v7280_v28 }
 0x261   :  { %2599 = vmatprep.subr.bf16.mxu0 %v5856_v17 }
 0x263   :  { %2557 = vmatpush2.bf16.msra.mxu1 %v5727_v18  ;;  %v6379_v18 = vld [vmem:[%s9373_s7 + $0xf4] ss:$24 sps:$4 sm:$0xff]  }
 0x264   :  { %2600 = vmatpush2.bf16.msra.mxu0 %v5855_v20  ;;  %2558 = vmatprep.subr.bf16.mxu1 %v5720_v25  ;;  %v6377_v25 = vld [vmem:[%s9373_s7 + $0xf0] ss:$24 sps:$4 sm:$0xff]  }
 0x265   :  { %2601 = vmatprep.subr.bf16.mxu0 %v5848_v23 }
 0x267   :  { %2559 = vmatpush2.bf16.msra.mxu1 %v5719_v31  ;;  %v6398_v31 = vld [vmem:[%s9373_s7 + $0x3f0] ss:$24 sps:$4 sm:$0xff]  }
 0x268   :  { %2602 = vmatpush2.bf16.msra.mxu0 %v5847_v34  ;;  %2560 = vmatprep.subr.bf16.mxu1 %v5712_v35  ;;  %v6380_v35 = vld [vmem:[%s9373_s7 + $0xc0] ss:$24 sps:$4 sm:$0xff]  }
 0x269   :  { %2603 = vmatprep.subr.bf16.mxu0 %v5840_v38  ;;  %v6385_v38 = vld [vmem:[%s9373_s7 + $0x94] ss:$24 sps:$4 sm:$0xff]  }
 0x26b   :  { %2561 = vmatpush2.bf16.msra.mxu1 %v5711_v39  ;;  %v6404_v39 = vld [vmem:[%s9373_s7 + $0x3c0] ss:$24 sps:$4 sm:$0xff]  }
 0x26c   :  { %2604 = vmatpush2.bf16.msra.mxu0 %v5839_v42  ;;  %2562 = vmatprep.subr.bf16.mxu1 %v5704_v43  ;;  %v6383_v43 = vld [vmem:[%s9373_s7 + $0x90] ss:$24 sps:$4 sm:$0xff]  }
 0x26d   :  { %2605 = vmatprep.subr.bf16.mxu0 %v5832_v46  ;;  %v6410_v46 = vld [vmem:[%s9373_s7 + $0x390] ss:$24 sps:$4 sm:$0xff]  }
 0x26f   :  { %2563 = vmatpush2.bf16.msra.mxu1 %v5703_v47 }
 0x270   :  { %2606 = vmatpush2.bf16.msra.mxu0 %v5831_v50  ;;  %2564 = vmatprep.subr.bf16.mxu1 %v5696_v51  ;;  %v6397_v50 = vld [vmem:[%s9373_s7 + $0x34] ss:$24 sps:$4 sm:$0xff]   ;;  %v6416_v51 = vld [vmem:[%s9373_s7 + $0x360] ss:$24 sps:$4 sm:$0xff]  }
 0x271   :  { %2607 = vmatprep.subr.bf16.mxu0 %v5824_v56  ;;  %v6403_v56 = vld [vmem:[%s9373_s7 + $0x4] ss:$24 sps:$4 sm:$0xff]  }
 0x273   :  { %2565 = vmatpush2.bf16.msra.mxu1 %v5695_v57  ;;  %v6422_v57 = vld [vmem:[%s9373_s7 + $0x330] ss:$24 sps:$4 sm:$0xff]  }
 0x274   :  { %2608 = vmatpush2.bf16.msra.mxu0 %v5823_v60  ;;  %2566 = vmatprep.subr.bf16.mxu1 %v5688_v61  ;;  %v6409_v60 = vld [vmem:[%s9373_s7 + $0x2d4] ss:$24 sps:$4 sm:$0xff]   ;;  %v6428_v61 = vld [vmem:[%s9373_s7 + $0x300] ss:$24 sps:$4 sm:$0xff]  }
 0x275   :  { %2609 = vmatprep.subr.bf16.mxu0 %v5816_v0  ;;  %v6415_v0 = vld [vmem:[%s9373_s7 + $0x2a4] ss:$24 sps:$4 sm:$0xff]  }
 0x277   :  { %2567 = vmatpush2.bf16.msra.mxu1 %v5687_v1  ;;  %v6434_v1 = vld [vmem:[%s9373_s7 + $0x5d0] ss:$24 sps:$4 sm:$0xff]  }
 0x278   :  { %2610 = vmatpush2.bf16.msra.mxu0 %v5815_v2  ;;  %2568 = vmatprep.subr.bf16.mxu1 %v5680_v3  ;;  %v6442_v2 = vld [vmem:[%s9373_s7 + $0x5a4] ss:$24 sps:$4 sm:$0xff]   ;;  %v6413_v3 = vld [vmem:[%s9373_s7 + $0x2a0] ss:$24 sps:$4 sm:$0xff]  }
 0x279   :  { %2611 = vmatprep.subr.bf16.mxu0 %v5808_v4  ;;  %v6421_v4 = vld [vmem:[%s9373_s7 + $0x274] ss:$24 sps:$4 sm:$0xff]  }
 0x27b   :  { %2569 = vmatpush2.bf16.msra.mxu1 %v5679_v6  ;;  %v6448_v6 = vld [vmem:[%s9373_s7 + $0x574] ss:$24 sps:$4 sm:$0xff]  }
 0x27c   :  { %2612 = vmatpush2.bf16.msra.mxu0 %v5807_v8  ;;  %4984 = vmatprep.subr.bf16.mxu1 %v6373_v5  ;;  %v6440_v5 = vld [vmem:[%s9373_s7 + $0x5a0] ss:$24 sps:$4 sm:$0xff]   ;;  %v6427_v8 = vld [vmem:[%s9373_s7 + $0x244] ss:$24 sps:$4 sm:$0xff]  }
 0x27d   :  { %5027 = vmatprep.subr.bf16.mxu0 %v6388_v7  ;;  %v6419_v7 = vld [vmem:[%s9373_s7 + $0x270] ss:$24 sps:$4 sm:$0xff]  }
 0x27e   :  { %2571 = vmatmul.mubr.bf16.vlgmr.msra.gmra.mxu1 %v7511_v26  ;;  %v8110_v16 = vpop.f32.mrf.mxu1  ;;  %v8112_v17 = vpop.f32.mrf.mxu0 }
 0x27f   :  { %2614 = vmatmul.mubr.bf16.vlgmr.msra.gmra.mxu0 %v7513_v30  ;;  %4985 = vmatpush1.bf16.msra.mxu1 %v6371_v9  ;;  %v6382_v30 = vld [vmem:[%s9373_s7 + $0xc4] ss:$24 sps:$4 sm:$0xff]   ;;  %v6446_v9 = vld [vmem:[%s9373_s7 + $0x570] ss:$24 sps:$4 sm:$0xff]  }
 0x280   :  { %v2316_v24 = vpop.f32.mrf.mxu1  ;;  %v2359_v20 = vpop.f32.mrf.mxu0  ;;  %4986 = vmatprep.subr.bf16.mxu1 %v6376_v11  ;;  %5028 = vmatpush1.bf16.msra.mxu0 %v6386_v12  ;;  %v6454_v11 = vld [vmem:[%s9373_s7 + $0x544] ss:$24 sps:$4 sm:$0xff]   ;;  %v6425_v12 = vld [vmem:[%s9373_s7 + $0x240] ss:$24 sps:$4 sm:$0xff]  }
 0x281   :  { %v2317_v26 = vadd.f32 %v2316_v24, %v967_v14  ;;  %5029 = vmatprep.subr.bf16.mxu0 %v6394_v13  ;;  %v6433_v13 = vld [vmem:[%s9373_s7 + $0x214] ss:$24 sps:$4 sm:$0xff]   ;;  %v6455_v24 = vld [vmem:[%s9373_s7 + $0x510] ss:$24 sps:$4 sm:$0xff]  }
 0x282   :  { %v8127_v22 = vpop.f32.mrf.mxu1  ;;  %v8129_v23 = vpop.f32.mrf.mxu0 }
 0x283   :  { %4987 = vmatpush1.bf16.msra.mxu1 %v6374_v15  ;;  %v2360_v33 = vadd.f32 %v2359_v20, %v2317_v26  ;;  %v6457_v15 = vld [vmem:[%s9373_s7 + $0x514] ss:$24 sps:$4 sm:$0xff]   ;;  %v6460_v20 = vld [vmem:[%s9373_s7 + $0x4e4] ss:$24 sps:$4 sm:$0xff]   ;;  %v963_v26 = vrot.slane %v8093_v10, %v7283_v29 }
 0x284   :  { %v2320_v32 = vpop.f32.mrf.mxu1  ;;  %4988 = vmatprep.subr.bf16.mxu1 %v6379_v18  ;;  %5030 = vmatpush1.bf16.msra.mxu0 %v6392_v19  ;;  %v2363_v37 = vpop.f32.mrf.mxu0  ;;  %v6431_v18 = vld [vmem:[%s9373_s7 + $0x210] ss:$24 sps:$4 sm:$0xff]   ;;  %v6439_v19 = vld [vmem:[%s9373_s7 + $0x1e4] ss:$24 sps:$4 sm:$0xff]  }
 0x285   :  { %v2321_v34 = vadd.f32 %v2320_v32, %v967_v14  ;;  %5031 = vmatprep.subr.bf16.mxu0 %v6400_v21  ;;  %v2625_v41 = vmax.f32 %v2360_v33, 0.0  ;;  %v6452_v14 = vld [vmem:[%s9373_s7 + $0x540] ss:$24 sps:$4 sm:$0xff]   ;;  %v2319_v21 = vadd.f32 %v8127_v22, %v963_v26  ;;  %v6463_v32 = vld [vmem:[%s9373_s7 + $0x4b4] ss:$24 sps:$4 sm:$0xff]   ;;  %v2315_v33 = vadd.f32 %v8110_v16, %v963_v26 }
 0x286   :  { %v6443_v22 = vld [vmem:[%s9373_s7 + $0x1b0] ss:$24 sps:$4 sm:$0xff]   ;;  %v6466_v16 = vld [vmem:[%s9373_s7 + $0x484] ss:$24 sps:$4 sm:$0xff]   ;;  %v6521_v26 = vld [vmem:[%s9373_s7 + $0xa20] ss:$24 sps:$4 sm:$0xff]  }
 0x287   :  { %v2364_v40 = vadd.f32 %v2363_v37, %v2321_v34  ;;  %4989 = vmatpush1.bf16.msra.mxu1 %v6377_v25  ;;  %v6437_v25 = vld [vmem:[%s9373_s7 + $0x1e0] ss:$24 sps:$4 sm:$0xff]   ;;  %v2362_v34 = vadd.f32 %v8129_v23, %v2319_v21  ;;  %v2358_v37 = vadd.f32 %v8112_v17, %v2315_v33  ;;  %v6517_v17 = vld [vmem:[%s9373_s7 + $0xa54] ss:$24 sps:$4 sm:$0xff]   ;;  %v6535_v33 = vld [vmem:[%s9373_s7 + $0x9c4] ss:$24 sps:$4 sm:$0xff]  }
 0x288   :  { %4990 = vmatprep.subr.bf16.mxu1 %v6382_v30  ;;  %5032 = vmatpush1.bf16.msra.mxu0 %v6398_v31  ;;  %v6445_v30 = vld [vmem:[%s9373_s7 + $0x1b4] ss:$24 sps:$4 sm:$0xff]   ;;  %v6458_v31 = vld [vmem:[%s9373_s7 + $0x4e0] ss:$24 sps:$4 sm:$0xff]  }
 0x289   :  { %v2633_v42 = vmax.f32 %v2364_v40, 0.0  ;;  %5033 = vmatprep.subr.bf16.mxu0 %v6406_v36  ;;  %v6461_v36 = vld [vmem:[%s9373_s7 + $0x4b0] ss:$24 sps:$4 sm:$0xff]   ;;  %v6449_v23 = vld [vmem:[%s9373_s7 + $0x180] ss:$24 sps:$4 sm:$0xff]  }
 0x28a   :  { %v6469_v40 = vld [vmem:[%s9373_s7 + $0x754] ss:$24 sps:$4 sm:$0xff]  }
 0x28b   :  { %v8161_v47 = vpack.c.bf16 %v2633_v42, %v2625_v41  ;;  %4991 = vmatpush1.bf16.msra.mxu1 %v6380_v35  ;;  %v6451_v35 = vld [vmem:[%s9373_s7 + $0x184] ss:$24 sps:$4 sm:$0xff]   ;;  %v2624_v41 = vmax.f32 %v2358_v37, 0.0  ;;  %v6467_v42 = vld [vmem:[%s9373_s7 + $0x750] ss:$24 sps:$4 sm:$0xff]  }
 0x28c   :  { %4992 = vmatprep.subr.bf16.mxu1 %v6385_v38  ;;  %5034 = vmatpush1.bf16.msra.mxu0 %v6404_v39  ;;  %v2632_v38 = vmax.f32 %v2362_v34, 0.0  ;;  %v6464_v39 = vld [vmem:[%s9373_s7 + $0x480] ss:$24 sps:$4 sm:$0xff]   ;;  %v6529_v21 = vld [vmem:[%s9373_s7 + $0x9f4] ss:$24 sps:$4 sm:$0xff]  }
 0x28d   :  { %5016 = vmatprep.mubr.bf16.mxu1 %v8161_v47  ;;  %5035 = vmatprep.subr.bf16.mxu0 %v6412_v44  ;;  %v6472_v44 = vld [vmem:[%s9373_s7 + $0x724] ss:$24 sps:$4 sm:$0xff]   ;;  %v6533_v34 = vld [vmem:[%s9373_s7 + $0x9c0] ss:$24 sps:$4 sm:$0xff]   ;;  %v6539_v37 = vld [vmem:[%s9373_s7 + $0x990] ss:$24 sps:$4 sm:$0xff]  }
 0x28f   :  { %4993 = vmatpush1.bf16.msra.mxu1 %v6383_v43  ;;  %v8308_v43 = vpack.c.bf16 %v2632_v38, %v2624_v41  ;;  %v6547_v38 = vld [vmem:[%s9373_s7 + $0x964] ss:$24 sps:$4 sm:$0xff]   ;;  %v6553_v41 = vld [vmem:[%s9373_s7 + $0x934] ss:$24 sps:$4 sm:$0xff]  }
 0x290   :  { %4994 = vmatprep.subr.bf16.mxu1 %v6391_v45  ;;  %5036 = vmatpush1.bf16.msra.mxu0 %v6410_v46  ;;  %v975_v45 = vrot.slane %v8093_v10, %v7483_v53  ;;  %v971_v46 = vrot.slane %v8093_v10, %v7486_v54 }
 0x291   :  { %5037 = vmatprep.subr.bf16.mxu0 %v6418_v48 }
 0x293   :  { %4995 = vmatpush1.bf16.msra.mxu1 %v6389_v49 }
 0x294   :  { %4996 = vmatprep.subr.bf16.mxu1 %v6397_v50  ;;  %5038 = vmatpush1.bf16.msra.mxu0 %v6416_v51  ;;  %v6470_v50 = vld [vmem:[%s9373_s7 + $0x720] ss:$24 sps:$4 sm:$0xff]  }
 0x295   :  { %5039 = vmatprep.subr.bf16.mxu0 %v6424_v52 }
 0x297   :  { %4997 = vmatpush1.bf16.msra.mxu1 %v6395_v55  ;;  %v6475_v55 = vld [vmem:[%s9373_s7 + $0x6f4] ss:$24 sps:$4 sm:$0xff]  }
 0x298   :  { %4998 = vmatprep.subr.bf16.mxu1 %v6403_v56  ;;  %5040 = vmatpush1.bf16.msra.mxu0 %v6422_v57 }
 0x299   :  { %5041 = vmatprep.subr.bf16.mxu0 %v6430_v58 }
 0x29b   :  { %4999 = vmatpush1.bf16.msra.mxu1 %v6401_v59 }
 0x29c   :  { %5000 = vmatprep.subr.bf16.mxu1 %v6409_v60  ;;  %5042 = vmatpush1.bf16.msra.mxu0 %v6428_v61  ;;  %v6473_v61 = vld [vmem:[%s9373_s7 + $0x6f0] ss:$24 sps:$4 sm:$0xff]  }
 0x29d   :  { %5043 = vmatprep.subr.bf16.mxu0 %v6436_v62 }
 0x29f   :  { %5001 = vmatpush2.bf16.msra.mxu1 %v6407_v63  ;;  %v6478_v63 = vld [vmem:[%s9373_s7 + $0x6c4] ss:$24 sps:$4 sm:$0xff]  }
 0x2a0   :  { %5002 = vmatprep.subr.bf16.mxu1 %v6415_v0  ;;  %5044 = vmatpush2.bf16.msra.mxu0 %v6434_v1 }
 0x2a1   :  { %5045 = vmatprep.subr.bf16.mxu0 %v6442_v2 }
 0x2a3   :  { %5003 = vmatpush2.bf16.msra.mxu1 %v6413_v3 }
 0x2a4   :  { %5004 = vmatprep.subr.bf16.mxu1 %v6421_v4  ;;  %5046 = vmatpush2.bf16.msra.mxu0 %v6440_v5 }
 0x2a5   :  { %5047 = vmatprep.subr.bf16.mxu0 %v6448_v6  ;;  %v6476_v6 = vld [vmem:[%s9373_s7 + $0x6c0] ss:$24 sps:$4 sm:$0xff]  }
 0x2a7   :  { %5005 = vmatpush2.bf16.msra.mxu1 %v6419_v7 }
 0x2a8   :  { %5006 = vmatprep.subr.bf16.mxu1 %v6427_v8  ;;  %5048 = vmatpush2.bf16.msra.mxu0 %v6446_v9  ;;  %v6481_v8 = vld [vmem:[%s9373_s7 + $0x694] ss:$24 sps:$4 sm:$0xff]  }
 0x2a9   :  { %5049 = vmatprep.subr.bf16.mxu0 %v6454_v11 }
 0x2ab   :  { %5007 = vmatpush2.bf16.msra.mxu1 %v6425_v12 }
 0x2ac   :  { %5008 = vmatprep.subr.bf16.mxu1 %v6433_v13  ;;  %5050 = vmatpush2.bf16.msra.mxu0 %v6452_v14  ;;  %v6479_v14 = vld [vmem:[%s9373_s7 + $0x690] ss:$24 sps:$4 sm:$0xff]  }
 0x2ad   :  { %5051 = vmatprep.subr.bf16.mxu0 %v6457_v15  ;;  %v6515_v15 = vld [vmem:[%s9373_s7 + $0xa50] ss:$24 sps:$4 sm:$0xff]  }
 0x2af   :  { %5009 = vmatpush2.bf16.msra.mxu1 %v6431_v18 }
 0x2b0   :  { %5010 = vmatprep.subr.bf16.mxu1 %v6439_v19  ;;  %5052 = vmatpush2.bf16.msra.mxu0 %v6455_v24  ;;  %v6484_v19 = vld [vmem:[%s9373_s7 + $0x664] ss:$24 sps:$4 sm:$0xff]  }
 0x2b1   :  { %5053 = vmatprep.subr.bf16.mxu0 %v6460_v20  ;;  %v6523_v24 = vld [vmem:[%s9373_s7 + $0xa24] ss:$24 sps:$4 sm:$0xff]   ;;  %v6482_v20 = vld [vmem:[%s9373_s7 + $0x660] ss:$24 sps:$4 sm:$0xff]  }
 0x2b3   :  { %5011 = vmatpush2.bf16.msra.mxu1 %v6437_v25  ;;  %v6487_v25 = vld [vmem:[%s9373_s7 + $0x634] ss:$24 sps:$4 sm:$0xff]  }
 0x2b4   :  { %5012 = vmatprep.subr.bf16.mxu1 %v6445_v30  ;;  %5054 = vmatpush2.bf16.msra.mxu0 %v6458_v31  ;;  %v6485_v30 = vld [vmem:[%s9373_s7 + $0x630] ss:$24 sps:$4 sm:$0xff]  }
 0x2b5   :  { %5055 = vmatprep.subr.bf16.mxu0 %v6463_v32  ;;  %v6527_v31 = vld [vmem:[%s9373_s7 + $0x9f0] ss:$24 sps:$4 sm:$0xff]   ;;  %v6490_v32 = vld [vmem:[%s9373_s7 + $0x604] ss:$24 sps:$4 sm:$0xff]  }
 0x2b7   :  { %5013 = vmatpush2.bf16.msra.mxu1 %v6443_v22  ;;  %v6488_v22 = vld [vmem:[%s9373_s7 + $0x600] ss:$24 sps:$4 sm:$0xff]  }
 0x2b8   :  { %5014 = vmatprep.subr.bf16.mxu1 %v6451_v35  ;;  %5056 = vmatpush2.bf16.msra.mxu0 %v6461_v36  ;;  %v6493_v35 = vld [vmem:[%s9373_s7 + $0x8d4] ss:$24 sps:$4 sm:$0xff]  }
 0x2b9   :  { %5057 = vmatprep.subr.bf16.mxu0 %v6466_v16  ;;  %v6541_v36 = vld [vmem:[%s9373_s7 + $0x994] ss:$24 sps:$4 sm:$0xff]   ;;  %v6491_v16 = vld [vmem:[%s9373_s7 + $0x8d0] ss:$24 sps:$4 sm:$0xff]  }
 0x2bb   :  { %5015 = vmatpush2.bf16.msra.mxu1 %v6449_v23  ;;  %v6496_v23 = vld [vmem:[%s9373_s7 + $0x8a4] ss:$24 sps:$4 sm:$0xff]  }
 0x2bc   :  { %5058 = vmatpush2.bf16.msra.mxu0 %v6464_v39  ;;  %5070 = vmatprep.subr.bf16.mxu1 %v6469_v40  ;;  %v6494_v39 = vld [vmem:[%s9373_s7 + $0x8a0] ss:$24 sps:$4 sm:$0xff]  }
 0x2bd   :  { %5113 = vmatprep.subr.bf16.mxu0 %v6517_v17  ;;  %v6545_v40 = vld [vmem:[%s9373_s7 + $0x960] ss:$24 sps:$4 sm:$0xff]   ;;  %v6499_v17 = vld [vmem:[%s9373_s7 + $0x874] ss:$24 sps:$4 sm:$0xff]  }
 0x2be   :  { %v2400_v48 = vpop.f32.mrf.mxu1  ;;  %v2443_v49 = vpop.f32.mrf.mxu0  ;;  %5017 = vmatmul.mubr.bf16.vlgmr.msra.gmra.mxu1 %v8308_v43 }
 0x2bf   :  { %5071 = vmatpush1.bf16.msra.mxu1 %v6467_v42  ;;  %v2401_v57 = vadd.f32 %v2400_v48, %v971_v46  ;;  %v6497_v42 = vld [vmem:[%s9373_s7 + $0x870] ss:$24 sps:$4 sm:$0xff]   ;;  %v6500_v48 = vld [vmem:[%s9373_s7 + $0x840] ss:$24 sps:$4 sm:$0xff]  }
 0x2c0   :  { %v2402_v51 = vpop.f32.mrf.mxu1  ;;  %v2445_v52 = vpop.f32.mrf.mxu0  ;;  %5072 = vmatprep.subr.bf16.mxu1 %v6472_v44  ;;  %v6551_v44 = vld [vmem:[%s9373_s7 + $0x930] ss:$24 sps:$4 sm:$0xff]  }
 0x2c1   :  { %v2403_v56 = vadd.f32 %v2402_v51, %v975_v45  ;;  %v2444_v3 = vadd.f32 %v2443_v49, %v2401_v57  ;;  %v6557_v49 = vld [vmem:[%s9373_s7 + $0x900] ss:$24 sps:$4 sm:$0xff]   ;;  %v6565_v51 = vld [vmem:[%s9373_s7 + $0xbd4] ss:$24 sps:$4 sm:$0xff]   ;;  %v6571_v57 = vld [vmem:[%s9373_s7 + $0xba4] ss:$24 sps:$4 sm:$0xff]  }
 0x2c2   :  { %v2404_v58 = vpop.f32.mrf.mxu1  ;;  %v2447_v59 = vpop.f32.mrf.mxu0 }
 0x2c3   :  { %v2405_v60 = vadd.f32 %v2404_v58, %v971_v46  ;;  %5073 = vmatpush1.bf16.msra.mxu1 %v6470_v50  ;;  %v2446_v0 = vadd.f32 %v2445_v52, %v2403_v56  ;;  %v2626_v12 = vmax.f32 %v2444_v3, 0.0  ;;  %v6559_v46 = vld [vmem:[%s9373_s7 + $0x904] ss:$24 sps:$4 sm:$0xff]   ;;  %v6505_v50 = vld [vmem:[%s9373_s7 + $0x814] ss:$24 sps:$4 sm:$0xff]  }
 0x2c4   :  { %v2406_v62 = vpop.f32.mrf.mxu1  ;;  %5074 = vmatprep.subr.bf16.mxu1 %v6475_v55  ;;  %v2449_v4 = vpop.f32.mrf.mxu0  ;;  %v6503_v52 = vld [vmem:[%s9373_s7 + $0x810] ss:$24 sps:$4 sm:$0xff]   ;;  %v6508_v56 = vld [vmem:[%s9373_s7 + $0x7e4] ss:$24 sps:$4 sm:$0xff]   ;;  %v6506_v58 = vld [vmem:[%s9373_s7 + $0x7e0] ss:$24 sps:$4 sm:$0xff]  }
 0x2c5   :  { %v2448_v1 = vadd.f32 %v2447_v59, %v2405_v60  ;;  %v2407_v2 = vadd.f32 %v2406_v62, %v975_v45  ;;  %v2627_v9 = vmax.f32 %v2446_v0, 0.0  ;;  %v6502_v45 = vld [vmem:[%s9373_s7 + $0x844] ss:$24 sps:$4 sm:$0xff]   ;;  %v6563_v55 = vld [vmem:[%s9373_s7 + $0xbd0] ss:$24 sps:$4 sm:$0xff]  }
 0x2c6   :  { %v6569_v59 = vld [vmem:[%s9373_s7 + $0xba0] ss:$24 sps:$4 sm:$0xff]   ;;  %v6511_v60 = vld [vmem:[%s9373_s7 + $0x7b4] ss:$24 sps:$4 sm:$0xff]   ;;  %v6509_v62 = vld [vmem:[%s9373_s7 + $0x7b0] ss:$24 sps:$4 sm:$0xff]  }
 0x2c7   :  { %v2450_v5 = vadd.f32 %v2449_v4, %v2407_v2  ;;  %5075 = vmatpush1.bf16.msra.mxu1 %v6473_v61  ;;  %v2634_v7 = vmax.f32 %v2448_v1, 0.0  ;;  %v6577_v61 = vld [vmem:[%s9373_s7 + $0xb74] ss:$24 sps:$4 sm:$0xff]   ;;  %v6514_v0 = vld [vmem:[%s9373_s7 + $0x784] ss:$24 sps:$4 sm:$0xff]  }
 0x2c8   :  { %5076 = vmatprep.subr.bf16.mxu1 %v6478_v63  ;;  %v6575_v63 = vld [vmem:[%s9373_s7 + $0xb70] ss:$24 sps:$4 sm:$0xff]   ;;  %v6583_v1 = vld [vmem:[%s9373_s7 + $0xb44] ss:$24 sps:$4 sm:$0xff]   ;;  %v6512_v2 = vld [vmem:[%s9373_s7 + $0x780] ss:$24 sps:$4 sm:$0xff]  }
 0x2c9   :  { %v2635_v11 = vmax.f32 %v2450_v5, 0.0  ;;  %v8344_v18 = vpack.c.bf16 %v2634_v7, %v2626_v12  ;;  %v6581_v3 = vld [vmem:[%s9373_s7 + $0xb40] ss:$24 sps:$4 sm:$0xff]   ;;  %v6520_v4 = vld [vmem:[%s9373_s7 + $0x15c] ss:$24 sps:$4 sm:$0xff]   ;;  %v978_v7 = vsub.s32 4, %v7277_v27 }
 0x2ca   :  { %v6589_v5 = vld [vmem:[%s9373_s7 + $0xb14] ss:$24 sps:$4 sm:$0xff]  }
 0x2cb   :  { %v8336_v13 = vpack.c.bf16 %v2635_v11, %v2627_v9  ;;  %5077 = vmatpush1.bf16.msra.mxu1 %v6476_v6  ;;  %v982_v6 = vsub.s32 5, %v7277_v27  ;;  %v6595_v9 = vld [vmem:[%s9373_s7 + $0xae4] ss:$24 sps:$4 sm:$0xff]   ;;  %v979_v12 = vrot.slane %v8093_v10, %v978_v7 }
 0x2cc   :  { %5078 = vmatprep.subr.bf16.mxu1 %v6481_v8  ;;  %v6587_v8 = vld [vmem:[%s9373_s7 + $0xb10] ss:$24 sps:$4 sm:$0xff]  }
 0x2cd   :  { %5059 = vmatprep.mubr.bf16.mxu0 %v8336_v13  ;;  %v983_v11 = vrot.slane %v8093_v10, %v982_v6 }
 0x2ce   :  { %5060 = vmatmul.mubr.bf16.vlgmr.msra.gmra.mxu0 %v8344_v18 }
 0x2cf   :  { %5079 = vmatpush1.bf16.msra.mxu1 %v6479_v14  ;;  %5114 = vmatpush1.bf16.msra.mxu0 %v6515_v15 }
 0x2d0   :  { %5080 = vmatprep.subr.bf16.mxu1 %v6484_v19  ;;  %5115 = vmatprep.subr.bf16.mxu0 %v6523_v24  ;;  %v6593_v19 = vld [vmem:[%s9373_s7 + $0xae0] ss:$24 sps:$4 sm:$0xff]  }
 0x2d3   :  { %5081 = vmatpush1.bf16.msra.mxu1 %v6482_v20  ;;  %5116 = vmatpush1.bf16.msra.mxu0 %v6521_v26  ;;  %v6601_v20 = vld [vmem:[%s9373_s7 + $0xab4] ss:$24 sps:$4 sm:$0xff]  }
 0x2d4   :  { %5082 = vmatprep.subr.bf16.mxu1 %v6487_v25  ;;  %5117 = vmatprep.subr.bf16.mxu0 %v6529_v21 }
 0x2d7   :  { %5083 = vmatpush1.bf16.msra.mxu1 %v6485_v30  ;;  %5118 = vmatpush1.bf16.msra.mxu0 %v6527_v31 }
 0x2d8   :  { %5084 = vmatprep.subr.bf16.mxu1 %v6490_v32  ;;  %5119 = vmatprep.subr.bf16.mxu0 %v6535_v33  ;;  %v6599_v33 = vld [vmem:[%s9373_s7 + $0xab0] ss:$24 sps:$4 sm:$0xff]  }
 0x2db   :  { %5085 = vmatpush1.bf16.msra.mxu1 %v6488_v22  ;;  %5120 = vmatpush1.bf16.msra.mxu0 %v6533_v34  ;;  %v6607_v34 = vld [vmem:[%s9373_s7 + $0xa84] ss:$24 sps:$4 sm:$0xff]  }
 0x2dc   :  { %5086 = vmatprep.subr.bf16.mxu1 %v6493_v35  ;;  %5121 = vmatprep.subr.bf16.mxu0 %v6541_v36 }
 0x2df   :  { %5087 = vmatpush2.bf16.msra.mxu1 %v6491_v16  ;;  %5122 = vmatpush1.bf16.msra.mxu0 %v6539_v37 }
 0x2e0   :  { %5088 = vmatprep.subr.bf16.mxu1 %v6496_v23  ;;  %5123 = vmatprep.subr.bf16.mxu0 %v6547_v38 }
 0x2e3   :  { %5089 = vmatpush2.bf16.msra.mxu1 %v6494_v39  ;;  %5124 = vmatpush1.bf16.msra.mxu0 %v6545_v40  ;;  %v6605_v39 = vld [vmem:[%s9373_s7 + $0xa80] ss:$24 sps:$4 sm:$0xff]  }
 0x2e4   :  { %5090 = vmatprep.subr.bf16.mxu1 %v6499_v17  ;;  %5125 = vmatprep.subr.bf16.mxu0 %v6553_v41  ;;  %v6613_v17 = vld [vmem:[%s9373_s7 + $0x45c] ss:$24 sps:$4 sm:$0xff]  }
 0x2e7   :  { %5091 = vmatpush2.bf16.msra.mxu1 %v6497_v42  ;;  %5126 = vmatpush1.bf16.msra.mxu0 %v6551_v44 }
 0x2e8   :  { %5092 = vmatprep.subr.bf16.mxu1 %v6502_v45  ;;  %5127 = vmatprep.subr.bf16.mxu0 %v6559_v46  ;;  %v6518_v46 = vld [vmem:[%s9373_s7 + $0x158] ss:$24 sps:$4 sm:$0xff]  }
 0x2eb   :  { %5093 = vmatpush2.bf16.msra.mxu1 %v6500_v48  ;;  %5128 = vmatpush1.bf16.msra.mxu0 %v6557_v49  ;;  %v6526_v49 = vld [vmem:[%s9373_s7 + $0x12c] ss:$24 sps:$4 sm:$0xff]  }
 0x2ec   :  { %5094 = vmatprep.subr.bf16.mxu1 %v6505_v50  ;;  %5129 = vmatprep.subr.bf16.mxu0 %v6565_v51  ;;  %v6524_v50 = vld [vmem:[%s9373_s7 + $0x128] ss:$24 sps:$4 sm:$0xff]   ;;  %v6532_v51 = vld [vmem:[%s9373_s7 + $0xfc] ss:$24 sps:$4 sm:$0xff]  }
 0x2ef   :  { %5095 = vmatpush2.bf16.msra.mxu1 %v6503_v52  ;;  %5130 = vmatpush2.bf16.msra.mxu0 %v6563_v55  ;;  %v6530_v52 = vld [vmem:[%s9373_s7 + $0xf8] ss:$24 sps:$4 sm:$0xff]   ;;  %v6538_v55 = vld [vmem:[%s9373_s7 + $0xcc] ss:$24 sps:$4 sm:$0xff]  }
 0x2f0   :  { %5096 = vmatprep.subr.bf16.mxu1 %v6508_v56  ;;  %5131 = vmatprep.subr.bf16.mxu0 %v6571_v57  ;;  %v6536_v56 = vld [vmem:[%s9373_s7 + $0xc8] ss:$24 sps:$4 sm:$0xff]   ;;  %v6544_v57 = vld [vmem:[%s9373_s7 + $0x9c] ss:$24 sps:$4 sm:$0xff]  }
 0x2f3   :  { %5097 = vmatpush2.bf16.msra.mxu1 %v6506_v58  ;;  %5132 = vmatpush2.bf16.msra.mxu0 %v6569_v59  ;;  %v6542_v58 = vld [vmem:[%s9373_s7 + $0x98] ss:$24 sps:$4 sm:$0xff]   ;;  %v6550_v59 = vld [vmem:[%s9373_s7 + $0x6c] ss:$24 sps:$4 sm:$0xff]  }
 0x2f4   :  { %5098 = vmatprep.subr.bf16.mxu1 %v6511_v60  ;;  %5133 = vmatprep.subr.bf16.mxu0 %v6577_v61  ;;  %v6548_v60 = vld [vmem:[%s9373_s7 + $0x68] ss:$24 sps:$4 sm:$0xff]   ;;  %v6556_v61 = vld [vmem:[%s9373_s7 + $0x3c] ss:$24 sps:$4 sm:$0xff]  }
 0x2f7   :  { %5099 = vmatpush2.bf16.msra.mxu1 %v6509_v62  ;;  %5134 = vmatpush2.bf16.msra.mxu0 %v6575_v63  ;;  %v6554_v62 = vld [vmem:[%s9373_s7 + $0x38] ss:$24 sps:$4 sm:$0xff]   ;;  %v6562_v63 = vld [vmem:[%s9373_s7 + $0xc] ss:$24 sps:$4 sm:$0xff]  }
 0x2f8   :  { %5100 = vmatprep.subr.bf16.mxu1 %v6514_v0  ;;  %5135 = vmatprep.subr.bf16.mxu0 %v6583_v1  ;;  %v6560_v0 = vld [vmem:[%s9373_s7 + $0x8] ss:$24 sps:$4 sm:$0xff]   ;;  %v6568_v1 = vld [vmem:[%s9373_s7 + $0x2dc] ss:$24 sps:$4 sm:$0xff]  }
 0x2fb   :  { %5101 = vmatpush2.bf16.msra.mxu1 %v6512_v2  ;;  %5136 = vmatpush2.bf16.msra.mxu0 %v6581_v3  ;;  %v6566_v2 = vld [vmem:[%s9373_s7 + $0x2d8] ss:$24 sps:$4 sm:$0xff]   ;;  %v6574_v3 = vld [vmem:[%s9373_s7 + $0x2ac] ss:$24 sps:$4 sm:$0xff]  }
 0x2fc   :  { %5156 = vmatprep.subr.bf16.mxu1 %v6520_v4  ;;  %5137 = vmatprep.subr.bf16.mxu0 %v6589_v5  ;;  %v6572_v4 = vld [vmem:[%s9373_s7 + $0x2a8] ss:$24 sps:$4 sm:$0xff]   ;;  %v6580_v5 = vld [vmem:[%s9373_s7 + $0x27c] ss:$24 sps:$4 sm:$0xff]  }
 0x2fe   :  { %v2486_v14 = vpop.f32.mrf.mxu1 }
 0x2ff   :  { %v2529_v15 = vpop.f32.mrf.mxu0  ;;  %5138 = vmatpush2.bf16.msra.mxu0 %v6587_v8  ;;  %v2487_v21 = vadd.f32 %v2486_v14, %v979_v12  ;;  %v6578_v8 = vld [vmem:[%s9373_s7 + $0x278] ss:$24 sps:$4 sm:$0xff]   ;;  %v990_v14 = vsub.s32 7, %v7277_v27 }
 0x300   :  { %v2488_v24 = vpop.f32.mrf.mxu1  ;;  %5139 = vmatprep.subr.bf16.mxu0 %v6595_v9  ;;  %v6586_v9 = vld [vmem:[%s9373_s7 + $0x24c] ss:$24 sps:$4 sm:$0xff]  }
 0x301   :  { %v2489_v26 = vadd.f32 %v2488_v24, %v983_v11  ;;  %v2531_v25 = vpop.f32.mrf.mxu0  ;;  %v2530_v37 = vadd.f32 %v2529_v15, %v2487_v21  ;;  %v986_v15 = vsub.s32 6, %v7277_v27  ;;  %v6598_v24 = vld [vmem:[%s9373_s7 + $0x1ec] ss:$24 sps:$4 sm:$0xff]  }
 0x302   :  { %v2490_v30 = vpop.f32.mrf.mxu1 }
 0x303   :  { %v2491_v31 = vadd.f32 %v2490_v30, %v979_v12  ;;  %v2533_v32 = vpop.f32.mrf.mxu0  ;;  %5140 = vmatpush2.bf16.msra.mxu0 %v6593_v19  ;;  %v2532_v35 = vadd.f32 %v2531_v25, %v2489_v26  ;;  %v2628_v44 = vmax.f32 %v2530_v37, 0.0  ;;  %v6592_v12 = vld [vmem:[%s9373_s7 + $0x21c] ss:$24 sps:$4 sm:$0xff]   ;;  %v6590_v19 = vld [vmem:[%s9373_s7 + $0x218] ss:$24 sps:$4 sm:$0xff]   ;;  %v987_v26 = vrot.slane %v8093_v10, %v986_v15 }
 0x304   :  { %v2492_v22 = vpop.f32.mrf.mxu1  ;;  %5141 = vmatprep.subr.bf16.mxu0 %v6601_v20  ;;  %v991_v20 = vrot.slane %v8093_v10, %v990_v14  ;;  %v6596_v30 = vld [vmem:[%s9373_s7 + $0x1e8] ss:$24 sps:$4 sm:$0xff]   ;;  %v6602_v10 = vld [vmem:[%s9373_s7 + $0x1b8] ss:$24 sps:$4 sm:$0xff]   ;;  %v6643_v15 = vld [vmem:[%s9373_s7 + $0x36c] ss:$24 sps:$4 sm:$0xff]  }
 0x305   :  { %v2534_v36 = vadd.f32 %v2533_v32, %v2491_v31  ;;  %v2493_v16 = vadd.f32 %v2492_v22, %v983_v11  ;;  %v2535_v23 = vpop.f32.mrf.mxu0  ;;  %v2629_v41 = vmax.f32 %v2532_v35, 0.0  ;;  %v6584_v11 = vld [vmem:[%s9373_s7 + $0x248] ss:$24 sps:$4 sm:$0xff]   ;;  %v6604_v32 = vld [vmem:[%s9373_s7 + $0x1bc] ss:$24 sps:$4 sm:$0xff]  }
 0x306   :  { %v6638_v14 = vld [vmem:[%s9373_s7 + $0x698] ss:$24 sps:$4 sm:$0xff]  }
 0x307   :  { %v2536_v38 = vadd.f32 %v2535_v23, %v2493_v16  ;;  %5142 = vmatpush2.bf16.msra.mxu0 %v6599_v33  ;;  %v2636_v40 = vmax.f32 %v2534_v36, 0.0  ;;  %v6610_v23 = vld [vmem:[%s9373_s7 + $0x18c] ss:$24 sps:$4 sm:$0xff]  }
 0x308   :  { %5143 = vmatprep.subr.bf16.mxu0 %v6607_v34 }
 0x309   :  { %v2637_v42 = vmax.f32 %v2536_v38, 0.0  ;;  %v8523_v48 = vpack.c.bf16 %v2636_v40, %v2628_v44  ;;  %v6608_v44 = vld [vmem:[%s9373_s7 + $0x188] ss:$24 sps:$4 sm:$0xff]  }
 0x30b   :  { %v8518_v45 = vpack.c.bf16 %v2637_v42, %v2629_v41  ;;  %5144 = vmatpush2.bf16.msra.mxu0 %v6605_v39 }
 0x30c   :  { %5199 = vmatprep.subr.bf16.mxu0 %v6613_v17 }
 0x30d   :  { %5102 = vmatprep.mubr.bf16.mxu1 %v8518_v45 }
 0x30e   :  { %5103 = vmatmul.mubr.bf16.vlgmr.msra.gmra.mxu1 %v8523_v48 }
 0x30f   :  { %5157 = vmatpush1.bf16.msra.mxu1 %v6518_v46  ;;  %5188 = vmatprep.mubr.bf16.mxu1 %v8161_v47 }
 0x310   :  { %5158 = vmatprep.subr.bf16.mxu1 %v6526_v49  ;;  %v6616_v49 = vld [vmem:[%s9373_s7 + $0x75c] ss:$24 sps:$4 sm:$0xff]  }
 0x313   :  { %5159 = vmatpush1.bf16.msra.mxu1 %v6524_v50 }
 0x314   :  { %5160 = vmatprep.subr.bf16.mxu1 %v6532_v51 }
 0x317   :  { %5161 = vmatpush1.bf16.msra.mxu1 %v6530_v52 }
 0x318   :  { %5162 = vmatprep.subr.bf16.mxu1 %v6538_v55 }
 0x31b   :  { %5163 = vmatpush1.bf16.msra.mxu1 %v6536_v56  ;;  %v6611_v56 = vld [vmem:[%s9373_s7 + $0x458] ss:$24 sps:$4 sm:$0xff]  }
 0x31c   :  { %5164 = vmatprep.subr.bf16.mxu1 %v6544_v57  ;;  %v6614_v57 = vld [vmem:[%s9373_s7 + $0x758] ss:$24 sps:$4 sm:$0xff]  }
 0x31f   :  { %5165 = vmatpush1.bf16.msra.mxu1 %v6542_v58 }
 0x320   :  { %5166 = vmatprep.subr.bf16.mxu1 %v6550_v59  ;;  %v6619_v59 = vld [vmem:[%s9373_s7 + $0x42c] ss:$24 sps:$4 sm:$0xff]  }
 0x323   :  { %5167 = vmatpush1.bf16.msra.mxu1 %v6548_v60  ;;  %v6622_v60 = vld [vmem:[%s9373_s7 + $0x72c] ss:$24 sps:$4 sm:$0xff]  }
 0x324   :  { %5168 = vmatprep.subr.bf16.mxu1 %v6556_v61  ;;  %v6617_v61 = vld [vmem:[%s9373_s7 + $0x428] ss:$24 sps:$4 sm:$0xff]  }
 0x327   :  { %5169 = vmatpush1.bf16.msra.mxu1 %v6554_v62  ;;  %v6620_v62 = vld [vmem:[%s9373_s7 + $0x728] ss:$24 sps:$4 sm:$0xff]  }
 0x328   :  { %5170 = vmatprep.subr.bf16.mxu1 %v6562_v63  ;;  %v6625_v63 = vld [vmem:[%s9373_s7 + $0x3fc] ss:$24 sps:$4 sm:$0xff]  }
 0x32b   :  { %5171 = vmatpush1.bf16.msra.mxu1 %v6560_v0  ;;  %v6628_v0 = vld [vmem:[%s9373_s7 + $0x6fc] ss:$24 sps:$4 sm:$0xff]  }
 0x32c   :  { %5172 = vmatprep.subr.bf16.mxu1 %v6568_v1  ;;  %v6623_v1 = vld [vmem:[%s9373_s7 + $0x3f8] ss:$24 sps:$4 sm:$0xff]  }
 0x32f   :  { %5173 = vmatpush2.bf16.msra.mxu1 %v6566_v2  ;;  %v6626_v2 = vld [vmem:[%s9373_s7 + $0x6f8] ss:$24 sps:$4 sm:$0xff]  }
 0x330   :  { %5174 = vmatprep.subr.bf16.mxu1 %v6574_v3  ;;  %v6631_v3 = vld [vmem:[%s9373_s7 + $0x3cc] ss:$24 sps:$4 sm:$0xff]  }
 0x333   :  { %5175 = vmatpush2.bf16.msra.mxu1 %v6572_v4  ;;  %v6634_v4 = vld [vmem:[%s9373_s7 + $0x6cc] ss:$24 sps:$4 sm:$0xff]  }
 0x334   :  { %5176 = vmatprep.subr.bf16.mxu1 %v6580_v5  ;;  %v6629_v5 = vld [vmem:[%s9373_s7 + $0x3c8] ss:$24 sps:$4 sm:$0xff]  }
 0x337   :  { %5177 = vmatpush2.bf16.msra.mxu1 %v6578_v8  ;;  %v6632_v8 = vld [vmem:[%s9373_s7 + $0x6c8] ss:$24 sps:$4 sm:$0xff]  }
 0x338   :  { %5178 = vmatprep.subr.bf16.mxu1 %v6586_v9  ;;  %v6637_v9 = vld [vmem:[%s9373_s7 + $0x39c] ss:$24 sps:$4 sm:$0xff]  }
 0x33b   :  { %5179 = vmatpush2.bf16.msra.mxu1 %v6584_v11  ;;  %v6640_v11 = vld [vmem:[%s9373_s7 + $0x69c] ss:$24 sps:$4 sm:$0xff]  }
 0x33c   :  { %5180 = vmatprep.subr.bf16.mxu1 %v6592_v12  ;;  %v6635_v12 = vld [vmem:[%s9373_s7 + $0x398] ss:$24 sps:$4 sm:$0xff]  }
 0x33e   :  { %v2572_v25 = vpop.f32.mrf.mxu1 }
 0x33f   :  { %v2615_v21 = vpop.f32.mrf.mxu0  ;;  %5181 = vmatpush2.bf16.msra.mxu1 %v6590_v19  ;;  %v2573_v34 = vadd.f32 %v2572_v25, %v987_v26  ;;  %v6646_v19 = vld [vmem:[%s9373_s7 + $0x66c] ss:$24 sps:$4 sm:$0xff]   ;;  %v6652_v25 = vld [vmem:[%s9373_s7 + $0x63c] ss:$24 sps:$4 sm:$0xff]  }
 0x340   :  { %v2574_v31 = vpop.f32.mrf.mxu1  ;;  %5182 = vmatprep.subr.bf16.mxu1 %v6598_v24  ;;  %v6641_v24 = vld [vmem:[%s9373_s7 + $0x368] ss:$24 sps:$4 sm:$0xff]  }
 0x341   :  { %v2575_v33 = vadd.f32 %v2574_v31, %v991_v20  ;;  %v2617_v22 = vpop.f32.mrf.mxu0  ;;  %v2616_v17 = vadd.f32 %v2615_v21, %v2573_v34  ;;  %v6647_v21 = vld [vmem:[%s9373_s7 + $0x338] ss:$24 sps:$4 sm:$0xff]   ;;  %v6655_v31 = vld [vmem:[%s9373_s7 + $0x30c] ss:$24 sps:$4 sm:$0xff]   ;;  %v6661_v34 = vld [vmem:[%s9373_s7 + $0x5dc] ss:$24 sps:$4 sm:$0xff]  }
 0x342   :  { %v2576_v35 = vpop.f32.mrf.mxu1 }
 0x343   :  { %v2577_v36 = vadd.f32 %v2576_v35, %v987_v26  ;;  %v2619_v16 = vpop.f32.mrf.mxu0  ;;  %5183 = vmatpush2.bf16.msra.mxu1 %v6596_v30  ;;  %v2618_v38 = vadd.f32 %v2617_v22, %v2575_v33  ;;  %v2630_v52 = vmax.f32 %v2616_v17, 0.0  ;;  %v6649_v26 = vld [vmem:[%s9373_s7 + $0x33c] ss:$24 sps:$4 sm:$0xff]   ;;  %v6650_v30 = vld [vmem:[%s9373_s7 + $0x638] ss:$24 sps:$4 sm:$0xff]  }
 0x344   :  { %v2578_v37 = vpop.f32.mrf.mxu1  ;;  %5184 = vmatprep.subr.bf16.mxu1 %v6604_v32  ;;  %v6658_v32 = vld [vmem:[%s9373_s7 + $0x60c] ss:$24 sps:$4 sm:$0xff]   ;;  %v6653_v33 = vld [vmem:[%s9373_s7 + $0x308] ss:$24 sps:$4 sm:$0xff]   ;;  %v6664_v35 = vld [vmem:[%s9373_s7 + $0x8dc] ss:$24 sps:$4 sm:$0xff]  }
 0x345   :  { %v2620_v39 = vadd.f32 %v2619_v16, %v2577_v36  ;;  %v2579_v40 = vadd.f32 %v2578_v37, %v991_v20  ;;  %v2621_v41 = vpop.f32.mrf.mxu0  ;;  %v2631_v50 = vmax.f32 %v2618_v38, 0.0  ;;  %v6644_v20 = vld [vmem:[%s9373_s7 + $0x668] ss:$24 sps:$4 sm:$0xff]   ;;  %v6659_v36 = vld [vmem:[%s9373_s7 + $0x5d8] ss:$24 sps:$4 sm:$0xff]  }
 0x346   :  { %v6656_v22 = vld [vmem:[%s9373_s7 + $0x608] ss:$24 sps:$4 sm:$0xff]   ;;  %v6662_v16 = vld [vmem:[%s9373_s7 + $0x8d8] ss:$24 sps:$4 sm:$0xff]   ;;  %v6670_v37 = vld [vmem:[%s9373_s7 + $0x8ac] ss:$24 sps:$4 sm:$0xff]  }
 0x347   :  { %v2622_v42 = vadd.f32 %v2621_v41, %v2579_v40  ;;  %5185 = vmatpush2.bf16.msra.mxu1 %v6602_v10  ;;  %v2638_v46 = vmax.f32 %v2620_v39, 0.0  ;;  %v6667_v10 = vld [vmem:[%s9373_s7 + $0x5ac] ss:$24 sps:$4 sm:$0xff]   ;;  %v6668_v38 = vld [vmem:[%s9373_s7 + $0x8a8] ss:$24 sps:$4 sm:$0xff]  }
 0x348   :  { %5186 = vmatprep.subr.bf16.mxu1 %v6610_v23  ;;  %v6665_v23 = vld [vmem:[%s9373_s7 + $0x5a8] ss:$24 sps:$4 sm:$0xff]   ;;  %v6673_v39 = vld [vmem:[%s9373_s7 + $0x57c] ss:$24 sps:$4 sm:$0xff]   ;;  %v6671_v17 = vld [vmem:[%s9373_s7 + $0x578] ss:$24 sps:$4 sm:$0xff]  }
 0x349   :  { %v2639_v51 = vmax.f32 %v2622_v42, 0.0  ;;  %v8633_v58 = vpack.c.bf16 %v2638_v46, %v2630_v52  ;;  %v6676_v40 = vld [vmem:[%s9373_s7 + $0x87c] ss:$24 sps:$4 sm:$0xff]   ;;  %v6674_v41 = vld [vmem:[%s9373_s7 + $0x878] ss:$24 sps:$4 sm:$0xff]  }
 0x34a   :  { %v6679_v42 = vld [vmem:[%s9373_s7 + $0x54c] ss:$24 sps:$4 sm:$0xff]   ;;  %v6677_v46 = vld [vmem:[%s9373_s7 + $0x548] ss:$24 sps:$4 sm:$0xff]   ;;  %v6683_v52 = vld [vmem:[%s9373_s7 + $0x518] ss:$24 sps:$4 sm:$0xff]  }
 0x34b   :  { %v8625_v55 = vpack.c.bf16 %v2639_v51, %v2631_v50  ;;  %5187 = vmatpush2.bf16.msra.mxu1 %v6608_v44  ;;  %v6682_v44 = vld [vmem:[%s9373_s7 + $0x84c] ss:$24 sps:$4 sm:$0xff]   ;;  %v6685_v50 = vld [vmem:[%s9373_s7 + $0x51c] ss:$24 sps:$4 sm:$0xff]  }
 0x34c   :  { %5242 = vmatprep.subr.bf16.mxu1 %v6616_v49  ;;  %v6680_v49 = vld [vmem:[%s9373_s7 + $0x848] ss:$24 sps:$4 sm:$0xff]   ;;  %v6688_v51 = vld [vmem:[%s9373_s7 + $0x81c] ss:$24 sps:$4 sm:$0xff]  }
 0x34d   :  { %5145 = vmatprep.mubr.bf16.mxu0 %v8625_v55 }
 0x34e   :  { %5189 = vmatmul.mubr.bf16.vlgmr.msra.gmra.mxu1 %v8308_v43  ;;  %5146 = vmatmul.mubr.bf16.vlgmr.msra.gmra.mxu0 %v8633_v58 }
 0x34f   :  { %5200 = vmatpush1.bf16.msra.mxu0 %v6611_v56  ;;  %5243 = vmatpush1.bf16.msra.mxu1 %v6614_v57  ;;  %v6686_v56 = vld [vmem:[%s9373_s7 + $0x818] ss:$24 sps:$4 sm:$0xff]   ;;  %v6691_v57 = vld [vmem:[%s9373_s7 + $0x4ec] ss:$24 sps:$4 sm:$0xff]  }
 0x350   :  { %5274 = vmatprep.mubr.bf16.mxu1 %v8518_v45  ;;  %5231 = vmatprep.mubr.bf16.mxu0 %v8336_v13 }
 0x351   :  { %5201 = vmatprep.subr.bf16.mxu0 %v6619_v59  ;;  %5244 = vmatprep.subr.bf16.mxu1 %v6622_v60  ;;  %v6694_v59 = vld [vmem:[%s9373_s7 + $0x7ec] ss:$24 sps:$4 sm:$0xff]   ;;  %v6689_v60 = vld [vmem:[%s9373_s7 + $0x4e8] ss:$24 sps:$4 sm:$0xff]  }
 0x353   :  { %5202 = vmatpush1.bf16.msra.mxu0 %v6617_v61  ;;  %5245 = vmatpush1.bf16.msra.mxu1 %v6620_v62  ;;  %v6692_v61 = vld [vmem:[%s9373_s7 + $0x7e8] ss:$24 sps:$4 sm:$0xff]   ;;  %v6697_v62 = vld [vmem:[%s9373_s7 + $0x4bc] ss:$24 sps:$4 sm:$0xff]  }
 0x354   :  { %5203 = vmatprep.subr.bf16.mxu0 %v6625_v63  ;;  %5246 = vmatprep.subr.bf16.mxu1 %v6628_v0  ;;  %v6700_v63 = vld [vmem:[%s9373_s7 + $0x7bc] ss:$24 sps:$4 sm:$0xff]   ;;  %v6695_v0 = vld [vmem:[%s9373_s7 + $0x4b8] ss:$24 sps:$4 sm:$0xff]  }
 0x357   :  { %5204 = vmatpush1.bf16.msra.mxu0 %v6623_v1  ;;  %5247 = vmatpush1.bf16.msra.mxu1 %v6626_v2  ;;  %v6698_v1 = vld [vmem:[%s9373_s7 + $0x7b8] ss:$24 sps:$4 sm:$0xff]   ;;  %v6703_v2 = vld [vmem:[%s9373_s7 + $0x48c] ss:$24 sps:$4 sm:$0xff]  }
 0x358   :  { %5205 = vmatprep.subr.bf16.mxu0 %v6631_v3  ;;  %5248 = vmatprep.subr.bf16.mxu1 %v6634_v4  ;;  %v6706_v3 = vld [vmem:[%s9373_s7 + $0x78c] ss:$24 sps:$4 sm:$0xff]   ;;  %v6701_v4 = vld [vmem:[%s9373_s7 + $0x488] ss:$24 sps:$4 sm:$0xff]  }
 0x35b   :  { %5206 = vmatpush1.bf16.msra.mxu0 %v6629_v5  ;;  %5249 = vmatpush1.bf16.msra.mxu1 %v6632_v8  ;;  %v6704_v5 = vld [vmem:[%s9373_s7 + $0x788] ss:$24 sps:$4 sm:$0xff]   ;;  %v6709_v8 = vld [vmem:[%s9373_s7 + $0xa5c] ss:$24 sps:$4 sm:$0xff]  }
 0x35c   :  { %5207 = vmatprep.subr.bf16.mxu0 %v6637_v9  ;;  %5250 = vmatprep.subr.bf16.mxu1 %v6640_v11  ;;  %v6712_v9 = vld [vmem:[%s9373_s7 + $0x164] ss:$24 sps:$4 sm:$0xff]   ;;  %v6707_v11 = vld [vmem:[%s9373_s7 + $0xa58] ss:$24 sps:$4 sm:$0xff]  }
 0x35f   :  { %5208 = vmatpush1.bf16.msra.mxu0 %v6635_v12  ;;  %5251 = vmatpush1.bf16.msra.mxu1 %v6638_v14  ;;  %v6710_v12 = vld [vmem:[%s9373_s7 + $0x160] ss:$24 sps:$4 sm:$0xff]   ;;  %v6715_v14 = vld [vmem:[%s9373_s7 + $0xa2c] ss:$24 sps:$4 sm:$0xff]  }
 0x360   :  { %5209 = vmatprep.subr.bf16.mxu0 %v6643_v15  ;;  %5252 = vmatprep.subr.bf16.mxu1 %v6646_v19  ;;  %v6718_v15 = vld [vmem:[%s9373_s7 + $0x134] ss:$24 sps:$4 sm:$0xff]   ;;  %v6713_v19 = vld [vmem:[%s9373_s7 + $0xa28] ss:$24 sps:$4 sm:$0xff]  }
 0x363   :  { %5210 = vmatpush1.bf16.msra.mxu0 %v6641_v24  ;;  %5253 = vmatpush1.bf16.msra.mxu1 %v6644_v20  ;;  %v6716_v24 = vld [vmem:[%s9373_s7 + $0x130] ss:$24 sps:$4 sm:$0xff]   ;;  %v6721_v20 = vld [vmem:[%s9373_s7 + $0x9fc] ss:$24 sps:$4 sm:$0xff]  }
 0x364   :  { %5211 = vmatprep.subr.bf16.mxu0 %v6649_v26  ;;  %5254 = vmatprep.subr.bf16.mxu1 %v6652_v25  ;;  %v6724_v26 = vld [vmem:[%s9373_s7 + $0x104] ss:$24 sps:$4 sm:$0xff]   ;;  %v6719_v25 = vld [vmem:[%s9373_s7 + $0x9f8] ss:$24 sps:$4 sm:$0xff]  }
 0x367   :  { %5212 = vmatpush1.bf16.msra.mxu0 %v6647_v21  ;;  %5255 = vmatpush1.bf16.msra.mxu1 %v6650_v30  ;;  %v6727_v21 = vld [vmem:[%s9373_s7 + $0x9cc] ss:$24 sps:$4 sm:$0xff]  }
 0x368   :  { %5213 = vmatprep.subr.bf16.mxu0 %v6655_v31  ;;  %5256 = vmatprep.subr.bf16.mxu1 %v6658_v32  ;;  %v6730_v30 = vld [vmem:[%s9373_s7 + $0xd4] ss:$24 sps:$4 sm:$0xff]   ;;  %v6725_v31 = vld [vmem:[%s9373_s7 + $0x9c8] ss:$24 sps:$4 sm:$0xff]  }
 0x369   :  { %v6728_v32 = vld [vmem:[%s9373_s7 + $0xd0] ss:$24 sps:$4 sm:$0xff]  }
 0x36b   :  { %5214 = vmatpush1.bf16.msra.mxu0 %v6653_v33  ;;  %5257 = vmatpush1.bf16.msra.mxu1 %v6656_v22  ;;  %v6733_v33 = vld [vmem:[%s9373_s7 + $0x99c] ss:$24 sps:$4 sm:$0xff]  }
 0x36c   :  { %5215 = vmatprep.subr.bf16.mxu0 %v6661_v34  ;;  %5258 = vmatprep.subr.bf16.mxu1 %v6664_v35  ;;  %v6736_v22 = vld [vmem:[%s9373_s7 + $0xa4] ss:$24 sps:$4 sm:$0xff]   ;;  %v6731_v34 = vld [vmem:[%s9373_s7 + $0x998] ss:$24 sps:$4 sm:$0xff]  }
 0x36d   :  { %v6734_v35 = vld [vmem:[%s9373_s7 + $0xa0] ss:$24 sps:$4 sm:$0xff]  }
 0x36f   :  { %5216 = vmatpush2.bf16.msra.mxu0 %v6659_v36  ;;  %5259 = vmatpush2.bf16.msra.mxu1 %v6662_v16  ;;  %v6739_v36 = vld [vmem:[%s9373_s7 + $0x96c] ss:$24 sps:$4 sm:$0xff]  }
 0x370   :  { %5217 = vmatprep.subr.bf16.mxu0 %v6667_v10  ;;  %5260 = vmatprep.subr.bf16.mxu1 %v6670_v37  ;;  %v6742_v16 = vld [vmem:[%s9373_s7 + $0x74] ss:$24 sps:$4 sm:$0xff]   ;;  %v6737_v10 = vld [vmem:[%s9373_s7 + $0x968] ss:$24 sps:$4 sm:$0xff]  }
 0x371   :  { %v6740_v37 = vld [vmem:[%s9373_s7 + $0x70] ss:$24 sps:$4 sm:$0xff]  }
 0x373   :  { %5218 = vmatpush2.bf16.msra.mxu0 %v6665_v23  ;;  %5261 = vmatpush2.bf16.msra.mxu1 %v6668_v38  ;;  %v6745_v23 = vld [vmem:[%s9373_s7 + $0x93c] ss:$24 sps:$4 sm:$0xff]  }
 0x374   :  { %5219 = vmatprep.subr.bf16.mxu0 %v6673_v39  ;;  %5262 = vmatprep.subr.bf16.mxu1 %v6676_v40  ;;  %v6748_v38 = vld [vmem:[%s9373_s7 + $0x44] ss:$24 sps:$4 sm:$0xff]   ;;  %v6743_v39 = vld [vmem:[%s9373_s7 + $0x938] ss:$24 sps:$4 sm:$0xff]  }
 0x375   :  { %v6746_v40 = vld [vmem:[%s9373_s7 + $0x40] ss:$24 sps:$4 sm:$0xff]  }
 0x377   :  { %5220 = vmatpush2.bf16.msra.mxu0 %v6671_v17  ;;  %5263 = vmatpush2.bf16.msra.mxu1 %v6674_v41  ;;  %v6751_v17 = vld [vmem:[%s9373_s7 + $0x90c] ss:$24 sps:$4 sm:$0xff]  }
 0x378   :  { %5221 = vmatprep.subr.bf16.mxu0 %v6679_v42  ;;  %5264 = vmatprep.subr.bf16.mxu1 %v6682_v44  ;;  %v6754_v41 = vld [vmem:[%s9373_s7 + $0x14] ss:$24 sps:$4 sm:$0xff]   ;;  %v6749_v42 = vld [vmem:[%s9373_s7 + $0x908] ss:$24 sps:$4 sm:$0xff]  }
 0x379   :  { %v6752_v44 = vld [vmem:[%s9373_s7 + $0x10] ss:$24 sps:$4 sm:$0xff]  }
 0x37b   :  { %5222 = vmatpush2.bf16.msra.mxu0 %v6677_v46  ;;  %5265 = vmatpush2.bf16.msra.mxu1 %v6680_v49  ;;  %v6757_v46 = vld [vmem:[%s9373_s7 + $0xbdc] ss:$24 sps:$4 sm:$0xff]  }
 0x37c   :  { %5223 = vmatprep.subr.bf16.mxu0 %v6685_v50  ;;  %5266 = vmatprep.subr.bf16.mxu1 %v6688_v51  ;;  %v6760_v49 = vld [vmem:[%s9373_s7 + $0x2e4] ss:$24 sps:$4 sm:$0xff]   ;;  %v6755_v50 = vld [vmem:[%s9373_s7 + $0xbd8] ss:$24 sps:$4 sm:$0xff]  }
 0x37d   :  { %v6758_v51 = vld [vmem:[%s9373_s7 + $0x2e0] ss:$24 sps:$4 sm:$0xff]  }
 0x37f   :  { %5224 = vmatpush2.bf16.msra.mxu0 %v6683_v52  ;;  %5267 = vmatpush2.bf16.msra.mxu1 %v6686_v56  ;;  %v6763_v52 = vld [vmem:[%s9373_s7 + $0xbac] ss:$24 sps:$4 sm:$0xff]  }
 0x380   :  { %5225 = vmatprep.subr.bf16.mxu0 %v6691_v57  ;;  %5268 = vmatprep.subr.bf16.mxu1 %v6694_v59  ;;  %v6766_v56 = vld [vmem:[%s9373_s7 + $0x2b4] ss:$24 sps:$4 sm:$0xff]   ;;  %v6761_v57 = vld [vmem:[%s9373_s7 + $0xba8] ss:$24 sps:$4 sm:$0xff]  }
 0x381   :  { %v6764_v59 = vld [vmem:[%s9373_s7 + $0x2b0] ss:$24 sps:$4 sm:$0xff]  }
 0x383   :  { %5226 = vmatpush2.bf16.msra.mxu0 %v6689_v60  ;;  %5269 = vmatpush2.bf16.msra.mxu1 %v6692_v61  ;;  %v6769_v60 = vld [vmem:[%s9373_s7 + $0xb7c] ss:$24 sps:$4 sm:$0xff]  }
 0x384   :  { %5227 = vmatprep.subr.bf16.mxu0 %v6697_v62  ;;  %5270 = vmatprep.subr.bf16.mxu1 %v6700_v63  ;;  %v6772_v61 = vld [vmem:[%s9373_s7 + $0x284] ss:$24 sps:$4 sm:$0xff]   ;;  %v6767_v62 = vld [vmem:[%s9373_s7 + $0xb78] ss:$24 sps:$4 sm:$0xff]  }
 0x385   :  { %v6770_v63 = vld [vmem:[%s9373_s7 + $0x280] ss:$24 sps:$4 sm:$0xff]  }
 0x387   :  { %5228 = vmatpush2.bf16.msra.mxu0 %v6695_v0  ;;  %5271 = vmatpush2.bf16.msra.mxu1 %v6698_v1  ;;  %v6775_v0 = vld [vmem:[%s9373_s7 + $0xb4c] ss:$24 sps:$4 sm:$0xff]  }
 0x388   :  { %5229 = vmatprep.subr.bf16.mxu0 %v6703_v2  ;;  %5272 = vmatprep.subr.bf16.mxu1 %v6706_v3  ;;  %v6778_v1 = vld [vmem:[%s9373_s7 + $0x254] ss:$24 sps:$4 sm:$0xff]   ;;  %v6773_v2 = vld [vmem:[%s9373_s7 + $0xb48] ss:$24 sps:$4 sm:$0xff]  }
 0x389   :  { %v6776_v3 = vld [vmem:[%s9373_s7 + $0x250] ss:$24 sps:$4 sm:$0xff]  }
 0x38b   :  { %5230 = vmatpush2.bf16.msra.mxu0 %v6701_v4  ;;  %5273 = vmatpush2.bf16.msra.mxu1 %v6704_v5  ;;  %v6781_v4 = vld [vmem:[%s9373_s7 + $0xb1c] ss:$24 sps:$4 sm:$0xff]  }
 0x38c   :  { %5285 = vmatprep.subr.bf16.mxu0 %v6709_v8  ;;  %5328 = vmatprep.subr.bf16.mxu1 %v6712_v9  ;;  %v6784_v5 = vld [vmem:[%s9373_s7 + $0x224] ss:$24 sps:$4 sm:$0xff]   ;;  %v6779_v8 = vld [vmem:[%s9373_s7 + $0xb18] ss:$24 sps:$4 sm:$0xff]  }
 0x38d   :  { %v6782_v9 = vld [vmem:[%s9373_s7 + $0x220] ss:$24 sps:$4 sm:$0xff]  }
 0x38e   :  { %5232 = vmatmul.mubr.bf16.vlgmr.msra.gmra.mxu0 %v8344_v18  ;;  %5275 = vmatmul.mubr.bf16.vlgmr.msra.gmra.mxu1 %v8523_v48 }
 0x38f   :  { %5286 = vmatpush1.bf16.msra.mxu0 %v6707_v11  ;;  %5317 = vmatprep.mubr.bf16.mxu0 %v8625_v55  ;;  %v6787_v11 = vld [vmem:[%s9373_s7 + $0xaec] ss:$24 sps:$4 sm:$0xff]  }
 0x390   :  { %5329 = vmatpush1.bf16.msra.mxu1 %v6710_v12  ;;  %5360 = vmatprep.mubr.bf16.mxu1 %v8161_v47  ;;  %v6722_v47 = vld [vmem:[%s9373_s7 + $0x100] ss:$24 sps:$4 sm:$0xff]   ;;  %v6790_v12 = vld [vmem:[%s9373_s7 + $0x1f4] ss:$24 sps:$4 sm:$0xff]  }
 0x391   :  { %5287 = vmatprep.subr.bf16.mxu0 %v6715_v14  ;;  %5330 = vmatprep.subr.bf16.mxu1 %v6718_v15  ;;  %v6785_v14 = vld [vmem:[%s9373_s7 + $0xae8] ss:$24 sps:$4 sm:$0xff]  }
 0x392   :  { %v6788_v15 = vld [vmem:[%s9373_s7 + $0x1f0] ss:$24 sps:$4 sm:$0xff]  }
 0x393   :  { %5288 = vmatpush1.bf16.msra.mxu0 %v6713_v19  ;;  %v6793_v19 = vld [vmem:[%s9373_s7 + $0xabc] ss:$24 sps:$4 sm:$0xff]  }
 0x394   :  { %5331 = vmatpush1.bf16.msra.mxu1 %v6716_v24  ;;  %5289 = vmatprep.subr.bf16.mxu0 %v6721_v20  ;;  %v6796_v24 = vld [vmem:[%s9373_s7 + $0x1c4] ss:$24 sps:$4 sm:$0xff]   ;;  %v6791_v20 = vld [vmem:[%s9373_s7 + $0xab8] ss:$24 sps:$4 sm:$0xff]  }
 0x395   :  { %5332 = vmatprep.subr.bf16.mxu1 %v6724_v26  ;;  %v6794_v26 = vld [vmem:[%s9373_s7 + $0x1c0] ss:$24 sps:$4 sm:$0xff]  }
 0x397   :  { %5290 = vmatpush1.bf16.msra.mxu0 %v6719_v25  ;;  %v6799_v25 = vld [vmem:[%s9373_s7 + $0xa8c] ss:$24 sps:$4 sm:$0xff]  }
 0x398   :  { %5333 = vmatpush1.bf16.msra.mxu1 %v6722_v47  ;;  %5291 = vmatprep.subr.bf16.mxu0 %v6727_v21  ;;  %v6802_v47 = vld [vmem:[%s9373_s7 + $0x194] ss:$24 sps:$4 sm:$0xff]   ;;  %v6797_v21 = vld [vmem:[%s9373_s7 + $0xa88] ss:$24 sps:$4 sm:$0xff]  }
 0x399   :  { %5334 = vmatprep.subr.bf16.mxu1 %v6730_v30  ;;  %v6800_v30 = vld [vmem:[%s9373_s7 + $0x190] ss:$24 sps:$4 sm:$0xff]  }
 0x39b   :  { %5292 = vmatpush1.bf16.msra.mxu0 %v6725_v31  ;;  %v6805_v31 = vld [vmem:[%s9373_s7 + $0x464] ss:$24 sps:$4 sm:$0xff]  }
 0x39c   :  { %5335 = vmatpush1.bf16.msra.mxu1 %v6728_v32  ;;  %5293 = vmatprep.subr.bf16.mxu0 %v6733_v33  ;;  %v6808_v32 = vld [vmem:[%s9373_s7 + $0x764] ss:$24 sps:$4 sm:$0xff]   ;;  %v6803_v33 = vld [vmem:[%s9373_s7 + $0x460] ss:$24 sps:$4 sm:$0xff]  }
 0x39d   :  { %5336 = vmatprep.subr.bf16.mxu1 %v6736_v22  ;;  %v6806_v22 = vld [vmem:[%s9373_s7 + $0x760] ss:$24 sps:$4 sm:$0xff]  }
 0x39f   :  { %5294 = vmatpush1.bf16.msra.mxu0 %v6731_v34  ;;  %v6811_v34 = vld [vmem:[%s9373_s7 + $0x434] ss:$24 sps:$4 sm:$0xff]  }
 0x3a0   :  { %5337 = vmatpush1.bf16.msra.mxu1 %v6734_v35  ;;  %5295 = vmatprep.subr.bf16.mxu0 %v6739_v36  ;;  %v6814_v35 = vld [vmem:[%s9373_s7 + $0x734] ss:$24 sps:$4 sm:$0xff]   ;;  %v6809_v36 = vld [vmem:[%s9373_s7 + $0x430] ss:$24 sps:$4 sm:$0xff]  }
 0x3a1   :  { %5338 = vmatprep.subr.bf16.mxu1 %v6742_v16  ;;  %v6812_v16 = vld [vmem:[%s9373_s7 + $0x730] ss:$24 sps:$4 sm:$0xff]  }
 0x3a3   :  { %5296 = vmatpush1.bf16.msra.mxu0 %v6737_v10  ;;  %v6817_v10 = vld [vmem:[%s9373_s7 + $0x404] ss:$24 sps:$4 sm:$0xff]  }
 0x3a4   :  { %5339 = vmatpush1.bf16.msra.mxu1 %v6740_v37  ;;  %5297 = vmatprep.subr.bf16.mxu0 %v6745_v23  ;;  %v6818_v37 = vld [vmem:[%s9373_s7 + $0x700] ss:$24 sps:$4 sm:$0xff]   ;;  %v6826_v23 = vld [vmem:[%s9373_s7 + $0x6d4] ss:$24 sps:$4 sm:$0xff]  }
 0x3a5   :  { %5340 = vmatprep.subr.bf16.mxu1 %v6748_v38  ;;  %v6821_v38 = vld [vmem:[%s9373_s7 + $0x3d0] ss:$24 sps:$4 sm:$0xff]  }
 0x3a7   :  { %5298 = vmatpush1.bf16.msra.mxu0 %v6743_v39  ;;  %v6824_v39 = vld [vmem:[%s9373_s7 + $0x6d0] ss:$24 sps:$4 sm:$0xff]  }
 0x3a8   :  { %5341 = vmatpush1.bf16.msra.mxu1 %v6746_v40  ;;  %5299 = vmatprep.subr.bf16.mxu0 %v6751_v17  ;;  %v6829_v40 = vld [vmem:[%s9373_s7 + $0x3a4] ss:$24 sps:$4 sm:$0xff]  }
 0x3a9   :  { %5342 = vmatprep.subr.bf16.mxu1 %v6754_v41  ;;  %v6832_v17 = vld [vmem:[%s9373_s7 + $0x6a4] ss:$24 sps:$4 sm:$0xff]   ;;  %v6827_v41 = vld [vmem:[%s9373_s7 + $0x3a0] ss:$24 sps:$4 sm:$0xff]  }
 0x3ab   :  { %5300 = vmatpush1.bf16.msra.mxu0 %v6749_v42  ;;  %v6830_v42 = vld [vmem:[%s9373_s7 + $0x6a0] ss:$24 sps:$4 sm:$0xff]  }
 0x3ac   :  { %5343 = vmatpush1.bf16.msra.mxu1 %v6752_v44  ;;  %5301 = vmatprep.subr.bf16.mxu0 %v6757_v46  ;;  %v6835_v44 = vld [vmem:[%s9373_s7 + $0x374] ss:$24 sps:$4 sm:$0xff]  }
 0x3ad   :  { %5344 = vmatprep.subr.bf16.mxu1 %v6760_v49  ;;  %v6838_v46 = vld [vmem:[%s9373_s7 + $0x674] ss:$24 sps:$4 sm:$0xff]   ;;  %v6833_v49 = vld [vmem:[%s9373_s7 + $0x370] ss:$24 sps:$4 sm:$0xff]  }
 0x3af   :  { %5302 = vmatpush2.bf16.msra.mxu0 %v6755_v50  ;;  %v6836_v50 = vld [vmem:[%s9373_s7 + $0x670] ss:$24 sps:$4 sm:$0xff]  }
 0x3b0   :  { %5345 = vmatpush2.bf16.msra.mxu1 %v6758_v51  ;;  %5303 = vmatprep.subr.bf16.mxu0 %v6763_v52  ;;  %v6841_v51 = vld [vmem:[%s9373_s7 + $0x344] ss:$24 sps:$4 sm:$0xff]  }
 0x3b1   :  { %5346 = vmatprep.subr.bf16.mxu1 %v6766_v56  ;;  %v6844_v52 = vld [vmem:[%s9373_s7 + $0x644] ss:$24 sps:$4 sm:$0xff]   ;;  %v6839_v56 = vld [vmem:[%s9373_s7 + $0x340] ss:$24 sps:$4 sm:$0xff]  }
 0x3b3   :  { %5304 = vmatpush2.bf16.msra.mxu0 %v6761_v57  ;;  %v6842_v57 = vld [vmem:[%s9373_s7 + $0x640] ss:$24 sps:$4 sm:$0xff]  }
 0x3b4   :  { %5347 = vmatpush2.bf16.msra.mxu1 %v6764_v59  ;;  %5305 = vmatprep.subr.bf16.mxu0 %v6769_v60  ;;  %v6847_v59 = vld [vmem:[%s9373_s7 + $0x314] ss:$24 sps:$4 sm:$0xff]  }
 0x3b5   :  { %5348 = vmatprep.subr.bf16.mxu1 %v6772_v61  ;;  %v6850_v60 = vld [vmem:[%s9373_s7 + $0x614] ss:$24 sps:$4 sm:$0xff]   ;;  %v6845_v61 = vld [vmem:[%s9373_s7 + $0x310] ss:$24 sps:$4 sm:$0xff]  }
 0x3b7   :  { %5306 = vmatpush2.bf16.msra.mxu0 %v6767_v62  ;;  %v6848_v62 = vld [vmem:[%s9373_s7 + $0x610] ss:$24 sps:$4 sm:$0xff]  }
 0x3b8   :  { %5349 = vmatpush2.bf16.msra.mxu1 %v6770_v63  ;;  %5307 = vmatprep.subr.bf16.mxu0 %v6775_v0  ;;  %v6853_v63 = vld [vmem:[%s9373_s7 + $0x5e4] ss:$24 sps:$4 sm:$0xff]  }
 0x3b9   :  { %5350 = vmatprep.subr.bf16.mxu1 %v6778_v1  ;;  %v6856_v0 = vld [vmem:[%s9373_s7 + $0x8e4] ss:$24 sps:$4 sm:$0xff]   ;;  %v6851_v1 = vld [vmem:[%s9373_s7 + $0x5e0] ss:$24 sps:$4 sm:$0xff]  }
 0x3bb   :  { %5308 = vmatpush2.bf16.msra.mxu0 %v6773_v2  ;;  %v6854_v2 = vld [vmem:[%s9373_s7 + $0x8e0] ss:$24 sps:$4 sm:$0xff]  }
 0x3bc   :  { %5351 = vmatpush2.bf16.msra.mxu1 %v6776_v3  ;;  %5309 = vmatprep.subr.bf16.mxu0 %v6781_v4  ;;  %v6859_v3 = vld [vmem:[%s9373_s7 + $0x5b4] ss:$24 sps:$4 sm:$0xff]  }
 0x3bd   :  { %5352 = vmatprep.subr.bf16.mxu1 %v6784_v5  ;;  %v6862_v4 = vld [vmem:[%s9373_s7 + $0x8b4] ss:$24 sps:$4 sm:$0xff]   ;;  %v6857_v5 = vld [vmem:[%s9373_s7 + $0x5b0] ss:$24 sps:$4 sm:$0xff]  }
 0x3bf   :  { %5310 = vmatpush2.bf16.msra.mxu0 %v6779_v8  ;;  %v6860_v8 = vld [vmem:[%s9373_s7 + $0x8b0] ss:$24 sps:$4 sm:$0xff]  }
 0x3c0   :  { %5353 = vmatpush2.bf16.msra.mxu1 %v6782_v9  ;;  %5311 = vmatprep.subr.bf16.mxu0 %v6787_v11  ;;  %v6865_v9 = vld [vmem:[%s9373_s7 + $0x584] ss:$24 sps:$4 sm:$0xff]  }
 0x3c1   :  { %5354 = vmatprep.subr.bf16.mxu1 %v6790_v12  ;;  %v6868_v11 = vld [vmem:[%s9373_s7 + $0x884] ss:$24 sps:$4 sm:$0xff]   ;;  %v6863_v12 = vld [vmem:[%s9373_s7 + $0x580] ss:$24 sps:$4 sm:$0xff]  }
 0x3c3   :  { %5312 = vmatpush2.bf16.msra.mxu0 %v6785_v14  ;;  %v6866_v14 = vld [vmem:[%s9373_s7 + $0x880] ss:$24 sps:$4 sm:$0xff]  }
 0x3c4   :  { %5355 = vmatpush2.bf16.msra.mxu1 %v6788_v15  ;;  %5313 = vmatprep.subr.bf16.mxu0 %v6793_v19  ;;  %v6871_v15 = vld [vmem:[%s9373_s7 + $0x554] ss:$24 sps:$4 sm:$0xff]  }
 0x3c5   :  { %5356 = vmatprep.subr.bf16.mxu1 %v6796_v24  ;;  %v6874_v19 = vld [vmem:[%s9373_s7 + $0x854] ss:$24 sps:$4 sm:$0xff]   ;;  %v5018_v24 = vpop.f32.mrf.mxu1 }
 0x3c7   :  { %5314 = vmatpush2.bf16.msra.mxu0 %v6791_v20  ;;  %v6869_v20 = vld [vmem:[%s9373_s7 + $0x550] ss:$24 sps:$4 sm:$0xff]  }
 0x3c8   :  { %5357 = vmatpush2.bf16.msra.mxu1 %v6794_v26  ;;  %5315 = vmatprep.subr.bf16.mxu0 %v6799_v25  ;;  %v6872_v26 = vld [vmem:[%s9373_s7 + $0x850] ss:$24 sps:$4 sm:$0xff]   ;;  %v6877_v25 = vld [vmem:[%s9373_s7 + $0x524] ss:$24 sps:$4 sm:$0xff]  }
 0x3c9   :  { %5358 = vmatprep.subr.bf16.mxu1 %v6802_v47  ;;  %v6880_v47 = vld [vmem:[%s9373_s7 + $0x824] ss:$24 sps:$4 sm:$0xff]  }
 0x3cb   :  { %5316 = vmatpush2.bf16.msra.mxu0 %v6797_v21  ;;  %v5020_v21 = vpop.f32.mrf.mxu1 }
 0x3cc   :  { %5359 = vmatpush2.bf16.msra.mxu1 %v6800_v30  ;;  %5371 = vmatprep.subr.bf16.mxu0 %v6805_v31  ;;  %v6875_v30 = vld [vmem:[%s9373_s7 + $0x520] ss:$24 sps:$4 sm:$0xff]  }
 0x3cd   :  { %5414 = vmatprep.subr.bf16.mxu1 %v6808_v32  ;;  %v6878_v31 = vld [vmem:[%s9373_s7 + $0x820] ss:$24 sps:$4 sm:$0xff]   ;;  %v6883_v32 = vld [vmem:[%s9373_s7 + $0x4f4] ss:$24 sps:$4 sm:$0xff]  }
 0x3ce   :  { %5318 = vmatmul.mubr.bf16.vlgmr.msra.gmra.mxu0 %v8633_v58 }
 0x3cf   :  { %5361 = vmatmul.mubr.bf16.vlgmr.msra.gmra.mxu1 %v8308_v43  ;;  %5372 = vmatpush1.bf16.msra.mxu0 %v6803_v33  ;;  %v6820_v43 = vld [vmem:[%s9373_s7 + $0x704] ss:$24 sps:$4 sm:$0xff]   ;;  %v6886_v33 = vld [vmem:[%s9373_s7 + $0x7f4] ss:$24 sps:$4 sm:$0xff]  }
 0x3d0   :  { %5403 = vmatprep.mubr.bf16.mxu0 %v8336_v13  ;;  %5415 = vmatpush1.bf16.msra.mxu1 %v6806_v22  ;;  %v6815_v13 = vld [vmem:[%s9373_s7 + $0x400] ss:$24 sps:$4 sm:$0xff]   ;;  %v5022_v22 = vpop.f32.mrf.mxu1 }
 0x3d1   :  { %5446 = vmatprep.mubr.bf16.mxu1 %v8518_v45  ;;  %5373 = vmatprep.subr.bf16.mxu0 %v6811_v34  ;;  %v6823_v45 = vld [vmem:[%s9373_s7 + $0x3d4] ss:$24 sps:$4 sm:$0xff]   ;;  %v6881_v34 = vld [vmem:[%s9373_s7 + $0x4f0] ss:$24 sps:$4 sm:$0xff]  }
 0x3d2   :  { %5416 = vmatprep.subr.bf16.mxu1 %v6814_v35  ;;  %v5061_v35 = vpop.f32.mrf.mxu0 }
 0x3d3   :  { %5374 = vmatpush1.bf16.msra.mxu0 %v6809_v36  ;;  %v6884_v36 = vld [vmem:[%s9373_s7 + $0x7f0] ss:$24 sps:$4 sm:$0xff]  }
 0x3d4   :  { %5417 = vmatpush1.bf16.msra.mxu1 %v6812_v16  ;;  %5375 = vmatprep.subr.bf16.mxu0 %v6817_v10  ;;  %v6889_v16 = vld [vmem:[%s9373_s7 + $0x4c4] ss:$24 sps:$4 sm:$0xff]  }
 0x3d5   :  { %5418 = vmatprep.subr.bf16.mxu1 %v6820_v43  ;;  %v6892_v10 = vld [vmem:[%s9373_s7 + $0x7c4] ss:$24 sps:$4 sm:$0xff]  }
 0x3d6   :  { %v9197_v43 = vld [vmem:[%s9375_s8] sm:$0x3f] }
 0x3d7   :  { %5376 = vmatpush1.bf16.msra.mxu0 %v6815_v13  ;;  %v5024_v13 = vpop.f32.mrf.mxu1 }
 0x3d8   :  { %5419 = vmatpush1.bf16.msra.mxu1 %v6818_v37  ;;  %5377 = vmatprep.subr.bf16.mxu0 %v6823_v45  ;;  %v6887_v37 = vld [vmem:[%s9373_s7 + $0x4c0] ss:$24 sps:$4 sm:$0xff]   ;;  %v5063_v45 = vpop.f32.mrf.mxu0 }
 0x3d9   :  { %5420 = vmatprep.subr.bf16.mxu1 %v6826_v23  ;;  %v5104_v23 = vpop.f32.mrf.mxu1 }
 0x3db   :  { %5378 = vmatpush1.bf16.msra.mxu0 %v6821_v38  ;;  %v6890_v38 = vld [vmem:[%s9373_s7 + $0x7c0] ss:$24 sps:$4 sm:$0xff]  }
 0x3dc   :  { %5421 = vmatpush1.bf16.msra.mxu1 %v6824_v39  ;;  %5379 = vmatprep.subr.bf16.mxu0 %v6829_v40  ;;  %v6895_v39 = vld [vmem:[%s9373_s7 + $0x494] ss:$24 sps:$4 sm:$0xff]   ;;  %v3037_v40 = vrot.slane %v9197_v43, %v7283_v29  ;;  %v6896_v29 = vld [vmem:[%s9373_s7 + $0x790] ss:$24 sps:$4 sm:$0xff]  }
 0x3dd   :  { %5422 = vmatprep.subr.bf16.mxu1 %v6832_v17  ;;  %v6898_v17 = vld [vmem:[%s9373_s7 + $0x794] ss:$24 sps:$4 sm:$0xff]  }
 0x3df   :  { %5380 = vmatpush1.bf16.msra.mxu0 %v6827_v41  ;;  %v3041_v41 = vrot.slane %v9197_v43, %v7280_v28 }
 0x3e0   :  { %5423 = vmatpush1.bf16.msra.mxu1 %v6830_v42  ;;  %5381 = vmatprep.subr.bf16.mxu0 %v6835_v44  ;;  %v6893_v42 = vld [vmem:[%s9373_s7 + $0x490] ss:$24 sps:$4 sm:$0xff]   ;;  %v5065_v44 = vpop.f32.mrf.mxu0 }
 0x3e1   :  { %5424 = vmatprep.subr.bf16.mxu1 %v6838_v46  ;;  %v5106_v46 = vpop.f32.mrf.mxu1  ;;  %v5021_v28 = vadd.f32 %v5020_v21, %v3041_v41  ;;  %v6916_v21 = vld [vmem:[%s9373_s7 + $0x974] ss:$24 sps:$4 sm:$0xff]  }
 0x3e3   :  { %5382 = vmatpush1.bf16.msra.mxu0 %v6833_v49  ;;  %v6901_v49 = vld [vmem:[%s9373_s7 + $0xa64] ss:$24 sps:$4 sm:$0xff]  }
 0x3e4   :  { %5425 = vmatpush1.bf16.msra.mxu1 %v6836_v50  ;;  %5383 = vmatprep.subr.bf16.mxu0 %v6841_v51  ;;  %v5019_v50 = vadd.f32 %v5018_v24, %v3037_v40  ;;  %v6910_v24 = vld [vmem:[%s9373_s7 + $0x9d4] ss:$24 sps:$4 sm:$0xff]  }
 0x3e5   :  { %5426 = vmatprep.subr.bf16.mxu1 %v6844_v52  ;;  %v6899_v52 = vld [vmem:[%s9373_s7 + $0xa60] ss:$24 sps:$4 sm:$0xff]  }
 0x3e6   :  { %v5062_v51 = vadd.f32 %v5061_v35, %v5019_v50  ;;  %v6944_v50 = vld [vmem:[%s9373_s7 + $0xa90] ss:$24 sps:$4 sm:$0xff]  }
 0x3e7   :  { %5384 = vmatpush1.bf16.msra.mxu0 %v6839_v56  ;;  %v5067_v56 = vpop.f32.mrf.mxu0 }
 0x3e8   :  { %5427 = vmatpush1.bf16.msra.mxu1 %v6842_v57  ;;  %5385 = vmatprep.subr.bf16.mxu0 %v6847_v59  ;;  %v5108_v57 = vpop.f32.mrf.mxu1  ;;  %v6904_v59 = vld [vmem:[%s9373_s7 + $0xa34] ss:$24 sps:$4 sm:$0xff]  }
 0x3e9   :  { %5428 = vmatprep.subr.bf16.mxu1 %v6850_v60  ;;  %v5023_v60 = vadd.f32 %v5022_v22, %v3037_v40  ;;  %v6932_v40 = vld [vmem:[%s9373_s7 + $0xb50] ss:$24 sps:$4 sm:$0xff]  }
 0x3eb   :  { %5386 = vmatpush1.bf16.msra.mxu0 %v6845_v61  ;;  %v5064_v61 = vadd.f32 %v5063_v45, %v5021_v28  ;;  %v6926_v45 = vld [vmem:[%s9373_s7 + $0xbb0] ss:$24 sps:$4 sm:$0xff]  }
 0x3ec   :  { %5429 = vmatpush1.bf16.msra.mxu1 %v6848_v62  ;;  %5387 = vmatprep.subr.bf16.mxu0 %v6853_v63  ;;  %v5105_v62 = vadd.f32 %v5104_v23, %v5062_v51  ;;  %v5025_v63 = vadd.f32 %v5024_v13, %v3041_v41  ;;  %v6923_v13 = vld [vmem:[%s9373_s7 + $0xbe0] ss:$24 sps:$4 sm:$0xff]   ;;  %v6931_v23 = vld [vmem:[%s9373_s7 + $0xb84] ss:$24 sps:$4 sm:$0xff]  }
 0x3ed   :  { %5430 = vmatprep.subr.bf16.mxu1 %v6856_v0  ;;  %v6935_v41 = vld [vmem:[%s9373_s7 + $0xb20] ss:$24 sps:$4 sm:$0xff]  }
 0x3ef   :  { %5388 = vmatpush2.bf16.msra.mxu0 %v6851_v1  ;;  %v5066_v1 = vadd.f32 %v5065_v44, %v5023_v60  ;;  %v6938_v44 = vld [vmem:[%s9373_s7 + $0xaf0] ss:$24 sps:$4 sm:$0xff]  }
 0x3f0   :  { %5431 = vmatpush2.bf16.msra.mxu1 %v6854_v2  ;;  %5389 = vmatprep.subr.bf16.mxu0 %v6859_v3  ;;  %v5107_v2 = vadd.f32 %v5106_v46, %v5064_v61  ;;  %v6943_v46 = vld [vmem:[%s9373_s7 + $0xac4] ss:$24 sps:$4 sm:$0xff]   ;;  %v3049_v61 = vrot.slane %v9197_v43, %v7483_v53 }
 0x3f1   :  { %5432 = vmatprep.subr.bf16.mxu1 %v6862_v4  ;;  %v6902_v4 = vld [vmem:[%s9373_s7 + $0xa30] ss:$24 sps:$4 sm:$0xff]  }
 0x3f3   :  { %5390 = vmatpush2.bf16.msra.mxu0 %v6857_v5  ;;  %v5110_v5 = vpop.f32.mrf.mxu1 }
 0x3f4   :  { %5433 = vmatpush2.bf16.msra.mxu1 %v6860_v8  ;;  %5391 = vmatprep.subr.bf16.mxu0 %v6865_v9  ;;  %v5068_v9 = vadd.f32 %v5067_v56, %v5025_v63 }
 0x3f5   :  { %5434 = vmatprep.subr.bf16.mxu1 %v6868_v11  ;;  %v5109_v11 = vadd.f32 %v5108_v57, %v5066_v1  ;;  %v3045_v57 = vrot.slane %v9197_v43, %v7486_v54 }
 0x3f7   :  { %5392 = vmatpush2.bf16.msra.mxu0 %v6863_v12 }
 0x3f8   :  { %5435 = vmatpush2.bf16.msra.mxu1 %v6866_v14  ;;  %5393 = vmatprep.subr.bf16.mxu0 %v6871_v15  ;;  %v5111_v14 = vadd.f32 %v5110_v5, %v5068_v9 }
 0x3f9   :  { %5436 = vmatprep.subr.bf16.mxu1 %v6874_v19  ;;  %v6905_v19 = vld [vmem:[%s9373_s7 + $0xa00] ss:$24 sps:$4 sm:$0xff]  }
 0x3fb   :  { %5394 = vmatpush2.bf16.msra.mxu0 %v6869_v20 }
 0x3fc   :  { %5437 = vmatpush2.bf16.msra.mxu1 %v6872_v26  ;;  %5395 = vmatprep.subr.bf16.mxu0 %v6877_v25  ;;  %v6908_v26 = vld [vmem:[%s9373_s7 + $0x9d0] ss:$24 sps:$4 sm:$0xff]   ;;  %v6913_v25 = vld [vmem:[%s9373_s7 + $0x9a4] ss:$24 sps:$4 sm:$0xff]  }
 0x3fd   :  { %5438 = vmatprep.subr.bf16.mxu1 %v6880_v47  ;;  %v6911_v47 = vld [vmem:[%s9373_s7 + $0x9a0] ss:$24 sps:$4 sm:$0xff]  }
 0x3ff   :  { %5396 = vmatpush2.bf16.msra.mxu0 %v6875_v30 }
 0x400   :  { %5439 = vmatpush2.bf16.msra.mxu1 %v6878_v31  ;;  %5397 = vmatprep.subr.bf16.mxu0 %v6883_v32  ;;  %v6914_v31 = vld [vmem:[%s9373_s7 + $0x970] ss:$24 sps:$4 sm:$0xff]  }
 0x401   :  { %5440 = vmatprep.subr.bf16.mxu1 %v6886_v33  ;;  %v6919_v33 = vld [vmem:[%s9373_s7 + $0x944] ss:$24 sps:$4 sm:$0xff]  }
 0x403   :  { %5398 = vmatpush2.bf16.msra.mxu0 %v6881_v34  ;;  %v6917_v34 = vld [vmem:[%s9373_s7 + $0x940] ss:$24 sps:$4 sm:$0xff]  }
 0x404   :  { %5441 = vmatpush2.bf16.msra.mxu1 %v6884_v36  ;;  %5399 = vmatprep.subr.bf16.mxu0 %v6889_v16  ;;  %v6922_v36 = vld [vmem:[%s9373_s7 + $0x914] ss:$24 sps:$4 sm:$0xff]   ;;  %v6920_v16 = vld [vmem:[%s9373_s7 + $0x910] ss:$24 sps:$4 sm:$0xff]  }
 0x405   :  { %5442 = vmatprep.subr.bf16.mxu1 %v6892_v10  ;;  %v6925_v10 = vld [vmem:[%s9373_s7 + $0xbe4] ss:$24 sps:$4 sm:$0xff]  }
 0x407   :  { %5400 = vmatpush2.bf16.msra.mxu0 %v6887_v37  ;;  %v6928_v37 = vld [vmem:[%s9373_s7 + $0xbb4] ss:$24 sps:$4 sm:$0xff]  }
 0x408   :  { %5443 = vmatpush2.bf16.msra.mxu1 %v6890_v38  ;;  %5401 = vmatprep.subr.bf16.mxu0 %v6895_v39  ;;  %v6929_v38 = vld [vmem:[%s9373_s7 + $0xb80] ss:$24 sps:$4 sm:$0xff]   ;;  %v6934_v39 = vld [vmem:[%s9373_s7 + $0xb54] ss:$24 sps:$4 sm:$0xff]  }
 0x409   :  { %5444 = vmatprep.subr.bf16.mxu1 %v6898_v17  ;;  %v6937_v17 = vld [vmem:[%s9373_s7 + $0xb24] ss:$24 sps:$4 sm:$0xff]  }
 0x40b   :  { %5402 = vmatpush2.bf16.msra.mxu0 %v6893_v42  ;;  %v6940_v42 = vld [vmem:[%s9373_s7 + $0xaf4] ss:$24 sps:$4 sm:$0xff]  }
 0x40c   :  { %5445 = vmatpush2.bf16.msra.mxu1 %v6896_v29  ;;  %5457 = vmatprep.subr.bf16.mxu0 %v6901_v49  ;;  %v6941_v29 = vld [vmem:[%s9373_s7 + $0xac0] ss:$24 sps:$4 sm:$0xff]   ;;  %v6946_v49 = vld [vmem:[%s9373_s7 + $0xa94] ss:$24 sps:$4 sm:$0xff]  }
 0x40e   :  { %5404 = vmatmul.mubr.bf16.vlgmr.msra.gmra.mxu0 %v8344_v18  ;;  %v5147_v0 = vpop.f32.mrf.mxu0  ;;  %v6907_v18 = vld [vmem:[%s9373_s7 + $0xa04] ss:$24 sps:$4 sm:$0xff]   ;;  %v5190_v28 = vpop.f32.mrf.mxu1 }
 0x40f   :  { %5447 = vmatmul.mubr.bf16.vlgmr.msra.gmra.mxu1 %v8523_v48  ;;  %v5148_v3 = vadd.f32 %v5147_v0, %v5105_v62  ;;  %5458 = vmatpush1.bf16.msra.mxu0 %v6899_v52  ;;  %v5191_v63 = vadd.f32 %v5190_v28, %v3045_v57 }
 0x410   :  { %5489 = vmatprep.mubr.bf16.mxu0 %v8625_v55  ;;  %v5149_v8 = vpop.f32.mrf.mxu0  ;;  %5459 = vmatprep.subr.bf16.mxu0 %v6904_v59  ;;  %v5192_v51 = vpop.f32.mrf.mxu1 }
 0x411   :  { %6947 = vtanh.f32 %v5148_v3  ;;  %v5150_v12 = vadd.f32 %v5149_v8, %v5107_v2  ;;  %v5193_v1 = vadd.f32 %v5192_v51, %v3049_v61 }
 0x412   :  { %v5151_v48 = vpop.f32.mrf.mxu0  ;;  %v5194_v52 = vpop.f32.mrf.mxu1 }
 0x413   :  { %6949 = vtanh.f32 %v5150_v12  ;;  %v5152_v15 = vadd.f32 %v5151_v48, %v5109_v11  ;;  %5460 = vmatpush1.bf16.msra.mxu0 %v6902_v4  ;;  %v5195_v4 = vadd.f32 %v5194_v52, %v3045_v57 }
 0x414   :  { %v5153_v55 = vpop.f32.mrf.mxu0  ;;  %5461 = vmatprep.subr.bf16.mxu0 %v6907_v18  ;;  %v5196_v59 = vpop.f32.mrf.mxu1 }
 0x415   :  { %6951 = vtanh.f32 %v5152_v15  ;;  %v5154_v20 = vadd.f32 %v5153_v55, %v5111_v14  ;;  %v5197_v8 = vadd.f32 %v5196_v59, %v3049_v61 }
 0x417   :  { %6953 = vtanh.f32 %v5154_v20  ;;  %5462 = vmatpush1.bf16.msra.mxu0 %v6905_v19 }
 0x418   :  { %5463 = vmatprep.subr.bf16.mxu0 %v6910_v24 }
 0x41b   :  { %5464 = vmatpush1.bf16.msra.mxu0 %v6908_v26 }
 0x41c   :  { %5465 = vmatprep.subr.bf16.mxu0 %v6913_v25 }
 0x41e   :  { %v6948_v30 = vpop.eup %6947 }
 0x41f   :  { %5512 = vst [vmem:[%s9376_s9] sm:$0xff] %v6948_v30  ;;  %5466 = vmatpush1.bf16.msra.mxu0 %v6911_v47 }
 0x420   :  { %v6950_v32 = vpop.eup %6949  ;;  %5467 = vmatprep.subr.bf16.mxu0 %v6916_v21 }
 0x421   :  { %5513 = vst [vmem:[%s9376_s9 + $0x8] sm:$0xff] %v6950_v32 }
 0x422   :  { %v6952_v22 = vpop.eup %6951 }
 0x423   :  { %5518 = vst [vmem:[%s9376_s9 + $0x30] sm:$0xff] %v6952_v22  ;;  %5468 = vmatpush1.bf16.msra.mxu0 %v6914_v31 }
 0x424   :  { %v6954_v35 = vpop.eup %6953  ;;  %5469 = vmatprep.subr.bf16.mxu0 %v6919_v33 }
 0x425   :  { %5519 = vst [vmem:[%s9376_s9 + $0x38] sm:$0xff] %v6954_v35 }
 0x427   :  { %5470 = vmatpush1.bf16.msra.mxu0 %v6917_v34 }
 0x428   :  { %5471 = vmatprep.subr.bf16.mxu0 %v6922_v36  ;;  %v3053_v36 = vrot.slane %v9197_v43, %v978_v7 }
 0x42b   :  { %5472 = vmatpush1.bf16.msra.mxu0 %v6920_v16 }
 0x42c   :  { %5473 = vmatprep.subr.bf16.mxu0 %v6925_v10 }
 0x42f   :  { %5474 = vmatpush2.bf16.msra.mxu0 %v6923_v13  ;;  %v3057_v13 = vrot.slane %v9197_v43, %v982_v6 }
 0x430   :  { %5475 = vmatprep.subr.bf16.mxu0 %v6928_v37 }
 0x433   :  { %5476 = vmatpush2.bf16.msra.mxu0 %v6926_v45 }
 0x434   :  { %5477 = vmatprep.subr.bf16.mxu0 %v6931_v23 }
 0x437   :  { %5478 = vmatpush2.bf16.msra.mxu0 %v6929_v38 }
 0x438   :  { %5479 = vmatprep.subr.bf16.mxu0 %v6934_v39 }
 0x43b   :  { %5480 = vmatpush2.bf16.msra.mxu0 %v6932_v40 }
 0x43c   :  { %5481 = vmatprep.subr.bf16.mxu0 %v6937_v17 }
 0x43f   :  { %5482 = vmatpush2.bf16.msra.mxu0 %v6935_v41 }
 0x440   :  { %5483 = vmatprep.subr.bf16.mxu0 %v6940_v42 }
 0x443   :  { %5484 = vmatpush2.bf16.msra.mxu0 %v6938_v44 }
 0x444   :  { %5485 = vmatprep.subr.bf16.mxu0 %v6943_v46 }
 0x447   :  { %5486 = vmatpush2.bf16.msra.mxu0 %v6941_v29 }
 0x448   :  { %5487 = vmatprep.subr.bf16.mxu0 %v6946_v49 }
 0x44b   :  { %5488 = vmatpush2.bf16.msra.mxu0 %v6944_v50 }
 0x44e   :  { %5490 = vmatmul.mubr.bf16.vlgmr.msra.gmra.mxu0 %v8633_v58  ;;  %v5233_v56 = vpop.f32.mrf.mxu0  ;;  %v5276_v62 = vpop.f32.mrf.mxu1 }
 0x44f   :  { %v5234_v2 = vadd.f32 %v5233_v56, %v5191_v63 }
 0x450   :  { %v5235_v60 = vpop.f32.mrf.mxu0  ;;  %v5278_v3 = vpop.f32.mrf.mxu1 }
 0x451   :  { %v5236_v58 = vadd.f32 %v5235_v60, %v5193_v1  ;;  %v5277_v18 = vadd.f32 %v5276_v62, %v5234_v2 }
 0x452   :  { %v5237_v0 = vpop.f32.mrf.mxu0  ;;  %v5280_v11 = vpop.f32.mrf.mxu1 }
 0x453   :  { %v5238_v9 = vadd.f32 %v5237_v0, %v5195_v4  ;;  %v5279_v54 = vadd.f32 %v5278_v3, %v5236_v58 }
 0x454   :  { %v5239_v5 = vpop.f32.mrf.mxu0  ;;  %v5282_v55 = vpop.f32.mrf.mxu1 }
 0x455   :  { %v5240_v48 = vadd.f32 %v5239_v5, %v5197_v8  ;;  %v5281_v19 = vadd.f32 %v5280_v11, %v5238_v9 }
 0x457   :  { %v5283_v20 = vadd.f32 %v5282_v55, %v5240_v48 }
 0x48e   :  { %v5319_v12 = vpop.f32.mrf.mxu0 }
 0x48f   :  { %v5320_v14 = vadd.f32 %v5319_v12, %v5277_v18  ;;  %v5362_v33 = vpop.f32.mrf.mxu1 }
 0x490   :  { %v5321_v15 = vpop.f32.mrf.mxu0  ;;  %v5363_v45 = vadd.f32 %v5362_v33, %v3053_v36 }
 0x491   :  { %6955 = vtanh.f32 %v5320_v14  ;;  %v5322_v53 = vadd.f32 %v5321_v15, %v5279_v54  ;;  %v5364_v22 = vpop.f32.mrf.mxu1 }
 0x492   :  { %v5323_v24 = vpop.f32.mrf.mxu0  ;;  %v5365_v38 = vadd.f32 %v5364_v22, %v3057_v13 }
 0x493   :  { %6957 = vtanh.f32 %v5322_v53  ;;  %v5324_v26 = vadd.f32 %v5323_v24, %v5281_v19  ;;  %v5366_v34 = vpop.f32.mrf.mxu1 }
 0x494   :  { %v5325_v25 = vpop.f32.mrf.mxu0  ;;  %v5367_v17 = vadd.f32 %v5366_v34, %v3053_v36 }
 0x495   :  { %6959 = vtanh.f32 %v5324_v26  ;;  %v5326_v47 = vadd.f32 %v5325_v25, %v5283_v20  ;;  %v5368_v16 = vpop.f32.mrf.mxu1 }
 0x496   :  { %v5369_v44 = vadd.f32 %v5368_v16, %v3057_v13 }
 0x497   :  { %6961 = vtanh.f32 %v5326_v47 }
 0x49e   :  { %v6956_v21 = vpop.eup %6955 }
 0x49f   :  { %5514 = vst [vmem:[%s9376_s9 + $0x10] sm:$0xff] %v6956_v21 }
 0x4a0   :  { %v6958_v30 = vpop.eup %6957 }
 0x4a1   :  { %5515 = vst [vmem:[%s9376_s9 + $0x18] sm:$0xff] %v6958_v30 }
 0x4a2   :  { %v6960_v31 = vpop.eup %6959 }
 0x4a3   :  { %5520 = vst [vmem:[%s9376_s9 + $0x40] sm:$0xff] %v6960_v31 }
 0x4a4   :  { %v6962_v32 = vpop.eup %6961 }
 0x4a5   :  { %5521 = vst [vmem:[%s9376_s9 + $0x48] sm:$0xff] %v6962_v32 }
 0x4ce   :  { %v5405_v35 = vpop.f32.mrf.mxu0 }
 0x4cf   :  { %v5448_v37 = vpop.f32.mrf.mxu1  ;;  %v5406_v39 = vadd.f32 %v5405_v35, %v5363_v45 }
 0x4d0   :  { %v5407_v10 = vpop.f32.mrf.mxu0 }
 0x4d1   :  { %v5450_v40 = vpop.f32.mrf.mxu1  ;;  %v5408_v41 = vadd.f32 %v5407_v10, %v5365_v38  ;;  %v5449_v46 = vadd.f32 %v5448_v37, %v5406_v39 }
 0x4d2   :  { %v5409_v23 = vpop.f32.mrf.mxu0 }
 0x4d3   :  { %v5410_v29 = vadd.f32 %v5409_v23, %v5367_v17  ;;  %v5452_v49 = vpop.f32.mrf.mxu1  ;;  %v5451_v50 = vadd.f32 %v5450_v40, %v5408_v41 }
 0x4d4   :  { %v5411_v42 = vpop.f32.mrf.mxu0 }
 0x4d5   :  { %v5412_v28 = vadd.f32 %v5411_v42, %v5369_v44  ;;  %v5453_v52 = vadd.f32 %v5452_v49, %v5410_v29  ;;  %v5454_v43 = vpop.f32.mrf.mxu1 }
 0x4d7   :  { %v5455_v57 = vadd.f32 %v5454_v43, %v5412_v28 }
 0x50e   :  { %v5491_v7 = vpop.f32.mrf.mxu0 }
 0x50f   :  { %v5492_v51 = vadd.f32 %v5491_v7, %v5449_v46 }
 0x510   :  { %v5493_v27 = vpop.f32.mrf.mxu0 }
 0x511   :  { %6963 = vtanh.f32 %v5492_v51  ;;  %v5494_v6 = vadd.f32 %v5493_v27, %v5451_v50 }
 0x512   :  { %v5495_v56 = vpop.f32.mrf.mxu0 }
 0x513   :  { %6965 = vtanh.f32 %v5494_v6  ;;  %v5496_v59 = vadd.f32 %v5495_v56, %v5453_v52 }
 0x514   :  { %v5497_v60 = vpop.f32.mrf.mxu0 }
 0x515   :  { %6967 = vtanh.f32 %v5496_v59  ;;  %v5498_v61 = vadd.f32 %v5497_v60, %v5455_v57 }
 0x517   :  { %6969 = vtanh.f32 %v5498_v61 }
 0x51e   :  { %v6964_v62 = vpop.eup %6963 }
 0x51f   :  { %5516 = vst [vmem:[%s9376_s9 + $0x20] sm:$0xff] %v6964_v62 }
 0x520   :  { %v6966_v63 = vpop.eup %6965 }
 0x521   :  { %5517 = vst [vmem:[%s9376_s9 + $0x28] sm:$0xff] %v6966_v63 }
 0x522   :  { %v6968_v0 = vpop.eup %6967 }
 0x523   :  { %5522 = vst [vmem:[%s9376_s9 + $0x50] sm:$0xff] %v6968_v0 }
 0x524   :  { %v6970_v1 = vpop.eup %6969 }
 0x525   :  { %5523 = vst [vmem:[%s9376_s9 + $0x58] sm:$0xff] %v6970_v1 }

</bundles_post_ra>
